<compile_context>
chip_gen: v7x
topology: tpu7x:2x2x1
jax: 0.10.0
libtpu: 0.0.40
codegen_flags: <defaults>
</compile_context>

<pallas_src>
import functools

import numpy as np
import jax
import jax.numpy as jnp
from jax.experimental import pallas as pl
from jax.experimental.pallas import tpu as pltpu


# ----------------------------------------------------------------------------
# Pallas kernel: one LSTM layer, both directions via grid=(2,).
# Each grid step handles one direction; its input sequence is already in
# processing order (backward direction pre-reversed by the wrapper).
# ----------------------------------------------------------------------------
def _bilstm_dir_kernel(x_ref, lo_ref, hi_ref, wih_ref, whh_ref, b_ref,
                       y_ref, gx_ref, *, T, B, H):
    """x_ref:  (T*B, Dp)  f32   sequence (processing order) for this direction
       lo_ref: (B, 1)     i32   first valid processing step (inclusive)
       hi_ref: (B, 1)     i32   last  valid processing step (exclusive)
       wih_ref:(Dp, 4H)   bf16  input weights (transposed, zero-padded K)
       whh_ref:(H, 4H)    bf16  recurrent weights (transposed)
       b_ref:  (1, 4H)    f32   b_ih + b_hh
       y_ref:  (T, B, H)  f32   hidden states in processing order
       gx_ref: (T*B, 4H)  f32   VMEM scratch for the hoisted input projection
    """
    # ---- hoisted input projection: ONE MXU call for all T timesteps --------
    gx_ref[...] = (
        jnp.dot(x_ref[...].astype(jnp.bfloat16), wih_ref[...],
                preferred_element_type=jnp.float32)
        + b_ref[...]
    )

    lo = lo_ref[...]            # (B, 1) int32
    hi = hi_ref[...]            # (B, 1) int32
    whh = whh_ref[...]          # (H, 4H) bf16, loop-invariant

    h = jnp.zeros((B, H), jnp.float32)
    c = jnp.zeros((B, H), jnp.float32)

    # ---- fully unrolled recurrence (T is small & static) -------------------
    for i in range(T):
        gates = gx_ref[i * B:(i + 1) * B, :] + jnp.dot(
            h.astype(jnp.bfloat16), whh, preferred_element_type=jnp.float32)
        # torch gate order: i, f, g, o ; slices are 128-lane aligned (H>=128)
        i_g = jax.nn.sigmoid(gates[:, 0:H])
        f_g = jax.nn.sigmoid(gates[:, H:2 * H])
        g_g = jnp.tanh(gates[:, 2 * H:3 * H])
        o_g = jax.nn.sigmoid(gates[:, 3 * H:4 * H])
        c_new = f_g * c + i_g * g_g
        h_new = o_g * jnp.tanh(c_new)

        valid = (i >= lo) & (i < hi)                 # (B, 1) bool
        # padded positions: output zero (pad_packed_sequence), state frozen
        y_ref[i] = jnp.where(valid, h_new, 0.0)
        h = jnp.where(valid, h_new, h)
        c = jnp.where(valid, c_new, c)


# ----------------------------------------------------------------------------
# Shared input prep for kernel and reference.
# ----------------------------------------------------------------------------
def _prep_layer(x_tbd, lengths, w_ih, w_hh, bias):
    """x_tbd (T,B,Din) f32; w_ih (2,4H,Din); w_hh (2,4H,H); bias (2,4H)."""
    T, B, Din = x_tbd.shape
    fourH = w_ih.shape[1]
    H = fourH // 4
    Dp = ((Din + 127) // 128) * 128            # pad K to a multiple of 128

    x_fwd = x_tbd
    x_bwd = x_tbd[::-1]                        # time-reversed for backward dir
    x2 = jnp.stack([x_fwd.reshape(T * B, Din),
                    x_bwd.reshape(T * B, Din)], axis=0)        # (2, T*B, Din)
    if Dp != Din:
        x2 = jnp.pad(x2, ((0, 0), (0, 0), (0, Dp - Din)))

    wih_t = jnp.swapaxes(w_ih, 1, 2)                           # (2, Din, 4H)
    if Dp != Din:
        wih_t = jnp.pad(wih_t, ((0, 0), (0, Dp - Din), (0, 0)))
    wih_t = wih_t.astype(jnp.bfloat16)
    whh_t = jnp.swapaxes(w_hh, 1, 2).astype(jnp.bfloat16)      # (2, H, 4H)
    b = bias.reshape(2, 1, fourH).astype(jnp.float32)

    lengths = lengths.astype(jnp.int32)
    # forward dir: valid processing steps [0, len); backward dir (reversed
    # input): valid steps [T - len, T)  (state stays zero during the padding
    # that now sits at the front, matching packed-sequence semantics).
    lo = jnp.stack([jnp.zeros_like(lengths), T - lengths], axis=0)[..., None]
    hi = jnp.stack([lengths, jnp.full_like(lengths, T)], axis=0)[..., None]
    return x2, lo, hi, wih_t, whh_t, b, (T, B, Dp, H)


# ----------------------------------------------------------------------------
# One bidirectional layer via a single pallas_call (grid over direction).
# ----------------------------------------------------------------------------
def bilstm_layer_pallas(x_tbd, lengths, w_ih, w_hh, bias):
    x2, lo, hi, wih_t, whh_t, b, (T, B, Dp, H) = _prep_layer(
        x_tbd, lengths, w_ih, w_hh, bias)
    fourH = 4 * H

    kernel = functools.partial(_bilstm_dir_kernel, T=T, B=B, H=H)
    y = pl.pallas_call(
        kernel,
        out_shape=jax.ShapeDtypeStruct((2, T, B, H), jnp.float32),
        grid=(2,),
        in_specs=[
            pl.BlockSpec((None, T * B, Dp), lambda d: (d, 0, 0)),
            pl.BlockSpec((None, B, 1), lambda d: (d, 0, 0)),
            pl.BlockSpec((None, B, 1), lambda d: (d, 0, 0)),
            pl.BlockSpec((None, Dp, fourH), lambda d: (d, 0, 0)),
            pl.BlockSpec((None, H, fourH), lambda d: (d, 0, 0)),
            pl.BlockSpec((None, 1, fourH), lambda d: (d, 0, 0)),
        ],
        out_specs=pl.BlockSpec((None, T, B, H), lambda d: (d, 0, 0, 0)),
        scratch_shapes=[pltpu.VMEM((T * B, fourH), jnp.float32)],
        compiler_params=pltpu.CompilerParams(
            dimension_semantics=("parallel",)),
    )(x2, lo, hi, wih_t, whh_t, b)

    # y[0]: forward hidden in time order; y[1]: backward hidden in reversed
    # processing order -> un-reverse (cheap wrapper-side layout plumbing).
    return jnp.concatenate([y[0], y[1][::-1]], axis=-1)       # (T, B, 2H)


# ----------------------------------------------------------------------------
# Pure-JAX reference with identical math (used only to verify the kernel).
# ----------------------------------------------------------------------------
def bilstm_layer_ref(x_tbd, lengths, w_ih, w_hh, bias):
    x2, lo, hi, wih_t, whh_t, b, (T, B, Dp, H) = _prep_layer(
        x_tbd, lengths, w_ih, w_hh, bias)
    outs = []
    for d in range(2):
        gx = jnp.dot(x2[d].astype(jnp.bfloat16), wih_t[d],
                     preferred_element_type=jnp.float32) + b[d]
        h = jnp.zeros((B, H), jnp.float32)
        c = jnp.zeros((B, H), jnp.float32)
        ys = []
        for i in range(T):
            gates = gx[i * B:(i + 1) * B, :] + jnp.dot(
                h.astype(jnp.bfloat16), whh_t[d],
                preferred_element_type=jnp.float32)
            i_g = jax.nn.sigmoid(gates[:, 0:H])
            f_g = jax.nn.sigmoid(gates[:, H:2 * H])
            g_g = jnp.tanh(gates[:, 2 * H:3 * H])
            o_g = jax.nn.sigmoid(gates[:, 3 * H:4 * H])
            c_new = f_g * c + i_g * g_g
            h_new = o_g * jnp.tanh(c_new)
            valid = (i >= lo[d]) & (i < hi[d])
            ys.append(jnp.where(valid, h_new, 0.0))
            h = jnp.where(valid, h_new, h)
            c = jnp.where(valid, c_new, c)
        outs.append(jnp.stack(ys, axis=0))
    return jnp.concatenate([outs[0], outs[1][::-1]], axis=-1)


# ----------------------------------------------------------------------------
# QueryEncoder equivalent.
# ----------------------------------------------------------------------------
class QueryEncoderPallas:
    def __init__(self, max_query_length=13, lstm_hidden_size=256, input_size=300,
                 key=jax.random.PRNGKey(0)):
        self.max_query_length = max_query_length
        self.H = lstm_hidden_size
        self.input_size = input_size
        scale = 1.0 / np.sqrt(lstm_hidden_size)
        fourH = 4 * lstm_hidden_size
        params = []
        for layer in range(2):
            in_size = input_size if layer == 0 else 2 * lstm_hidden_size
            key, k1, k2, k3, k4 = jax.random.split(key, 5)
            # weights stacked over direction: (2, 4H, in), (2, 4H, H), (2, 4H)
            params.append(dict(
                w_ih=jax.random.uniform(k1, (2, fourH, in_size),
                                        jnp.float32, -scale, scale),
                w_hh=jax.random.uniform(k2, (2, fourH, lstm_hidden_size),
                                        jnp.float32, -scale, scale),
                bias=(jax.random.uniform(k3, (2, fourH), jnp.float32, -scale, scale)
                      + jax.random.uniform(k4, (2, fourH), jnp.float32, -scale, scale)),
            ))
        self.params = params

    def _forward(self, query_features, query_mask, layer_fn):
        # query_features: (B, T, input_size), query_mask: (B, T) {0,1}
        lengths = query_mask.sum(axis=1).astype(jnp.int32)                 # (B,)
        x = jnp.transpose(query_features, (1, 0, 2)).astype(jnp.float32)   # (T,B,D)

        layer_in = x
        for layer in range(2):
            p = self.params[layer]
            layer_in = layer_fn(layer_in, lengths, p["w_ih"], p["w_hh"], p["bias"])

        fw = jnp.transpose(layer_in, (1, 0, 2))                            # (B,T,2H)
        Bsz = fw.shape[0]
        H2 = fw.shape[2] // 2
        idx = lengths - 1                       # assumes >=1 valid token (as in torch)
        fLSTM = fw[jnp.arange(Bsz), idx][:, :H2]   # forward hidden at last valid step
        bLSTM = fw[:, 0, H2:]                      # backward hidden at t=0
        fs = jnp.concatenate([fLSTM, bLSTM], axis=1)                       # (B, 2H)
        return fs, fw

    def __call__(self, query_features, query_mask):
        return self._forward(query_features, query_mask, bilstm_layer_pallas)

    def reference(self, query_features, query_mask):
        return self._forward(query_features, query_mask, bilstm_layer_ref)


if __name__ == "__main__":
    root = jax.random.PRNGKey(0)
    k_params, k_feat = jax.random.split(root, 2)

    B = 2
    T = 13            # max_query_length
    DIN = 300         # nn.LSTM input_size=300
    H = 128           # small lstm_hidden_size for the demo (lane-aligned)

    enc = QueryEncoderPallas(max_query_length=T, lstm_hidden_size=H,
                             input_size=DIN, key=k_params)

    query_features = jax.random.normal(k_feat, (B, T, DIN), jnp.float32)
    lengths = jnp.array([13, 7], jnp.int32)
    query_mask = (jnp.arange(T)[None, :] < lengths[:, None]).astype(jnp.float32)

    fwd = jax.jit(enc.__call__)
    fs, fw = fwd(query_features, query_mask)
    fs = jax.block_until_ready(fs)
    fw = jax.block_until_ready(fw)

    assert fs.shape == (B, 2 * H), fs.shape
    assert fw.shape == (B, T, 2 * H), fw.shape

    # Verify the Pallas kernel against the pure-JAX reference (same precision
    # strategy: bf16 matmul operands, f32 accumulation & gate math).
    fs_ref, fw_ref = jax.jit(enc.reference)(query_features, query_mask)
    np.testing.assert_allclose(np.asarray(fs), np.asarray(fs_ref), rtol=2e-3, atol=2e-3)
    np.testing.assert_allclose(np.asarray(fw), np.asarray(fw_ref), rtol=2e-3, atol=2e-3)

    print("KERNEL_OK")
</pallas_src>

<mosaic_0001>
module attributes {stable_mosaic.version = 11 : i64} {
  func.func @_bilstm_dir_kernel(%arg0: i32, %arg1: memref<1x26x384xf32, #tpu.memory_space<vmem>>, %arg2: memref<1x2x1xi32, #tpu.memory_space<vmem>>, %arg3: memref<1x2x1xi32, #tpu.memory_space<vmem>>, %arg4: memref<1x384x512xbf16, #tpu.memory_space<vmem>>, %arg5: memref<1x128x512xbf16, #tpu.memory_space<vmem>>, %arg6: memref<1x1x512xf32, #tpu.memory_space<vmem>>, %arg7: memref<1x13x2x128xf32, #tpu.memory_space<vmem>>, %arg8: memref<26x512xf32, #tpu.memory_space<vmem>>) attributes {dimension_semantics = [#tpu.dimension_semantics<parallel>], iteration_bounds = array<i64: 2>, scalar_prefetch = 0 : i64, scratch_operands = 1 : i64, tpu.core_type = #tpu.core_type<tc>, window_params = [{transform_indices = @transform_0, window_bounds = array<i64: 1, 26, 384>}, {transform_indices = @transform_1, window_bounds = array<i64: 1, 2, 1>}, {transform_indices = @transform_2, window_bounds = array<i64: 1, 2, 1>}, {transform_indices = @transform_3, window_bounds = array<i64: 1, 384, 512>}, {transform_indices = @transform_4, window_bounds = array<i64: 1, 128, 512>}, {transform_indices = @transform_5, window_bounds = array<i64: 1, 1, 512>}, {transform_indices = @transform_6, window_bounds = array<i64: 1, 13, 2, 128>}]} {
    %c0 = arith.constant 0 : index
    %c0_0 = arith.constant 0 : index
    %c0_1 = arith.constant 0 : index
    %0 = vector.load %arg1[%c0, %c0_0, %c0_1] : memref<1x26x384xf32, #tpu.memory_space<vmem>>, vector<1x26x384xf32>
    %1 = vector.shape_cast %0 : vector<1x26x384xf32> to vector<26x384xf32>
    %2 = arith.truncf %1 : vector<26x384xf32> to vector<26x384xbf16>
    %c0_2 = arith.constant 0 : index
    %c0_3 = arith.constant 0 : index
    %c0_4 = arith.constant 0 : index
    %3 = vector.load %arg4[%c0_2, %c0_3, %c0_4] : memref<1x384x512xbf16, #tpu.memory_space<vmem>>, vector<1x384x512xbf16>
    %4 = vector.shape_cast %3 : vector<1x384x512xbf16> to vector<384x512xbf16>
    %cst = arith.constant dense<0.000000e+00> : vector<26x512xf32>
    %5 = tpu.matmul %2, %4, %cst {dimension_numbers = #tpu.dot_dimension_numbers<[1], [0], [0], [1], [0, 0, 1, 1], [], []>} : vector<26x384xbf16>, vector<384x512xbf16>, vector<26x512xf32> -> vector<26x512xf32>
    %c0_5 = arith.constant 0 : index
    %c0_6 = arith.constant 0 : index
    %c0_7 = arith.constant 0 : index
    %6 = vector.load %arg6[%c0_5, %c0_6, %c0_7] : memref<1x1x512xf32, #tpu.memory_space<vmem>>, vector<1x1x512xf32>
    %7 = vector.shape_cast %6 : vector<1x1x512xf32> to vector<1x512xf32>
    %8 = vector.broadcast %7 : vector<1x512xf32> to vector<26x512xf32>
    %9 = arith.addf %5, %8 : vector<26x512xf32>
    %c0_8 = arith.constant 0 : index
    %c0_9 = arith.constant 0 : index
    %10 = vector.load %arg8[%c0_8, %c0_9] : memref<26x512xf32, #tpu.memory_space<vmem>>, vector<26x512xf32>
    tpu.vector_store %arg8[%c0_8, %c0_9], %9 {strides = array<i32>} : memref<26x512xf32, #tpu.memory_space<vmem>>, vector<26x512xf32>,
    %c0_10 = arith.constant 0 : index
    %c0_11 = arith.constant 0 : index
    %c0_12 = arith.constant 0 : index
    %11 = vector.load %arg2[%c0_10, %c0_11, %c0_12] : memref<1x2x1xi32, #tpu.memory_space<vmem>>, vector<1x2x1xi32>
    %12 = vector.shape_cast %11 : vector<1x2x1xi32> to vector<2x1xi32>
    %c0_13 = arith.constant 0 : index
    %c0_14 = arith.constant 0 : index
    %c0_15 = arith.constant 0 : index
    %13 = vector.load %arg3[%c0_13, %c0_14, %c0_15] : memref<1x2x1xi32, #tpu.memory_space<vmem>>, vector<1x2x1xi32>
    %14 = vector.shape_cast %13 : vector<1x2x1xi32> to vector<2x1xi32>
    %c0_16 = arith.constant 0 : index
    %c0_17 = arith.constant 0 : index
    %c0_18 = arith.constant 0 : index
    %15 = vector.load %arg5[%c0_16, %c0_17, %c0_18] : memref<1x128x512xbf16, #tpu.memory_space<vmem>>, vector<1x128x512xbf16>
    %16 = vector.shape_cast %15 : vector<1x128x512xbf16> to vector<128x512xbf16>
    %cst_19 = arith.constant 0.000000e+00 : f32
    %17 = vector.broadcast %cst_19 : f32 to vector<2x128xf32>
    %cst_20 = arith.constant 0.000000e+00 : f32
    %18 = vector.broadcast %cst_20 : f32 to vector<2x128xf32>
    %c0_21 = arith.constant 0 : index
    %c0_22 = arith.constant 0 : index
    %19 = vector.load %arg8[%c0_21, %c0_22] : memref<26x512xf32, #tpu.memory_space<vmem>>, vector<2x512xf32>
    %20 = arith.truncf %17 : vector<2x128xf32> to vector<2x128xbf16>
    %cst_23 = arith.constant dense<0.000000e+00> : vector<2x512xf32>
    %21 = tpu.matmul %20, %16, %cst_23 {dimension_numbers = #tpu.dot_dimension_numbers<[1], [0], [0], [1], [0, 0, 1, 1], [], []>} : vector<2x128xbf16>, vector<128x512xbf16>, vector<2x512xf32> -> vector<2x512xf32>
    %22 = arith.addf %19, %21 : vector<2x512xf32>
    %23 = vector.extract_strided_slice %22 {offsets = [0, 0], sizes = [2, 128], strides = [1, 1]} : vector<2x512xf32> to vector<2x128xf32>
    %24 = arith.negf %23 : vector<2x128xf32>
    %25 = math.exp %24 : vector<2x128xf32>
    %cst_24 = arith.constant 1.000000e+00 : f32
    %26 = vector.broadcast %cst_24 : f32 to vector<2x128xf32>
    %27 = arith.addf %26, %25 : vector<2x128xf32>
    %28 = arith.divf %26, %27 : vector<2x128xf32>
    %29 = vector.extract_strided_slice %22 {offsets = [0, 128], sizes = [2, 128], strides = [1, 1]} : vector<2x512xf32> to vector<2x128xf32>
    %30 = arith.negf %29 : vector<2x128xf32>
    %31 = math.exp %30 : vector<2x128xf32>
    %cst_25 = arith.constant 1.000000e+00 : f32
    %32 = vector.broadcast %cst_25 : f32 to vector<2x128xf32>
    %33 = arith.addf %32, %31 : vector<2x128xf32>
    %34 = arith.divf %32, %33 : vector<2x128xf32>
    %35 = vector.extract_strided_slice %22 {offsets = [0, 256], sizes = [2, 128], strides = [1, 1]} : vector<2x512xf32> to vector<2x128xf32>
    %36 = math.tanh %35 : vector<2x128xf32>
    %37 = vector.extract_strided_slice %22 {offsets = [0, 384], sizes = [2, 128], strides = [1, 1]} : vector<2x512xf32> to vector<2x128xf32>
    %38 = arith.negf %37 : vector<2x128xf32>
    %39 = math.exp %38 : vector<2x128xf32>
    %cst_26 = arith.constant 1.000000e+00 : f32
    %40 = vector.broadcast %cst_26 : f32 to vector<2x128xf32>
    %41 = arith.addf %40, %39 : vector<2x128xf32>
    %42 = arith.divf %40, %41 : vector<2x128xf32>
    %43 = arith.mulf %34, %18 : vector<2x128xf32>
    %44 = arith.mulf %28, %36 : vector<2x128xf32>
    %45 = arith.addf %43, %44 : vector<2x128xf32>
    %46 = math.tanh %45 : vector<2x128xf32>
    %47 = arith.mulf %42, %46 : vector<2x128xf32>
    %c0_i32 = arith.constant 0 : i32
    %48 = vector.broadcast %c0_i32 : i32 to vector<2x1xi32>
    %49 = arith.cmpi sle, %12, %48 : vector<2x1xi32>
    %c0_i32_27 = arith.constant 0 : i32
    %50 = vector.broadcast %c0_i32_27 : i32 to vector<2x1xi32>
    %51 = arith.cmpi sgt, %14, %50 : vector<2x1xi32>
    %52 = arith.andi %49, %51 : vector<2x1xi1>
    %cst_28 = arith.constant 0.000000e+00 : f32
    %53 = vector.shape_cast %52 : vector<2x1xi1> to vector<2x1xi1>
    %54 = vector.broadcast %53 : vector<2x1xi1> to vector<2x128xi1>
    %55 = vector.broadcast %cst_28 : f32 to vector<2x128xf32>
    %56 = arith.select %54, %47, %55 : vector<2x128xi1>, vector<2x128xf32>
    %c0_29 = arith.constant 0 : index
    %c0_30 = arith.constant 0 : index
    %c0_31 = arith.constant 0 : index
    %c0_32 = arith.constant 0 : index
    %57 = vector.load %arg7[%c0_29, %c0_30, %c0_31, %c0_32] : memref<1x13x2x128xf32, #tpu.memory_space<vmem>>, vector<1x1x2x128xf32>
    %58 = vector.shape_cast %57 : vector<1x1x2x128xf32> to vector<2x128xf32>
    %59 = vector.shape_cast %56 : vector<2x128xf32> to vector<1x1x2x128xf32>
    tpu.vector_store %arg7[%c0_29, %c0_30, %c0_31, %c0_32], %59 {strides = array<i32>} : memref<1x13x2x128xf32, #tpu.memory_space<vmem>>, vector<1x1x2x128xf32>,
    %60 = vector.shape_cast %52 : vector<2x1xi1> to vector<2x1xi1>
    %61 = vector.broadcast %60 : vector<2x1xi1> to vector<2x128xi1>
    %62 = arith.select %61, %47, %17 : vector<2x128xi1>, vector<2x128xf32>
    %63 = vector.shape_cast %52 : vector<2x1xi1> to vector<2x1xi1>
    %64 = vector.broadcast %63 : vector<2x1xi1> to vector<2x128xi1>
    %65 = arith.select %64, %45, %18 : vector<2x128xi1>, vector<2x128xf32>
    %c2 = arith.constant 2 : index
    %c0_33 = arith.constant 0 : index
    %66 = vector.load %arg8[%c2, %c0_33] : memref<26x512xf32, #tpu.memory_space<vmem>>, vector<2x512xf32>
    %67 = arith.truncf %62 : vector<2x128xf32> to vector<2x128xbf16>
    %cst_34 = arith.constant dense<0.000000e+00> : vector<2x512xf32>
    %68 = tpu.matmul %67, %16, %cst_34 {dimension_numbers = #tpu.dot_dimension_numbers<[1], [0], [0], [1], [0, 0, 1, 1], [], []>} : vector<2x128xbf16>, vector<128x512xbf16>, vector<2x512xf32> -> vector<2x512xf32>
    %69 = arith.addf %66, %68 : vector<2x512xf32>
    %70 = vector.extract_strided_slice %69 {offsets = [0, 0], sizes = [2, 128], strides = [1, 1]} : vector<2x512xf32> to vector<2x128xf32>
    %71 = arith.negf %70 : vector<2x128xf32>
    %72 = math.exp %71 : vector<2x128xf32>
    %cst_35 = arith.constant 1.000000e+00 : f32
    %73 = vector.broadcast %cst_35 : f32 to vector<2x128xf32>
    %74 = arith.addf %73, %72 : vector<2x128xf32>
    %75 = arith.divf %73, %74 : vector<2x128xf32>
    %76 = vector.extract_strided_slice %69 {offsets = [0, 128], sizes = [2, 128], strides = [1, 1]} : vector<2x512xf32> to vector<2x128xf32>
    %77 = arith.negf %76 : vector<2x128xf32>
    %78 = math.exp %77 : vector<2x128xf32>
    %cst_36 = arith.constant 1.000000e+00 : f32
    %79 = vector.broadcast %cst_36 : f32 to vector<2x128xf32>
    %80 = arith.addf %79, %78 : vector<2x128xf32>
    %81 = arith.divf %79, %80 : vector<2x128xf32>
    %82 = vector.extract_strided_slice %69 {offsets = [0, 256], sizes = [2, 128], strides = [1, 1]} : vector<2x512xf32> to vector<2x128xf32>
    %83 = math.tanh %82 : vector<2x128xf32>
    %84 = vector.extract_strided_slice %69 {offsets = [0, 384], sizes = [2, 128], strides = [1, 1]} : vector<2x512xf32> to vector<2x128xf32>
    %85 = arith.negf %84 : vector<2x128xf32>
    %86 = math.exp %85 : vector<2x128xf32>
    %cst_37 = arith.constant 1.000000e+00 : f32
    %87 = vector.broadcast %cst_37 : f32 to vector<2x128xf32>
    %88 = arith.addf %87, %86 : vector<2x128xf32>
    %89 = arith.divf %87, %88 : vector<2x128xf32>
    %90 = arith.mulf %81, %65 : vector<2x128xf32>
    %91 = arith.mulf %75, %83 : vector<2x128xf32>
    %92 = arith.addf %90, %91 : vector<2x128xf32>
    %93 = math.tanh %92 : vector<2x128xf32>
    %94 = arith.mulf %89, %93 : vector<2x128xf32>
    %c1_i32 = arith.constant 1 : i32
    %95 = vector.broadcast %c1_i32 : i32 to vector<2x1xi32>
    %96 = arith.cmpi sle, %12, %95 : vector<2x1xi32>
    %c1_i32_38 = arith.constant 1 : i32
    %97 = vector.broadcast %c1_i32_38 : i32 to vector<2x1xi32>
    %98 = arith.cmpi sgt, %14, %97 : vector<2x1xi32>
    %99 = arith.andi %96, %98 : vector<2x1xi1>
    %cst_39 = arith.constant 0.000000e+00 : f32
    %100 = vector.shape_cast %99 : vector<2x1xi1> to vector<2x1xi1>
    %101 = vector.broadcast %100 : vector<2x1xi1> to vector<2x128xi1>
    %102 = vector.broadcast %cst_39 : f32 to vector<2x128xf32>
    %103 = arith.select %101, %94, %102 : vector<2x128xi1>, vector<2x128xf32>
    %c0_40 = arith.constant 0 : index
    %c1 = arith.constant 1 : index
    %c0_41 = arith.constant 0 : index
    %c0_42 = arith.constant 0 : index
    %104 = vector.load %arg7[%c0_40, %c1, %c0_41, %c0_42] : memref<1x13x2x128xf32, #tpu.memory_space<vmem>>, vector<1x1x2x128xf32>
    %105 = vector.shape_cast %104 : vector<1x1x2x128xf32> to vector<2x128xf32>
    %106 = vector.shape_cast %103 : vector<2x128xf32> to vector<1x1x2x128xf32>
    tpu.vector_store %arg7[%c0_40, %c1, %c0_41, %c0_42], %106 {strides = array<i32>} : memref<1x13x2x128xf32, #tpu.memory_space<vmem>>, vector<1x1x2x128xf32>,
    %107 = vector.shape_cast %99 : vector<2x1xi1> to vector<2x1xi1>
    %108 = vector.broadcast %107 : vector<2x1xi1> to vector<2x128xi1>
    %109 = arith.select %108, %94, %62 : vector<2x128xi1>, vector<2x128xf32>
    %110 = vector.shape_cast %99 : vector<2x1xi1> to vector<2x1xi1>
    %111 = vector.broadcast %110 : vector<2x1xi1> to vector<2x128xi1>
    %112 = arith.select %111, %92, %65 : vector<2x128xi1>, vector<2x128xf32>
    %c4 = arith.constant 4 : index
    %c0_43 = arith.constant 0 : index
    %113 = vector.load %arg8[%c4, %c0_43] : memref<26x512xf32, #tpu.memory_space<vmem>>, vector<2x512xf32>
    %114 = arith.truncf %109 : vector<2x128xf32> to vector<2x128xbf16>
    %cst_44 = arith.constant dense<0.000000e+00> : vector<2x512xf32>
    %115 = tpu.matmul %114, %16, %cst_44 {dimension_numbers = #tpu.dot_dimension_numbers<[1], [0], [0], [1], [0, 0, 1, 1], [], []>} : vector<2x128xbf16>, vector<128x512xbf16>, vector<2x512xf32> -> vector<2x512xf32>
    %116 = arith.addf %113, %115 : vector<2x512xf32>
    %117 = vector.extract_strided_slice %116 {offsets = [0, 0], sizes = [2, 128], strides = [1, 1]} : vector<2x512xf32> to vector<2x128xf32>
    %118 = arith.negf %117 : vector<2x128xf32>
    %119 = math.exp %118 : vector<2x128xf32>
    %cst_45 = arith.constant 1.000000e+00 : f32
    %120 = vector.broadcast %cst_45 : f32 to vector<2x128xf32>
    %121 = arith.addf %120, %119 : vector<2x128xf32>
    %122 = arith.divf %120, %121 : vector<2x128xf32>
    %123 = vector.extract_strided_slice %116 {offsets = [0, 128], sizes = [2, 128], strides = [1, 1]} : vector<2x512xf32> to vector<2x128xf32>
    %124 = arith.negf %123 : vector<2x128xf32>
    %125 = math.exp %124 : vector<2x128xf32>
    %cst_46 = arith.constant 1.000000e+00 : f32
    %126 = vector.broadcast %cst_46 : f32 to vector<2x128xf32>
    %127 = arith.addf %126, %125 : vector<2x128xf32>
    %128 = arith.divf %126, %127 : vector<2x128xf32>
    %129 = vector.extract_strided_slice %116 {offsets = [0, 256], sizes = [2, 128], strides = [1, 1]} : vector<2x512xf32> to vector<2x128xf32>
    %130 = math.tanh %129 : vector<2x128xf32>
    %131 = vector.extract_strided_slice %116 {offsets = [0, 384], sizes = [2, 128], strides = [1, 1]} : vector<2x512xf32> to vector<2x128xf32>
    %132 = arith.negf %131 : vector<2x128xf32>
    %133 = math.exp %132 : vector<2x128xf32>
    %cst_47 = arith.constant 1.000000e+00 : f32
    %134 = vector.broadcast %cst_47 : f32 to vector<2x128xf32>
    %135 = arith.addf %134, %133 : vector<2x128xf32>
    %136 = arith.divf %134, %135 : vector<2x128xf32>
    %137 = arith.mulf %128, %112 : vector<2x128xf32>
    %138 = arith.mulf %122, %130 : vector<2x128xf32>
    %139 = arith.addf %137, %138 : vector<2x128xf32>
    %140 = math.tanh %139 : vector<2x128xf32>
    %141 = arith.mulf %136, %140 : vector<2x128xf32>
    %c2_i32 = arith.constant 2 : i32
    %142 = vector.broadcast %c2_i32 : i32 to vector<2x1xi32>
    %143 = arith.cmpi sle, %12, %142 : vector<2x1xi32>
    %c2_i32_48 = arith.constant 2 : i32
    %144 = vector.broadcast %c2_i32_48 : i32 to vector<2x1xi32>
    %145 = arith.cmpi sgt, %14, %144 : vector<2x1xi32>
    %146 = arith.andi %143, %145 : vector<2x1xi1>
    %cst_49 = arith.constant 0.000000e+00 : f32
    %147 = vector.shape_cast %146 : vector<2x1xi1> to vector<2x1xi1>
    %148 = vector.broadcast %147 : vector<2x1xi1> to vector<2x128xi1>
    %149 = vector.broadcast %cst_49 : f32 to vector<2x128xf32>
    %150 = arith.select %148, %141, %149 : vector<2x128xi1>, vector<2x128xf32>
    %c0_50 = arith.constant 0 : index
    %c2_51 = arith.constant 2 : index
    %c0_52 = arith.constant 0 : index
    %c0_53 = arith.constant 0 : index
    %151 = vector.load %arg7[%c0_50, %c2_51, %c0_52, %c0_53] : memref<1x13x2x128xf32, #tpu.memory_space<vmem>>, vector<1x1x2x128xf32>
    %152 = vector.shape_cast %151 : vector<1x1x2x128xf32> to vector<2x128xf32>
    %153 = vector.shape_cast %150 : vector<2x128xf32> to vector<1x1x2x128xf32>
    tpu.vector_store %arg7[%c0_50, %c2_51, %c0_52, %c0_53], %153 {strides = array<i32>} : memref<1x13x2x128xf32, #tpu.memory_space<vmem>>, vector<1x1x2x128xf32>,
    %154 = vector.shape_cast %146 : vector<2x1xi1> to vector<2x1xi1>
    %155 = vector.broadcast %154 : vector<2x1xi1> to vector<2x128xi1>
    %156 = arith.select %155, %141, %109 : vector<2x128xi1>, vector<2x128xf32>
    %157 = vector.shape_cast %146 : vector<2x1xi1> to vector<2x1xi1>
    %158 = vector.broadcast %157 : vector<2x1xi1> to vector<2x128xi1>
    %159 = arith.select %158, %139, %112 : vector<2x128xi1>, vector<2x128xf32>
    %c6 = arith.constant 6 : index
    %c0_54 = arith.constant 0 : index
    %160 = vector.load %arg8[%c6, %c0_54] : memref<26x512xf32, #tpu.memory_space<vmem>>, vector<2x512xf32>
    %161 = arith.truncf %156 : vector<2x128xf32> to vector<2x128xbf16>
    %cst_55 = arith.constant dense<0.000000e+00> : vector<2x512xf32>
    %162 = tpu.matmul %161, %16, %cst_55 {dimension_numbers = #tpu.dot_dimension_numbers<[1], [0], [0], [1], [0, 0, 1, 1], [], []>} : vector<2x128xbf16>, vector<128x512xbf16>, vector<2x512xf32> -> vector<2x512xf32>
    %163 = arith.addf %160, %162 : vector<2x512xf32>
    %164 = vector.extract_strided_slice %163 {offsets = [0, 0], sizes = [2, 128], strides = [1, 1]} : vector<2x512xf32> to vector<2x128xf32>
    %165 = arith.negf %164 : vector<2x128xf32>
    %166 = math.exp %165 : vector<2x128xf32>
    %cst_56 = arith.constant 1.000000e+00 : f32
    %167 = vector.broadcast %cst_56 : f32 to vector<2x128xf32>
    %168 = arith.addf %167, %166 : vector<2x128xf32>
    %169 = arith.divf %167, %168 : vector<2x128xf32>
    %170 = vector.extract_strided_slice %163 {offsets = [0, 128], sizes = [2, 128], strides = [1, 1]} : vector<2x512xf32> to vector<2x128xf32>
    %171 = arith.negf %170 : vector<2x128xf32>
    %172 = math.exp %171 : vector<2x128xf32>
    %cst_57 = arith.constant 1.000000e+00 : f32
    %173 = vector.broadcast %cst_57 : f32 to vector<2x128xf32>
    %174 = arith.addf %173, %172 : vector<2x128xf32>
    %175 = arith.divf %173, %174 : vector<2x128xf32>
    %176 = vector.extract_strided_slice %163 {offsets = [0, 256], sizes = [2, 128], strides = [1, 1]} : vector<2x512xf32> to vector<2x128xf32>
    %177 = math.tanh %176 : vector<2x128xf32>
    %178 = vector.extract_strided_slice %163 {offsets = [0, 384], sizes = [2, 128], strides = [1, 1]} : vector<2x512xf32> to vector<2x128xf32>
    %179 = arith.negf %178 : vector<2x128xf32>
    %180 = math.exp %179 : vector<2x128xf32>
    %cst_58 = arith.constant 1.000000e+00 : f32
    %181 = vector.broadcast %cst_58 : f32 to vector<2x128xf32>
    %182 = arith.addf %181, %180 : vector<2x128xf32>
    %183 = arith.divf %181, %182 : vector<2x128xf32>
    %184 = arith.mulf %175, %159 : vector<2x128xf32>
    %185 = arith.mulf %169, %177 : vector<2x128xf32>
    %186 = arith.addf %184, %185 : vector<2x128xf32>
    %187 = math.tanh %186 : vector<2x128xf32>
    %188 = arith.mulf %183, %187 : vector<2x128xf32>
    %c3_i32 = arith.constant 3 : i32
    %189 = vector.broadcast %c3_i32 : i32 to vector<2x1xi32>
    %190 = arith.cmpi sle, %12, %189 : vector<2x1xi32>
    %c3_i32_59 = arith.constant 3 : i32
    %191 = vector.broadcast %c3_i32_59 : i32 to vector<2x1xi32>
    %192 = arith.cmpi sgt, %14, %191 : vector<2x1xi32>
    %193 = arith.andi %190, %192 : vector<2x1xi1>
    %cst_60 = arith.constant 0.000000e+00 : f32
    %194 = vector.shape_cast %193 : vector<2x1xi1> to vector<2x1xi1>
    %195 = vector.broadcast %194 : vector<2x1xi1> to vector<2x128xi1>
    %196 = vector.broadcast %cst_60 : f32 to vector<2x128xf32>
    %197 = arith.select %195, %188, %196 : vector<2x128xi1>, vector<2x128xf32>
    %c0_61 = arith.constant 0 : index
    %c3 = arith.constant 3 : index
    %c0_62 = arith.constant 0 : index
    %c0_63 = arith.constant 0 : index
    %198 = vector.load %arg7[%c0_61, %c3, %c0_62, %c0_63] : memref<1x13x2x128xf32, #tpu.memory_space<vmem>>, vector<1x1x2x128xf32>
    %199 = vector.shape_cast %198 : vector<1x1x2x128xf32> to vector<2x128xf32>
    %200 = vector.shape_cast %197 : vector<2x128xf32> to vector<1x1x2x128xf32>
    tpu.vector_store %arg7[%c0_61, %c3, %c0_62, %c0_63], %200 {strides = array<i32>} : memref<1x13x2x128xf32, #tpu.memory_space<vmem>>, vector<1x1x2x128xf32>,
    %201 = vector.shape_cast %193 : vector<2x1xi1> to vector<2x1xi1>
    %202 = vector.broadcast %201 : vector<2x1xi1> to vector<2x128xi1>
    %203 = arith.select %202, %188, %156 : vector<2x128xi1>, vector<2x128xf32>
    %204 = vector.shape_cast %193 : vector<2x1xi1> to vector<2x1xi1>
    %205 = vector.broadcast %204 : vector<2x1xi1> to vector<2x128xi1>
    %206 = arith.select %205, %186, %159 : vector<2x128xi1>, vector<2x128xf32>
    %c8 = arith.constant 8 : index
    %c0_64 = arith.constant 0 : index
    %207 = vector.load %arg8[%c8, %c0_64] : memref<26x512xf32, #tpu.memory_space<vmem>>, vector<2x512xf32>
    %208 = arith.truncf %203 : vector<2x128xf32> to vector<2x128xbf16>
    %cst_65 = arith.constant dense<0.000000e+00> : vector<2x512xf32>
    %209 = tpu.matmul %208, %16, %cst_65 {dimension_numbers = #tpu.dot_dimension_numbers<[1], [0], [0], [1], [0, 0, 1, 1], [], []>} : vector<2x128xbf16>, vector<128x512xbf16>, vector<2x512xf32> -> vector<2x512xf32>
    %210 = arith.addf %207, %209 : vector<2x512xf32>
    %211 = vector.extract_strided_slice %210 {offsets = [0, 0], sizes = [2, 128], strides = [1, 1]} : vector<2x512xf32> to vector<2x128xf32>
    %212 = arith.negf %211 : vector<2x128xf32>
    %213 = math.exp %212 : vector<2x128xf32>
    %cst_66 = arith.constant 1.000000e+00 : f32
    %214 = vector.broadcast %cst_66 : f32 to vector<2x128xf32>
    %215 = arith.addf %214, %213 : vector<2x128xf32>
    %216 = arith.divf %214, %215 : vector<2x128xf32>
    %217 = vector.extract_strided_slice %210 {offsets = [0, 128], sizes = [2, 128], strides = [1, 1]} : vector<2x512xf32> to vector<2x128xf32>
    %218 = arith.negf %217 : vector<2x128xf32>
    %219 = math.exp %218 : vector<2x128xf32>
    %cst_67 = arith.constant 1.000000e+00 : f32
    %220 = vector.broadcast %cst_67 : f32 to vector<2x128xf32>
    %221 = arith.addf %220, %219 : vector<2x128xf32>
    %222 = arith.divf %220, %221 : vector<2x128xf32>
    %223 = vector.extract_strided_slice %210 {offsets = [0, 256], sizes = [2, 128], strides = [1, 1]} : vector<2x512xf32> to vector<2x128xf32>
    %224 = math.tanh %223 : vector<2x128xf32>
    %225 = vector.extract_strided_slice %210 {offsets = [0, 384], sizes = [2, 128], strides = [1, 1]} : vector<2x512xf32> to vector<2x128xf32>
    %226 = arith.negf %225 : vector<2x128xf32>
    %227 = math.exp %226 : vector<2x128xf32>
    %cst_68 = arith.constant 1.000000e+00 : f32
    %228 = vector.broadcast %cst_68 : f32 to vector<2x128xf32>
    %229 = arith.addf %228, %227 : vector<2x128xf32>
    %230 = arith.divf %228, %229 : vector<2x128xf32>
    %231 = arith.mulf %222, %206 : vector<2x128xf32>
    %232 = arith.mulf %216, %224 : vector<2x128xf32>
    %233 = arith.addf %231, %232 : vector<2x128xf32>
    %234 = math.tanh %233 : vector<2x128xf32>
    %235 = arith.mulf %230, %234 : vector<2x128xf32>
    %c4_i32 = arith.constant 4 : i32
    %236 = vector.broadcast %c4_i32 : i32 to vector<2x1xi32>
    %237 = arith.cmpi sle, %12, %236 : vector<2x1xi32>
    %c4_i32_69 = arith.constant 4 : i32
    %238 = vector.broadcast %c4_i32_69 : i32 to vector<2x1xi32>
    %239 = arith.cmpi sgt, %14, %238 : vector<2x1xi32>
    %240 = arith.andi %237, %239 : vector<2x1xi1>
    %cst_70 = arith.constant 0.000000e+00 : f32
    %241 = vector.shape_cast %240 : vector<2x1xi1> to vector<2x1xi1>
    %242 = vector.broadcast %241 : vector<2x1xi1> to vector<2x128xi1>
    %243 = vector.broadcast %cst_70 : f32 to vector<2x128xf32>
    %244 = arith.select %242, %235, %243 : vector<2x128xi1>, vector<2x128xf32>
    %c0_71 = arith.constant 0 : index
    %c4_72 = arith.constant 4 : index
    %c0_73 = arith.constant 0 : index
    %c0_74 = arith.constant 0 : index
    %245 = vector.load %arg7[%c0_71, %c4_72, %c0_73, %c0_74] : memref<1x13x2x128xf32, #tpu.memory_space<vmem>>, vector<1x1x2x128xf32>
    %246 = vector.shape_cast %245 : vector<1x1x2x128xf32> to vector<2x128xf32>
    %247 = vector.shape_cast %244 : vector<2x128xf32> to vector<1x1x2x128xf32>
    tpu.vector_store %arg7[%c0_71, %c4_72, %c0_73, %c0_74], %247 {strides = array<i32>} : memref<1x13x2x128xf32, #tpu.memory_space<vmem>>, vector<1x1x2x128xf32>,
    %248 = vector.shape_cast %240 : vector<2x1xi1> to vector<2x1xi1>
    %249 = vector.broadcast %248 : vector<2x1xi1> to vector<2x128xi1>
    %250 = arith.select %249, %235, %203 : vector<2x128xi1>, vector<2x128xf32>
    %251 = vector.shape_cast %240 : vector<2x1xi1> to vector<2x1xi1>
    %252 = vector.broadcast %251 : vector<2x1xi1> to vector<2x128xi1>
    %253 = arith.select %252, %233, %206 : vector<2x128xi1>, vector<2x128xf32>
    %c10 = arith.constant 10 : index
    %c0_75 = arith.constant 0 : index
    %254 = vector.load %arg8[%c10, %c0_75] : memref<26x512xf32, #tpu.memory_space<vmem>>, vector<2x512xf32>
    %255 = arith.truncf %250 : vector<2x128xf32> to vector<2x128xbf16>
    %cst_76 = arith.constant dense<0.000000e+00> : vector<2x512xf32>
    %256 = tpu.matmul %255, %16, %cst_76 {dimension_numbers = #tpu.dot_dimension_numbers<[1], [0], [0], [1], [0, 0, 1, 1], [], []>} : vector<2x128xbf16>, vector<128x512xbf16>, vector<2x512xf32> -> vector<2x512xf32>
    %257 = arith.addf %254, %256 : vector<2x512xf32>
    %258 = vector.extract_strided_slice %257 {offsets = [0, 0], sizes = [2, 128], strides = [1, 1]} : vector<2x512xf32> to vector<2x128xf32>
    %259 = arith.negf %258 : vector<2x128xf32>
    %260 = math.exp %259 : vector<2x128xf32>
    %cst_77 = arith.constant 1.000000e+00 : f32
    %261 = vector.broadcast %cst_77 : f32 to vector<2x128xf32>
    %262 = arith.addf %261, %260 : vector<2x128xf32>
    %263 = arith.divf %261, %262 : vector<2x128xf32>
    %264 = vector.extract_strided_slice %257 {offsets = [0, 128], sizes = [2, 128], strides = [1, 1]} : vector<2x512xf32> to vector<2x128xf32>
    %265 = arith.negf %264 : vector<2x128xf32>
    %266 = math.exp %265 : vector<2x128xf32>
    %cst_78 = arith.constant 1.000000e+00 : f32
    %267 = vector.broadcast %cst_78 : f32 to vector<2x128xf32>
    %268 = arith.addf %267, %266 : vector<2x128xf32>
    %269 = arith.divf %267, %268 : vector<2x128xf32>
    %270 = vector.extract_strided_slice %257 {offsets = [0, 256], sizes = [2, 128], strides = [1, 1]} : vector<2x512xf32> to vector<2x128xf32>
    %271 = math.tanh %270 : vector<2x128xf32>
    %272 = vector.extract_strided_slice %257 {offsets = [0, 384], sizes = [2, 128], strides = [1, 1]} : vector<2x512xf32> to vector<2x128xf32>
    %273 = arith.negf %272 : vector<2x128xf32>
    %274 = math.exp %273 : vector<2x128xf32>
    %cst_79 = arith.constant 1.000000e+00 : f32
    %275 = vector.broadcast %cst_79 : f32 to vector<2x128xf32>
    %276 = arith.addf %275, %274 : vector<2x128xf32>
    %277 = arith.divf %275, %276 : vector<2x128xf32>
    %278 = arith.mulf %269, %253 : vector<2x128xf32>
    %279 = arith.mulf %263, %271 : vector<2x128xf32>
    %280 = arith.addf %278, %279 : vector<2x128xf32>
    %281 = math.tanh %280 : vector<2x128xf32>
    %282 = arith.mulf %277, %281 : vector<2x128xf32>
    %c5_i32 = arith.constant 5 : i32
    %283 = vector.broadcast %c5_i32 : i32 to vector<2x1xi32>
    %284 = arith.cmpi sle, %12, %283 : vector<2x1xi32>
    %c5_i32_80 = arith.constant 5 : i32
    %285 = vector.broadcast %c5_i32_80 : i32 to vector<2x1xi32>
    %286 = arith.cmpi sgt, %14, %285 : vector<2x1xi32>
    %287 = arith.andi %284, %286 : vector<2x1xi1>
    %cst_81 = arith.constant 0.000000e+00 : f32
    %288 = vector.shape_cast %287 : vector<2x1xi1> to vector<2x1xi1>
    %289 = vector.broadcast %288 : vector<2x1xi1> to vector<2x128xi1>
    %290 = vector.broadcast %cst_81 : f32 to vector<2x128xf32>
    %291 = arith.select %289, %282, %290 : vector<2x128xi1>, vector<2x128xf32>
    %c0_82 = arith.constant 0 : index
    %c5 = arith.constant 5 : index
    %c0_83 = arith.constant 0 : index
    %c0_84 = arith.constant 0 : index
    %292 = vector.load %arg7[%c0_82, %c5, %c0_83, %c0_84] : memref<1x13x2x128xf32, #tpu.memory_space<vmem>>, vector<1x1x2x128xf32>
    %293 = vector.shape_cast %292 : vector<1x1x2x128xf32> to vector<2x128xf32>
    %294 = vector.shape_cast %291 : vector<2x128xf32> to vector<1x1x2x128xf32>
    tpu.vector_store %arg7[%c0_82, %c5, %c0_83, %c0_84], %294 {strides = array<i32>} : memref<1x13x2x128xf32, #tpu.memory_space<vmem>>, vector<1x1x2x128xf32>,
    %295 = vector.shape_cast %287 : vector<2x1xi1> to vector<2x1xi1>
    %296 = vector.broadcast %295 : vector<2x1xi1> to vector<2x128xi1>
    %297 = arith.select %296, %282, %250 : vector<2x128xi1>, vector<2x128xf32>
    %298 = vector.shape_cast %287 : vector<2x1xi1> to vector<2x1xi1>
    %299 = vector.broadcast %298 : vector<2x1xi1> to vector<2x128xi1>
    %300 = arith.select %299, %280, %253 : vector<2x128xi1>, vector<2x128xf32>
    %c12 = arith.constant 12 : index
    %c0_85 = arith.constant 0 : index
    %301 = vector.load %arg8[%c12, %c0_85] : memref<26x512xf32, #tpu.memory_space<vmem>>, vector<2x512xf32>
    %302 = arith.truncf %297 : vector<2x128xf32> to vector<2x128xbf16>
    %cst_86 = arith.constant dense<0.000000e+00> : vector<2x512xf32>
    %303 = tpu.matmul %302, %16, %cst_86 {dimension_numbers = #tpu.dot_dimension_numbers<[1], [0], [0], [1], [0, 0, 1, 1], [], []>} : vector<2x128xbf16>, vector<128x512xbf16>, vector<2x512xf32> -> vector<2x512xf32>
    %304 = arith.addf %301, %303 : vector<2x512xf32>
    %305 = vector.extract_strided_slice %304 {offsets = [0, 0], sizes = [2, 128], strides = [1, 1]} : vector<2x512xf32> to vector<2x128xf32>
    %306 = arith.negf %305 : vector<2x128xf32>
    %307 = math.exp %306 : vector<2x128xf32>
    %cst_87 = arith.constant 1.000000e+00 : f32
    %308 = vector.broadcast %cst_87 : f32 to vector<2x128xf32>
    %309 = arith.addf %308, %307 : vector<2x128xf32>
    %310 = arith.divf %308, %309 : vector<2x128xf32>
    %311 = vector.extract_strided_slice %304 {offsets = [0, 128], sizes = [2, 128], strides = [1, 1]} : vector<2x512xf32> to vector<2x128xf32>
    %312 = arith.negf %311 : vector<2x128xf32>
    %313 = math.exp %312 : vector<2x128xf32>
    %cst_88 = arith.constant 1.000000e+00 : f32
    %314 = vector.broadcast %cst_88 : f32 to vector<2x128xf32>
    %315 = arith.addf %314, %313 : vector<2x128xf32>
    %316 = arith.divf %314, %315 : vector<2x128xf32>
    %317 = vector.extract_strided_slice %304 {offsets = [0, 256], sizes = [2, 128], strides = [1, 1]} : vector<2x512xf32> to vector<2x128xf32>
    %318 = math.tanh %317 : vector<2x128xf32>
    %319 = vector.extract_strided_slice %304 {offsets = [0, 384], sizes = [2, 128], strides = [1, 1]} : vector<2x512xf32> to vector<2x128xf32>
    %320 = arith.negf %319 : vector<2x128xf32>
    %321 = math.exp %320 : vector<2x128xf32>
    %cst_89 = arith.constant 1.000000e+00 : f32
    %322 = vector.broadcast %cst_89 : f32 to vector<2x128xf32>
    %323 = arith.addf %322, %321 : vector<2x128xf32>
    %324 = arith.divf %322, %323 : vector<2x128xf32>
    %325 = arith.mulf %316, %300 : vector<2x128xf32>
    %326 = arith.mulf %310, %318 : vector<2x128xf32>
    %327 = arith.addf %325, %326 : vector<2x128xf32>
    %328 = math.tanh %327 : vector<2x128xf32>
    %329 = arith.mulf %324, %328 : vector<2x128xf32>
    %c6_i32 = arith.constant 6 : i32
    %330 = vector.broadcast %c6_i32 : i32 to vector<2x1xi32>
    %331 = arith.cmpi sle, %12, %330 : vector<2x1xi32>
    %c6_i32_90 = arith.constant 6 : i32
    %332 = vector.broadcast %c6_i32_90 : i32 to vector<2x1xi32>
    %333 = arith.cmpi sgt, %14, %332 : vector<2x1xi32>
    %334 = arith.andi %331, %333 : vector<2x1xi1>
    %cst_91 = arith.constant 0.000000e+00 : f32
    %335 = vector.shape_cast %334 : vector<2x1xi1> to vector<2x1xi1>
    %336 = vector.broadcast %335 : vector<2x1xi1> to vector<2x128xi1>
    %337 = vector.broadcast %cst_91 : f32 to vector<2x128xf32>
    %338 = arith.select %336, %329, %337 : vector<2x128xi1>, vector<2x128xf32>
    %c0_92 = arith.constant 0 : index
    %c6_93 = arith.constant 6 : index
    %c0_94 = arith.constant 0 : index
    %c0_95 = arith.constant 0 : index
    %339 = vector.load %arg7[%c0_92, %c6_93, %c0_94, %c0_95] : memref<1x13x2x128xf32, #tpu.memory_space<vmem>>, vector<1x1x2x128xf32>
    %340 = vector.shape_cast %339 : vector<1x1x2x128xf32> to vector<2x128xf32>
    %341 = vector.shape_cast %338 : vector<2x128xf32> to vector<1x1x2x128xf32>
    tpu.vector_store %arg7[%c0_92, %c6_93, %c0_94, %c0_95], %341 {strides = array<i32>} : memref<1x13x2x128xf32, #tpu.memory_space<vmem>>, vector<1x1x2x128xf32>,
    %342 = vector.shape_cast %334 : vector<2x1xi1> to vector<2x1xi1>
    %343 = vector.broadcast %342 : vector<2x1xi1> to vector<2x128xi1>
    %344 = arith.select %343, %329, %297 : vector<2x128xi1>, vector<2x128xf32>
    %345 = vector.shape_cast %334 : vector<2x1xi1> to vector<2x1xi1>
    %346 = vector.broadcast %345 : vector<2x1xi1> to vector<2x128xi1>
    %347 = arith.select %346, %327, %300 : vector<2x128xi1>, vector<2x128xf32>
    %c14 = arith.constant 14 : index
    %c0_96 = arith.constant 0 : index
    %348 = vector.load %arg8[%c14, %c0_96] : memref<26x512xf32, #tpu.memory_space<vmem>>, vector<2x512xf32>
    %349 = arith.truncf %344 : vector<2x128xf32> to vector<2x128xbf16>
    %cst_97 = arith.constant dense<0.000000e+00> : vector<2x512xf32>
    %350 = tpu.matmul %349, %16, %cst_97 {dimension_numbers = #tpu.dot_dimension_numbers<[1], [0], [0], [1], [0, 0, 1, 1], [], []>} : vector<2x128xbf16>, vector<128x512xbf16>, vector<2x512xf32> -> vector<2x512xf32>
    %351 = arith.addf %348, %350 : vector<2x512xf32>
    %352 = vector.extract_strided_slice %351 {offsets = [0, 0], sizes = [2, 128], strides = [1, 1]} : vector<2x512xf32> to vector<2x128xf32>
    %353 = arith.negf %352 : vector<2x128xf32>
    %354 = math.exp %353 : vector<2x128xf32>
    %cst_98 = arith.constant 1.000000e+00 : f32
    %355 = vector.broadcast %cst_98 : f32 to vector<2x128xf32>
    %356 = arith.addf %355, %354 : vector<2x128xf32>
    %357 = arith.divf %355, %356 : vector<2x128xf32>
    %358 = vector.extract_strided_slice %351 {offsets = [0, 128], sizes = [2, 128], strides = [1, 1]} : vector<2x512xf32> to vector<2x128xf32>
    %359 = arith.negf %358 : vector<2x128xf32>
    %360 = math.exp %359 : vector<2x128xf32>
    %cst_99 = arith.constant 1.000000e+00 : f32
    %361 = vector.broadcast %cst_99 : f32 to vector<2x128xf32>
    %362 = arith.addf %361, %360 : vector<2x128xf32>
    %363 = arith.divf %361, %362 : vector<2x128xf32>
    %364 = vector.extract_strided_slice %351 {offsets = [0, 256], sizes = [2, 128], strides = [1, 1]} : vector<2x512xf32> to vector<2x128xf32>
    %365 = math.tanh %364 : vector<2x128xf32>
    %366 = vector.extract_strided_slice %351 {offsets = [0, 384], sizes = [2, 128], strides = [1, 1]} : vector<2x512xf32> to vector<2x128xf32>
    %367 = arith.negf %366 : vector<2x128xf32>
    %368 = math.exp %367 : vector<2x128xf32>
    %cst_100 = arith.constant 1.000000e+00 : f32
    %369 = vector.broadcast %cst_100 : f32 to vector<2x128xf32>
    %370 = arith.addf %369, %368 : vector<2x128xf32>
    %371 = arith.divf %369, %370 : vector<2x128xf32>
    %372 = arith.mulf %363, %347 : vector<2x128xf32>
    %373 = arith.mulf %357, %365 : vector<2x128xf32>
    %374 = arith.addf %372, %373 : vector<2x128xf32>
    %375 = math.tanh %374 : vector<2x128xf32>
    %376 = arith.mulf %371, %375 : vector<2x128xf32>
    %c7_i32 = arith.constant 7 : i32
    %377 = vector.broadcast %c7_i32 : i32 to vector<2x1xi32>
    %378 = arith.cmpi sle, %12, %377 : vector<2x1xi32>
    %c7_i32_101 = arith.constant 7 : i32
    %379 = vector.broadcast %c7_i32_101 : i32 to vector<2x1xi32>
    %380 = arith.cmpi sgt, %14, %379 : vector<2x1xi32>
    %381 = arith.andi %378, %380 : vector<2x1xi1>
    %cst_102 = arith.constant 0.000000e+00 : f32
    %382 = vector.shape_cast %381 : vector<2x1xi1> to vector<2x1xi1>
    %383 = vector.broadcast %382 : vector<2x1xi1> to vector<2x128xi1>
    %384 = vector.broadcast %cst_102 : f32 to vector<2x128xf32>
    %385 = arith.select %383, %376, %384 : vector<2x128xi1>, vector<2x128xf32>
    %c0_103 = arith.constant 0 : index
    %c7 = arith.constant 7 : index
    %c0_104 = arith.constant 0 : index
    %c0_105 = arith.constant 0 : index
    %386 = vector.load %arg7[%c0_103, %c7, %c0_104, %c0_105] : memref<1x13x2x128xf32, #tpu.memory_space<vmem>>, vector<1x1x2x128xf32>
    %387 = vector.shape_cast %386 : vector<1x1x2x128xf32> to vector<2x128xf32>
    %388 = vector.shape_cast %385 : vector<2x128xf32> to vector<1x1x2x128xf32>
    tpu.vector_store %arg7[%c0_103, %c7, %c0_104, %c0_105], %388 {strides = array<i32>} : memref<1x13x2x128xf32, #tpu.memory_space<vmem>>, vector<1x1x2x128xf32>,
    %389 = vector.shape_cast %381 : vector<2x1xi1> to vector<2x1xi1>
    %390 = vector.broadcast %389 : vector<2x1xi1> to vector<2x128xi1>
    %391 = arith.select %390, %376, %344 : vector<2x128xi1>, vector<2x128xf32>
    %392 = vector.shape_cast %381 : vector<2x1xi1> to vector<2x1xi1>
    %393 = vector.broadcast %392 : vector<2x1xi1> to vector<2x128xi1>
    %394 = arith.select %393, %374, %347 : vector<2x128xi1>, vector<2x128xf32>
    %c16 = arith.constant 16 : index
    %c0_106 = arith.constant 0 : index
    %395 = vector.load %arg8[%c16, %c0_106] : memref<26x512xf32, #tpu.memory_space<vmem>>, vector<2x512xf32>
    %396 = arith.truncf %391 : vector<2x128xf32> to vector<2x128xbf16>
    %cst_107 = arith.constant dense<0.000000e+00> : vector<2x512xf32>
    %397 = tpu.matmul %396, %16, %cst_107 {dimension_numbers = #tpu.dot_dimension_numbers<[1], [0], [0], [1], [0, 0, 1, 1], [], []>} : vector<2x128xbf16>, vector<128x512xbf16>, vector<2x512xf32> -> vector<2x512xf32>
    %398 = arith.addf %395, %397 : vector<2x512xf32>
    %399 = vector.extract_strided_slice %398 {offsets = [0, 0], sizes = [2, 128], strides = [1, 1]} : vector<2x512xf32> to vector<2x128xf32>
    %400 = arith.negf %399 : vector<2x128xf32>
    %401 = math.exp %400 : vector<2x128xf32>
    %cst_108 = arith.constant 1.000000e+00 : f32
    %402 = vector.broadcast %cst_108 : f32 to vector<2x128xf32>
    %403 = arith.addf %402, %401 : vector<2x128xf32>
    %404 = arith.divf %402, %403 : vector<2x128xf32>
    %405 = vector.extract_strided_slice %398 {offsets = [0, 128], sizes = [2, 128], strides = [1, 1]} : vector<2x512xf32> to vector<2x128xf32>
    %406 = arith.negf %405 : vector<2x128xf32>
    %407 = math.exp %406 : vector<2x128xf32>
    %cst_109 = arith.constant 1.000000e+00 : f32
    %408 = vector.broadcast %cst_109 : f32 to vector<2x128xf32>
    %409 = arith.addf %408, %407 : vector<2x128xf32>
    %410 = arith.divf %408, %409 : vector<2x128xf32>
    %411 = vector.extract_strided_slice %398 {offsets = [0, 256], sizes = [2, 128], strides = [1, 1]} : vector<2x512xf32> to vector<2x128xf32>
    %412 = math.tanh %411 : vector<2x128xf32>
    %413 = vector.extract_strided_slice %398 {offsets = [0, 384], sizes = [2, 128], strides = [1, 1]} : vector<2x512xf32> to vector<2x128xf32>
    %414 = arith.negf %413 : vector<2x128xf32>
    %415 = math.exp %414 : vector<2x128xf32>
    %cst_110 = arith.constant 1.000000e+00 : f32
    %416 = vector.broadcast %cst_110 : f32 to vector<2x128xf32>
    %417 = arith.addf %416, %415 : vector<2x128xf32>
    %418 = arith.divf %416, %417 : vector<2x128xf32>
    %419 = arith.mulf %410, %394 : vector<2x128xf32>
    %420 = arith.mulf %404, %412 : vector<2x128xf32>
    %421 = arith.addf %419, %420 : vector<2x128xf32>
    %422 = math.tanh %421 : vector<2x128xf32>
    %423 = arith.mulf %418, %422 : vector<2x128xf32>
    %c8_i32 = arith.constant 8 : i32
    %424 = vector.broadcast %c8_i32 : i32 to vector<2x1xi32>
    %425 = arith.cmpi sle, %12, %424 : vector<2x1xi32>
    %c8_i32_111 = arith.constant 8 : i32
    %426 = vector.broadcast %c8_i32_111 : i32 to vector<2x1xi32>
    %427 = arith.cmpi sgt, %14, %426 : vector<2x1xi32>
    %428 = arith.andi %425, %427 : vector<2x1xi1>
    %cst_112 = arith.constant 0.000000e+00 : f32
    %429 = vector.shape_cast %428 : vector<2x1xi1> to vector<2x1xi1>
    %430 = vector.broadcast %429 : vector<2x1xi1> to vector<2x128xi1>
    %431 = vector.broadcast %cst_112 : f32 to vector<2x128xf32>
    %432 = arith.select %430, %423, %431 : vector<2x128xi1>, vector<2x128xf32>
    %c0_113 = arith.constant 0 : index
    %c8_114 = arith.constant 8 : index
    %c0_115 = arith.constant 0 : index
    %c0_116 = arith.constant 0 : index
    %433 = vector.load %arg7[%c0_113, %c8_114, %c0_115, %c0_116] : memref<1x13x2x128xf32, #tpu.memory_space<vmem>>, vector<1x1x2x128xf32>
    %434 = vector.shape_cast %433 : vector<1x1x2x128xf32> to vector<2x128xf32>
    %435 = vector.shape_cast %432 : vector<2x128xf32> to vector<1x1x2x128xf32>
    tpu.vector_store %arg7[%c0_113, %c8_114, %c0_115, %c0_116], %435 {strides = array<i32>} : memref<1x13x2x128xf32, #tpu.memory_space<vmem>>, vector<1x1x2x128xf32>,
    %436 = vector.shape_cast %428 : vector<2x1xi1> to vector<2x1xi1>
    %437 = vector.broadcast %436 : vector<2x1xi1> to vector<2x128xi1>
    %438 = arith.select %437, %423, %391 : vector<2x128xi1>, vector<2x128xf32>
    %439 = vector.shape_cast %428 : vector<2x1xi1> to vector<2x1xi1>
    %440 = vector.broadcast %439 : vector<2x1xi1> to vector<2x128xi1>
    %441 = arith.select %440, %421, %394 : vector<2x128xi1>, vector<2x128xf32>
    %c18 = arith.constant 18 : index
    %c0_117 = arith.constant 0 : index
    %442 = vector.load %arg8[%c18, %c0_117] : memref<26x512xf32, #tpu.memory_space<vmem>>, vector<2x512xf32>
    %443 = arith.truncf %438 : vector<2x128xf32> to vector<2x128xbf16>
    %cst_118 = arith.constant dense<0.000000e+00> : vector<2x512xf32>
    %444 = tpu.matmul %443, %16, %cst_118 {dimension_numbers = #tpu.dot_dimension_numbers<[1], [0], [0], [1], [0, 0, 1, 1], [], []>} : vector<2x128xbf16>, vector<128x512xbf16>, vector<2x512xf32> -> vector<2x512xf32>
    %445 = arith.addf %442, %444 : vector<2x512xf32>
    %446 = vector.extract_strided_slice %445 {offsets = [0, 0], sizes = [2, 128], strides = [1, 1]} : vector<2x512xf32> to vector<2x128xf32>
    %447 = arith.negf %446 : vector<2x128xf32>
    %448 = math.exp %447 : vector<2x128xf32>
    %cst_119 = arith.constant 1.000000e+00 : f32
    %449 = vector.broadcast %cst_119 : f32 to vector<2x128xf32>
    %450 = arith.addf %449, %448 : vector<2x128xf32>
    %451 = arith.divf %449, %450 : vector<2x128xf32>
    %452 = vector.extract_strided_slice %445 {offsets = [0, 128], sizes = [2, 128], strides = [1, 1]} : vector<2x512xf32> to vector<2x128xf32>
    %453 = arith.negf %452 : vector<2x128xf32>
    %454 = math.exp %453 : vector<2x128xf32>
    %cst_120 = arith.constant 1.000000e+00 : f32
    %455 = vector.broadcast %cst_120 : f32 to vector<2x128xf32>
    %456 = arith.addf %455, %454 : vector<2x128xf32>
    %457 = arith.divf %455, %456 : vector<2x128xf32>
    %458 = vector.extract_strided_slice %445 {offsets = [0, 256], sizes = [2, 128], strides = [1, 1]} : vector<2x512xf32> to vector<2x128xf32>
    %459 = math.tanh %458 : vector<2x128xf32>
    %460 = vector.extract_strided_slice %445 {offsets = [0, 384], sizes = [2, 128], strides = [1, 1]} : vector<2x512xf32> to vector<2x128xf32>
    %461 = arith.negf %460 : vector<2x128xf32>
    %462 = math.exp %461 : vector<2x128xf32>
    %cst_121 = arith.constant 1.000000e+00 : f32
    %463 = vector.broadcast %cst_121 : f32 to vector<2x128xf32>
    %464 = arith.addf %463, %462 : vector<2x128xf32>
    %465 = arith.divf %463, %464 : vector<2x128xf32>
    %466 = arith.mulf %457, %441 : vector<2x128xf32>
    %467 = arith.mulf %451, %459 : vector<2x128xf32>
    %468 = arith.addf %466, %467 : vector<2x128xf32>
    %469 = math.tanh %468 : vector<2x128xf32>
    %470 = arith.mulf %465, %469 : vector<2x128xf32>
    %c9_i32 = arith.constant 9 : i32
    %471 = vector.broadcast %c9_i32 : i32 to vector<2x1xi32>
    %472 = arith.cmpi sle, %12, %471 : vector<2x1xi32>
    %c9_i32_122 = arith.constant 9 : i32
    %473 = vector.broadcast %c9_i32_122 : i32 to vector<2x1xi32>
    %474 = arith.cmpi sgt, %14, %473 : vector<2x1xi32>
    %475 = arith.andi %472, %474 : vector<2x1xi1>
    %cst_123 = arith.constant 0.000000e+00 : f32
    %476 = vector.shape_cast %475 : vector<2x1xi1> to vector<2x1xi1>
    %477 = vector.broadcast %476 : vector<2x1xi1> to vector<2x128xi1>
    %478 = vector.broadcast %cst_123 : f32 to vector<2x128xf32>
    %479 = arith.select %477, %470, %478 : vector<2x128xi1>, vector<2x128xf32>
    %c0_124 = arith.constant 0 : index
    %c9 = arith.constant 9 : index
    %c0_125 = arith.constant 0 : index
    %c0_126 = arith.constant 0 : index
    %480 = vector.load %arg7[%c0_124, %c9, %c0_125, %c0_126] : memref<1x13x2x128xf32, #tpu.memory_space<vmem>>, vector<1x1x2x128xf32>
    %481 = vector.shape_cast %480 : vector<1x1x2x128xf32> to vector<2x128xf32>
    %482 = vector.shape_cast %479 : vector<2x128xf32> to vector<1x1x2x128xf32>
    tpu.vector_store %arg7[%c0_124, %c9, %c0_125, %c0_126], %482 {strides = array<i32>} : memref<1x13x2x128xf32, #tpu.memory_space<vmem>>, vector<1x1x2x128xf32>,
    %483 = vector.shape_cast %475 : vector<2x1xi1> to vector<2x1xi1>
    %484 = vector.broadcast %483 : vector<2x1xi1> to vector<2x128xi1>
    %485 = arith.select %484, %470, %438 : vector<2x128xi1>, vector<2x128xf32>
    %486 = vector.shape_cast %475 : vector<2x1xi1> to vector<2x1xi1>
    %487 = vector.broadcast %486 : vector<2x1xi1> to vector<2x128xi1>
    %488 = arith.select %487, %468, %441 : vector<2x128xi1>, vector<2x128xf32>
    %c20 = arith.constant 20 : index
    %c0_127 = arith.constant 0 : index
    %489 = vector.load %arg8[%c20, %c0_127] : memref<26x512xf32, #tpu.memory_space<vmem>>, vector<2x512xf32>
    %490 = arith.truncf %485 : vector<2x128xf32> to vector<2x128xbf16>
    %cst_128 = arith.constant dense<0.000000e+00> : vector<2x512xf32>
    %491 = tpu.matmul %490, %16, %cst_128 {dimension_numbers = #tpu.dot_dimension_numbers<[1], [0], [0], [1], [0, 0, 1, 1], [], []>} : vector<2x128xbf16>, vector<128x512xbf16>, vector<2x512xf32> -> vector<2x512xf32>
    %492 = arith.addf %489, %491 : vector<2x512xf32>
    %493 = vector.extract_strided_slice %492 {offsets = [0, 0], sizes = [2, 128], strides = [1, 1]} : vector<2x512xf32> to vector<2x128xf32>
    %494 = arith.negf %493 : vector<2x128xf32>
    %495 = math.exp %494 : vector<2x128xf32>
    %cst_129 = arith.constant 1.000000e+00 : f32
    %496 = vector.broadcast %cst_129 : f32 to vector<2x128xf32>
    %497 = arith.addf %496, %495 : vector<2x128xf32>
    %498 = arith.divf %496, %497 : vector<2x128xf32>
    %499 = vector.extract_strided_slice %492 {offsets = [0, 128], sizes = [2, 128], strides = [1, 1]} : vector<2x512xf32> to vector<2x128xf32>
    %500 = arith.negf %499 : vector<2x128xf32>
    %501 = math.exp %500 : vector<2x128xf32>
    %cst_130 = arith.constant 1.000000e+00 : f32
    %502 = vector.broadcast %cst_130 : f32 to vector<2x128xf32>
    %503 = arith.addf %502, %501 : vector<2x128xf32>
    %504 = arith.divf %502, %503 : vector<2x128xf32>
    %505 = vector.extract_strided_slice %492 {offsets = [0, 256], sizes = [2, 128], strides = [1, 1]} : vector<2x512xf32> to vector<2x128xf32>
    %506 = math.tanh %505 : vector<2x128xf32>
    %507 = vector.extract_strided_slice %492 {offsets = [0, 384], sizes = [2, 128], strides = [1, 1]} : vector<2x512xf32> to vector<2x128xf32>
    %508 = arith.negf %507 : vector<2x128xf32>
    %509 = math.exp %508 : vector<2x128xf32>
    %cst_131 = arith.constant 1.000000e+00 : f32
    %510 = vector.broadcast %cst_131 : f32 to vector<2x128xf32>
    %511 = arith.addf %510, %509 : vector<2x128xf32>
    %512 = arith.divf %510, %511 : vector<2x128xf32>
    %513 = arith.mulf %504, %488 : vector<2x128xf32>
    %514 = arith.mulf %498, %506 : vector<2x128xf32>
    %515 = arith.addf %513, %514 : vector<2x128xf32>
    %516 = math.tanh %515 : vector<2x128xf32>
    %517 = arith.mulf %512, %516 : vector<2x128xf32>
    %c10_i32 = arith.constant 10 : i32
    %518 = vector.broadcast %c10_i32 : i32 to vector<2x1xi32>
    %519 = arith.cmpi sle, %12, %518 : vector<2x1xi32>
    %c10_i32_132 = arith.constant 10 : i32
    %520 = vector.broadcast %c10_i32_132 : i32 to vector<2x1xi32>
    %521 = arith.cmpi sgt, %14, %520 : vector<2x1xi32>
    %522 = arith.andi %519, %521 : vector<2x1xi1>
    %cst_133 = arith.constant 0.000000e+00 : f32
    %523 = vector.shape_cast %522 : vector<2x1xi1> to vector<2x1xi1>
    %524 = vector.broadcast %523 : vector<2x1xi1> to vector<2x128xi1>
    %525 = vector.broadcast %cst_133 : f32 to vector<2x128xf32>
    %526 = arith.select %524, %517, %525 : vector<2x128xi1>, vector<2x128xf32>
    %c0_134 = arith.constant 0 : index
    %c10_135 = arith.constant 10 : index
    %c0_136 = arith.constant 0 : index
    %c0_137 = arith.constant 0 : index
    %527 = vector.load %arg7[%c0_134, %c10_135, %c0_136, %c0_137] : memref<1x13x2x128xf32, #tpu.memory_space<vmem>>, vector<1x1x2x128xf32>
    %528 = vector.shape_cast %527 : vector<1x1x2x128xf32> to vector<2x128xf32>
    %529 = vector.shape_cast %526 : vector<2x128xf32> to vector<1x1x2x128xf32>
    tpu.vector_store %arg7[%c0_134, %c10_135, %c0_136, %c0_137], %529 {strides = array<i32>} : memref<1x13x2x128xf32, #tpu.memory_space<vmem>>, vector<1x1x2x128xf32>,
    %530 = vector.shape_cast %522 : vector<2x1xi1> to vector<2x1xi1>
    %531 = vector.broadcast %530 : vector<2x1xi1> to vector<2x128xi1>
    %532 = arith.select %531, %517, %485 : vector<2x128xi1>, vector<2x128xf32>
    %533 = vector.shape_cast %522 : vector<2x1xi1> to vector<2x1xi1>
    %534 = vector.broadcast %533 : vector<2x1xi1> to vector<2x128xi1>
    %535 = arith.select %534, %515, %488 : vector<2x128xi1>, vector<2x128xf32>
    %c22 = arith.constant 22 : index
    %c0_138 = arith.constant 0 : index
    %536 = vector.load %arg8[%c22, %c0_138] : memref<26x512xf32, #tpu.memory_space<vmem>>, vector<2x512xf32>
    %537 = arith.truncf %532 : vector<2x128xf32> to vector<2x128xbf16>
    %cst_139 = arith.constant dense<0.000000e+00> : vector<2x512xf32>
    %538 = tpu.matmul %537, %16, %cst_139 {dimension_numbers = #tpu.dot_dimension_numbers<[1], [0], [0], [1], [0, 0, 1, 1], [], []>} : vector<2x128xbf16>, vector<128x512xbf16>, vector<2x512xf32> -> vector<2x512xf32>
    %539 = arith.addf %536, %538 : vector<2x512xf32>
    %540 = vector.extract_strided_slice %539 {offsets = [0, 0], sizes = [2, 128], strides = [1, 1]} : vector<2x512xf32> to vector<2x128xf32>
    %541 = arith.negf %540 : vector<2x128xf32>
    %542 = math.exp %541 : vector<2x128xf32>
    %cst_140 = arith.constant 1.000000e+00 : f32
    %543 = vector.broadcast %cst_140 : f32 to vector<2x128xf32>
    %544 = arith.addf %543, %542 : vector<2x128xf32>
    %545 = arith.divf %543, %544 : vector<2x128xf32>
    %546 = vector.extract_strided_slice %539 {offsets = [0, 128], sizes = [2, 128], strides = [1, 1]} : vector<2x512xf32> to vector<2x128xf32>
    %547 = arith.negf %546 : vector<2x128xf32>
    %548 = math.exp %547 : vector<2x128xf32>
    %cst_141 = arith.constant 1.000000e+00 : f32
    %549 = vector.broadcast %cst_141 : f32 to vector<2x128xf32>
    %550 = arith.addf %549, %548 : vector<2x128xf32>
    %551 = arith.divf %549, %550 : vector<2x128xf32>
    %552 = vector.extract_strided_slice %539 {offsets = [0, 256], sizes = [2, 128], strides = [1, 1]} : vector<2x512xf32> to vector<2x128xf32>
    %553 = math.tanh %552 : vector<2x128xf32>
    %554 = vector.extract_strided_slice %539 {offsets = [0, 384], sizes = [2, 128], strides = [1, 1]} : vector<2x512xf32> to vector<2x128xf32>
    %555 = arith.negf %554 : vector<2x128xf32>
    %556 = math.exp %555 : vector<2x128xf32>
    %cst_142 = arith.constant 1.000000e+00 : f32
    %557 = vector.broadcast %cst_142 : f32 to vector<2x128xf32>
    %558 = arith.addf %557, %556 : vector<2x128xf32>
    %559 = arith.divf %557, %558 : vector<2x128xf32>
    %560 = arith.mulf %551, %535 : vector<2x128xf32>
    %561 = arith.mulf %545, %553 : vector<2x128xf32>
    %562 = arith.addf %560, %561 : vector<2x128xf32>
    %563 = math.tanh %562 : vector<2x128xf32>
    %564 = arith.mulf %559, %563 : vector<2x128xf32>
    %c11_i32 = arith.constant 11 : i32
    %565 = vector.broadcast %c11_i32 : i32 to vector<2x1xi32>
    %566 = arith.cmpi sle, %12, %565 : vector<2x1xi32>
    %c11_i32_143 = arith.constant 11 : i32
    %567 = vector.broadcast %c11_i32_143 : i32 to vector<2x1xi32>
    %568 = arith.cmpi sgt, %14, %567 : vector<2x1xi32>
    %569 = arith.andi %566, %568 : vector<2x1xi1>
    %cst_144 = arith.constant 0.000000e+00 : f32
    %570 = vector.shape_cast %569 : vector<2x1xi1> to vector<2x1xi1>
    %571 = vector.broadcast %570 : vector<2x1xi1> to vector<2x128xi1>
    %572 = vector.broadcast %cst_144 : f32 to vector<2x128xf32>
    %573 = arith.select %571, %564, %572 : vector<2x128xi1>, vector<2x128xf32>
    %c0_145 = arith.constant 0 : index
    %c11 = arith.constant 11 : index
    %c0_146 = arith.constant 0 : index
    %c0_147 = arith.constant 0 : index
    %574 = vector.load %arg7[%c0_145, %c11, %c0_146, %c0_147] : memref<1x13x2x128xf32, #tpu.memory_space<vmem>>, vector<1x1x2x128xf32>
    %575 = vector.shape_cast %574 : vector<1x1x2x128xf32> to vector<2x128xf32>
    %576 = vector.shape_cast %573 : vector<2x128xf32> to vector<1x1x2x128xf32>
    tpu.vector_store %arg7[%c0_145, %c11, %c0_146, %c0_147], %576 {strides = array<i32>} : memref<1x13x2x128xf32, #tpu.memory_space<vmem>>, vector<1x1x2x128xf32>,
    %577 = vector.shape_cast %569 : vector<2x1xi1> to vector<2x1xi1>
    %578 = vector.broadcast %577 : vector<2x1xi1> to vector<2x128xi1>
    %579 = arith.select %578, %564, %532 : vector<2x128xi1>, vector<2x128xf32>
    %580 = vector.shape_cast %569 : vector<2x1xi1> to vector<2x1xi1>
    %581 = vector.broadcast %580 : vector<2x1xi1> to vector<2x128xi1>
    %582 = arith.select %581, %562, %535 : vector<2x128xi1>, vector<2x128xf32>
    %c24 = arith.constant 24 : index
    %c0_148 = arith.constant 0 : index
    %583 = vector.load %arg8[%c24, %c0_148] : memref<26x512xf32, #tpu.memory_space<vmem>>, vector<2x512xf32>
    %584 = arith.truncf %579 : vector<2x128xf32> to vector<2x128xbf16>
    %cst_149 = arith.constant dense<0.000000e+00> : vector<2x512xf32>
    %585 = tpu.matmul %584, %16, %cst_149 {dimension_numbers = #tpu.dot_dimension_numbers<[1], [0], [0], [1], [0, 0, 1, 1], [], []>} : vector<2x128xbf16>, vector<128x512xbf16>, vector<2x512xf32> -> vector<2x512xf32>
    %586 = arith.addf %583, %585 : vector<2x512xf32>
    %587 = vector.extract_strided_slice %586 {offsets = [0, 0], sizes = [2, 128], strides = [1, 1]} : vector<2x512xf32> to vector<2x128xf32>
    %588 = arith.negf %587 : vector<2x128xf32>
    %589 = math.exp %588 : vector<2x128xf32>
    %cst_150 = arith.constant 1.000000e+00 : f32
    %590 = vector.broadcast %cst_150 : f32 to vector<2x128xf32>
    %591 = arith.addf %590, %589 : vector<2x128xf32>
    %592 = arith.divf %590, %591 : vector<2x128xf32>
    %593 = vector.extract_strided_slice %586 {offsets = [0, 128], sizes = [2, 128], strides = [1, 1]} : vector<2x512xf32> to vector<2x128xf32>
    %594 = arith.negf %593 : vector<2x128xf32>
    %595 = math.exp %594 : vector<2x128xf32>
    %cst_151 = arith.constant 1.000000e+00 : f32
    %596 = vector.broadcast %cst_151 : f32 to vector<2x128xf32>
    %597 = arith.addf %596, %595 : vector<2x128xf32>
    %598 = arith.divf %596, %597 : vector<2x128xf32>
    %599 = vector.extract_strided_slice %586 {offsets = [0, 256], sizes = [2, 128], strides = [1, 1]} : vector<2x512xf32> to vector<2x128xf32>
    %600 = math.tanh %599 : vector<2x128xf32>
    %601 = vector.extract_strided_slice %586 {offsets = [0, 384], sizes = [2, 128], strides = [1, 1]} : vector<2x512xf32> to vector<2x128xf32>
    %602 = arith.negf %601 : vector<2x128xf32>
    %603 = math.exp %602 : vector<2x128xf32>
    %cst_152 = arith.constant 1.000000e+00 : f32
    %604 = vector.broadcast %cst_152 : f32 to vector<2x128xf32>
    %605 = arith.addf %604, %603 : vector<2x128xf32>
    %606 = arith.divf %604, %605 : vector<2x128xf32>
    %607 = arith.mulf %598, %582 : vector<2x128xf32>
    %608 = arith.mulf %592, %600 : vector<2x128xf32>
    %609 = arith.addf %607, %608 : vector<2x128xf32>
    %610 = math.tanh %609 : vector<2x128xf32>
    %611 = arith.mulf %606, %610 : vector<2x128xf32>
    %c12_i32 = arith.constant 12 : i32
    %612 = vector.broadcast %c12_i32 : i32 to vector<2x1xi32>
    %613 = arith.cmpi sle, %12, %612 : vector<2x1xi32>
    %c12_i32_153 = arith.constant 12 : i32
    %614 = vector.broadcast %c12_i32_153 : i32 to vector<2x1xi32>
    %615 = arith.cmpi sgt, %14, %614 : vector<2x1xi32>
    %616 = arith.andi %613, %615 : vector<2x1xi1>
    %cst_154 = arith.constant 0.000000e+00 : f32
    %617 = vector.shape_cast %616 : vector<2x1xi1> to vector<2x1xi1>
    %618 = vector.broadcast %617 : vector<2x1xi1> to vector<2x128xi1>
    %619 = vector.broadcast %cst_154 : f32 to vector<2x128xf32>
    %620 = arith.select %618, %611, %619 : vector<2x128xi1>, vector<2x128xf32>
    %c0_155 = arith.constant 0 : index
    %c12_156 = arith.constant 12 : index
    %c0_157 = arith.constant 0 : index
    %c0_158 = arith.constant 0 : index
    %621 = vector.load %arg7[%c0_155, %c12_156, %c0_157, %c0_158] : memref<1x13x2x128xf32, #tpu.memory_space<vmem>>, vector<1x1x2x128xf32>
    %622 = vector.shape_cast %621 : vector<1x1x2x128xf32> to vector<2x128xf32>
    %623 = vector.shape_cast %620 : vector<2x128xf32> to vector<1x1x2x128xf32>
    tpu.vector_store %arg7[%c0_155, %c12_156, %c0_157, %c0_158], %623 {strides = array<i32>} : memref<1x13x2x128xf32, #tpu.memory_space<vmem>>, vector<1x1x2x128xf32>,
    return
  }
  func.func @transform_0(%arg0: i32) -> (i32, i32, i32) {
    %c0_i32 = arith.constant 0 : i32
    %c0_i32_0 = arith.constant 0 : i32
    %c0_i32_1 = arith.constant 0 : i32
    return %arg0, %c0_i32, %c0_i32_0 : i32, i32, i32
  }
  func.func @transform_1(%arg0: i32) -> (i32, i32, i32) {
    %c0_i32 = arith.constant 0 : i32
    %c0_i32_0 = arith.constant 0 : i32
    %c0_i32_1 = arith.constant 0 : i32
    return %arg0, %c0_i32, %c0_i32_0 : i32, i32, i32
  }
  func.func @transform_2(%arg0: i32) -> (i32, i32, i32) {
    %c0_i32 = arith.constant 0 : i32
    %c0_i32_0 = arith.constant 0 : i32
    %c0_i32_1 = arith.constant 0 : i32
    return %arg0, %c0_i32, %c0_i32_0 : i32, i32, i32
  }
  func.func @transform_3(%arg0: i32) -> (i32, i32, i32) {
    %c0_i32 = arith.constant 0 : i32
    %c0_i32_0 = arith.constant 0 : i32
    %c0_i32_1 = arith.constant 0 : i32
    return %arg0, %c0_i32, %c0_i32_0 : i32, i32, i32
  }
  func.func @transform_4(%arg0: i32) -> (i32, i32, i32) {
    %c0_i32 = arith.constant 0 : i32
    %c0_i32_0 = arith.constant 0 : i32
    %c0_i32_1 = arith.constant 0 : i32
    return %arg0, %c0_i32, %c0_i32_0 : i32, i32, i32
  }
  func.func @transform_5(%arg0: i32) -> (i32, i32, i32) {
    %c0_i32 = arith.constant 0 : i32
    %c0_i32_0 = arith.constant 0 : i32
    %c0_i32_1 = arith.constant 0 : i32
    return %arg0, %c0_i32, %c0_i32_0 : i32, i32, i32
  }
  func.func @transform_6(%arg0: i32) -> (i32, i32, i32, i32) {
    %c0_i32 = arith.constant 0 : i32
    %c0_i32_0 = arith.constant 0 : i32
    %c0_i32_1 = arith.constant 0 : i32
    %c0_i32_2 = arith.constant 0 : i32
    return %arg0, %c0_i32, %c0_i32_0, %c0_i32_1 : i32, i32, i32, i32
  }
}

module attributes {stable_mosaic.version = 11 : i64} {
  func.func @_bilstm_dir_kernel(%arg0: i32, %arg1: memref<1x26x256xf32, #tpu.memory_space<vmem>>, %arg2: memref<1x2x1xi32, #tpu.memory_space<vmem>>, %arg3: memref<1x2x1xi32, #tpu.memory_space<vmem>>, %arg4: memref<1x256x512xbf16, #tpu.memory_space<vmem>>, %arg5: memref<1x128x512xbf16, #tpu.memory_space<vmem>>, %arg6: memref<1x1x512xf32, #tpu.memory_space<vmem>>, %arg7: memref<1x13x2x128xf32, #tpu.memory_space<vmem>>, %arg8: memref<26x512xf32, #tpu.memory_space<vmem>>) attributes {dimension_semantics = [#tpu.dimension_semantics<parallel>], iteration_bounds = array<i64: 2>, scalar_prefetch = 0 : i64, scratch_operands = 1 : i64, tpu.core_type = #tpu.core_type<tc>, window_params = [{transform_indices = @transform_0, window_bounds = array<i64: 1, 26, 256>}, {transform_indices = @transform_1, window_bounds = array<i64: 1, 2, 1>}, {transform_indices = @transform_2, window_bounds = array<i64: 1, 2, 1>}, {transform_indices = @transform_3, window_bounds = array<i64: 1, 256, 512>}, {transform_indices = @transform_4, window_bounds = array<i64: 1, 128, 512>}, {transform_indices = @transform_5, window_bounds = array<i64: 1, 1, 512>}, {transform_indices = @transform_6, window_bounds = array<i64: 1, 13, 2, 128>}]} {
    %c0 = arith.constant 0 : index
    %c0_0 = arith.constant 0 : index
    %c0_1 = arith.constant 0 : index
    %0 = vector.load %arg1[%c0, %c0_0, %c0_1] : memref<1x26x256xf32, #tpu.memory_space<vmem>>, vector<1x26x256xf32>
    %1 = vector.shape_cast %0 : vector<1x26x256xf32> to vector<26x256xf32>
    %2 = arith.truncf %1 : vector<26x256xf32> to vector<26x256xbf16>
    %c0_2 = arith.constant 0 : index
    %c0_3 = arith.constant 0 : index
    %c0_4 = arith.constant 0 : index
    %3 = vector.load %arg4[%c0_2, %c0_3, %c0_4] : memref<1x256x512xbf16, #tpu.memory_space<vmem>>, vector<1x256x512xbf16>
    %4 = vector.shape_cast %3 : vector<1x256x512xbf16> to vector<256x512xbf16>
    %cst = arith.constant dense<0.000000e+00> : vector<26x512xf32>
    %5 = tpu.matmul %2, %4, %cst {dimension_numbers = #tpu.dot_dimension_numbers<[1], [0], [0], [1], [0, 0, 1, 1], [], []>} : vector<26x256xbf16>, vector<256x512xbf16>, vector<26x512xf32> -> vector<26x512xf32>
    %c0_5 = arith.constant 0 : index
    %c0_6 = arith.constant 0 : index
    %c0_7 = arith.constant 0 : index
    %6 = vector.load %arg6[%c0_5, %c0_6, %c0_7] : memref<1x1x512xf32, #tpu.memory_space<vmem>>, vector<1x1x512xf32>
    %7 = vector.shape_cast %6 : vector<1x1x512xf32> to vector<1x512xf32>
    %8 = vector.broadcast %7 : vector<1x512xf32> to vector<26x512xf32>
    %9 = arith.addf %5, %8 : vector<26x512xf32>
    %c0_8 = arith.constant 0 : index
    %c0_9 = arith.constant 0 : index
    %10 = vector.load %arg8[%c0_8, %c0_9] : memref<26x512xf32, #tpu.memory_space<vmem>>, vector<26x512xf32>
    tpu.vector_store %arg8[%c0_8, %c0_9], %9 {strides = array<i32>} : memref<26x512xf32, #tpu.memory_space<vmem>>, vector<26x512xf32>,
    %c0_10 = arith.constant 0 : index
    %c0_11 = arith.constant 0 : index
    %c0_12 = arith.constant 0 : index
    %11 = vector.load %arg2[%c0_10, %c0_11, %c0_12] : memref<1x2x1xi32, #tpu.memory_space<vmem>>, vector<1x2x1xi32>
    %12 = vector.shape_cast %11 : vector<1x2x1xi32> to vector<2x1xi32>
    %c0_13 = arith.constant 0 : index
    %c0_14 = arith.constant 0 : index
    %c0_15 = arith.constant 0 : index
    %13 = vector.load %arg3[%c0_13, %c0_14, %c0_15] : memref<1x2x1xi32, #tpu.memory_space<vmem>>, vector<1x2x1xi32>
    %14 = vector.shape_cast %13 : vector<1x2x1xi32> to vector<2x1xi32>
    %c0_16 = arith.constant 0 : index
    %c0_17 = arith.constant 0 : index
    %c0_18 = arith.constant 0 : index
    %15 = vector.load %arg5[%c0_16, %c0_17, %c0_18] : memref<1x128x512xbf16, #tpu.memory_space<vmem>>, vector<1x128x512xbf16>
    %16 = vector.shape_cast %15 : vector<1x128x512xbf16> to vector<128x512xbf16>
    %cst_19 = arith.constant 0.000000e+00 : f32
    %17 = vector.broadcast %cst_19 : f32 to vector<2x128xf32>
    %cst_20 = arith.constant 0.000000e+00 : f32
    %18 = vector.broadcast %cst_20 : f32 to vector<2x128xf32>
    %c0_21 = arith.constant 0 : index
    %c0_22 = arith.constant 0 : index
    %19 = vector.load %arg8[%c0_21, %c0_22] : memref<26x512xf32, #tpu.memory_space<vmem>>, vector<2x512xf32>
    %20 = arith.truncf %17 : vector<2x128xf32> to vector<2x128xbf16>
    %cst_23 = arith.constant dense<0.000000e+00> : vector<2x512xf32>
    %21 = tpu.matmul %20, %16, %cst_23 {dimension_numbers = #tpu.dot_dimension_numbers<[1], [0], [0], [1], [0, 0, 1, 1], [], []>} : vector<2x128xbf16>, vector<128x512xbf16>, vector<2x512xf32> -> vector<2x512xf32>
    %22 = arith.addf %19, %21 : vector<2x512xf32>
    %23 = vector.extract_strided_slice %22 {offsets = [0, 0], sizes = [2, 128], strides = [1, 1]} : vector<2x512xf32> to vector<2x128xf32>
    %24 = arith.negf %23 : vector<2x128xf32>
    %25 = math.exp %24 : vector<2x128xf32>
    %cst_24 = arith.constant 1.000000e+00 : f32
    %26 = vector.broadcast %cst_24 : f32 to vector<2x128xf32>
    %27 = arith.addf %26, %25 : vector<2x128xf32>
    %28 = arith.divf %26, %27 : vector<2x128xf32>
    %29 = vector.extract_strided_slice %22 {offsets = [0, 128], sizes = [2, 128], strides = [1, 1]} : vector<2x512xf32> to vector<2x128xf32>
    %30 = arith.negf %29 : vector<2x128xf32>
    %31 = math.exp %30 : vector<2x128xf32>
    %cst_25 = arith.constant 1.000000e+00 : f32
    %32 = vector.broadcast %cst_25 : f32 to vector<2x128xf32>
    %33 = arith.addf %32, %31 : vector<2x128xf32>
    %34 = arith.divf %32, %33 : vector<2x128xf32>
    %35 = vector.extract_strided_slice %22 {offsets = [0, 256], sizes = [2, 128], strides = [1, 1]} : vector<2x512xf32> to vector<2x128xf32>
    %36 = math.tanh %35 : vector<2x128xf32>
    %37 = vector.extract_strided_slice %22 {offsets = [0, 384], sizes = [2, 128], strides = [1, 1]} : vector<2x512xf32> to vector<2x128xf32>
    %38 = arith.negf %37 : vector<2x128xf32>
    %39 = math.exp %38 : vector<2x128xf32>
    %cst_26 = arith.constant 1.000000e+00 : f32
    %40 = vector.broadcast %cst_26 : f32 to vector<2x128xf32>
    %41 = arith.addf %40, %39 : vector<2x128xf32>
    %42 = arith.divf %40, %41 : vector<2x128xf32>
    %43 = arith.mulf %34, %18 : vector<2x128xf32>
    %44 = arith.mulf %28, %36 : vector<2x128xf32>
    %45 = arith.addf %43, %44 : vector<2x128xf32>
    %46 = math.tanh %45 : vector<2x128xf32>
    %47 = arith.mulf %42, %46 : vector<2x128xf32>
    %c0_i32 = arith.constant 0 : i32
    %48 = vector.broadcast %c0_i32 : i32 to vector<2x1xi32>
    %49 = arith.cmpi sle, %12, %48 : vector<2x1xi32>
    %c0_i32_27 = arith.constant 0 : i32
    %50 = vector.broadcast %c0_i32_27 : i32 to vector<2x1xi32>
    %51 = arith.cmpi sgt, %14, %50 : vector<2x1xi32>
    %52 = arith.andi %49, %51 : vector<2x1xi1>
    %cst_28 = arith.constant 0.000000e+00 : f32
    %53 = vector.shape_cast %52 : vector<2x1xi1> to vector<2x1xi1>
    %54 = vector.broadcast %53 : vector<2x1xi1> to vector<2x128xi1>
    %55 = vector.broadcast %cst_28 : f32 to vector<2x128xf32>
    %56 = arith.select %54, %47, %55 : vector<2x128xi1>, vector<2x128xf32>
    %c0_29 = arith.constant 0 : index
    %c0_30 = arith.constant 0 : index
    %c0_31 = arith.constant 0 : index
    %c0_32 = arith.constant 0 : index
    %57 = vector.load %arg7[%c0_29, %c0_30, %c0_31, %c0_32] : memref<1x13x2x128xf32, #tpu.memory_space<vmem>>, vector<1x1x2x128xf32>
    %58 = vector.shape_cast %57 : vector<1x1x2x128xf32> to vector<2x128xf32>
    %59 = vector.shape_cast %56 : vector<2x128xf32> to vector<1x1x2x128xf32>
    tpu.vector_store %arg7[%c0_29, %c0_30, %c0_31, %c0_32], %59 {strides = array<i32>} : memref<1x13x2x128xf32, #tpu.memory_space<vmem>>, vector<1x1x2x128xf32>,
    %60 = vector.shape_cast %52 : vector<2x1xi1> to vector<2x1xi1>
    %61 = vector.broadcast %60 : vector<2x1xi1> to vector<2x128xi1>
    %62 = arith.select %61, %47, %17 : vector<2x128xi1>, vector<2x128xf32>
    %63 = vector.shape_cast %52 : vector<2x1xi1> to vector<2x1xi1>
    %64 = vector.broadcast %63 : vector<2x1xi1> to vector<2x128xi1>
    %65 = arith.select %64, %45, %18 : vector<2x128xi1>, vector<2x128xf32>
    %c2 = arith.constant 2 : index
    %c0_33 = arith.constant 0 : index
    %66 = vector.load %arg8[%c2, %c0_33] : memref<26x512xf32, #tpu.memory_space<vmem>>, vector<2x512xf32>
    %67 = arith.truncf %62 : vector<2x128xf32> to vector<2x128xbf16>
    %cst_34 = arith.constant dense<0.000000e+00> : vector<2x512xf32>
    %68 = tpu.matmul %67, %16, %cst_34 {dimension_numbers = #tpu.dot_dimension_numbers<[1], [0], [0], [1], [0, 0, 1, 1], [], []>} : vector<2x128xbf16>, vector<128x512xbf16>, vector<2x512xf32> -> vector<2x512xf32>
    %69 = arith.addf %66, %68 : vector<2x512xf32>
    %70 = vector.extract_strided_slice %69 {offsets = [0, 0], sizes = [2, 128], strides = [1, 1]} : vector<2x512xf32> to vector<2x128xf32>
    %71 = arith.negf %70 : vector<2x128xf32>
    %72 = math.exp %71 : vector<2x128xf32>
    %cst_35 = arith.constant 1.000000e+00 : f32
    %73 = vector.broadcast %cst_35 : f32 to vector<2x128xf32>
    %74 = arith.addf %73, %72 : vector<2x128xf32>
    %75 = arith.divf %73, %74 : vector<2x128xf32>
    %76 = vector.extract_strided_slice %69 {offsets = [0, 128], sizes = [2, 128], strides = [1, 1]} : vector<2x512xf32> to vector<2x128xf32>
    %77 = arith.negf %76 : vector<2x128xf32>
    %78 = math.exp %77 : vector<2x128xf32>
    %cst_36 = arith.constant 1.000000e+00 : f32
    %79 = vector.broadcast %cst_36 : f32 to vector<2x128xf32>
    %80 = arith.addf %79, %78 : vector<2x128xf32>
    %81 = arith.divf %79, %80 : vector<2x128xf32>
    %82 = vector.extract_strided_slice %69 {offsets = [0, 256], sizes = [2, 128], strides = [1, 1]} : vector<2x512xf32> to vector<2x128xf32>
    %83 = math.tanh %82 : vector<2x128xf32>
    %84 = vector.extract_strided_slice %69 {offsets = [0, 384], sizes = [2, 128], strides = [1, 1]} : vector<2x512xf32> to vector<2x128xf32>
    %85 = arith.negf %84 : vector<2x128xf32>
    %86 = math.exp %85 : vector<2x128xf32>
    %cst_37 = arith.constant 1.000000e+00 : f32
    %87 = vector.broadcast %cst_37 : f32 to vector<2x128xf32>
    %88 = arith.addf %87, %86 : vector<2x128xf32>
    %89 = arith.divf %87, %88 : vector<2x128xf32>
    %90 = arith.mulf %81, %65 : vector<2x128xf32>
    %91 = arith.mulf %75, %83 : vector<2x128xf32>
    %92 = arith.addf %90, %91 : vector<2x128xf32>
    %93 = math.tanh %92 : vector<2x128xf32>
    %94 = arith.mulf %89, %93 : vector<2x128xf32>
    %c1_i32 = arith.constant 1 : i32
    %95 = vector.broadcast %c1_i32 : i32 to vector<2x1xi32>
    %96 = arith.cmpi sle, %12, %95 : vector<2x1xi32>
    %c1_i32_38 = arith.constant 1 : i32
    %97 = vector.broadcast %c1_i32_38 : i32 to vector<2x1xi32>
    %98 = arith.cmpi sgt, %14, %97 : vector<2x1xi32>
    %99 = arith.andi %96, %98 : vector<2x1xi1>
    %cst_39 = arith.constant 0.000000e+00 : f32
    %100 = vector.shape_cast %99 : vector<2x1xi1> to vector<2x1xi1>
    %101 = vector.broadcast %100 : vector<2x1xi1> to vector<2x128xi1>
    %102 = vector.broadcast %cst_39 : f32 to vector<2x128xf32>
    %103 = arith.select %101, %94, %102 : vector<2x128xi1>, vector<2x128xf32>
    %c0_40 = arith.constant 0 : index
    %c1 = arith.constant 1 : index
    %c0_41 = arith.constant 0 : index
    %c0_42 = arith.constant 0 : index
    %104 = vector.load %arg7[%c0_40, %c1, %c0_41, %c0_42] : memref<1x13x2x128xf32, #tpu.memory_space<vmem>>, vector<1x1x2x128xf32>
    %105 = vector.shape_cast %104 : vector<1x1x2x128xf32> to vector<2x128xf32>
    %106 = vector.shape_cast %103 : vector<2x128xf32> to vector<1x1x2x128xf32>
    tpu.vector_store %arg7[%c0_40, %c1, %c0_41, %c0_42], %106 {strides = array<i32>} : memref<1x13x2x128xf32, #tpu.memory_space<vmem>>, vector<1x1x2x128xf32>,
    %107 = vector.shape_cast %99 : vector<2x1xi1> to vector<2x1xi1>
    %108 = vector.broadcast %107 : vector<2x1xi1> to vector<2x128xi1>
    %109 = arith.select %108, %94, %62 : vector<2x128xi1>, vector<2x128xf32>
    %110 = vector.shape_cast %99 : vector<2x1xi1> to vector<2x1xi1>
    %111 = vector.broadcast %110 : vector<2x1xi1> to vector<2x128xi1>
    %112 = arith.select %111, %92, %65 : vector<2x128xi1>, vector<2x128xf32>
    %c4 = arith.constant 4 : index
    %c0_43 = arith.constant 0 : index
    %113 = vector.load %arg8[%c4, %c0_43] : memref<26x512xf32, #tpu.memory_space<vmem>>, vector<2x512xf32>
    %114 = arith.truncf %109 : vector<2x128xf32> to vector<2x128xbf16>
    %cst_44 = arith.constant dense<0.000000e+00> : vector<2x512xf32>
    %115 = tpu.matmul %114, %16, %cst_44 {dimension_numbers = #tpu.dot_dimension_numbers<[1], [0], [0], [1], [0, 0, 1, 1], [], []>} : vector<2x128xbf16>, vector<128x512xbf16>, vector<2x512xf32> -> vector<2x512xf32>
    %116 = arith.addf %113, %115 : vector<2x512xf32>
    %117 = vector.extract_strided_slice %116 {offsets = [0, 0], sizes = [2, 128], strides = [1, 1]} : vector<2x512xf32> to vector<2x128xf32>
    %118 = arith.negf %117 : vector<2x128xf32>
    %119 = math.exp %118 : vector<2x128xf32>
    %cst_45 = arith.constant 1.000000e+00 : f32
    %120 = vector.broadcast %cst_45 : f32 to vector<2x128xf32>
    %121 = arith.addf %120, %119 : vector<2x128xf32>
    %122 = arith.divf %120, %121 : vector<2x128xf32>
    %123 = vector.extract_strided_slice %116 {offsets = [0, 128], sizes = [2, 128], strides = [1, 1]} : vector<2x512xf32> to vector<2x128xf32>
    %124 = arith.negf %123 : vector<2x128xf32>
    %125 = math.exp %124 : vector<2x128xf32>
    %cst_46 = arith.constant 1.000000e+00 : f32
    %126 = vector.broadcast %cst_46 : f32 to vector<2x128xf32>
    %127 = arith.addf %126, %125 : vector<2x128xf32>
    %128 = arith.divf %126, %127 : vector<2x128xf32>
    %129 = vector.extract_strided_slice %116 {offsets = [0, 256], sizes = [2, 128], strides = [1, 1]} : vector<2x512xf32> to vector<2x128xf32>
    %130 = math.tanh %129 : vector<2x128xf32>
    %131 = vector.extract_strided_slice %116 {offsets = [0, 384], sizes = [2, 128], strides = [1, 1]} : vector<2x512xf32> to vector<2x128xf32>
    %132 = arith.negf %131 : vector<2x128xf32>
    %133 = math.exp %132 : vector<2x128xf32>
    %cst_47 = arith.constant 1.000000e+00 : f32
    %134 = vector.broadcast %cst_47 : f32 to vector<2x128xf32>
    %135 = arith.addf %134, %133 : vector<2x128xf32>
    %136 = arith.divf %134, %135 : vector<2x128xf32>
    %137 = arith.mulf %128, %112 : vector<2x128xf32>
    %138 = arith.mulf %122, %130 : vector<2x128xf32>
    %139 = arith.addf %137, %138 : vector<2x128xf32>
    %140 = math.tanh %139 : vector<2x128xf32>
    %141 = arith.mulf %136, %140 : vector<2x128xf32>
    %c2_i32 = arith.constant 2 : i32
    %142 = vector.broadcast %c2_i32 : i32 to vector<2x1xi32>
    %143 = arith.cmpi sle, %12, %142 : vector<2x1xi32>
    %c2_i32_48 = arith.constant 2 : i32
    %144 = vector.broadcast %c2_i32_48 : i32 to vector<2x1xi32>
    %145 = arith.cmpi sgt, %14, %144 : vector<2x1xi32>
    %146 = arith.andi %143, %145 : vector<2x1xi1>
    %cst_49 = arith.constant 0.000000e+00 : f32
    %147 = vector.shape_cast %146 : vector<2x1xi1> to vector<2x1xi1>
    %148 = vector.broadcast %147 : vector<2x1xi1> to vector<2x128xi1>
    %149 = vector.broadcast %cst_49 : f32 to vector<2x128xf32>
    %150 = arith.select %148, %141, %149 : vector<2x128xi1>, vector<2x128xf32>
    %c0_50 = arith.constant 0 : index
    %c2_51 = arith.constant 2 : index
    %c0_52 = arith.constant 0 : index
    %c0_53 = arith.constant 0 : index
    %151 = vector.load %arg7[%c0_50, %c2_51, %c0_52, %c0_53] : memref<1x13x2x128xf32, #tpu.memory_space<vmem>>, vector<1x1x2x128xf32>
    %152 = vector.shape_cast %151 : vector<1x1x2x128xf32> to vector<2x128xf32>
    %153 = vector.shape_cast %150 : vector<2x128xf32> to vector<1x1x2x128xf32>
    tpu.vector_store %arg7[%c0_50, %c2_51, %c0_52, %c0_53], %153 {strides = array<i32>} : memref<1x13x2x128xf32, #tpu.memory_space<vmem>>, vector<1x1x2x128xf32>,
    %154 = vector.shape_cast %146 : vector<2x1xi1> to vector<2x1xi1>
    %155 = vector.broadcast %154 : vector<2x1xi1> to vector<2x128xi1>
    %156 = arith.select %155, %141, %109 : vector<2x128xi1>, vector<2x128xf32>
    %157 = vector.shape_cast %146 : vector<2x1xi1> to vector<2x1xi1>
    %158 = vector.broadcast %157 : vector<2x1xi1> to vector<2x128xi1>
    %159 = arith.select %158, %139, %112 : vector<2x128xi1>, vector<2x128xf32>
    %c6 = arith.constant 6 : index
    %c0_54 = arith.constant 0 : index
    %160 = vector.load %arg8[%c6, %c0_54] : memref<26x512xf32, #tpu.memory_space<vmem>>, vector<2x512xf32>
    %161 = arith.truncf %156 : vector<2x128xf32> to vector<2x128xbf16>
    %cst_55 = arith.constant dense<0.000000e+00> : vector<2x512xf32>
    %162 = tpu.matmul %161, %16, %cst_55 {dimension_numbers = #tpu.dot_dimension_numbers<[1], [0], [0], [1], [0, 0, 1, 1], [], []>} : vector<2x128xbf16>, vector<128x512xbf16>, vector<2x512xf32> -> vector<2x512xf32>
    %163 = arith.addf %160, %162 : vector<2x512xf32>
    %164 = vector.extract_strided_slice %163 {offsets = [0, 0], sizes = [2, 128], strides = [1, 1]} : vector<2x512xf32> to vector<2x128xf32>
    %165 = arith.negf %164 : vector<2x128xf32>
    %166 = math.exp %165 : vector<2x128xf32>
    %cst_56 = arith.constant 1.000000e+00 : f32
    %167 = vector.broadcast %cst_56 : f32 to vector<2x128xf32>
    %168 = arith.addf %167, %166 : vector<2x128xf32>
    %169 = arith.divf %167, %168 : vector<2x128xf32>
    %170 = vector.extract_strided_slice %163 {offsets = [0, 128], sizes = [2, 128], strides = [1, 1]} : vector<2x512xf32> to vector<2x128xf32>
    %171 = arith.negf %170 : vector<2x128xf32>
    %172 = math.exp %171 : vector<2x128xf32>
    %cst_57 = arith.constant 1.000000e+00 : f32
    %173 = vector.broadcast %cst_57 : f32 to vector<2x128xf32>
    %174 = arith.addf %173, %172 : vector<2x128xf32>
    %175 = arith.divf %173, %174 : vector<2x128xf32>
    %176 = vector.extract_strided_slice %163 {offsets = [0, 256], sizes = [2, 128], strides = [1, 1]} : vector<2x512xf32> to vector<2x128xf32>
    %177 = math.tanh %176 : vector<2x128xf32>
    %178 = vector.extract_strided_slice %163 {offsets = [0, 384], sizes = [2, 128], strides = [1, 1]} : vector<2x512xf32> to vector<2x128xf32>
    %179 = arith.negf %178 : vector<2x128xf32>
    %180 = math.exp %179 : vector<2x128xf32>
    %cst_58 = arith.constant 1.000000e+00 : f32
    %181 = vector.broadcast %cst_58 : f32 to vector<2x128xf32>
    %182 = arith.addf %181, %180 : vector<2x128xf32>
    %183 = arith.divf %181, %182 : vector<2x128xf32>
    %184 = arith.mulf %175, %159 : vector<2x128xf32>
    %185 = arith.mulf %169, %177 : vector<2x128xf32>
    %186 = arith.addf %184, %185 : vector<2x128xf32>
    %187 = math.tanh %186 : vector<2x128xf32>
    %188 = arith.mulf %183, %187 : vector<2x128xf32>
    %c3_i32 = arith.constant 3 : i32
    %189 = vector.broadcast %c3_i32 : i32 to vector<2x1xi32>
    %190 = arith.cmpi sle, %12, %189 : vector<2x1xi32>
    %c3_i32_59 = arith.constant 3 : i32
    %191 = vector.broadcast %c3_i32_59 : i32 to vector<2x1xi32>
    %192 = arith.cmpi sgt, %14, %191 : vector<2x1xi32>
    %193 = arith.andi %190, %192 : vector<2x1xi1>
    %cst_60 = arith.constant 0.000000e+00 : f32
    %194 = vector.shape_cast %193 : vector<2x1xi1> to vector<2x1xi1>
    %195 = vector.broadcast %194 : vector<2x1xi1> to vector<2x128xi1>
    %196 = vector.broadcast %cst_60 : f32 to vector<2x128xf32>
    %197 = arith.select %195, %188, %196 : vector<2x128xi1>, vector<2x128xf32>
    %c0_61 = arith.constant 0 : index
    %c3 = arith.constant 3 : index
    %c0_62 = arith.constant 0 : index
    %c0_63 = arith.constant 0 : index
    %198 = vector.load %arg7[%c0_61, %c3, %c0_62, %c0_63] : memref<1x13x2x128xf32, #tpu.memory_space<vmem>>, vector<1x1x2x128xf32>
    %199 = vector.shape_cast %198 : vector<1x1x2x128xf32> to vector<2x128xf32>
    %200 = vector.shape_cast %197 : vector<2x128xf32> to vector<1x1x2x128xf32>
    tpu.vector_store %arg7[%c0_61, %c3, %c0_62, %c0_63], %200 {strides = array<i32>} : memref<1x13x2x128xf32, #tpu.memory_space<vmem>>, vector<1x1x2x128xf32>,
    %201 = vector.shape_cast %193 : vector<2x1xi1> to vector<2x1xi1>
    %202 = vector.broadcast %201 : vector<2x1xi1> to vector<2x128xi1>
    %203 = arith.select %202, %188, %156 : vector<2x128xi1>, vector<2x128xf32>
    %204 = vector.shape_cast %193 : vector<2x1xi1> to vector<2x1xi1>
    %205 = vector.broadcast %204 : vector<2x1xi1> to vector<2x128xi1>
    %206 = arith.select %205, %186, %159 : vector<2x128xi1>, vector<2x128xf32>
    %c8 = arith.constant 8 : index
    %c0_64 = arith.constant 0 : index
    %207 = vector.load %arg8[%c8, %c0_64] : memref<26x512xf32, #tpu.memory_space<vmem>>, vector<2x512xf32>
    %208 = arith.truncf %203 : vector<2x128xf32> to vector<2x128xbf16>
    %cst_65 = arith.constant dense<0.000000e+00> : vector<2x512xf32>
    %209 = tpu.matmul %208, %16, %cst_65 {dimension_numbers = #tpu.dot_dimension_numbers<[1], [0], [0], [1], [0, 0, 1, 1], [], []>} : vector<2x128xbf16>, vector<128x512xbf16>, vector<2x512xf32> -> vector<2x512xf32>
    %210 = arith.addf %207, %209 : vector<2x512xf32>
    %211 = vector.extract_strided_slice %210 {offsets = [0, 0], sizes = [2, 128], strides = [1, 1]} : vector<2x512xf32> to vector<2x128xf32>
    %212 = arith.negf %211 : vector<2x128xf32>
    %213 = math.exp %212 : vector<2x128xf32>
    %cst_66 = arith.constant 1.000000e+00 : f32
    %214 = vector.broadcast %cst_66 : f32 to vector<2x128xf32>
    %215 = arith.addf %214, %213 : vector<2x128xf32>
    %216 = arith.divf %214, %215 : vector<2x128xf32>
    %217 = vector.extract_strided_slice %210 {offsets = [0, 128], sizes = [2, 128], strides = [1, 1]} : vector<2x512xf32> to vector<2x128xf32>
    %218 = arith.negf %217 : vector<2x128xf32>
    %219 = math.exp %218 : vector<2x128xf32>
    %cst_67 = arith.constant 1.000000e+00 : f32
    %220 = vector.broadcast %cst_67 : f32 to vector<2x128xf32>
    %221 = arith.addf %220, %219 : vector<2x128xf32>
    %222 = arith.divf %220, %221 : vector<2x128xf32>
    %223 = vector.extract_strided_slice %210 {offsets = [0, 256], sizes = [2, 128], strides = [1, 1]} : vector<2x512xf32> to vector<2x128xf32>
    %224 = math.tanh %223 : vector<2x128xf32>
    %225 = vector.extract_strided_slice %210 {offsets = [0, 384], sizes = [2, 128], strides = [1, 1]} : vector<2x512xf32> to vector<2x128xf32>
    %226 = arith.negf %225 : vector<2x128xf32>
    %227 = math.exp %226 : vector<2x128xf32>
    %cst_68 = arith.constant 1.000000e+00 : f32
    %228 = vector.broadcast %cst_68 : f32 to vector<2x128xf32>
    %229 = arith.addf %228, %227 : vector<2x128xf32>
    %230 = arith.divf %228, %229 : vector<2x128xf32>
    %231 = arith.mulf %222, %206 : vector<2x128xf32>
    %232 = arith.mulf %216, %224 : vector<2x128xf32>
    %233 = arith.addf %231, %232 : vector<2x128xf32>
    %234 = math.tanh %233 : vector<2x128xf32>
    %235 = arith.mulf %230, %234 : vector<2x128xf32>
    %c4_i32 = arith.constant 4 : i32
    %236 = vector.broadcast %c4_i32 : i32 to vector<2x1xi32>
    %237 = arith.cmpi sle, %12, %236 : vector<2x1xi32>
    %c4_i32_69 = arith.constant 4 : i32
    %238 = vector.broadcast %c4_i32_69 : i32 to vector<2x1xi32>
    %239 = arith.cmpi sgt, %14, %238 : vector<2x1xi32>
    %240 = arith.andi %237, %239 : vector<2x1xi1>
    %cst_70 = arith.constant 0.000000e+00 : f32
    %241 = vector.shape_cast %240 : vector<2x1xi1> to vector<2x1xi1>
    %242 = vector.broadcast %241 : vector<2x1xi1> to vector<2x128xi1>
    %243 = vector.broadcast %cst_70 : f32 to vector<2x128xf32>
    %244 = arith.select %242, %235, %243 : vector<2x128xi1>, vector<2x128xf32>
    %c0_71 = arith.constant 0 : index
    %c4_72 = arith.constant 4 : index
    %c0_73 = arith.constant 0 : index
    %c0_74 = arith.constant 0 : index
    %245 = vector.load %arg7[%c0_71, %c4_72, %c0_73, %c0_74] : memref<1x13x2x128xf32, #tpu.memory_space<vmem>>, vector<1x1x2x128xf32>
    %246 = vector.shape_cast %245 : vector<1x1x2x128xf32> to vector<2x128xf32>
    %247 = vector.shape_cast %244 : vector<2x128xf32> to vector<1x1x2x128xf32>
    tpu.vector_store %arg7[%c0_71, %c4_72, %c0_73, %c0_74], %247 {strides = array<i32>} : memref<1x13x2x128xf32, #tpu.memory_space<vmem>>, vector<1x1x2x128xf32>,
    %248 = vector.shape_cast %240 : vector<2x1xi1> to vector<2x1xi1>
    %249 = vector.broadcast %248 : vector<2x1xi1> to vector<2x128xi1>
    %250 = arith.select %249, %235, %203 : vector<2x128xi1>, vector<2x128xf32>
    %251 = vector.shape_cast %240 : vector<2x1xi1> to vector<2x1xi1>
    %252 = vector.broadcast %251 : vector<2x1xi1> to vector<2x128xi1>
    %253 = arith.select %252, %233, %206 : vector<2x128xi1>, vector<2x128xf32>
    %c10 = arith.constant 10 : index
    %c0_75 = arith.constant 0 : index
    %254 = vector.load %arg8[%c10, %c0_75] : memref<26x512xf32, #tpu.memory_space<vmem>>, vector<2x512xf32>
    %255 = arith.truncf %250 : vector<2x128xf32> to vector<2x128xbf16>
    %cst_76 = arith.constant dense<0.000000e+00> : vector<2x512xf32>
    %256 = tpu.matmul %255, %16, %cst_76 {dimension_numbers = #tpu.dot_dimension_numbers<[1], [0], [0], [1], [0, 0, 1, 1], [], []>} : vector<2x128xbf16>, vector<128x512xbf16>, vector<2x512xf32> -> vector<2x512xf32>
    %257 = arith.addf %254, %256 : vector<2x512xf32>
    %258 = vector.extract_strided_slice %257 {offsets = [0, 0], sizes = [2, 128], strides = [1, 1]} : vector<2x512xf32> to vector<2x128xf32>
    %259 = arith.negf %258 : vector<2x128xf32>
    %260 = math.exp %259 : vector<2x128xf32>
    %cst_77 = arith.constant 1.000000e+00 : f32
    %261 = vector.broadcast %cst_77 : f32 to vector<2x128xf32>
    %262 = arith.addf %261, %260 : vector<2x128xf32>
    %263 = arith.divf %261, %262 : vector<2x128xf32>
    %264 = vector.extract_strided_slice %257 {offsets = [0, 128], sizes = [2, 128], strides = [1, 1]} : vector<2x512xf32> to vector<2x128xf32>
    %265 = arith.negf %264 : vector<2x128xf32>
    %266 = math.exp %265 : vector<2x128xf32>
    %cst_78 = arith.constant 1.000000e+00 : f32
    %267 = vector.broadcast %cst_78 : f32 to vector<2x128xf32>
    %268 = arith.addf %267, %266 : vector<2x128xf32>
    %269 = arith.divf %267, %268 : vector<2x128xf32>
    %270 = vector.extract_strided_slice %257 {offsets = [0, 256], sizes = [2, 128], strides = [1, 1]} : vector<2x512xf32> to vector<2x128xf32>
    %271 = math.tanh %270 : vector<2x128xf32>
    %272 = vector.extract_strided_slice %257 {offsets = [0, 384], sizes = [2, 128], strides = [1, 1]} : vector<2x512xf32> to vector<2x128xf32>
    %273 = arith.negf %272 : vector<2x128xf32>
    %274 = math.exp %273 : vector<2x128xf32>
    %cst_79 = arith.constant 1.000000e+00 : f32
    %275 = vector.broadcast %cst_79 : f32 to vector<2x128xf32>
    %276 = arith.addf %275, %274 : vector<2x128xf32>
    %277 = arith.divf %275, %276 : vector<2x128xf32>
    %278 = arith.mulf %269, %253 : vector<2x128xf32>
    %279 = arith.mulf %263, %271 : vector<2x128xf32>
    %280 = arith.addf %278, %279 : vector<2x128xf32>
    %281 = math.tanh %280 : vector<2x128xf32>
    %282 = arith.mulf %277, %281 : vector<2x128xf32>
    %c5_i32 = arith.constant 5 : i32
    %283 = vector.broadcast %c5_i32 : i32 to vector<2x1xi32>
    %284 = arith.cmpi sle, %12, %283 : vector<2x1xi32>
    %c5_i32_80 = arith.constant 5 : i32
    %285 = vector.broadcast %c5_i32_80 : i32 to vector<2x1xi32>
    %286 = arith.cmpi sgt, %14, %285 : vector<2x1xi32>
    %287 = arith.andi %284, %286 : vector<2x1xi1>
    %cst_81 = arith.constant 0.000000e+00 : f32
    %288 = vector.shape_cast %287 : vector<2x1xi1> to vector<2x1xi1>
    %289 = vector.broadcast %288 : vector<2x1xi1> to vector<2x128xi1>
    %290 = vector.broadcast %cst_81 : f32 to vector<2x128xf32>
    %291 = arith.select %289, %282, %290 : vector<2x128xi1>, vector<2x128xf32>
    %c0_82 = arith.constant 0 : index
    %c5 = arith.constant 5 : index
    %c0_83 = arith.constant 0 : index
    %c0_84 = arith.constant 0 : index
    %292 = vector.load %arg7[%c0_82, %c5, %c0_83, %c0_84] : memref<1x13x2x128xf32, #tpu.memory_space<vmem>>, vector<1x1x2x128xf32>
    %293 = vector.shape_cast %292 : vector<1x1x2x128xf32> to vector<2x128xf32>
    %294 = vector.shape_cast %291 : vector<2x128xf32> to vector<1x1x2x128xf32>
    tpu.vector_store %arg7[%c0_82, %c5, %c0_83, %c0_84], %294 {strides = array<i32>} : memref<1x13x2x128xf32, #tpu.memory_space<vmem>>, vector<1x1x2x128xf32>,
    %295 = vector.shape_cast %287 : vector<2x1xi1> to vector<2x1xi1>
    %296 = vector.broadcast %295 : vector<2x1xi1> to vector<2x128xi1>
    %297 = arith.select %296, %282, %250 : vector<2x128xi1>, vector<2x128xf32>
    %298 = vector.shape_cast %287 : vector<2x1xi1> to vector<2x1xi1>
    %299 = vector.broadcast %298 : vector<2x1xi1> to vector<2x128xi1>
    %300 = arith.select %299, %280, %253 : vector<2x128xi1>, vector<2x128xf32>
    %c12 = arith.constant 12 : index
    %c0_85 = arith.constant 0 : index
    %301 = vector.load %arg8[%c12, %c0_85] : memref<26x512xf32, #tpu.memory_space<vmem>>, vector<2x512xf32>
    %302 = arith.truncf %297 : vector<2x128xf32> to vector<2x128xbf16>
    %cst_86 = arith.constant dense<0.000000e+00> : vector<2x512xf32>
    %303 = tpu.matmul %302, %16, %cst_86 {dimension_numbers = #tpu.dot_dimension_numbers<[1], [0], [0], [1], [0, 0, 1, 1], [], []>} : vector<2x128xbf16>, vector<128x512xbf16>, vector<2x512xf32> -> vector<2x512xf32>
    %304 = arith.addf %301, %303 : vector<2x512xf32>
    %305 = vector.extract_strided_slice %304 {offsets = [0, 0], sizes = [2, 128], strides = [1, 1]} : vector<2x512xf32> to vector<2x128xf32>
    %306 = arith.negf %305 : vector<2x128xf32>
    %307 = math.exp %306 : vector<2x128xf32>
    %cst_87 = arith.constant 1.000000e+00 : f32
    %308 = vector.broadcast %cst_87 : f32 to vector<2x128xf32>
    %309 = arith.addf %308, %307 : vector<2x128xf32>
    %310 = arith.divf %308, %309 : vector<2x128xf32>
    %311 = vector.extract_strided_slice %304 {offsets = [0, 128], sizes = [2, 128], strides = [1, 1]} : vector<2x512xf32> to vector<2x128xf32>
    %312 = arith.negf %311 : vector<2x128xf32>
    %313 = math.exp %312 : vector<2x128xf32>
    %cst_88 = arith.constant 1.000000e+00 : f32
    %314 = vector.broadcast %cst_88 : f32 to vector<2x128xf32>
    %315 = arith.addf %314, %313 : vector<2x128xf32>
    %316 = arith.divf %314, %315 : vector<2x128xf32>
    %317 = vector.extract_strided_slice %304 {offsets = [0, 256], sizes = [2, 128], strides = [1, 1]} : vector<2x512xf32> to vector<2x128xf32>
    %318 = math.tanh %317 : vector<2x128xf32>
    %319 = vector.extract_strided_slice %304 {offsets = [0, 384], sizes = [2, 128], strides = [1, 1]} : vector<2x512xf32> to vector<2x128xf32>
    %320 = arith.negf %319 : vector<2x128xf32>
    %321 = math.exp %320 : vector<2x128xf32>
    %cst_89 = arith.constant 1.000000e+00 : f32
    %322 = vector.broadcast %cst_89 : f32 to vector<2x128xf32>
    %323 = arith.addf %322, %321 : vector<2x128xf32>
    %324 = arith.divf %322, %323 : vector<2x128xf32>
    %325 = arith.mulf %316, %300 : vector<2x128xf32>
    %326 = arith.mulf %310, %318 : vector<2x128xf32>
    %327 = arith.addf %325, %326 : vector<2x128xf32>
    %328 = math.tanh %327 : vector<2x128xf32>
    %329 = arith.mulf %324, %328 : vector<2x128xf32>
    %c6_i32 = arith.constant 6 : i32
    %330 = vector.broadcast %c6_i32 : i32 to vector<2x1xi32>
    %331 = arith.cmpi sle, %12, %330 : vector<2x1xi32>
    %c6_i32_90 = arith.constant 6 : i32
    %332 = vector.broadcast %c6_i32_90 : i32 to vector<2x1xi32>
    %333 = arith.cmpi sgt, %14, %332 : vector<2x1xi32>
    %334 = arith.andi %331, %333 : vector<2x1xi1>
    %cst_91 = arith.constant 0.000000e+00 : f32
    %335 = vector.shape_cast %334 : vector<2x1xi1> to vector<2x1xi1>
    %336 = vector.broadcast %335 : vector<2x1xi1> to vector<2x128xi1>
    %337 = vector.broadcast %cst_91 : f32 to vector<2x128xf32>
    %338 = arith.select %336, %329, %337 : vector<2x128xi1>, vector<2x128xf32>
    %c0_92 = arith.constant 0 : index
    %c6_93 = arith.constant 6 : index
    %c0_94 = arith.constant 0 : index
    %c0_95 = arith.constant 0 : index
    %339 = vector.load %arg7[%c0_92, %c6_93, %c0_94, %c0_95] : memref<1x13x2x128xf32, #tpu.memory_space<vmem>>, vector<1x1x2x128xf32>
    %340 = vector.shape_cast %339 : vector<1x1x2x128xf32> to vector<2x128xf32>
    %341 = vector.shape_cast %338 : vector<2x128xf32> to vector<1x1x2x128xf32>
    tpu.vector_store %arg7[%c0_92, %c6_93, %c0_94, %c0_95], %341 {strides = array<i32>} : memref<1x13x2x128xf32, #tpu.memory_space<vmem>>, vector<1x1x2x128xf32>,
    %342 = vector.shape_cast %334 : vector<2x1xi1> to vector<2x1xi1>
    %343 = vector.broadcast %342 : vector<2x1xi1> to vector<2x128xi1>
    %344 = arith.select %343, %329, %297 : vector<2x128xi1>, vector<2x128xf32>
    %345 = vector.shape_cast %334 : vector<2x1xi1> to vector<2x1xi1>
    %346 = vector.broadcast %345 : vector<2x1xi1> to vector<2x128xi1>
    %347 = arith.select %346, %327, %300 : vector<2x128xi1>, vector<2x128xf32>
    %c14 = arith.constant 14 : index
    %c0_96 = arith.constant 0 : index
    %348 = vector.load %arg8[%c14, %c0_96] : memref<26x512xf32, #tpu.memory_space<vmem>>, vector<2x512xf32>
    %349 = arith.truncf %344 : vector<2x128xf32> to vector<2x128xbf16>
    %cst_97 = arith.constant dense<0.000000e+00> : vector<2x512xf32>
    %350 = tpu.matmul %349, %16, %cst_97 {dimension_numbers = #tpu.dot_dimension_numbers<[1], [0], [0], [1], [0, 0, 1, 1], [], []>} : vector<2x128xbf16>, vector<128x512xbf16>, vector<2x512xf32> -> vector<2x512xf32>
    %351 = arith.addf %348, %350 : vector<2x512xf32>
    %352 = vector.extract_strided_slice %351 {offsets = [0, 0], sizes = [2, 128], strides = [1, 1]} : vector<2x512xf32> to vector<2x128xf32>
    %353 = arith.negf %352 : vector<2x128xf32>
    %354 = math.exp %353 : vector<2x128xf32>
    %cst_98 = arith.constant 1.000000e+00 : f32
    %355 = vector.broadcast %cst_98 : f32 to vector<2x128xf32>
    %356 = arith.addf %355, %354 : vector<2x128xf32>
    %357 = arith.divf %355, %356 : vector<2x128xf32>
    %358 = vector.extract_strided_slice %351 {offsets = [0, 128], sizes = [2, 128], strides = [1, 1]} : vector<2x512xf32> to vector<2x128xf32>
    %359 = arith.negf %358 : vector<2x128xf32>
    %360 = math.exp %359 : vector<2x128xf32>
    %cst_99 = arith.constant 1.000000e+00 : f32
    %361 = vector.broadcast %cst_99 : f32 to vector<2x128xf32>
    %362 = arith.addf %361, %360 : vector<2x128xf32>
    %363 = arith.divf %361, %362 : vector<2x128xf32>
    %364 = vector.extract_strided_slice %351 {offsets = [0, 256], sizes = [2, 128], strides = [1, 1]} : vector<2x512xf32> to vector<2x128xf32>
    %365 = math.tanh %364 : vector<2x128xf32>
    %366 = vector.extract_strided_slice %351 {offsets = [0, 384], sizes = [2, 128], strides = [1, 1]} : vector<2x512xf32> to vector<2x128xf32>
    %367 = arith.negf %366 : vector<2x128xf32>
    %368 = math.exp %367 : vector<2x128xf32>
    %cst_100 = arith.constant 1.000000e+00 : f32
    %369 = vector.broadcast %cst_100 : f32 to vector<2x128xf32>
    %370 = arith.addf %369, %368 : vector<2x128xf32>
    %371 = arith.divf %369, %370 : vector<2x128xf32>
    %372 = arith.mulf %363, %347 : vector<2x128xf32>
    %373 = arith.mulf %357, %365 : vector<2x128xf32>
    %374 = arith.addf %372, %373 : vector<2x128xf32>
    %375 = math.tanh %374 : vector<2x128xf32>
    %376 = arith.mulf %371, %375 : vector<2x128xf32>
    %c7_i32 = arith.constant 7 : i32
    %377 = vector.broadcast %c7_i32 : i32 to vector<2x1xi32>
    %378 = arith.cmpi sle, %12, %377 : vector<2x1xi32>
    %c7_i32_101 = arith.constant 7 : i32
    %379 = vector.broadcast %c7_i32_101 : i32 to vector<2x1xi32>
    %380 = arith.cmpi sgt, %14, %379 : vector<2x1xi32>
    %381 = arith.andi %378, %380 : vector<2x1xi1>
    %cst_102 = arith.constant 0.000000e+00 : f32
    %382 = vector.shape_cast %381 : vector<2x1xi1> to vector<2x1xi1>
    %383 = vector.broadcast %382 : vector<2x1xi1> to vector<2x128xi1>
    %384 = vector.broadcast %cst_102 : f32 to vector<2x128xf32>
    %385 = arith.select %383, %376, %384 : vector<2x128xi1>, vector<2x128xf32>
    %c0_103 = arith.constant 0 : index
    %c7 = arith.constant 7 : index
    %c0_104 = arith.constant 0 : index
    %c0_105 = arith.constant 0 : index
    %386 = vector.load %arg7[%c0_103, %c7, %c0_104, %c0_105] : memref<1x13x2x128xf32, #tpu.memory_space<vmem>>, vector<1x1x2x128xf32>
    %387 = vector.shape_cast %386 : vector<1x1x2x128xf32> to vector<2x128xf32>
    %388 = vector.shape_cast %385 : vector<2x128xf32> to vector<1x1x2x128xf32>
    tpu.vector_store %arg7[%c0_103, %c7, %c0_104, %c0_105], %388 {strides = array<i32>} : memref<1x13x2x128xf32, #tpu.memory_space<vmem>>, vector<1x1x2x128xf32>,
    %389 = vector.shape_cast %381 : vector<2x1xi1> to vector<2x1xi1>
    %390 = vector.broadcast %389 : vector<2x1xi1> to vector<2x128xi1>
    %391 = arith.select %390, %376, %344 : vector<2x128xi1>, vector<2x128xf32>
    %392 = vector.shape_cast %381 : vector<2x1xi1> to vector<2x1xi1>
    %393 = vector.broadcast %392 : vector<2x1xi1> to vector<2x128xi1>
    %394 = arith.select %393, %374, %347 : vector<2x128xi1>, vector<2x128xf32>
    %c16 = arith.constant 16 : index
    %c0_106 = arith.constant 0 : index
    %395 = vector.load %arg8[%c16, %c0_106] : memref<26x512xf32, #tpu.memory_space<vmem>>, vector<2x512xf32>
    %396 = arith.truncf %391 : vector<2x128xf32> to vector<2x128xbf16>
    %cst_107 = arith.constant dense<0.000000e+00> : vector<2x512xf32>
    %397 = tpu.matmul %396, %16, %cst_107 {dimension_numbers = #tpu.dot_dimension_numbers<[1], [0], [0], [1], [0, 0, 1, 1], [], []>} : vector<2x128xbf16>, vector<128x512xbf16>, vector<2x512xf32> -> vector<2x512xf32>
    %398 = arith.addf %395, %397 : vector<2x512xf32>
    %399 = vector.extract_strided_slice %398 {offsets = [0, 0], sizes = [2, 128], strides = [1, 1]} : vector<2x512xf32> to vector<2x128xf32>
    %400 = arith.negf %399 : vector<2x128xf32>
    %401 = math.exp %400 : vector<2x128xf32>
    %cst_108 = arith.constant 1.000000e+00 : f32
    %402 = vector.broadcast %cst_108 : f32 to vector<2x128xf32>
    %403 = arith.addf %402, %401 : vector<2x128xf32>
    %404 = arith.divf %402, %403 : vector<2x128xf32>
    %405 = vector.extract_strided_slice %398 {offsets = [0, 128], sizes = [2, 128], strides = [1, 1]} : vector<2x512xf32> to vector<2x128xf32>
    %406 = arith.negf %405 : vector<2x128xf32>
    %407 = math.exp %406 : vector<2x128xf32>
    %cst_109 = arith.constant 1.000000e+00 : f32
    %408 = vector.broadcast %cst_109 : f32 to vector<2x128xf32>
    %409 = arith.addf %408, %407 : vector<2x128xf32>
    %410 = arith.divf %408, %409 : vector<2x128xf32>
    %411 = vector.extract_strided_slice %398 {offsets = [0, 256], sizes = [2, 128], strides = [1, 1]} : vector<2x512xf32> to vector<2x128xf32>
    %412 = math.tanh %411 : vector<2x128xf32>
    %413 = vector.extract_strided_slice %398 {offsets = [0, 384], sizes = [2, 128], strides = [1, 1]} : vector<2x512xf32> to vector<2x128xf32>
    %414 = arith.negf %413 : vector<2x128xf32>
    %415 = math.exp %414 : vector<2x128xf32>
    %cst_110 = arith.constant 1.000000e+00 : f32
    %416 = vector.broadcast %cst_110 : f32 to vector<2x128xf32>
    %417 = arith.addf %416, %415 : vector<2x128xf32>
    %418 = arith.divf %416, %417 : vector<2x128xf32>
    %419 = arith.mulf %410, %394 : vector<2x128xf32>
    %420 = arith.mulf %404, %412 : vector<2x128xf32>
    %421 = arith.addf %419, %420 : vector<2x128xf32>
    %422 = math.tanh %421 : vector<2x128xf32>
    %423 = arith.mulf %418, %422 : vector<2x128xf32>
    %c8_i32 = arith.constant 8 : i32
    %424 = vector.broadcast %c8_i32 : i32 to vector<2x1xi32>
    %425 = arith.cmpi sle, %12, %424 : vector<2x1xi32>
    %c8_i32_111 = arith.constant 8 : i32
    %426 = vector.broadcast %c8_i32_111 : i32 to vector<2x1xi32>
    %427 = arith.cmpi sgt, %14, %426 : vector<2x1xi32>
    %428 = arith.andi %425, %427 : vector<2x1xi1>
    %cst_112 = arith.constant 0.000000e+00 : f32
    %429 = vector.shape_cast %428 : vector<2x1xi1> to vector<2x1xi1>
    %430 = vector.broadcast %429 : vector<2x1xi1> to vector<2x128xi1>
    %431 = vector.broadcast %cst_112 : f32 to vector<2x128xf32>
    %432 = arith.select %430, %423, %431 : vector<2x128xi1>, vector<2x128xf32>
    %c0_113 = arith.constant 0 : index
    %c8_114 = arith.constant 8 : index
    %c0_115 = arith.constant 0 : index
    %c0_116 = arith.constant 0 : index
    %433 = vector.load %arg7[%c0_113, %c8_114, %c0_115, %c0_116] : memref<1x13x2x128xf32, #tpu.memory_space<vmem>>, vector<1x1x2x128xf32>
    %434 = vector.shape_cast %433 : vector<1x1x2x128xf32> to vector<2x128xf32>
    %435 = vector.shape_cast %432 : vector<2x128xf32> to vector<1x1x2x128xf32>
    tpu.vector_store %arg7[%c0_113, %c8_114, %c0_115, %c0_116], %435 {strides = array<i32>} : memref<1x13x2x128xf32, #tpu.memory_space<vmem>>, vector<1x1x2x128xf32>,
    %436 = vector.shape_cast %428 : vector<2x1xi1> to vector<2x1xi1>
    %437 = vector.broadcast %436 : vector<2x1xi1> to vector<2x128xi1>
    %438 = arith.select %437, %423, %391 : vector<2x128xi1>, vector<2x128xf32>
    %439 = vector.shape_cast %428 : vector<2x1xi1> to vector<2x1xi1>
    %440 = vector.broadcast %439 : vector<2x1xi1> to vector<2x128xi1>
    %441 = arith.select %440, %421, %394 : vector<2x128xi1>, vector<2x128xf32>
    %c18 = arith.constant 18 : index
    %c0_117 = arith.constant 0 : index
    %442 = vector.load %arg8[%c18, %c0_117] : memref<26x512xf32, #tpu.memory_space<vmem>>, vector<2x512xf32>
    %443 = arith.truncf %438 : vector<2x128xf32> to vector<2x128xbf16>
    %cst_118 = arith.constant dense<0.000000e+00> : vector<2x512xf32>
    %444 = tpu.matmul %443, %16, %cst_118 {dimension_numbers = #tpu.dot_dimension_numbers<[1], [0], [0], [1], [0, 0, 1, 1], [], []>} : vector<2x128xbf16>, vector<128x512xbf16>, vector<2x512xf32> -> vector<2x512xf32>
    %445 = arith.addf %442, %444 : vector<2x512xf32>
    %446 = vector.extract_strided_slice %445 {offsets = [0, 0], sizes = [2, 128], strides = [1, 1]} : vector<2x512xf32> to vector<2x128xf32>
    %447 = arith.negf %446 : vector<2x128xf32>
    %448 = math.exp %447 : vector<2x128xf32>
    %cst_119 = arith.constant 1.000000e+00 : f32
    %449 = vector.broadcast %cst_119 : f32 to vector<2x128xf32>
    %450 = arith.addf %449, %448 : vector<2x128xf32>
    %451 = arith.divf %449, %450 : vector<2x128xf32>
    %452 = vector.extract_strided_slice %445 {offsets = [0, 128], sizes = [2, 128], strides = [1, 1]} : vector<2x512xf32> to vector<2x128xf32>
    %453 = arith.negf %452 : vector<2x128xf32>
    %454 = math.exp %453 : vector<2x128xf32>
    %cst_120 = arith.constant 1.000000e+00 : f32
    %455 = vector.broadcast %cst_120 : f32 to vector<2x128xf32>
    %456 = arith.addf %455, %454 : vector<2x128xf32>
    %457 = arith.divf %455, %456 : vector<2x128xf32>
    %458 = vector.extract_strided_slice %445 {offsets = [0, 256], sizes = [2, 128], strides = [1, 1]} : vector<2x512xf32> to vector<2x128xf32>
    %459 = math.tanh %458 : vector<2x128xf32>
    %460 = vector.extract_strided_slice %445 {offsets = [0, 384], sizes = [2, 128], strides = [1, 1]} : vector<2x512xf32> to vector<2x128xf32>
    %461 = arith.negf %460 : vector<2x128xf32>
    %462 = math.exp %461 : vector<2x128xf32>
    %cst_121 = arith.constant 1.000000e+00 : f32
    %463 = vector.broadcast %cst_121 : f32 to vector<2x128xf32>
    %464 = arith.addf %463, %462 : vector<2x128xf32>
    %465 = arith.divf %463, %464 : vector<2x128xf32>
    %466 = arith.mulf %457, %441 : vector<2x128xf32>
    %467 = arith.mulf %451, %459 : vector<2x128xf32>
    %468 = arith.addf %466, %467 : vector<2x128xf32>
    %469 = math.tanh %468 : vector<2x128xf32>
    %470 = arith.mulf %465, %469 : vector<2x128xf32>
    %c9_i32 = arith.constant 9 : i32
    %471 = vector.broadcast %c9_i32 : i32 to vector<2x1xi32>
    %472 = arith.cmpi sle, %12, %471 : vector<2x1xi32>
    %c9_i32_122 = arith.constant 9 : i32
    %473 = vector.broadcast %c9_i32_122 : i32 to vector<2x1xi32>
    %474 = arith.cmpi sgt, %14, %473 : vector<2x1xi32>
    %475 = arith.andi %472, %474 : vector<2x1xi1>
    %cst_123 = arith.constant 0.000000e+00 : f32
    %476 = vector.shape_cast %475 : vector<2x1xi1> to vector<2x1xi1>
    %477 = vector.broadcast %476 : vector<2x1xi1> to vector<2x128xi1>
    %478 = vector.broadcast %cst_123 : f32 to vector<2x128xf32>
    %479 = arith.select %477, %470, %478 : vector<2x128xi1>, vector<2x128xf32>
    %c0_124 = arith.constant 0 : index
    %c9 = arith.constant 9 : index
    %c0_125 = arith.constant 0 : index
    %c0_126 = arith.constant 0 : index
    %480 = vector.load %arg7[%c0_124, %c9, %c0_125, %c0_126] : memref<1x13x2x128xf32, #tpu.memory_space<vmem>>, vector<1x1x2x128xf32>
    %481 = vector.shape_cast %480 : vector<1x1x2x128xf32> to vector<2x128xf32>
    %482 = vector.shape_cast %479 : vector<2x128xf32> to vector<1x1x2x128xf32>
    tpu.vector_store %arg7[%c0_124, %c9, %c0_125, %c0_126], %482 {strides = array<i32>} : memref<1x13x2x128xf32, #tpu.memory_space<vmem>>, vector<1x1x2x128xf32>,
    %483 = vector.shape_cast %475 : vector<2x1xi1> to vector<2x1xi1>
    %484 = vector.broadcast %483 : vector<2x1xi1> to vector<2x128xi1>
    %485 = arith.select %484, %470, %438 : vector<2x128xi1>, vector<2x128xf32>
    %486 = vector.shape_cast %475 : vector<2x1xi1> to vector<2x1xi1>
    %487 = vector.broadcast %486 : vector<2x1xi1> to vector<2x128xi1>
    %488 = arith.select %487, %468, %441 : vector<2x128xi1>, vector<2x128xf32>
    %c20 = arith.constant 20 : index
    %c0_127 = arith.constant 0 : index
    %489 = vector.load %arg8[%c20, %c0_127] : memref<26x512xf32, #tpu.memory_space<vmem>>, vector<2x512xf32>
    %490 = arith.truncf %485 : vector<2x128xf32> to vector<2x128xbf16>
    %cst_128 = arith.constant dense<0.000000e+00> : vector<2x512xf32>
    %491 = tpu.matmul %490, %16, %cst_128 {dimension_numbers = #tpu.dot_dimension_numbers<[1], [0], [0], [1], [0, 0, 1, 1], [], []>} : vector<2x128xbf16>, vector<128x512xbf16>, vector<2x512xf32> -> vector<2x512xf32>
    %492 = arith.addf %489, %491 : vector<2x512xf32>
    %493 = vector.extract_strided_slice %492 {offsets = [0, 0], sizes = [2, 128], strides = [1, 1]} : vector<2x512xf32> to vector<2x128xf32>
    %494 = arith.negf %493 : vector<2x128xf32>
    %495 = math.exp %494 : vector<2x128xf32>
    %cst_129 = arith.constant 1.000000e+00 : f32
    %496 = vector.broadcast %cst_129 : f32 to vector<2x128xf32>
    %497 = arith.addf %496, %495 : vector<2x128xf32>
    %498 = arith.divf %496, %497 : vector<2x128xf32>
    %499 = vector.extract_strided_slice %492 {offsets = [0, 128], sizes = [2, 128], strides = [1, 1]} : vector<2x512xf32> to vector<2x128xf32>
    %500 = arith.negf %499 : vector<2x128xf32>
    %501 = math.exp %500 : vector<2x128xf32>
    %cst_130 = arith.constant 1.000000e+00 : f32
    %502 = vector.broadcast %cst_130 : f32 to vector<2x128xf32>
    %503 = arith.addf %502, %501 : vector<2x128xf32>
    %504 = arith.divf %502, %503 : vector<2x128xf32>
    %505 = vector.extract_strided_slice %492 {offsets = [0, 256], sizes = [2, 128], strides = [1, 1]} : vector<2x512xf32> to vector<2x128xf32>
    %506 = math.tanh %505 : vector<2x128xf32>
    %507 = vector.extract_strided_slice %492 {offsets = [0, 384], sizes = [2, 128], strides = [1, 1]} : vector<2x512xf32> to vector<2x128xf32>
    %508 = arith.negf %507 : vector<2x128xf32>
    %509 = math.exp %508 : vector<2x128xf32>
    %cst_131 = arith.constant 1.000000e+00 : f32
    %510 = vector.broadcast %cst_131 : f32 to vector<2x128xf32>
    %511 = arith.addf %510, %509 : vector<2x128xf32>
    %512 = arith.divf %510, %511 : vector<2x128xf32>
    %513 = arith.mulf %504, %488 : vector<2x128xf32>
    %514 = arith.mulf %498, %506 : vector<2x128xf32>
    %515 = arith.addf %513, %514 : vector<2x128xf32>
    %516 = math.tanh %515 : vector<2x128xf32>
    %517 = arith.mulf %512, %516 : vector<2x128xf32>
    %c10_i32 = arith.constant 10 : i32
    %518 = vector.broadcast %c10_i32 : i32 to vector<2x1xi32>
    %519 = arith.cmpi sle, %12, %518 : vector<2x1xi32>
    %c10_i32_132 = arith.constant 10 : i32
    %520 = vector.broadcast %c10_i32_132 : i32 to vector<2x1xi32>
    %521 = arith.cmpi sgt, %14, %520 : vector<2x1xi32>
    %522 = arith.andi %519, %521 : vector<2x1xi1>
    %cst_133 = arith.constant 0.000000e+00 : f32
    %523 = vector.shape_cast %522 : vector<2x1xi1> to vector<2x1xi1>
    %524 = vector.broadcast %523 : vector<2x1xi1> to vector<2x128xi1>
    %525 = vector.broadcast %cst_133 : f32 to vector<2x128xf32>
    %526 = arith.select %524, %517, %525 : vector<2x128xi1>, vector<2x128xf32>
    %c0_134 = arith.constant 0 : index
    %c10_135 = arith.constant 10 : index
    %c0_136 = arith.constant 0 : index
    %c0_137 = arith.constant 0 : index
    %527 = vector.load %arg7[%c0_134, %c10_135, %c0_136, %c0_137] : memref<1x13x2x128xf32, #tpu.memory_space<vmem>>, vector<1x1x2x128xf32>
    %528 = vector.shape_cast %527 : vector<1x1x2x128xf32> to vector<2x128xf32>
    %529 = vector.shape_cast %526 : vector<2x128xf32> to vector<1x1x2x128xf32>
    tpu.vector_store %arg7[%c0_134, %c10_135, %c0_136, %c0_137], %529 {strides = array<i32>} : memref<1x13x2x128xf32, #tpu.memory_space<vmem>>, vector<1x1x2x128xf32>,
    %530 = vector.shape_cast %522 : vector<2x1xi1> to vector<2x1xi1>
    %531 = vector.broadcast %530 : vector<2x1xi1> to vector<2x128xi1>
    %532 = arith.select %531, %517, %485 : vector<2x128xi1>, vector<2x128xf32>
    %533 = vector.shape_cast %522 : vector<2x1xi1> to vector<2x1xi1>
    %534 = vector.broadcast %533 : vector<2x1xi1> to vector<2x128xi1>
    %535 = arith.select %534, %515, %488 : vector<2x128xi1>, vector<2x128xf32>
    %c22 = arith.constant 22 : index
    %c0_138 = arith.constant 0 : index
    %536 = vector.load %arg8[%c22, %c0_138] : memref<26x512xf32, #tpu.memory_space<vmem>>, vector<2x512xf32>
    %537 = arith.truncf %532 : vector<2x128xf32> to vector<2x128xbf16>
    %cst_139 = arith.constant dense<0.000000e+00> : vector<2x512xf32>
    %538 = tpu.matmul %537, %16, %cst_139 {dimension_numbers = #tpu.dot_dimension_numbers<[1], [0], [0], [1], [0, 0, 1, 1], [], []>} : vector<2x128xbf16>, vector<128x512xbf16>, vector<2x512xf32> -> vector<2x512xf32>
    %539 = arith.addf %536, %538 : vector<2x512xf32>
    %540 = vector.extract_strided_slice %539 {offsets = [0, 0], sizes = [2, 128], strides = [1, 1]} : vector<2x512xf32> to vector<2x128xf32>
    %541 = arith.negf %540 : vector<2x128xf32>
    %542 = math.exp %541 : vector<2x128xf32>
    %cst_140 = arith.constant 1.000000e+00 : f32
    %543 = vector.broadcast %cst_140 : f32 to vector<2x128xf32>
    %544 = arith.addf %543, %542 : vector<2x128xf32>
    %545 = arith.divf %543, %544 : vector<2x128xf32>
    %546 = vector.extract_strided_slice %539 {offsets = [0, 128], sizes = [2, 128], strides = [1, 1]} : vector<2x512xf32> to vector<2x128xf32>
    %547 = arith.negf %546 : vector<2x128xf32>
    %548 = math.exp %547 : vector<2x128xf32>
    %cst_141 = arith.constant 1.000000e+00 : f32
    %549 = vector.broadcast %cst_141 : f32 to vector<2x128xf32>
    %550 = arith.addf %549, %548 : vector<2x128xf32>
    %551 = arith.divf %549, %550 : vector<2x128xf32>
    %552 = vector.extract_strided_slice %539 {offsets = [0, 256], sizes = [2, 128], strides = [1, 1]} : vector<2x512xf32> to vector<2x128xf32>
    %553 = math.tanh %552 : vector<2x128xf32>
    %554 = vector.extract_strided_slice %539 {offsets = [0, 384], sizes = [2, 128], strides = [1, 1]} : vector<2x512xf32> to vector<2x128xf32>
    %555 = arith.negf %554 : vector<2x128xf32>
    %556 = math.exp %555 : vector<2x128xf32>
    %cst_142 = arith.constant 1.000000e+00 : f32
    %557 = vector.broadcast %cst_142 : f32 to vector<2x128xf32>
    %558 = arith.addf %557, %556 : vector<2x128xf32>
    %559 = arith.divf %557, %558 : vector<2x128xf32>
    %560 = arith.mulf %551, %535 : vector<2x128xf32>
    %561 = arith.mulf %545, %553 : vector<2x128xf32>
    %562 = arith.addf %560, %561 : vector<2x128xf32>
    %563 = math.tanh %562 : vector<2x128xf32>
    %564 = arith.mulf %559, %563 : vector<2x128xf32>
    %c11_i32 = arith.constant 11 : i32
    %565 = vector.broadcast %c11_i32 : i32 to vector<2x1xi32>
    %566 = arith.cmpi sle, %12, %565 : vector<2x1xi32>
    %c11_i32_143 = arith.constant 11 : i32
    %567 = vector.broadcast %c11_i32_143 : i32 to vector<2x1xi32>
    %568 = arith.cmpi sgt, %14, %567 : vector<2x1xi32>
    %569 = arith.andi %566, %568 : vector<2x1xi1>
    %cst_144 = arith.constant 0.000000e+00 : f32
    %570 = vector.shape_cast %569 : vector<2x1xi1> to vector<2x1xi1>
    %571 = vector.broadcast %570 : vector<2x1xi1> to vector<2x128xi1>
    %572 = vector.broadcast %cst_144 : f32 to vector<2x128xf32>
    %573 = arith.select %571, %564, %572 : vector<2x128xi1>, vector<2x128xf32>
    %c0_145 = arith.constant 0 : index
    %c11 = arith.constant 11 : index
    %c0_146 = arith.constant 0 : index
    %c0_147 = arith.constant 0 : index
    %574 = vector.load %arg7[%c0_145, %c11, %c0_146, %c0_147] : memref<1x13x2x128xf32, #tpu.memory_space<vmem>>, vector<1x1x2x128xf32>
    %575 = vector.shape_cast %574 : vector<1x1x2x128xf32> to vector<2x128xf32>
    %576 = vector.shape_cast %573 : vector<2x128xf32> to vector<1x1x2x128xf32>
    tpu.vector_store %arg7[%c0_145, %c11, %c0_146, %c0_147], %576 {strides = array<i32>} : memref<1x13x2x128xf32, #tpu.memory_space<vmem>>, vector<1x1x2x128xf32>,
    %577 = vector.shape_cast %569 : vector<2x1xi1> to vector<2x1xi1>
    %578 = vector.broadcast %577 : vector<2x1xi1> to vector<2x128xi1>
    %579 = arith.select %578, %564, %532 : vector<2x128xi1>, vector<2x128xf32>
    %580 = vector.shape_cast %569 : vector<2x1xi1> to vector<2x1xi1>
    %581 = vector.broadcast %580 : vector<2x1xi1> to vector<2x128xi1>
    %582 = arith.select %581, %562, %535 : vector<2x128xi1>, vector<2x128xf32>
    %c24 = arith.constant 24 : index
    %c0_148 = arith.constant 0 : index
    %583 = vector.load %arg8[%c24, %c0_148] : memref<26x512xf32, #tpu.memory_space<vmem>>, vector<2x512xf32>
    %584 = arith.truncf %579 : vector<2x128xf32> to vector<2x128xbf16>
    %cst_149 = arith.constant dense<0.000000e+00> : vector<2x512xf32>
    %585 = tpu.matmul %584, %16, %cst_149 {dimension_numbers = #tpu.dot_dimension_numbers<[1], [0], [0], [1], [0, 0, 1, 1], [], []>} : vector<2x128xbf16>, vector<128x512xbf16>, vector<2x512xf32> -> vector<2x512xf32>
    %586 = arith.addf %583, %585 : vector<2x512xf32>
    %587 = vector.extract_strided_slice %586 {offsets = [0, 0], sizes = [2, 128], strides = [1, 1]} : vector<2x512xf32> to vector<2x128xf32>
    %588 = arith.negf %587 : vector<2x128xf32>
    %589 = math.exp %588 : vector<2x128xf32>
    %cst_150 = arith.constant 1.000000e+00 : f32
    %590 = vector.broadcast %cst_150 : f32 to vector<2x128xf32>
    %591 = arith.addf %590, %589 : vector<2x128xf32>
    %592 = arith.divf %590, %591 : vector<2x128xf32>
    %593 = vector.extract_strided_slice %586 {offsets = [0, 128], sizes = [2, 128], strides = [1, 1]} : vector<2x512xf32> to vector<2x128xf32>
    %594 = arith.negf %593 : vector<2x128xf32>
    %595 = math.exp %594 : vector<2x128xf32>
    %cst_151 = arith.constant 1.000000e+00 : f32
    %596 = vector.broadcast %cst_151 : f32 to vector<2x128xf32>
    %597 = arith.addf %596, %595 : vector<2x128xf32>
    %598 = arith.divf %596, %597 : vector<2x128xf32>
    %599 = vector.extract_strided_slice %586 {offsets = [0, 256], sizes = [2, 128], strides = [1, 1]} : vector<2x512xf32> to vector<2x128xf32>
    %600 = math.tanh %599 : vector<2x128xf32>
    %601 = vector.extract_strided_slice %586 {offsets = [0, 384], sizes = [2, 128], strides = [1, 1]} : vector<2x512xf32> to vector<2x128xf32>
    %602 = arith.negf %601 : vector<2x128xf32>
    %603 = math.exp %602 : vector<2x128xf32>
    %cst_152 = arith.constant 1.000000e+00 : f32
    %604 = vector.broadcast %cst_152 : f32 to vector<2x128xf32>
    %605 = arith.addf %604, %603 : vector<2x128xf32>
    %606 = arith.divf %604, %605 : vector<2x128xf32>
    %607 = arith.mulf %598, %582 : vector<2x128xf32>
    %608 = arith.mulf %592, %600 : vector<2x128xf32>
    %609 = arith.addf %607, %608 : vector<2x128xf32>
    %610 = math.tanh %609 : vector<2x128xf32>
    %611 = arith.mulf %606, %610 : vector<2x128xf32>
    %c12_i32 = arith.constant 12 : i32
    %612 = vector.broadcast %c12_i32 : i32 to vector<2x1xi32>
    %613 = arith.cmpi sle, %12, %612 : vector<2x1xi32>
    %c12_i32_153 = arith.constant 12 : i32
    %614 = vector.broadcast %c12_i32_153 : i32 to vector<2x1xi32>
    %615 = arith.cmpi sgt, %14, %614 : vector<2x1xi32>
    %616 = arith.andi %613, %615 : vector<2x1xi1>
    %cst_154 = arith.constant 0.000000e+00 : f32
    %617 = vector.shape_cast %616 : vector<2x1xi1> to vector<2x1xi1>
    %618 = vector.broadcast %617 : vector<2x1xi1> to vector<2x128xi1>
    %619 = vector.broadcast %cst_154 : f32 to vector<2x128xf32>
    %620 = arith.select %618, %611, %619 : vector<2x128xi1>, vector<2x128xf32>
    %c0_155 = arith.constant 0 : index
    %c12_156 = arith.constant 12 : index
    %c0_157 = arith.constant 0 : index
    %c0_158 = arith.constant 0 : index
    %621 = vector.load %arg7[%c0_155, %c12_156, %c0_157, %c0_158] : memref<1x13x2x128xf32, #tpu.memory_space<vmem>>, vector<1x1x2x128xf32>
    %622 = vector.shape_cast %621 : vector<1x1x2x128xf32> to vector<2x128xf32>
    %623 = vector.shape_cast %620 : vector<2x128xf32> to vector<1x1x2x128xf32>
    tpu.vector_store %arg7[%c0_155, %c12_156, %c0_157, %c0_158], %623 {strides = array<i32>} : memref<1x13x2x128xf32, #tpu.memory_space<vmem>>, vector<1x1x2x128xf32>,
    return
  }
  func.func @transform_0(%arg0: i32) -> (i32, i32, i32) {
    %c0_i32 = arith.constant 0 : i32
    %c0_i32_0 = arith.constant 0 : i32
    %c0_i32_1 = arith.constant 0 : i32
    return %arg0, %c0_i32, %c0_i32_0 : i32, i32, i32
  }
  func.func @transform_1(%arg0: i32) -> (i32, i32, i32) {
    %c0_i32 = arith.constant 0 : i32
    %c0_i32_0 = arith.constant 0 : i32
    %c0_i32_1 = arith.constant 0 : i32
    return %arg0, %c0_i32, %c0_i32_0 : i32, i32, i32
  }
  func.func @transform_2(%arg0: i32) -> (i32, i32, i32) {
    %c0_i32 = arith.constant 0 : i32
    %c0_i32_0 = arith.constant 0 : i32
    %c0_i32_1 = arith.constant 0 : i32
    return %arg0, %c0_i32, %c0_i32_0 : i32, i32, i32
  }
  func.func @transform_3(%arg0: i32) -> (i32, i32, i32) {
    %c0_i32 = arith.constant 0 : i32
    %c0_i32_0 = arith.constant 0 : i32
    %c0_i32_1 = arith.constant 0 : i32
    return %arg0, %c0_i32, %c0_i32_0 : i32, i32, i32
  }
  func.func @transform_4(%arg0: i32) -> (i32, i32, i32) {
    %c0_i32 = arith.constant 0 : i32
    %c0_i32_0 = arith.constant 0 : i32
    %c0_i32_1 = arith.constant 0 : i32
    return %arg0, %c0_i32, %c0_i32_0 : i32, i32, i32
  }
  func.func @transform_5(%arg0: i32) -> (i32, i32, i32) {
    %c0_i32 = arith.constant 0 : i32
    %c0_i32_0 = arith.constant 0 : i32
    %c0_i32_1 = arith.constant 0 : i32
    return %arg0, %c0_i32, %c0_i32_0 : i32, i32, i32
  }
  func.func @transform_6(%arg0: i32) -> (i32, i32, i32, i32) {
    %c0_i32 = arith.constant 0 : i32
    %c0_i32_0 = arith.constant 0 : i32
    %c0_i32_1 = arith.constant 0 : i32
    %c0_i32_2 = arith.constant 0 : i32
    return %arg0, %c0_i32, %c0_i32_0, %c0_i32_1 : i32, i32, i32, i32
  }
}

</mosaic_0001>

<bundles_post_ra>
// kernel: a_call__.3
= control target key start
LH: loop header
LB: loop body
LE: loop exit
PB: predicated region body
PF: predicated region fallthrough
CT: control target
= control target key end

     0   :  { %s3686_s21 = smov 0   ;;  %s4686_s0 = inlined_call_operand.vmem [shape: f32[2,26,256], index: 0, kind: input, shape index: {}]   ;;  %s4687_s1 = inlined_call_operand.vmem [shape: s32[2,2,1], index: 1, kind: input, shape index: {}]   ;;  %s4688_s2 = inlined_call_operand.vmem [shape: s32[2,2,1], index: 2, kind: input, shape index: {}]   ;;  %s4689_s3 = inlined_call_operand.vmem [shape: bf16[2,256,512], index: 3, kind: input, shape index: {}]   ;;  %s4690_s4 = inlined_call_operand.vmem [shape: bf16[2,128,512], index: 4, kind: input, shape index: {}]   ;;  %s4691_s5 = inlined_call_operand.vmem [shape: f32[2,1,512], index: 5, kind: input, shape index: {}]   ;;  %s4692_s6 = inlined_call_operand.vmem [shape: f32[2,13,2,128], index: 6, kind: output, shape index: {}]  }
   0x1 LB: > { %s3041_s22 = sadd.s32 4294967295, %s3648_s21   ;;  %p3045_p0 = scmp.ge.s32.totalorder %s3648_s21, 1  ;;  %s3648_s21 = sphi %s3686_s21, %s16_s21  }
   0x2   : > { %p259_p1 = scmp.lt.s32.totalorder %s3648_s21, 3 }
   0x4   : > { %p260_p2 = pnand %p3045_p0, %p259_p1 }
   0x5   : > { %p311_p3 = scmp.lt.s32.totalorder (!%p260_p2), %s3041_s22, 1  ;;  %v3650_v0 = vmov (!%p260_p2), 0  }
   0x6   : > { %263 = sbr.rel (%p260_p2) target bundleno = 3540 (0xdd4), region = 44  ;;  %3224 = vset.pattern.permute.xlu0 (!%p260_p2), %v3650_v0  ;;  %3225 = vset.pattern.permute.xlu1 (!%p260_p2), %v3650_v0 }
   0xd   : > { %s4694_s22 = smov (!%p311_p3, %s3041_s22), 1 }
   0xe   : > { %s3212_s23 = sshll.u32 %s4694_s22, 9  ;;  %s3211_s27 = sshll.u32 %s4694_s22, 6 }
   0xf   : > { %s3702_s26 = scalar_lea.vmem %s4689_s3, %s3212_s23  ;;  %s3752_s30 = scalar_lea.vmem %s4686_s0, %s3211_s27 }
  0x10   : > { %v3226_v1 = vld [vmem:[%s3702_s26 + $0x4] ss:$16 sps:$4 sm:$0xff]   ;;  %v3228_v2 = vld [vmem:[%s3702_s26 + $0xc] ss:$16 sps:$4 sm:$0xff]   ;;  %v3230_v3 = vld [vmem:[%s3702_s26] ss:$16 sps:$4 sm:$0xff]  }
  0x11   : > { %762 = vmatprep.subr.bf16.mxu0 %v3226_v1  ;;  %v3231_v4 = vld [vmem:[%s3702_s26 + $0x8] ss:$16 sps:$4 sm:$0xff]   ;;  %815 = vmatprep.subr.bf16.mxu1 %v3228_v2  ;;  %v3232_v5 = vld [vmem:[%s3702_s26 + $0x24] ss:$16 sps:$4 sm:$0xff]   ;;  %v3234_v6 = vld [vmem:[%s3702_s26 + $0x2c] ss:$16 sps:$4 sm:$0xff]  }
  0x12   : > { %763 = vmatpush1.bf16.msra.mxu0 %v3230_v3  ;;  %816 = vmatpush1.bf16.msra.mxu1 %v3231_v4  ;;  %v3236_v7 = vld [vmem:[%s3702_s26 + $0x20] ss:$16 sps:$4 sm:$0xff]   ;;  %v3237_v8 = vld [vmem:[%s3702_s26 + $0x28] ss:$16 sps:$4 sm:$0xff]   ;;  %v3238_v9 = vld [vmem:[%s3702_s26 + $0x44] ss:$16 sps:$4 sm:$0xff]  }
  0x13   : > { %764 = vmatprep.subr.bf16.mxu0 %v3232_v5  ;;  %817 = vmatprep.subr.bf16.mxu1 %v3234_v6  ;;  %v3240_v10 = vld [vmem:[%s3702_s26 + $0x4c] ss:$16 sps:$4 sm:$0xff]   ;;  %v3242_v11 = vld [vmem:[%s3702_s26 + $0x40] ss:$16 sps:$4 sm:$0xff]   ;;  %v3243_v12 = vld [vmem:[%s3702_s26 + $0x48] ss:$16 sps:$4 sm:$0xff]  }
  0x14   : > { %v3244_v13 = vld [vmem:[%s3702_s26 + $0x64] ss:$16 sps:$4 sm:$0xff]   ;;  %v3246_v14 = vld [vmem:[%s3702_s26 + $0x6c] ss:$16 sps:$4 sm:$0xff]   ;;  %v3248_v15 = vld [vmem:[%s3702_s26 + $0x60] ss:$16 sps:$4 sm:$0xff]  }
  0x15   : > { %v3249_v16 = vld [vmem:[%s3702_s26 + $0x68] ss:$16 sps:$4 sm:$0xff]   ;;  %v3250_v17 = vld [vmem:[%s3702_s26 + $0x84] ss:$16 sps:$4 sm:$0xff]   ;;  %v3252_v18 = vld [vmem:[%s3702_s26 + $0x8c] ss:$16 sps:$4 sm:$0xff]  }
  0x16   : > { %765 = vmatpush1.bf16.msra.mxu0 %v3236_v7  ;;  %818 = vmatpush1.bf16.msra.mxu1 %v3237_v8  ;;  %v3254_v19 = vld [vmem:[%s3702_s26 + $0x80] ss:$16 sps:$4 sm:$0xff]   ;;  %v3255_v20 = vld [vmem:[%s3702_s26 + $0x88] ss:$16 sps:$4 sm:$0xff]   ;;  %v3256_v21 = vld [vmem:[%s3702_s26 + $0xa4] ss:$16 sps:$4 sm:$0xff]  }
  0x17   : > { %766 = vmatprep.subr.bf16.mxu0 %v3238_v9  ;;  %819 = vmatprep.subr.bf16.mxu1 %v3240_v10  ;;  %v3258_v22 = vld [vmem:[%s3702_s26 + $0xac] ss:$16 sps:$4 sm:$0xff]   ;;  %v3260_v23 = vld [vmem:[%s3702_s26 + $0xa0] ss:$16 sps:$4 sm:$0xff]   ;;  %v3261_v24 = vld [vmem:[%s3702_s26 + $0xa8] ss:$16 sps:$4 sm:$0xff]  }
  0x18   : > { %v3262_v25 = vld [vmem:[%s3702_s26 + $0xc4] ss:$16 sps:$4 sm:$0xff]   ;;  %v3264_v26 = vld [vmem:[%s3702_s26 + $0xcc] ss:$16 sps:$4 sm:$0xff]   ;;  %v3266_v27 = vld [vmem:[%s3702_s26 + $0xc0] ss:$16 sps:$4 sm:$0xff]  }
  0x19   : > { %v3267_v28 = vld [vmem:[%s3702_s26 + $0xc8] ss:$16 sps:$4 sm:$0xff]   ;;  %v3268_v29 = vld [vmem:[%s3702_s26 + $0xe4] ss:$16 sps:$4 sm:$0xff]   ;;  %v3270_v30 = vld [vmem:[%s3702_s26 + $0xec] ss:$16 sps:$4 sm:$0xff]  }
  0x1a   : > { %767 = vmatpush1.bf16.msra.mxu0 %v3242_v11  ;;  %820 = vmatpush1.bf16.msra.mxu1 %v3243_v12  ;;  %v3272_v31 = vld [vmem:[%s3702_s26 + $0xe0] ss:$16 sps:$4 sm:$0xff]   ;;  %v3273_v32 = vld [vmem:[%s3702_s26 + $0xe8] ss:$16 sps:$4 sm:$0xff]   ;;  %v3274_v33 = vld [vmem:[%s3702_s26 + $0x104] ss:$16 sps:$4 sm:$0xff]  }
  0x1b   : > { %768 = vmatprep.subr.bf16.mxu0 %v3244_v13  ;;  %821 = vmatprep.subr.bf16.mxu1 %v3246_v14  ;;  %v3276_v34 = vld [vmem:[%s3702_s26 + $0x10c] ss:$16 sps:$4 sm:$0xff]   ;;  %v3278_v35 = vld [vmem:[%s3702_s26 + $0x100] ss:$16 sps:$4 sm:$0xff]   ;;  %v3279_v36 = vld [vmem:[%s3702_s26 + $0x108] ss:$16 sps:$4 sm:$0xff]  }
  0x1c   : > { %v3280_v37 = vld [vmem:[%s3702_s26 + $0x124] ss:$16 sps:$4 sm:$0xff]   ;;  %v3282_v38 = vld [vmem:[%s3702_s26 + $0x12c] ss:$16 sps:$4 sm:$0xff]   ;;  %v3284_v39 = vld [vmem:[%s3702_s26 + $0x120] ss:$16 sps:$4 sm:$0xff]  }
  0x1d   : > { %v3285_v40 = vld [vmem:[%s3702_s26 + $0x128] ss:$16 sps:$4 sm:$0xff]   ;;  %v3286_v41 = vld [vmem:[%s3702_s26 + $0x144] ss:$16 sps:$4 sm:$0xff]   ;;  %v3288_v42 = vld [vmem:[%s3702_s26 + $0x14c] ss:$16 sps:$4 sm:$0xff]  }
  0x1e   : > { %769 = vmatpush1.bf16.msra.mxu0 %v3248_v15  ;;  %822 = vmatpush1.bf16.msra.mxu1 %v3249_v16  ;;  %v3290_v43 = vld [vmem:[%s3702_s26 + $0x140] ss:$16 sps:$4 sm:$0xff]   ;;  %v3291_v44 = vld [vmem:[%s3702_s26 + $0x148] ss:$16 sps:$4 sm:$0xff]   ;;  %v3292_v45 = vld [vmem:[%s3702_s26 + $0x164] ss:$16 sps:$4 sm:$0xff]  }
  0x1f   : > { %770 = vmatprep.subr.bf16.mxu0 %v3250_v17  ;;  %823 = vmatprep.subr.bf16.mxu1 %v3252_v18  ;;  %s3213_s7 = sshll.u32 %s4694_s22, 8  ;;  %v3294_v46 = vld [vmem:[%s3702_s26 + $0x16c] ss:$16 sps:$4 sm:$0xff]   ;;  %v3296_v48 = vld [vmem:[%s3702_s26 + $0x160] ss:$16 sps:$4 sm:$0xff]   ;;  %s3048_s11 = sshll.u32 %s4694_s22, 1 }
  0x20   : > { %v345_v47 = vld [vmem:[%s3752_s30 + $0x8] sm:$0xff]  ;;  %v347_v50 = vld [vmem:[%s3752_s30 + $0x18] sm:$0xff]  ;;  %s3764_s10 = scalar_lea.vmem %s4690_s4, %s3213_s7  ;;  %v3298_v51 = vld [vmem:[%s3702_s26 + $0x184] ss:$16 sps:$4 sm:$0xff]   ;;  %s319_s14 = scalar_lea.vmem %s4687_s1, %s3048_s11 }
  0x21   : > { %v3297_v49 = vld [vmem:[%s3702_s26 + $0x168] ss:$16 sps:$4 sm:$0xff]   ;;  %v353_v52 = vpack.c.bf16 %v347_v50, %v345_v47  ;;  %v3300_v53 = vld [vmem:[%s3702_s26 + $0x18c] ss:$16 sps:$4 sm:$0xff]   ;;  %v3302_v54 = vld [vmem:[%s3702_s26 + $0x180] ss:$16 sps:$4 sm:$0xff]   ;;  %s323_s17 = scalar_lea.vmem %s4688_s2, %s3048_s11 }
  0x22   : > { %771 = vmatpush1.bf16.msra.mxu0 %v3254_v19  ;;  %824 = vmatpush1.bf16.msra.mxu1 %v3255_v20  ;;  %v3303_v55 = vld [vmem:[%s3702_s26 + $0x188] ss:$16 sps:$4 sm:$0xff]   ;;  %v3304_v56 = vld [vmem:[%s3702_s26 + $0x1a4] ss:$16 sps:$4 sm:$0xff]   ;;  %v3306_v57 = vld [vmem:[%s3702_s26 + $0x1ac] ss:$16 sps:$4 sm:$0xff]  }
  0x23   : > { %772 = vmatprep.subr.bf16.mxu0 %v3256_v21  ;;  %825 = vmatprep.subr.bf16.mxu1 %v3258_v22  ;;  %v3308_v58 = vld [vmem:[%s3702_s26 + $0x1a0] ss:$16 sps:$4 sm:$0xff]   ;;  %v3309_v59 = vld [vmem:[%s3702_s26 + $0x1a8] ss:$16 sps:$4 sm:$0xff]   ;;  %v3310_v60 = vld [vmem:[%s3702_s26 + $0x1c4] ss:$16 sps:$4 sm:$0xff]  }
  0x24   : > { %794 = vmatprep.mubr.bf16.mxu0 %v353_v52  ;;  %847 = vmatprep.mubr.bf16.mxu1 %v353_v52  ;;  %v3312_v61 = vld [vmem:[%s3702_s26 + $0x1cc] ss:$16 sps:$4 sm:$0xff]   ;;  %v3314_v62 = vld [vmem:[%s3702_s26 + $0x1c0] ss:$16 sps:$4 sm:$0xff]   ;;  %v3315_v63 = vld [vmem:[%s3702_s26 + $0x1c8] ss:$16 sps:$4 sm:$0xff]  }
  0x25   : > { %v3316_v1 = vld [vmem:[%s3702_s26 + $0x1e4] ss:$16 sps:$4 sm:$0xff]   ;;  %v3318_v2 = vld [vmem:[%s3702_s26 + $0x1ec] ss:$16 sps:$4 sm:$0xff]   ;;  %v3320_v3 = vld [vmem:[%s3702_s26 + $0x1e0] ss:$16 sps:$4 sm:$0xff]  }
  0x26   : > { %773 = vmatpush1.bf16.msra.mxu0 %v3260_v23  ;;  %826 = vmatpush1.bf16.msra.mxu1 %v3261_v24  ;;  %v3321_v4 = vld [vmem:[%s3702_s26 + $0x1e8] ss:$16 sps:$4 sm:$0xff]   ;;  %v344_v5 = vld [vmem:[%s3752_s30] sm:$0xff]  ;;  %v346_v6 = vld [vmem:[%s3752_s30 + $0x10] sm:$0xff]  ;;  %s3054_s18 = sshll.u32 %s4694_s22, 2  ;;  %s3214_s24 = smul.u32 26, %s4694_s22 }
  0x27   : > { %774 = vmatprep.subr.bf16.mxu0 %v3262_v25  ;;  %827 = vmatprep.subr.bf16.mxu1 %v3264_v26  ;;  %v3785_v7 = vld [vmem:[%s3764_s10 + $0x4] ss:$16 sps:$4 sm:$0xff]   ;;  %v3789_v8 = vld [vmem:[%s3764_s10 + $0xc] ss:$16 sps:$4 sm:$0xff]   ;;  %v3792_v9 = vld [vmem:[%s3764_s10] ss:$16 sps:$4 sm:$0xff]   ;;  %v352_v10 = vpack.c.bf16 %v346_v6, %v344_v5  ;;  %s337_s23 = scalar_lea.vmem %s4691_s5, %s3054_s18 }
  0x28   : > { %v3795_v11 = vld [vmem:[%s3764_s10 + $0x8] ss:$16 sps:$4 sm:$0xff]   ;;  %v3803_v14 = vld [vmem:[%s3764_s10 + $0x24] ss:$16 sps:$4 sm:$0xff]   ;;  %v3811_v15 = vld [vmem:[%s3764_s10 + $0x2c] ss:$16 sps:$4 sm:$0xff]   ;;  %s4001_s27 = scalar_lea.vmem %s4692_s6, %s3214_s24 }
  0x29   : > { %v349_v12 = vld [vmem:[%s3752_s30 + $0x28] sm:$0xff]  ;;  %v351_v13 = vld [vmem:[%s3752_s30 + $0x38] sm:$0x3]  ;;  %v3813_v17 = vld [vmem:[%s319_s14] sm:$0x3] }
  0x2a   : > { %775 = vmatpush1.bf16.msra.mxu0 %v3266_v27  ;;  %828 = vmatpush1.bf16.msra.mxu1 %v3267_v28  ;;  %v355_v16 = vpack.c.bf16 %v351_v13, %v349_v12  ;;  %v3816_v18 = vld [vmem:[%s3764_s10 + $0x20] ss:$16 sps:$4 sm:$0xff]   ;;  %vm1192_vm0 = vcmp.le.s32.totalorder %v3813_v17, 0  ;;  %v3824_v20 = vld [vmem:[%s3764_s10 + $0x28] ss:$16 sps:$4 sm:$0xff]   ;;  %vm1333_vm3 = vcmp.le.s32.totalorder %v3813_v17, 1 }
  0x2b   : > { %776 = vmatprep.subr.bf16.mxu0 %v3268_v29  ;;  %829 = vmatprep.subr.bf16.mxu1 %v3270_v30  ;;  %v3818_v19 = vld [vmem:[%s323_s17] sm:$0x3]  ;;  %v350_v22 = vld [vmem:[%s3752_s30 + $0x30] sm:$0x3]  ;;  %v3832_v23 = vld [vmem:[%s3764_s10 + $0x44] ss:$16 sps:$4 sm:$0xff]  }
  0x2c   : > { %v348_v21 = vld [vmem:[%s3752_s30 + $0x20] sm:$0xff]  ;;  %vm1193_vm1 = vcmp.gt.s32.totalorder %v3818_v19, 0  ;;  %v3835_v24 = vld [vmem:[%s3764_s10 + $0x4c] ss:$16 sps:$4 sm:$0xff]   ;;  %vm1334_vm4 = vcmp.gt.s32.totalorder %v3818_v19, 1  ;;  %vm1765_vm6 = vcmp.le.s32.totalorder %v3813_v17, 4 }
  0x2d   : > { %vm1194_vm2 = vmand %vm1192_vm0, %vm1193_vm1  ;;  %v354_v26 = vpack.c.bf16 %v350_v22, %v348_v21  ;;  %v3843_v27 = vld [vmem:[%s3764_s10 + $0x40] ss:$16 sps:$4 sm:$0xff]   ;;  %v3846_v28 = vld [vmem:[%s3764_s10 + $0x48] ss:$16 sps:$4 sm:$0xff]   ;;  %vm1766_vm7 = vcmp.gt.s32.totalorder %v3818_v19, 4  ;;  %vm2057_vm9 = vcmp.le.s32.totalorder %v3813_v17, 6 }
  0x2e   : > { %777 = vmatpush1.bf16.msra.mxu0 %v3272_v31  ;;  %830 = vmatpush1.bf16.msra.mxu1 %v3273_v32  ;;  %v1195_v25 = vsel %vm1194_vm2, 1, %v3650_v0  ;;  %v3851_v29 = vld [vmem:[%s3764_s10 + $0x64] ss:$16 sps:$4 sm:$0xff]   ;;  %v3854_v30 = vld [vmem:[%s3764_s10 + $0x6c] ss:$16 sps:$4 sm:$0xff]   ;;  %vm1335_vm5 = vmand %vm1333_vm3, %vm1334_vm4  ;;  %vm2058_vm10 = vcmp.gt.s32.totalorder %v3818_v19, 6 }
  0x2f   : > { %778 = vmatprep.subr.bf16.mxu0 %v3274_v33  ;;  %831 = vmatprep.subr.bf16.mxu1 %v3276_v34  ;;  %v3861_v31 = vld [vmem:[%s3764_s10 + $0x60] ss:$16 sps:$4 sm:$0xff]   ;;  %v3864_v32 = vld [vmem:[%s3764_s10 + $0x68] ss:$16 sps:$4 sm:$0xff]   ;;  %v1336_v33 = vsel %vm1335_vm5, 1, %v3650_v0  ;;  %vm1767_vm8 = vmand %vm1765_vm6, %vm1766_vm7  ;;  %vm2340_vm12 = vcmp.le.s32.totalorder %v3813_v17, 8 }
  0x30   : > { %1197 = vperm.xlu0 %3224, %v1195_v25   ;;  %v3870_v34 = vld [vmem:[%s3764_s10 + $0x84] ss:$16 sps:$4 sm:$0xff]   ;;  %vm2059_vm11 = vmand %vm2057_vm9, %vm2058_vm10  ;;  %vm2341_vm13 = vcmp.gt.s32.totalorder %v3818_v19, 8  ;;  %vm2632_vm15 = vcmp.le.s32.totalorder %v3813_v17, 10  ;;  %vm2633_vm0 = vcmp.gt.s32.totalorder %v3818_v19, 10  ;;  %vm2915_vm2 = vcmp.le.s32.totalorder %v3813_v17, 12 }
  0x31   : > { %vm2342_vm14 = vmand %vm2340_vm12, %vm2341_vm13  ;;  %v3923_v47 = vld [vmem:[%s3764_s10 + $0xc8] ss:$16 sps:$4 sm:$0xff]   ;;  %v3932_v50 = vld [vmem:[%s3764_s10 + $0xec] ss:$16 sps:$4 sm:$0xff]   ;;  %vm2916_vm3 = vcmp.gt.s32.totalorder %v3818_v19, 12  ;;  %vm1482_vm7 = vcmp.le.s32.totalorder %v3813_v17, 2 }
  0x32   : > { %779 = vmatpush1.bf16.msra.mxu0 %v3278_v35  ;;  %832 = vmatpush1.bf16.msra.mxu1 %v3279_v36  ;;  %v3873_v35 = vld [vmem:[%s3764_s10 + $0x8c] ss:$16 sps:$4 sm:$0xff]   ;;  %v3882_v36 = vld [vmem:[%s3764_s10 + $0x80] ss:$16 sps:$4 sm:$0xff]   ;;  %vm2634_vm1 = vmand %vm2632_vm15, %vm2633_vm0  ;;  %vm1631_vm9 = vcmp.le.s32.totalorder %v3813_v17, 3  ;;  %vm1632_vm10 = vcmp.gt.s32.totalorder %v3818_v19, 3 }
  0x33   : > { %780 = vmatprep.subr.bf16.mxu0 %v3280_v37  ;;  %833 = vmatprep.subr.bf16.mxu1 %v3282_v38  ;;  %v3885_v37 = vld [vmem:[%s3764_s10 + $0x88] ss:$16 sps:$4 sm:$0xff]   ;;  %v1768_v38 = vsel %vm1767_vm8, 1, %v3650_v0  ;;  %vm2917_vm4 = vmand %vm2915_vm2, %vm2916_vm3  ;;  %vm1483_vm8 = vcmp.gt.s32.totalorder %v3818_v19, 2  ;;  %vm1908_vm13 = vcmp.le.s32.totalorder %v3813_v17, 5  ;;  %vm2206_vm0 = vcmp.le.s32.totalorder %v3813_v17, 7 }
  0x34   : > { %1338 = vperm.xlu0 %3224, %v1336_v33   ;;  %v3942_v52 = vld [vmem:[%s3764_s10 + $0xe8] ss:$16 sps:$4 sm:$0xff]   ;;  %vm1633_vm12 = vmand %vm1631_vm9, %vm1632_vm10  ;;  %vm2483_vm3 = vcmp.le.s32.totalorder %v3813_v17, 9 }
  0x36   : > { %781 = vmatpush1.bf16.msra.mxu0 %v3284_v39  ;;  %834 = vmatpush1.bf16.msra.mxu1 %v3285_v40  ;;  %v3891_v39 = vld [vmem:[%s3764_s10 + $0xa4] ss:$16 sps:$4 sm:$0xff]   ;;  %v3894_v40 = vld [vmem:[%s3764_s10 + $0xac] ss:$16 sps:$4 sm:$0xff]  }
  0x37   : > { %782 = vmatprep.subr.bf16.mxu0 %v3286_v41  ;;  %835 = vmatprep.subr.bf16.mxu1 %v3288_v42  ;;  %v3901_v41 = vld [vmem:[%s3764_s10 + $0xa0] ss:$16 sps:$4 sm:$0xff]   ;;  %v3904_v42 = vld [vmem:[%s3764_s10 + $0xa8] ss:$16 sps:$4 sm:$0xff]  }
  0x38   : > { %1770 = vperm.xlu0 %3224, %v1768_v38  }
  0x3a   : > { %783 = vmatpush1.bf16.msra.mxu0 %v3290_v43  ;;  %836 = vmatpush1.bf16.msra.mxu1 %v3291_v44  ;;  %v2060_v43 = vsel %vm2059_vm11, 1, %v3650_v0  ;;  %v3910_v44 = vld [vmem:[%s3764_s10 + $0xc4] ss:$16 sps:$4 sm:$0xff]   ;;  %vm1484_vm11 = vmand %vm1482_vm7, %vm1483_vm8  ;;  %vm2781_vm7 = vcmp.le.s32.totalorder %v3813_v17, 11  ;;  %vm2782_vm8 = vcmp.gt.s32.totalorder %v3818_v19, 11 }
  0x3b   : > { %784 = vmatprep.subr.bf16.mxu0 %v3292_v45  ;;  %837 = vmatprep.subr.bf16.mxu1 %v3294_v46  ;;  %v3913_v45 = vld [vmem:[%s3764_s10 + $0xcc] ss:$16 sps:$4 sm:$0xff]   ;;  %v3920_v46 = vld [vmem:[%s3764_s10 + $0xc0] ss:$16 sps:$4 sm:$0xff]   ;;  %vm2783_vm9 = vmand %vm2781_vm7, %vm2782_vm8 }
  0x3c   : > { %2062 = vperm.xlu0 %3224, %v2060_v43  }
  0x3e   : > { %785 = vmatpush1.bf16.msra.mxu0 %v3296_v48  ;;  %838 = vmatpush1.bf16.msra.mxu1 %v3297_v49  ;;  %v2343_v48 = vsel %vm2342_vm14, 1, %v3650_v0  ;;  %v3929_v49 = vld [vmem:[%s3764_s10 + $0xe4] ss:$16 sps:$4 sm:$0xff]   ;;  %vm1909_vm14 = vcmp.gt.s32.totalorder %v3818_v19, 5 }
  0x3f   : > { %786 = vmatprep.subr.bf16.mxu0 %v3298_v51  ;;  %839 = vmatprep.subr.bf16.mxu1 %v3300_v53  ;;  %v3939_v51 = vld [vmem:[%s3764_s10 + $0xe0] ss:$16 sps:$4 sm:$0xff]   ;;  %v2635_v53 = vsel %vm2634_vm1, 1, %v3650_v0  ;;  %vm1910_vm15 = vmand %vm1908_vm13, %vm1909_vm14  ;;  %vm2207_vm1 = vcmp.gt.s32.totalorder %v3818_v19, 7 }
  0x40   : > { %2345 = vperm.xlu0 %3224, %v2343_v48   ;;  %vm2208_vm2 = vmand %vm2206_vm0, %vm2207_vm1 }
  0x42   : > { %787 = vmatpush1.bf16.msra.mxu0 %v3302_v54  ;;  %840 = vmatpush1.bf16.msra.mxu1 %v3303_v55  ;;  %v2918_v54 = vsel %vm2917_vm4, 1, %v3650_v0  ;;  %v422_v55 = vlaneseq  ;;  %vm2484_vm4 = vcmp.gt.s32.totalorder %v3818_v19, 9 }
  0x43   : > { %788 = vmatprep.subr.bf16.mxu0 %v3304_v56  ;;  %841 = vmatprep.subr.bf16.mxu1 %v3306_v57 }
  0x44   : > { %2637 = vperm.xlu0 %3224, %v2635_v53   ;;  %v423_v56 = vshrl.u32 %v422_v55, 7 }
  0x46   : > { %789 = vmatpush1.bf16.msra.mxu0 %v3308_v58  ;;  %842 = vmatpush1.bf16.msra.mxu1 %v3309_v59  ;;  %v424_v57 = vsub.s32 0, %v423_v56  ;;  %v432_v58 = vsub.s32 2, %v423_v56  ;;  %v420_v59 = vld [vmem:[%s337_s23] sm:$0xf] }
  0x47   : > { %790 = vmatprep.subr.bf16.mxu0 %v3310_v60  ;;  %843 = vmatprep.subr.bf16.mxu1 %v3312_v61  ;;  %v428_v60 = vsub.s32 1, %v423_v56  ;;  %v436_v61 = vsub.s32 3, %v423_v56 }
  0x48   : > { %2920 = vperm.xlu0 %3224, %v2918_v54  }
  0x4a   : > { %791 = vmatpush1.bf16.msra.mxu0 %v3314_v62  ;;  %844 = vmatpush1.bf16.msra.mxu1 %v3315_v63  ;;  %v425_v62 = vrot.slane %v420_v59, %v424_v57  ;;  %v433_v63 = vrot.slane %v420_v59, %v432_v58 }
  0x4b   : > { %792 = vmatprep.subr.bf16.mxu0 %v3316_v1  ;;  %845 = vmatprep.subr.bf16.mxu1 %v3318_v2  ;;  %v429_v1 = vrot.slane %v420_v59, %v428_v60  ;;  %v437_v2 = vrot.slane %v420_v59, %v436_v61 }
  0x4e   : > { %793 = vmatpush1.bf16.msra.mxu0 %v3320_v3  ;;  %846 = vmatpush1.bf16.msra.mxu1 %v3321_v4 }
  0x4f   : > { %1082 = vmatprep.subr.bf16.mxu0 %v3785_v7  ;;  %1123 = vmatprep.subr.bf16.mxu1 %v3789_v8 }
  0x51   : > { %795 = vmatmul.mubr.bf16.vlgmr.msra.gmra.mrb[0].mxu0 %v352_v10  ;;  %848 = vmatmul.mubr.bf16.vlgmr.msra.gmra.mrb[0].mxu1 %v352_v10 }
  0x52   : > { %1083 = vmatpush1.bf16.msra.mxu0 %v3792_v9  ;;  %1124 = vmatpush1.bf16.msra.mxu1 %v3795_v11 }
  0x53   : > { %1084 = vmatprep.subr.bf16.mxu0 %v3803_v14  ;;  %1125 = vmatprep.subr.bf16.mxu1 %v3811_v15 }
  0x54   : > { %804 = vmatprep.mubr.bf16.mxu0 %v355_v16  ;;  %857 = vmatprep.mubr.bf16.mxu1 %v355_v16 }
  0x56   : > { %1085 = vmatpush1.bf16.msra.mxu0 %v3816_v18  ;;  %1126 = vmatpush1.bf16.msra.mxu1 %v3824_v20 }
  0x57   : > { %1086 = vmatprep.subr.bf16.mxu0 %v3832_v23  ;;  %1127 = vmatprep.subr.bf16.mxu1 %v3835_v24 }
  0x59   : > { %805 = vmatmul.mubr.bf16.gmra.mrb[4].mxu0 %v354_v26  ;;  %858 = vmatmul.mubr.bf16.gmra.mrb[4].mxu1 %v354_v26 }
  0x5a   : > { %1087 = vmatpush1.bf16.msra.mxu0 %v3843_v27  ;;  %1128 = vmatpush1.bf16.msra.mxu1 %v3846_v28 }
  0x5b   : > { %1088 = vmatprep.subr.bf16.mxu0 %v3851_v29  ;;  %1129 = vmatprep.subr.bf16.mxu1 %v3854_v30 }
  0x5c   : > { %1114 = vmatprep.mubr.bf16.mxu0 %v3650_v0  ;;  %1155 = vmatprep.mubr.bf16.mxu1 %v3650_v0 }
  0x5e   : > { %1089 = vmatpush1.bf16.msra.mxu0 %v3861_v31  ;;  %1130 = vmatpush1.bf16.msra.mxu1 %v3864_v32 }
  0x5f   : > { %1090 = vmatprep.subr.bf16.mxu0 %v3870_v34  ;;  %1131 = vmatprep.subr.bf16.mxu1 %v3873_v35 }
  0x62   : > { %1091 = vmatpush1.bf16.msra.mxu0 %v3882_v36  ;;  %1132 = vmatpush1.bf16.msra.mxu1 %v3885_v37 }
  0x63   : > { %1092 = vmatprep.subr.bf16.mxu0 %v3891_v39  ;;  %1133 = vmatprep.subr.bf16.mxu1 %v3894_v40 }
  0x66   : > { %1093 = vmatpush1.bf16.msra.mxu0 %v3901_v41  ;;  %1134 = vmatpush1.bf16.msra.mxu1 %v3904_v42 }
  0x67   : > { %1094 = vmatprep.subr.bf16.mxu0 %v3910_v44  ;;  %1135 = vmatprep.subr.bf16.mxu1 %v3913_v45 }
  0x6a   : > { %1095 = vmatpush1.bf16.msra.mxu0 %v3920_v46  ;;  %1136 = vmatpush1.bf16.msra.mxu1 %v3923_v47 }
  0x6b   : > { %1096 = vmatprep.subr.bf16.mxu0 %v3929_v49  ;;  %1137 = vmatprep.subr.bf16.mxu1 %v3932_v50 }
  0x6e   : > { %1097 = vmatpush1.bf16.msra.mxu0 %v3939_v51  ;;  %1138 = vmatpush1.bf16.msra.mxu1 %v3942_v52 }
  0x6f   : > { %1208 = vmatprep.subr.bf16.mxu0 %v3785_v7  ;;  %1249 = vmatprep.subr.bf16.mxu1 %v3789_v8 }
  0x71   : > { %1115 = vmatmul.mubr.bf16.vlgmr.msra.gmra.mrb[8].mxu0 %v3650_v0  ;;  %1156 = vmatmul.mubr.bf16.vlgmr.msra.gmra.mrb[8].mxu1 %v3650_v0 }
  0x72   : > { %1209 = vmatpush1.bf16.msra.mxu0 %v3792_v9  ;;  %1250 = vmatpush1.bf16.msra.mxu1 %v3795_v11 }
  0x73   : > { %1210 = vmatprep.subr.bf16.mxu0 %v3803_v14  ;;  %1251 = vmatprep.subr.bf16.mxu1 %v3811_v15 }
  0x74   : > { %1240 = vmatprep.mubr.bf16.mxu0 %v3650_v0  ;;  %1281 = vmatprep.mubr.bf16.mxu1 %v3650_v0 }
  0x76   : > { %1211 = vmatpush1.bf16.msra.mxu0 %v3816_v18  ;;  %1252 = vmatpush1.bf16.msra.mxu1 %v3824_v20 }
  0x77   : > { %1212 = vmatprep.subr.bf16.mxu0 %v3832_v23  ;;  %1253 = vmatprep.subr.bf16.mxu1 %v3835_v24 }
  0x7a   : > { %1213 = vmatpush1.bf16.msra.mxu0 %v3843_v27  ;;  %1254 = vmatpush1.bf16.msra.mxu1 %v3846_v28 }
  0x7b   : > { %1214 = vmatprep.subr.bf16.mxu0 %v3851_v29  ;;  %1255 = vmatprep.subr.bf16.mxu1 %v3854_v30 }
  0x7e   : > { %1215 = vmatpush1.bf16.msra.mxu0 %v3861_v31  ;;  %1256 = vmatpush1.bf16.msra.mxu1 %v3864_v32 }
  0x7f   : > { %1216 = vmatprep.subr.bf16.mxu0 %v3870_v34  ;;  %1257 = vmatprep.subr.bf16.mxu1 %v3873_v35 }
  0x82   : > { %1217 = vmatpush1.bf16.msra.mxu0 %v3882_v36  ;;  %1258 = vmatpush1.bf16.msra.mxu1 %v3885_v37 }
  0x83   : > { %1218 = vmatprep.subr.bf16.mxu0 %v3891_v39  ;;  %1259 = vmatprep.subr.bf16.mxu1 %v3894_v40 }
  0x86   : > { %1219 = vmatpush1.bf16.msra.mxu0 %v3901_v41  ;;  %1260 = vmatpush1.bf16.msra.mxu1 %v3904_v42 }
  0x87   : > { %1220 = vmatprep.subr.bf16.mxu0 %v3910_v44  ;;  %1261 = vmatprep.subr.bf16.mxu1 %v3913_v45 }
  0x8a   : > { %1221 = vmatpush1.bf16.msra.mxu0 %v3920_v46  ;;  %1262 = vmatpush1.bf16.msra.mxu1 %v3923_v47 }
  0x8b   : > { %1222 = vmatprep.subr.bf16.mxu0 %v3929_v49  ;;  %1263 = vmatprep.subr.bf16.mxu1 %v3932_v50 }
  0x8e   : > { %1223 = vmatpush1.bf16.msra.mxu0 %v3939_v51  ;;  %1264 = vmatpush1.bf16.msra.mxu1 %v3942_v52 }
  0x8f   : > { %1357 = vmatprep.subr.bf16.mxu0 %v3785_v7  ;;  %1398 = vmatprep.subr.bf16.mxu1 %v3789_v8 }
 0x124   : > { %v796_v3 = vpop.f32.mrb[0].mxu0  ;;  %v849_v4 = vpop.f32.mrb[0].mxu1 }
 0x125   : > { %v797_v5 = vadd.f32 %v796_v3, %v425_v62  ;;  %v798_v6 = vpop.f32.mrb[1].mxu0  ;;  %v850_v10 = vadd.f32 %v849_v4, %v433_v63  ;;  %v851_v12 = vpop.f32.mrb[1].mxu1 }
 0x126   : > { %v799_v13 = vadd.f32 %v798_v6, %v429_v1  ;;  %v800_v16 = vpop.f32.mrb[2].mxu0  ;;  %v852_v21 = vadd.f32 %v851_v12, %v437_v2  ;;  %v853_v22 = vpop.f32.mrb[2].mxu1 }
 0x127   : > { %868 = vst [vmem:[#allocation2] sm:$0xff] %v797_v5  ;;  %v801_v25 = vadd.f32 %v800_v16, %v425_v62  ;;  %v802_v26 = vpop.f32.mrb[3].mxu0  ;;  %870 = vst [vmem:[#allocation2 + $0x10] sm:$0xff] %v850_v10  ;;  %v854_v33 = vadd.f32 %v853_v22, %v433_v63  ;;  %v855_v38 = vpop.f32.mrb[3].mxu1 }
 0x128   : > { %869 = vst [vmem:[#allocation2 + $0x8] sm:$0xff] %v799_v13  ;;  %v803_v43 = vadd.f32 %v802_v26, %v429_v1  ;;  %871 = vst [vmem:[#allocation2 + $0x18] sm:$0xff] %v852_v21  ;;  %v856_v48 = vadd.f32 %v855_v38, %v437_v2 }
 0x129   : > { %872 = vst [vmem:[#allocation2 + $0x20] sm:$0xff] %v801_v25  ;;  %874 = vst [vmem:[#allocation2 + $0x30] sm:$0xff] %v854_v33 }
 0x12a   : > { %873 = vst [vmem:[#allocation2 + $0x28] sm:$0xff] %v803_v43  ;;  %875 = vst [vmem:[#allocation2 + $0x38] sm:$0xff] %v856_v48 }
 0x12c   : > { %v806_v53 = vpop.f32.mrb[4].mxu0  ;;  %v859_v54 = vpop.f32.mrb[4].mxu1 }
 0x12d   : > { %v807_v55 = vadd.f32 %v806_v53, %v425_v62  ;;  %v808_v56 = vpop.f32.mrb[5].mxu0  ;;  %v860_v57 = vadd.f32 %v859_v54, %v433_v63  ;;  %v861_v58 = vpop.f32.mrb[5].mxu1 }
 0x12e   : > { %v809_v59 = vadd.f32 %v808_v56, %v429_v1  ;;  %v810_v60 = vpop.f32.mrb[6].mxu0  ;;  %v862_v61 = vadd.f32 %v861_v58, %v437_v2  ;;  %v863_v3 = vpop.f32.mrb[6].mxu1  ;;  %v918_v16 = vld [vmem:[#allocation2] sm:$0x3]  ;;  %v920_v56 = vld [vmem:[#allocation2 + $0x10] sm:$0x3] }
 0x12f   : > { %876 = vst [vmem:[#allocation2 + $0x40] sm:$0xff] %v807_v55  ;;  %v811_v4 = vadd.f32 %v810_v60, %v425_v62  ;;  %v812_v5 = vpop.f32.mrb[7].mxu0  ;;  %878 = vst [vmem:[#allocation2 + $0x50] sm:$0xff] %v860_v57  ;;  %v864_v6 = vadd.f32 %v863_v3, %v433_v63  ;;  %v865_v10 = vpop.f32.mrb[7].mxu1  ;;  %v919_v26 = vld [vmem:[#allocation2 + $0x8] sm:$0x3] }
 0x130   : > { %877 = vst [vmem:[#allocation2 + $0x48] sm:$0xff] %v809_v59  ;;  %v813_v12 = vadd.f32 %v812_v5, %v429_v1  ;;  %879 = vst [vmem:[#allocation2 + $0x58] sm:$0xff] %v862_v61  ;;  %v866_v13 = vadd.f32 %v865_v10, %v437_v2  ;;  %v921_v2 = vld [vmem:[#allocation2 + $0x18] sm:$0x3] }
 0x131   : > { %880 = vst [vmem:[#allocation2 + $0x60] sm:$0x3] %v811_v4  ;;  %882 = vst [vmem:[#allocation2 + $0x70] sm:$0x3] %v864_v6 }
 0x132   : > { %881 = vst [vmem:[#allocation2 + $0x68] sm:$0x3] %v813_v12  ;;  %883 = vst [vmem:[#allocation2 + $0x78] sm:$0x3] %v866_v13 }
 0x144   : > { %v1116_v21 = vpop.f32.mrb[8].mxu0  ;;  %v1157_v22 = vpop.f32.mrb[8].mxu1 }
 0x145   : > { %v1164_v25 = vadd.f32 %v1116_v21, %v918_v16  ;;  %v1118_v33 = vpop.f32.mrb[9].mxu0  ;;  %v1159_v38 = vpop.f32.mrb[9].mxu1  ;;  %v1166_v58 = vadd.f32 %v1157_v22, %v920_v56 }
 0x146   : > { %v1165_v62 = vadd.f32 %v1118_v33, %v919_v26  ;;  %v1120_v43 = vpop.f32.mrb[10].mxu0  ;;  %v1161_v48 = vpop.f32.mrb[10].mxu1  ;;  %v1167_v55 = vadd.f32 %v1159_v38, %v921_v2 }
 0x147   : > { %v3152_v63 = vmul.f32 -1.442695, %v1164_v25  ;;  %v1121_v53 = vpop.f32.mrb[11].mxu0  ;;  %v1162_v54 = vpop.f32.mrb[11].mxu1  ;;  %v1485_v43 = vsel %vm1484_vm11, 1, %v3650_v0  ;;  %v1634_v48 = vsel %vm1633_vm12, 1, %v3650_v0 }
 0x148   : > { %v3153_v1 = vmul.f32 -1.442695, %v1165_v62  ;;  %v3154_v57 = vmul.f32 -1.442695, %v1167_v55  ;;  %v3996_v26 = vpop.permute.xlu0 %1197  ;;  %1487 = vperm.xlu1 %3225, %v1485_v43   ;;  %v2209_v53 = vsel %vm2208_vm2, 1, %v3650_v0 }
 0x149   : > { %3370 = vpow2.f32 %v3152_v63  ;;  %vm1199_vm5 = vcmp.eq.s32.totalorder %v3996_v26, 1  ;;  %v1911_v63 = vsel %vm1910_vm15, 1, %v3650_v0 }
 0x14a   : > { %3372 = vpow2.f32 %v3153_v1  ;;  %vm3155_vm6 = vmpackc.low %vm1199_vm5, %vm1199_vm5  ;;  %v2784_v1 = vsel %vm2783_vm9, 1, %v3650_v0 }
 0x14b   : > { %3374 = vpow2.f32 %v3154_v57 }
 0x14c   : > { %3376 = vtanh.f32 %v1166_v58  ;;  %1636 = vperm.xlu1 %3225, %v1634_v48  }
 0x150   : > { %1913 = vperm.xlu1 %3225, %v1911_v63  }
 0x153   : > { %v3371_v59 = vpop.eup %3370 }
 0x154   : > { %v3373_v60 = vpop.eup %3372  ;;  %v1171_v61 = vadd.f32 1.0, %v3371_v59  ;;  %2211 = vperm.xlu1 %3225, %v2209_v53   ;;  %v1203_v59 = vld [vmem:[#allocation2] sm:$0xc] }
 0x155   : > { %v1177_v3 = vadd.f32 1.0, %v3373_v60  ;;  %v3375_v4 = vpop.eup %3374 }
 0x156   : > { %3378 = vrcp.f32 %v1171_v61  ;;  %v3377_v5 = vpop.eup %3376  ;;  %v1184_v12 = vadd.f32 1.0, %v3375_v4  ;;  %v1204_v4 = vld [vmem:[#allocation2 + $0x8] sm:$0xc] }
 0x157   : > { %3380 = vrcp.f32 %v1177_v3 }
 0x158   : > { %3382 = vrcp.f32 %v1184_v12 }
 0x160   : > { %v3379_v6 = vpop.eup %3378 }
 0x161   : > { %v3381_v10 = vpop.eup %3380  ;;  %v1188_v13 = vmul.f32 %v3379_v6, %v3377_v5 }
 0x162   : > { %v1187_v16 = vmul.f32 0.0, %v3381_v10  ;;  %v3383_v22 = vpop.eup %3382 }
 0x164   : > { %v3992_v21 = vadd.f32 %v1188_v13, %v1187_v16  ;;  %v1206_v16 = vld [vmem:[#allocation2 + $0x18] sm:$0xc] }
 0x166   : > { %3384 = vtanh.f32 %v3992_v21 }
 0x170   : > { %v3385_v25 = vpop.eup %3384 }
 0x171   : > { %v1191_v33 = vmul.f32 %v3385_v25, %v3383_v22 }
 0x173   : > { %v4009_v38 = vsel %vm1199_vm5, %v1191_v33, 0.0  ;;  %v3156_v62 = vpack.c.bf16 %v1191_v33, %v1191_v33  ;;  %v1205_v33 = vld [vmem:[#allocation2 + $0x10] sm:$0xc] }
 0x174   : > { %1201 = vst [vmem:[%s4001_s27] sm:$0x3] %v4009_v38 }
 0x175   : > { %3157 = vmatmul.mubr.msk.bf16.vlgmr.msra.gmra.mrb[12].mxu0 %vm3155_vm6, %v3156_v62  ;;  %3160 = vmatmul.mubr.msk.bf16.vlgmr.msra.gmra.mrb[12].mxu1 %vm3155_vm6, %v3156_v62  ;;  %vm2485_vm6 = vmand %vm2483_vm3, %vm2484_vm4 }
 0x176   : > { %1358 = vmatpush1.bf16.msra.mxu0 %v3792_v9  ;;  %1399 = vmatpush1.bf16.msra.mxu1 %v3795_v11  ;;  %v2486_v54 = vsel %vm2485_vm6, 1, %v3650_v0 }
 0x177   : > { %1359 = vmatprep.subr.bf16.mxu0 %v3803_v14  ;;  %1400 = vmatprep.subr.bf16.mxu1 %v3811_v15 }
 0x178   : > { %1389 = vmatprep.mubr.bf16.mxu0 %v3650_v0  ;;  %1430 = vmatprep.mubr.bf16.mxu1 %v3650_v0 }
 0x179   : > { %2488 = vperm.xlu1 %3225, %v2486_v54  }
 0x17a   : > { %1360 = vmatpush1.bf16.msra.mxu0 %v3816_v18  ;;  %1401 = vmatpush1.bf16.msra.mxu1 %v3824_v20 }
 0x17b   : > { %1361 = vmatprep.subr.bf16.mxu0 %v3832_v23  ;;  %1402 = vmatprep.subr.bf16.mxu1 %v3835_v24 }
 0x17d   : > { %2786 = vperm.xlu1 %3225, %v2784_v1   ;;  %v1202_v1 = vsel %vm1199_vm5, %v3992_v21, 0.0 }
 0x17e   : > { %1362 = vmatpush1.bf16.msra.mxu0 %v3843_v27  ;;  %1403 = vmatpush1.bf16.msra.mxu1 %v3846_v28 }
 0x17f   : > { %1363 = vmatprep.subr.bf16.mxu0 %v3851_v29  ;;  %1404 = vmatprep.subr.bf16.mxu1 %v3854_v30 }
 0x182   : > { %1364 = vmatpush1.bf16.msra.mxu0 %v3861_v31  ;;  %1405 = vmatpush1.bf16.msra.mxu1 %v3864_v32 }
 0x183   : > { %1365 = vmatprep.subr.bf16.mxu0 %v3870_v34  ;;  %1406 = vmatprep.subr.bf16.mxu1 %v3873_v35 }
 0x186   : > { %1366 = vmatpush1.bf16.msra.mxu0 %v3882_v36  ;;  %1407 = vmatpush1.bf16.msra.mxu1 %v3885_v37 }
 0x187   : > { %1367 = vmatprep.subr.bf16.mxu0 %v3891_v39  ;;  %1408 = vmatprep.subr.bf16.mxu1 %v3894_v40 }
 0x18a   : > { %1368 = vmatpush1.bf16.msra.mxu0 %v3901_v41  ;;  %1409 = vmatpush1.bf16.msra.mxu1 %v3904_v42 }
 0x18b   : > { %1369 = vmatprep.subr.bf16.mxu0 %v3910_v44  ;;  %1410 = vmatprep.subr.bf16.mxu1 %v3913_v45 }
 0x18e   : > { %1370 = vmatpush1.bf16.msra.mxu0 %v3920_v46  ;;  %1411 = vmatpush1.bf16.msra.mxu1 %v3923_v47 }
 0x18f   : > { %1371 = vmatprep.subr.bf16.mxu0 %v3929_v49  ;;  %1412 = vmatprep.subr.bf16.mxu1 %v3932_v50 }
 0x192   : > { %1372 = vmatpush1.bf16.msra.mxu0 %v3939_v51  ;;  %1413 = vmatpush1.bf16.msra.mxu1 %v3942_v52 }
 0x193   : > { %1506 = vmatprep.subr.bf16.mxu0 %v3785_v7  ;;  %1547 = vmatprep.subr.bf16.mxu1 %v3789_v8 }
 0x248   : > { %v1242_v2 = vpop.f32.mrb[12].mxu0  ;;  %v1283_v55 = vpop.f32.mrb[12].mxu1 }
 0x249   : > { %v1294_v56 = vrot.slane %v1242_v2, 6  ;;  %v1244_v57 = vpop.f32.mrb[13].mxu0  ;;  %v1285_v58 = vpop.f32.mrb[13].mxu1  ;;  %v1296_v25 = vrot.slane %v1283_v55, 6 }
 0x24a   : > { %v1295_v60 = vrot.slane %v1244_v57, 6  ;;  %v1246_v61 = vpop.f32.mrb[14].mxu0  ;;  %v1287_v3 = vpop.f32.mrb[14].mxu1  ;;  %v1297_v13 = vrot.slane %v1285_v58, 6  ;;  %v1326_v58 = vrot.slane %v1202_v1, 6 }
 0x24b   : > { %v1302_v17 = vadd.f32 %v1294_v56, %v1203_v59  ;;  %v1247_v19 = vpop.f32.mrb[15].mxu0  ;;  %v1288_v5 = vpop.f32.mrb[15].mxu1  ;;  %v1304_v43 = vadd.f32 %v1296_v25, %v1205_v33 }
 0x24c   : > { %v1303_v6 = vadd.f32 %v1295_v60, %v1204_v4  ;;  %v1305_v22 = vadd.f32 %v1297_v13, %v1206_v16 }
 0x24d   : > { %v3161_v10 = vmul.f32 -1.442695, %v1302_v17  ;;  %v1339_v17 = vpop.permute.xlu0 %1338 }
 0x24e   : > { %v3162_v12 = vmul.f32 -1.442695, %v1303_v6  ;;  %v3163_v62 = vmul.f32 -1.442695, %v1305_v22  ;;  %vm1340_vm10 = vcmp.eq.s32.totalorder %v1339_v17, 1 }
 0x24f   : > { %3386 = vpow2.f32 %v3161_v10 }
 0x250   : > { %3388 = vpow2.f32 %v3162_v12 }
 0x251   : > { %3390 = vpow2.f32 %v3163_v62  ;;  %v1352_v62 = vld [vmem:[#allocation2] sm:$0x30] }
 0x252   : > { %3392 = vtanh.f32 %v1304_v43 }
 0x259   : > { %v3387_v48 = vpop.eup %3386 }
 0x25a   : > { %v3389_v63 = vpop.eup %3388  ;;  %v1309_v53 = vadd.f32 1.0, %v3387_v48 }
 0x25b   : > { %v1315_v54 = vadd.f32 1.0, %v3389_v63  ;;  %v3391_v2 = vpop.eup %3390 }
 0x25c   : > { %3394 = vrcp.f32 %v1309_v53  ;;  %v3393_v56 = vpop.eup %3392  ;;  %v1322_v60 = vadd.f32 1.0, %v3391_v2 }
 0x25d   : > { %3396 = vrcp.f32 %v1315_v54  ;;  %v1353_v54 = vld [vmem:[#allocation2 + $0x8] sm:$0x30] }
 0x25e   : > { %3398 = vrcp.f32 %v1322_v60  ;;  %v1354_v60 = vld [vmem:[#allocation2 + $0x10] sm:$0x30] }
 0x266   : > { %v3395_v57 = vpop.eup %3394 }
 0x267   : > { %v3397_v55 = vpop.eup %3396  ;;  %v1329_v59 = vmul.f32 %v3395_v57, %v3393_v56 }
 0x268   : > { %v1328_v61 = vmul.f32 %v3397_v55, %v1326_v58  ;;  %v3399_v5 = vpop.eup %3398 }
 0x26a   : > { %v1330_v3 = vadd.f32 %v1329_v59, %v1328_v61 }
 0x26c   : > { %3400 = vtanh.f32 %v1330_v3  ;;  %v1349_v4 = vrot.slane %v1330_v3, 2 }
 0x26e   : > { %v4068_v19 = vsel %vm1340_vm10, %v1349_v4, %v1202_v1 }
 0x276   : > { %v3401_v26 = vpop.eup %3400 }
 0x277   : > { %v1332_v21 = vmul.f32 %v3401_v26, %v3399_v5 }
 0x279   : > { %v1342_v6 = vrot.slane %v1332_v21, 2 }
 0x27b   : > { %v1344_v10 = vsel %vm1340_vm10, %v1342_v6, 0.0  ;;  %v4071_v12 = vsel %vm1340_vm10, %v1342_v6, %v4009_v38 }
 0x27c   : > { %3164 = vst [vmem:[%s4001_s27 + $0x2] sm:$0x3] %v1344_v10  ;;  %v1356_v13 = vpack.c.bf16 %v4071_v12, %v4071_v12 }
 0x27e   : > { %1390 = vmatmul.mubr.bf16.vlgmr.msra.gmra.mrb[16].mxu0 %v1356_v13  ;;  %1431 = vmatmul.mubr.bf16.vlgmr.msra.gmra.mrb[16].mxu1 %v1356_v13  ;;  %v1475_v13 = vrot.slane %v4068_v19, 4 }
 0x27f   : > { %1507 = vmatpush1.bf16.msra.mxu0 %v3792_v9  ;;  %1548 = vmatpush1.bf16.msra.mxu1 %v3795_v11 }
 0x280   : > { %1508 = vmatprep.subr.bf16.mxu0 %v3803_v14  ;;  %1549 = vmatprep.subr.bf16.mxu1 %v3811_v15 }
 0x281   : > { %1538 = vmatprep.mubr.bf16.mxu0 %v3650_v0  ;;  %1579 = vmatprep.mubr.bf16.mxu1 %v3650_v0 }
 0x283   : > { %1509 = vmatpush1.bf16.msra.mxu0 %v3816_v18  ;;  %1550 = vmatpush1.bf16.msra.mxu1 %v3824_v20 }
 0x284   : > { %1510 = vmatprep.subr.bf16.mxu0 %v3832_v23  ;;  %1551 = vmatprep.subr.bf16.mxu1 %v3835_v24 }
 0x287   : > { %1511 = vmatpush1.bf16.msra.mxu0 %v3843_v27  ;;  %1552 = vmatpush1.bf16.msra.mxu1 %v3846_v28 }
 0x288   : > { %1512 = vmatprep.subr.bf16.mxu0 %v3851_v29  ;;  %1553 = vmatprep.subr.bf16.mxu1 %v3854_v30 }
 0x28b   : > { %1513 = vmatpush1.bf16.msra.mxu0 %v3861_v31  ;;  %1554 = vmatpush1.bf16.msra.mxu1 %v3864_v32 }
 0x28c   : > { %1514 = vmatprep.subr.bf16.mxu0 %v3870_v34  ;;  %1555 = vmatprep.subr.bf16.mxu1 %v3873_v35 }
 0x28f   : > { %1515 = vmatpush1.bf16.msra.mxu0 %v3882_v36  ;;  %1556 = vmatpush1.bf16.msra.mxu1 %v3885_v37 }
 0x290   : > { %1516 = vmatprep.subr.bf16.mxu0 %v3891_v39  ;;  %1557 = vmatprep.subr.bf16.mxu1 %v3894_v40 }
 0x293   : > { %1517 = vmatpush1.bf16.msra.mxu0 %v3901_v41  ;;  %1558 = vmatpush1.bf16.msra.mxu1 %v3904_v42 }
 0x294   : > { %1518 = vmatprep.subr.bf16.mxu0 %v3910_v44  ;;  %1559 = vmatprep.subr.bf16.mxu1 %v3913_v45 }
 0x297   : > { %1519 = vmatpush1.bf16.msra.mxu0 %v3920_v46  ;;  %1560 = vmatpush1.bf16.msra.mxu1 %v3923_v47 }
 0x298   : > { %1520 = vmatprep.subr.bf16.mxu0 %v3929_v49  ;;  %1561 = vmatprep.subr.bf16.mxu1 %v3932_v50 }
 0x29b   : > { %1521 = vmatpush1.bf16.msra.mxu0 %v3939_v51  ;;  %1562 = vmatpush1.bf16.msra.mxu1 %v3942_v52 }
 0x29c   : > { %1655 = vmatprep.subr.bf16.mxu0 %v3785_v7  ;;  %1696 = vmatprep.subr.bf16.mxu1 %v3789_v8  ;;  %v1355_v7 = vld [vmem:[#allocation2 + $0x18] sm:$0x30] }
 0x351   : > { %v1391_v38 = vpop.f32.mrb[16].mxu0  ;;  %v1432_v16 = vpop.f32.mrb[16].mxu1 }
 0x352   : > { %v1443_v22 = vrot.slane %v1391_v38, 4  ;;  %v1393_v25 = vpop.f32.mrb[17].mxu0  ;;  %v1434_v33 = vpop.f32.mrb[17].mxu1  ;;  %v1445_v59 = vrot.slane %v1432_v16, 4 }
 0x353   : > { %v1444_v43 = vrot.slane %v1393_v25, 4  ;;  %v1395_v48 = vpop.f32.mrb[18].mxu0  ;;  %v1436_v63 = vpop.f32.mrb[18].mxu1  ;;  %v1446_v55 = vrot.slane %v1434_v33, 4 }
 0x354   : > { %v1451_v53 = vadd.f32 %v1443_v22, %v1352_v62  ;;  %v1396_v1 = vpop.f32.mrb[19].mxu0  ;;  %v1437_v2 = vpop.f32.mrb[19].mxu1  ;;  %v1453_v3 = vadd.f32 %v1445_v59, %v1354_v60 }
 0x355   : > { %v1452_v56 = vadd.f32 %v1444_v43, %v1353_v54  ;;  %v1454_v8 = vadd.f32 %v1446_v55, %v1355_v7  ;;  %v1488_v33 = vpop.permute.xlu1 %1487 }
 0x356   : > { %v3165_v57 = vmul.f32 -1.442695, %v1451_v53  ;;  %vm1489_vm5 = vcmp.eq.s32.totalorder %v1488_v33, 1 }
 0x357   : > { %v3166_v58 = vmul.f32 -1.442695, %v1452_v56  ;;  %v3167_v61 = vmul.f32 -1.442695, %v1454_v8 }
 0x358   : > { %3402 = vpow2.f32 %v3165_v57 }
 0x359   : > { %3404 = vpow2.f32 %v3166_v58 }
 0x35a   : > { %3406 = vpow2.f32 %v3167_v61 }
 0x35b   : > { %3408 = vtanh.f32 %v1453_v3 }
 0x362   : > { %v3403_v17 = vpop.eup %3402 }
 0x363   : > { %v3405_v4 = vpop.eup %3404  ;;  %v1458_v5 = vadd.f32 1.0, %v3403_v17 }
 0x364   : > { %v1464_v26 = vadd.f32 1.0, %v3405_v4  ;;  %v3407_v21 = vpop.eup %3406 }
 0x365   : > { %3410 = vrcp.f32 %v1458_v5  ;;  %v3409_v6 = vpop.eup %3408  ;;  %v1471_v22 = vadd.f32 1.0, %v3407_v21  ;;  %v1637_v21 = vpop.permute.xlu1 %1636 }
 0x366   : > { %3412 = vrcp.f32 %v1464_v26  ;;  %vm1638_vm11 = vcmp.eq.s32.totalorder %v1637_v21, 1 }
 0x367   : > { %3414 = vrcp.f32 %v1471_v22 }
 0x36f   : > { %v3411_v10 = vpop.eup %3410 }
 0x370   : > { %v3413_v38 = vpop.eup %3412  ;;  %v1478_v16 = vmul.f32 %v3411_v10, %v3409_v6 }
 0x371   : > { %v1477_v25 = vmul.f32 %v3413_v38, %v1475_v13  ;;  %v3415_v63 = vpop.eup %3414 }
 0x373   : > { %v1479_v62 = vadd.f32 %v1478_v16, %v1477_v25 }
 0x375   : > { %3416 = vtanh.f32 %v1479_v62  ;;  %v1498_v43 = vrot.slane %v1479_v62, 4 }
 0x377   : > { %v4112_v48 = vsel %vm1489_vm5, %v1498_v43, %v4068_v19  ;;  %v4171_v43 = vld [vmem:[%s3764_s10] ss:$16 sps:$4 sm:$0xff]  }
 0x378   : > { %v1624_v61 = vrot.slane %v4112_v48, 2 }
 0x37f   : > { %v3417_v53 = vpop.eup %3416 }
 0x380   : > { %v1481_v54 = vmul.f32 %v3417_v53, %v3415_v63  ;;  %v4179_v63 = vld [vmem:[%s3764_s10 + $0x24] ss:$16 sps:$4 sm:$0xff]   ;;  %v4183_v53 = vld [vmem:[%s3764_s10 + $0x2c] ss:$16 sps:$4 sm:$0xff]  }
 0x382   : > { %v1491_v1 = vrot.slane %v1481_v54, 4  ;;  %v4189_v54 = vld [vmem:[%s3764_s10 + $0x20] ss:$16 sps:$4 sm:$0xff]  }
 0x384   : > { %v1493_v2 = vsel %vm1489_vm5, %v1491_v1, 0.0  ;;  %v4115_v56 = vsel %vm1489_vm5, %v1491_v1, %v4071_v12  ;;  %v4193_v1 = vld [vmem:[%s3764_s10 + $0x28] ss:$16 sps:$4 sm:$0xff]  }
 0x385   : > { %3168 = vst [vmem:[%s4001_s27 + $0x4] sm:$0x3] %v1493_v2  ;;  %v1505_v57 = vpack.c.bf16 %v4115_v56, %v4115_v56  ;;  %v4197_v2 = vld [vmem:[%s3764_s10 + $0x44] ss:$16 sps:$4 sm:$0xff]  }
 0x387   : > { %1539 = vmatmul.mubr.bf16.vlgmr.msra.gmra.mrb[20].mxu0 %v1505_v57  ;;  %1580 = vmatmul.mubr.bf16.vlgmr.msra.gmra.mrb[20].mxu1 %v1505_v57  ;;  %v4205_v57 = vld [vmem:[%s3764_s10 + $0x40] ss:$16 sps:$4 sm:$0xff]  }
 0x388   : > { %1656 = vmatpush1.bf16.msra.mxu0 %v3792_v9  ;;  %1697 = vmatpush1.bf16.msra.mxu1 %v3795_v11  ;;  %v4153_v9 = vld [vmem:[%s3764_s10 + $0x4] ss:$16 sps:$4 sm:$0xff]   ;;  %v4157_v11 = vld [vmem:[%s3764_s10 + $0xc] ss:$16 sps:$4 sm:$0xff]  }
 0x389   : > { %1657 = vmatprep.subr.bf16.mxu0 %v3803_v14  ;;  %1698 = vmatprep.subr.bf16.mxu1 %v3811_v15 }
 0x38a   : > { %1687 = vmatprep.mubr.bf16.mxu0 %v3650_v0  ;;  %1728 = vmatprep.mubr.bf16.mxu1 %v3650_v0 }
 0x38c   : > { %1658 = vmatpush1.bf16.msra.mxu0 %v3816_v18  ;;  %1699 = vmatpush1.bf16.msra.mxu1 %v3824_v20 }
 0x38d   : > { %1659 = vmatprep.subr.bf16.mxu0 %v3832_v23  ;;  %1700 = vmatprep.subr.bf16.mxu1 %v3835_v24  ;;  %v1501_v24 = vld [vmem:[#allocation2] sm:$0xc0] }
 0x390   : > { %1660 = vmatpush1.bf16.msra.mxu0 %v3843_v27  ;;  %1701 = vmatpush1.bf16.msra.mxu1 %v3846_v28 }
 0x391   : > { %1661 = vmatprep.subr.bf16.mxu0 %v3851_v29  ;;  %1702 = vmatprep.subr.bf16.mxu1 %v3854_v30 }
 0x394   : > { %1662 = vmatpush1.bf16.msra.mxu0 %v3861_v31  ;;  %1703 = vmatpush1.bf16.msra.mxu1 %v3864_v32  ;;  %v1502_v31 = vld [vmem:[#allocation2 + $0x8] sm:$0xc0] }
 0x395   : > { %1663 = vmatprep.subr.bf16.mxu0 %v3870_v34  ;;  %1704 = vmatprep.subr.bf16.mxu1 %v3873_v35 }
 0x398   : > { %1664 = vmatpush1.bf16.msra.mxu0 %v3882_v36  ;;  %1705 = vmatpush1.bf16.msra.mxu1 %v3885_v37 }
 0x399   : > { %1665 = vmatprep.subr.bf16.mxu0 %v3891_v39  ;;  %1706 = vmatprep.subr.bf16.mxu1 %v3894_v40  ;;  %v1504_v40 = vld [vmem:[#allocation2 + $0x18] sm:$0xc0] }
 0x39c   : > { %1666 = vmatpush1.bf16.msra.mxu0 %v3901_v41  ;;  %1707 = vmatpush1.bf16.msra.mxu1 %v3904_v42 }
 0x39d   : > { %1667 = vmatprep.subr.bf16.mxu0 %v3910_v44  ;;  %1708 = vmatprep.subr.bf16.mxu1 %v3913_v45  ;;  %v1503_v44 = vld [vmem:[#allocation2 + $0x10] sm:$0xc0] }
 0x3a0   : > { %1668 = vmatpush1.bf16.msra.mxu0 %v3920_v46  ;;  %1709 = vmatpush1.bf16.msra.mxu1 %v3923_v47 }
 0x3a1   : > { %1669 = vmatprep.subr.bf16.mxu0 %v3929_v49  ;;  %1710 = vmatprep.subr.bf16.mxu1 %v3932_v50 }
 0x3a4   : > { %1670 = vmatpush1.bf16.msra.mxu0 %v3939_v51  ;;  %1711 = vmatpush1.bf16.msra.mxu1 %v3942_v52 }
 0x3a5   : > { %1783 = vmatprep.subr.bf16.mxu0 %v4153_v9  ;;  %1824 = vmatprep.subr.bf16.mxu1 %v4157_v11 }
 0x45a   : > { %v1540_v14 = vpop.f32.mrb[20].mxu0  ;;  %v1581_v15 = vpop.f32.mrb[20].mxu1 }
 0x45b   : > { %v1592_v18 = vrot.slane %v1540_v14, 2  ;;  %v1542_v20 = vpop.f32.mrb[21].mxu0  ;;  %v1583_v23 = vpop.f32.mrb[21].mxu1  ;;  %v1594_v42 = vrot.slane %v1581_v15, 2  ;;  %v4209_v14 = vld [vmem:[%s3764_s10 + $0x48] ss:$16 sps:$4 sm:$0xff]  }
 0x45c   : > { %v1593_v27 = vrot.slane %v1542_v20, 2  ;;  %v1544_v28 = vpop.f32.mrb[22].mxu0  ;;  %v1585_v29 = vpop.f32.mrb[22].mxu1  ;;  %v1595_v39 = vrot.slane %v1583_v23, 2  ;;  %v4213_v15 = vld [vmem:[%s3764_s10 + $0x64] ss:$16 sps:$4 sm:$0xff]  }
 0x45d   : > { %v1600_v30 = vadd.f32 %v1592_v18, %v1501_v24  ;;  %v1545_v32 = vpop.f32.mrb[23].mxu0  ;;  %v1586_v34 = vpop.f32.mrb[23].mxu1  ;;  %v1602_v19 = vadd.f32 %v1594_v42, %v1503_v44  ;;  %v4217_v18 = vld [vmem:[%s3764_s10 + $0x6c] ss:$16 sps:$4 sm:$0xff]   ;;  %v4221_v20 = vld [vmem:[%s3764_s10 + $0x60] ss:$16 sps:$4 sm:$0xff]  }
 0x45e   : > { %v1601_v35 = vadd.f32 %v1593_v27, %v1502_v31  ;;  %v1603_v41 = vadd.f32 %v1595_v39, %v1504_v40  ;;  %v4225_v23 = vld [vmem:[%s3764_s10 + $0x68] ss:$16 sps:$4 sm:$0xff]   ;;  %v4229_v24 = vld [vmem:[%s3764_s10 + $0x84] ss:$16 sps:$4 sm:$0xff]   ;;  %v4233_v27 = vld [vmem:[%s3764_s10 + $0x8c] ss:$16 sps:$4 sm:$0xff]  }
 0x45f   : > { %v3169_v36 = vmul.f32 -1.442695, %v1600_v30  ;;  %v4237_v28 = vld [vmem:[%s3764_s10 + $0x80] ss:$16 sps:$4 sm:$0xff]   ;;  %v4241_v29 = vld [vmem:[%s3764_s10 + $0x88] ss:$16 sps:$4 sm:$0xff]  }
 0x460   : > { %v3170_v37 = vmul.f32 -1.442695, %v1601_v35  ;;  %v3171_v45 = vmul.f32 -1.442695, %v1603_v41  ;;  %v4245_v30 = vld [vmem:[%s3764_s10 + $0xa4] ss:$16 sps:$4 sm:$0xff]  }
 0x461   : > { %3418 = vpow2.f32 %v3169_v36  ;;  %v4249_v31 = vld [vmem:[%s3764_s10 + $0xac] ss:$16 sps:$4 sm:$0xff]   ;;  %v4253_v32 = vld [vmem:[%s3764_s10 + $0xa0] ss:$16 sps:$4 sm:$0xff]   ;;  %v4257_v34 = vld [vmem:[%s3764_s10 + $0xa8] ss:$16 sps:$4 sm:$0xff]  }
 0x462   : > { %3420 = vpow2.f32 %v3170_v37  ;;  %v4261_v35 = vld [vmem:[%s3764_s10 + $0xc4] ss:$16 sps:$4 sm:$0xff]   ;;  %v4265_v36 = vld [vmem:[%s3764_s10 + $0xcc] ss:$16 sps:$4 sm:$0xff]   ;;  %v1650_v37 = vld [vmem:[#allocation2 + $0x20] sm:$0x3] }
 0x463   : > { %3422 = vpow2.f32 %v3171_v45  ;;  %v1651_v42 = vld [vmem:[#allocation2 + $0x28] sm:$0x3] }
 0x464   : > { %3424 = vtanh.f32 %v1602_v19 }
 0x46b   : > { %v3419_v12 = vpop.eup %3418 }
 0x46c   : > { %v3421_v58 = vpop.eup %3420  ;;  %v1607_v55 = vadd.f32 1.0, %v3419_v12 }
 0x46d   : > { %v1613_v7 = vadd.f32 1.0, %v3421_v58  ;;  %v3423_v8 = vpop.eup %3422 }
 0x46e   : > { %3426 = vrcp.f32 %v1607_v55  ;;  %v3425_v59 = vpop.eup %3424  ;;  %v1620_v4 = vadd.f32 1.0, %v3423_v8  ;;  %v1652_v55 = vld [vmem:[#allocation2 + $0x30] sm:$0x3] }
 0x46f   : > { %3428 = vrcp.f32 %v1613_v7 }
 0x470   : > { %3430 = vrcp.f32 %v1620_v4 }
 0x478   : > { %v3427_v60 = vpop.eup %3426 }
 0x479   : > { %v3429_v3 = vpop.eup %3428  ;;  %v1627_v17 = vmul.f32 %v3427_v60, %v3425_v59 }
 0x47a   : > { %v1626_v5 = vmul.f32 %v3429_v3, %v1624_v61  ;;  %v3431_v13 = vpop.eup %3430 }
 0x47c   : > { %v1628_v26 = vadd.f32 %v1627_v17, %v1626_v5 }
 0x47e   : > { %3432 = vtanh.f32 %v1628_v26  ;;  %v1647_v6 = vrot.slane %v1628_v26, 6 }
 0x480   : > { %v4162_v10 = vsel %vm1638_vm11, %v1647_v6, %v4112_v48  ;;  %v4175_v48 = vld [vmem:[%s3764_s10 + $0x8] ss:$16 sps:$4 sm:$0xff]  }
 0x488   : > { %v3433_v38 = vpop.eup %3432 }
 0x489   : > { %v1630_v22 = vmul.f32 %v3433_v38, %v3431_v13  ;;  %v1771_v38 = vpop.permute.xlu0 %1770 }
 0x48a   : > { %vm1772_vm12 = vcmp.eq.s32.totalorder %v1771_v38, 1 }
 0x48b   : > { %v1640_v16 = vrot.slane %v1630_v22, 6 }
 0x48d   : > { %v1642_v25 = vsel %vm1638_vm11, %v1640_v16, 0.0  ;;  %v4165_v33 = vsel %vm1638_vm11, %v1640_v16, %v4115_v56  ;;  %v4201_v56 = vld [vmem:[%s3764_s10 + $0x4c] ss:$16 sps:$4 sm:$0xff]  }
 0x48e   : > { %3172 = vst [vmem:[%s4001_s27 + $0x6] sm:$0x3] %v1642_v25  ;;  %v1654_v62 = vpack.c.bf16 %v4165_v33, %v4165_v33 }
 0x490   : > { %1688 = vmatmul.mubr.bf16.vlgmr.msra.gmra.mrb[24].mxu0 %v1654_v62  ;;  %1729 = vmatmul.mubr.bf16.vlgmr.msra.gmra.mrb[24].mxu1 %v1654_v62 }
 0x491   : > { %1784 = vmatpush1.bf16.msra.mxu0 %v4171_v43  ;;  %1825 = vmatpush1.bf16.msra.mxu1 %v4175_v48 }
 0x492   : > { %1785 = vmatprep.subr.bf16.mxu0 %v4179_v63  ;;  %1826 = vmatprep.subr.bf16.mxu1 %v4183_v53 }
 0x493   : > { %1815 = vmatprep.mubr.bf16.mxu0 %v3650_v0  ;;  %1856 = vmatprep.mubr.bf16.mxu1 %v3650_v0 }
 0x495   : > { %1786 = vmatpush1.bf16.msra.mxu0 %v4189_v54  ;;  %1827 = vmatpush1.bf16.msra.mxu1 %v4193_v1 }
 0x496   : > { %1787 = vmatprep.subr.bf16.mxu0 %v4197_v2  ;;  %1828 = vmatprep.subr.bf16.mxu1 %v4201_v56 }
 0x499   : > { %1788 = vmatpush1.bf16.msra.mxu0 %v4205_v57  ;;  %1829 = vmatpush1.bf16.msra.mxu1 %v4209_v14 }
 0x49a   : > { %1789 = vmatprep.subr.bf16.mxu0 %v4213_v15  ;;  %1830 = vmatprep.subr.bf16.mxu1 %v4217_v18 }
 0x49d   : > { %1790 = vmatpush1.bf16.msra.mxu0 %v4221_v20  ;;  %1831 = vmatpush1.bf16.msra.mxu1 %v4225_v23 }
 0x49e   : > { %1791 = vmatprep.subr.bf16.mxu0 %v4229_v24  ;;  %1832 = vmatprep.subr.bf16.mxu1 %v4233_v27 }
 0x4a1   : > { %1792 = vmatpush1.bf16.msra.mxu0 %v4237_v28  ;;  %1833 = vmatpush1.bf16.msra.mxu1 %v4241_v29 }
 0x4a2   : > { %1793 = vmatprep.subr.bf16.mxu0 %v4245_v30  ;;  %1834 = vmatprep.subr.bf16.mxu1 %v4249_v31 }
 0x4a5   : > { %1794 = vmatpush1.bf16.msra.mxu0 %v4253_v32  ;;  %1835 = vmatpush1.bf16.msra.mxu1 %v4257_v34 }
 0x4a6   : > { %1795 = vmatprep.subr.bf16.mxu0 %v4261_v35  ;;  %1836 = vmatprep.subr.bf16.mxu1 %v4265_v36 }
 0x4a9   : > { %1796 = vmatpush1.bf16.msra.mxu0 %v3920_v46  ;;  %1837 = vmatpush1.bf16.msra.mxu1 %v3923_v47 }
 0x4aa   : > { %1797 = vmatprep.subr.bf16.mxu0 %v3929_v49  ;;  %1838 = vmatprep.subr.bf16.mxu1 %v3932_v50 }
 0x4ad   : > { %1798 = vmatpush1.bf16.msra.mxu0 %v3939_v51  ;;  %1839 = vmatpush1.bf16.msra.mxu1 %v3942_v52  ;;  %v1653_v52 = vld [vmem:[#allocation2 + $0x38] sm:$0x3] }
 0x4ae   : > { %1932 = vmatprep.subr.bf16.mxu0 %v4153_v9  ;;  %1973 = vmatprep.subr.bf16.mxu1 %v4157_v11 }
 0x563   : > { %v1689_v39 = vpop.f32.mrb[24].mxu0  ;;  %v1730_v40 = vpop.f32.mrb[24].mxu1 }
 0x564   : > { %v1737_v41 = vadd.f32 %v1689_v39, %v1650_v37  ;;  %v1691_v46 = vpop.f32.mrb[25].mxu0  ;;  %v1732_v44 = vpop.f32.mrb[25].mxu1  ;;  %v1739_v8 = vadd.f32 %v1730_v40, %v1652_v55 }
 0x565   : > { %v1738_v47 = vadd.f32 %v1691_v46, %v1651_v42  ;;  %v1693_v45 = vpop.f32.mrb[26].mxu0  ;;  %v1734_v49 = vpop.f32.mrb[26].mxu1  ;;  %v1740_v58 = vadd.f32 %v1732_v44, %v1653_v52  ;;  %v4321_v42 = vld [vmem:[%s3764_s10 + $0xe4] ss:$16 sps:$4 sm:$0xff]   ;;  %v4325_v46 = vld [vmem:[%s3764_s10 + $0xec] ss:$16 sps:$4 sm:$0xff]  }
 0x566   : > { %v3173_v19 = vmul.f32 -1.442695, %v1737_v41  ;;  %v1694_v50 = vpop.f32.mrb[27].mxu0  ;;  %v1735_v12 = vpop.f32.mrb[27].mxu1  ;;  %v4329_v44 = vld [vmem:[%s3764_s10 + $0xe0] ss:$16 sps:$4 sm:$0xff]  }
 0x567   : > { %v3174_v51 = vmul.f32 -1.442695, %v1738_v47  ;;  %v3175_v7 = vmul.f32 -1.442695, %v1740_v58  ;;  %v4333_v47 = vld [vmem:[%s3764_s10 + $0xe8] ss:$16 sps:$4 sm:$0xff]  }
 0x568   : > { %3434 = vpow2.f32 %v3173_v19 }
 0x569   : > { %3436 = vpow2.f32 %v3174_v51  ;;  %v1778_v51 = vld [vmem:[#allocation2 + $0x20] sm:$0xc] }
 0x56a   : > { %3438 = vpow2.f32 %v3175_v7 }
 0x56b   : > { %3440 = vtanh.f32 %v1739_v8  ;;  %v1779_v8 = vld [vmem:[#allocation2 + $0x28] sm:$0xc] }
 0x572   : > { %v3435_v59 = vpop.eup %3434 }
 0x573   : > { %v3437_v60 = vpop.eup %3436  ;;  %v1744_v61 = vadd.f32 1.0, %v3435_v59 }
 0x574   : > { %v1750_v3 = vadd.f32 1.0, %v3437_v60  ;;  %v3439_v17 = vpop.eup %3438 }
 0x575   : > { %3442 = vrcp.f32 %v1744_v61  ;;  %v3441_v4 = vpop.eup %3440  ;;  %v1757_v6 = vadd.f32 1.0, %v3439_v17 }
 0x576   : > { %3444 = vrcp.f32 %v1750_v3 }
 0x577   : > { %3446 = vrcp.f32 %v1757_v6  ;;  %v1780_v6 = vld [vmem:[#allocation2 + $0x30] sm:$0xc] }
 0x57f   : > { %v3443_v5 = vpop.eup %3442 }
 0x580   : > { %v3445_v26 = vpop.eup %3444  ;;  %v1761_v21 = vmul.f32 %v3443_v5, %v3441_v4  ;;  %v1781_v5 = vld [vmem:[#allocation2 + $0x38] sm:$0xc] }
 0x581   : > { %v1760_v13 = vmul.f32 %v3445_v26, %v4162_v10  ;;  %v3447_v25 = vpop.eup %3446 }
 0x583   : > { %v1762_v22 = vadd.f32 %v1761_v21, %v1760_v13 }
 0x585   : > { %3448 = vtanh.f32 %v1762_v22  ;;  %v4278_v16 = vsel %vm1772_vm12, %v1762_v22, %v4162_v10  ;;  %v4313_v10 = vld [vmem:[%s3764_s10 + $0xc0] ss:$16 sps:$4 sm:$0xff]  }
 0x58f   : > { %v3449_v62 = vpop.eup %3448 }
 0x590   : > { %v1764_v37 = vmul.f32 %v3449_v62, %v3447_v25 }
 0x592   : > { %v1773_v39 = vsel %vm1772_vm12, %v1764_v37, 0.0  ;;  %v4281_v40 = vsel %vm1772_vm12, %v1764_v37, %v4165_v33  ;;  %v4317_v33 = vld [vmem:[%s3764_s10 + $0xc8] ss:$16 sps:$4 sm:$0xff]  }
 0x593   : > { %3176 = vst [vmem:[%s4001_s27 + $0x8] sm:$0x3] %v1773_v39  ;;  %v1782_v41 = vpack.c.bf16 %v4281_v40, %v4281_v40 }
 0x595   : > { %1816 = vmatmul.mubr.bf16.vlgmr.msra.gmra.mrb[28].mxu0 %v1782_v41  ;;  %1857 = vmatmul.mubr.bf16.vlgmr.msra.gmra.mrb[28].mxu1 %v1782_v41 }
 0x596   : > { %1933 = vmatpush1.bf16.msra.mxu0 %v4171_v43  ;;  %1974 = vmatpush1.bf16.msra.mxu1 %v4175_v48 }
 0x597   : > { %1934 = vmatprep.subr.bf16.mxu0 %v4179_v63  ;;  %1975 = vmatprep.subr.bf16.mxu1 %v4183_v53 }
 0x598   : > { %1964 = vmatprep.mubr.bf16.mxu0 %v3650_v0  ;;  %2005 = vmatprep.mubr.bf16.mxu1 %v3650_v0 }
 0x59a   : > { %1935 = vmatpush1.bf16.msra.mxu0 %v4189_v54  ;;  %1976 = vmatpush1.bf16.msra.mxu1 %v4193_v1 }
 0x59b   : > { %1936 = vmatprep.subr.bf16.mxu0 %v4197_v2  ;;  %1977 = vmatprep.subr.bf16.mxu1 %v4201_v56 }
 0x59e   : > { %1937 = vmatpush1.bf16.msra.mxu0 %v4205_v57  ;;  %1978 = vmatpush1.bf16.msra.mxu1 %v4209_v14 }
 0x59f   : > { %1938 = vmatprep.subr.bf16.mxu0 %v4213_v15  ;;  %1979 = vmatprep.subr.bf16.mxu1 %v4217_v18 }
 0x5a2   : > { %1939 = vmatpush1.bf16.msra.mxu0 %v4221_v20  ;;  %1980 = vmatpush1.bf16.msra.mxu1 %v4225_v23 }
 0x5a3   : > { %1940 = vmatprep.subr.bf16.mxu0 %v4229_v24  ;;  %1981 = vmatprep.subr.bf16.mxu1 %v4233_v27 }
 0x5a6   : > { %1941 = vmatpush1.bf16.msra.mxu0 %v4237_v28  ;;  %1982 = vmatpush1.bf16.msra.mxu1 %v4241_v29 }
 0x5a7   : > { %1942 = vmatprep.subr.bf16.mxu0 %v4245_v30  ;;  %1983 = vmatprep.subr.bf16.mxu1 %v4249_v31 }
 0x5aa   : > { %1943 = vmatpush1.bf16.msra.mxu0 %v4253_v32  ;;  %1984 = vmatpush1.bf16.msra.mxu1 %v4257_v34 }
 0x5ab   : > { %1944 = vmatprep.subr.bf16.mxu0 %v4261_v35  ;;  %1985 = vmatprep.subr.bf16.mxu1 %v4265_v36 }
 0x5ae   : > { %1945 = vmatpush1.bf16.msra.mxu0 %v4313_v10  ;;  %1986 = vmatpush1.bf16.msra.mxu1 %v4317_v33 }
 0x5af   : > { %1946 = vmatprep.subr.bf16.mxu0 %v4321_v42  ;;  %1987 = vmatprep.subr.bf16.mxu1 %v4325_v46 }
 0x5b2   : > { %1947 = vmatpush1.bf16.msra.mxu0 %v4329_v44  ;;  %1988 = vmatpush1.bf16.msra.mxu1 %v4333_v47 }
 0x5b3   : > { %2081 = vmatprep.subr.bf16.mxu0 %v4153_v9  ;;  %2122 = vmatprep.subr.bf16.mxu1 %v4157_v11 }
 0x668   : > { %v1817_v45 = vpop.f32.mrb[28].mxu0  ;;  %v1858_v49 = vpop.f32.mrb[28].mxu1 }
 0x669   : > { %v1869_v19 = vrot.slane %v1817_v45, 6  ;;  %v1819_v50 = vpop.f32.mrb[29].mxu0  ;;  %v1860_v12 = vpop.f32.mrb[29].mxu1  ;;  %v1871_v21 = vrot.slane %v1858_v49, 6 }
 0x66a   : > { %v1870_v52 = vrot.slane %v1819_v50, 6  ;;  %v1821_v58 = vpop.f32.mrb[30].mxu0  ;;  %v1862_v55 = vpop.f32.mrb[30].mxu1  ;;  %v1872_v4 = vrot.slane %v1860_v12, 6 }
 0x66b   : > { %v1877_v7 = vadd.f32 %v1869_v19, %v1778_v51  ;;  %v1822_v59 = vpop.f32.mrb[31].mxu0  ;;  %v1863_v60 = vpop.f32.mrb[31].mxu1  ;;  %v1879_v38 = vadd.f32 %v1871_v21, %v1780_v6  ;;  %v1901_v19 = vrot.slane %v4278_v16, 6  ;;  %v1927_v6 = vld [vmem:[#allocation2 + $0x20] sm:$0x30] }
 0x66c   : > { %v1878_v61 = vadd.f32 %v1870_v52, %v1779_v8  ;;  %v1880_v26 = vadd.f32 %v1872_v4, %v1781_v5  ;;  %v1914_v58 = vpop.permute.xlu1 %1913 }
 0x66d   : > { %v3177_v3 = vmul.f32 -1.442695, %v1877_v7  ;;  %vm1915_vm13 = vcmp.eq.s32.totalorder %v1914_v58, 1 }
 0x66e   : > { %v3178_v17 = vmul.f32 -1.442695, %v1878_v61  ;;  %v3179_v13 = vmul.f32 -1.442695, %v1880_v26 }
 0x66f   : > { %3450 = vpow2.f32 %v3177_v3 }
 0x670   : > { %3452 = vpow2.f32 %v3178_v17 }
 0x671   : > { %3454 = vpow2.f32 %v3179_v13 }
 0x672   : > { %3456 = vtanh.f32 %v1879_v38 }
 0x679   : > { %v3451_v22 = vpop.eup %3450 }
 0x67a   : > { %v3453_v25 = vpop.eup %3452  ;;  %v1884_v62 = vadd.f32 1.0, %v3451_v22 }
 0x67b   : > { %v1890_v37 = vadd.f32 1.0, %v3453_v25  ;;  %v3455_v39 = vpop.eup %3454 }
 0x67c   : > { %3458 = vrcp.f32 %v1884_v62  ;;  %v3457_v41 = vpop.eup %3456  ;;  %v1897_v49 = vadd.f32 1.0, %v3455_v39  ;;  %v1928_v62 = vld [vmem:[#allocation2 + $0x28] sm:$0x30] }
 0x67d   : > { %3460 = vrcp.f32 %v1890_v37 }
 0x67e   : > { %3462 = vrcp.f32 %v1897_v49 }
 0x686   : > { %v3459_v45 = vpop.eup %3458 }
 0x687   : > { %v3461_v50 = vpop.eup %3460  ;;  %v1904_v12 = vmul.f32 %v3459_v45, %v3457_v41 }
 0x688   : > { %v1903_v51 = vmul.f32 %v3461_v50, %v1901_v19  ;;  %v3463_v8 = vpop.eup %3462 }
 0x68a   : > { %v1905_v52 = vadd.f32 %v1904_v12, %v1903_v51  ;;  %v1930_v12 = vld [vmem:[#allocation2 + $0x38] sm:$0x30] }
 0x68c   : > { %3464 = vtanh.f32 %v1905_v52  ;;  %v1924_v55 = vrot.slane %v1905_v52, 2  ;;  %v1929_v52 = vld [vmem:[#allocation2 + $0x30] sm:$0x30] }
 0x68e   : > { %v4340_v7 = vsel %vm1915_vm13, %v1924_v55, %v4278_v16 }
 0x696   : > { %v3465_v59 = vpop.eup %3464 }
 0x697   : > { %v1907_v60 = vmul.f32 %v3465_v59, %v3463_v8 }
 0x699   : > { %v1917_v61 = vrot.slane %v1907_v60, 2 }
 0x69b   : > { %v1919_v3 = vsel %vm1915_vm13, %v1917_v61, 0.0  ;;  %v4343_v17 = vsel %vm1915_vm13, %v1917_v61, %v4281_v40 }
 0x69c   : > { %3180 = vst [vmem:[%s4001_s27 + $0xa] sm:$0x3] %v1919_v3  ;;  %v1931_v4 = vpack.c.bf16 %v4343_v17, %v4343_v17 }
 0x69e   : > { %1965 = vmatmul.mubr.bf16.vlgmr.msra.gmra.mrb[32].mxu0 %v1931_v4  ;;  %2006 = vmatmul.mubr.bf16.vlgmr.msra.gmra.mrb[32].mxu1 %v1931_v4 }
 0x69f   : > { %2082 = vmatpush1.bf16.msra.mxu0 %v4171_v43  ;;  %2123 = vmatpush1.bf16.msra.mxu1 %v4175_v48 }
 0x6a0   : > { %2083 = vmatprep.subr.bf16.mxu0 %v4179_v63  ;;  %2124 = vmatprep.subr.bf16.mxu1 %v4183_v53 }
 0x6a1   : > { %2113 = vmatprep.mubr.bf16.mxu0 %v3650_v0  ;;  %2154 = vmatprep.mubr.bf16.mxu1 %v3650_v0 }
 0x6a3   : > { %2084 = vmatpush1.bf16.msra.mxu0 %v4189_v54  ;;  %2125 = vmatpush1.bf16.msra.mxu1 %v4193_v1 }
 0x6a4   : > { %2085 = vmatprep.subr.bf16.mxu0 %v4197_v2  ;;  %2126 = vmatprep.subr.bf16.mxu1 %v4201_v56 }
 0x6a7   : > { %2086 = vmatpush1.bf16.msra.mxu0 %v4205_v57  ;;  %2127 = vmatpush1.bf16.msra.mxu1 %v4209_v14 }
 0x6a8   : > { %2087 = vmatprep.subr.bf16.mxu0 %v4213_v15  ;;  %2128 = vmatprep.subr.bf16.mxu1 %v4217_v18 }
 0x6ab   : > { %2088 = vmatpush1.bf16.msra.mxu0 %v4221_v20  ;;  %2129 = vmatpush1.bf16.msra.mxu1 %v4225_v23 }
 0x6ac   : > { %2089 = vmatprep.subr.bf16.mxu0 %v4229_v24  ;;  %2130 = vmatprep.subr.bf16.mxu1 %v4233_v27 }
 0x6af   : > { %2090 = vmatpush1.bf16.msra.mxu0 %v4237_v28  ;;  %2131 = vmatpush1.bf16.msra.mxu1 %v4241_v29 }
 0x6b0   : > { %2091 = vmatprep.subr.bf16.mxu0 %v4245_v30  ;;  %2132 = vmatprep.subr.bf16.mxu1 %v4249_v31 }
 0x6b3   : > { %2092 = vmatpush1.bf16.msra.mxu0 %v4253_v32  ;;  %2133 = vmatpush1.bf16.msra.mxu1 %v4257_v34 }
 0x6b4   : > { %2093 = vmatprep.subr.bf16.mxu0 %v4261_v35  ;;  %2134 = vmatprep.subr.bf16.mxu1 %v4265_v36 }
 0x6b7   : > { %2094 = vmatpush1.bf16.msra.mxu0 %v4313_v10  ;;  %2135 = vmatpush1.bf16.msra.mxu1 %v4317_v33 }
 0x6b8   : > { %2095 = vmatprep.subr.bf16.mxu0 %v4321_v42  ;;  %2136 = vmatprep.subr.bf16.mxu1 %v4325_v46 }
 0x6bb   : > { %2096 = vmatpush1.bf16.msra.mxu0 %v4329_v44  ;;  %2137 = vmatpush1.bf16.msra.mxu1 %v4333_v47 }
 0x6bc   : > { %2230 = vmatprep.subr.bf16.mxu0 %v4153_v9  ;;  %2271 = vmatprep.subr.bf16.mxu1 %v4157_v11 }
 0x771   : > { %v1966_v16 = vpop.f32.mrb[32].mxu0  ;;  %v2007_v40 = vpop.f32.mrb[32].mxu1 }
 0x772   : > { %v2018_v5 = vrot.slane %v1966_v16, 4  ;;  %v1968_v26 = vpop.f32.mrb[33].mxu0  ;;  %v2009_v21 = vpop.f32.mrb[33].mxu1  ;;  %v2020_v51 = vrot.slane %v2007_v40, 4 }
 0x773   : > { %v2019_v13 = vrot.slane %v1968_v26, 4  ;;  %v1970_v38 = vpop.f32.mrb[34].mxu0  ;;  %v2011_v22 = vpop.f32.mrb[34].mxu1  ;;  %v2021_v50 = vrot.slane %v2009_v21, 4 }
 0x774   : > { %v2026_v25 = vadd.f32 %v2018_v5, %v1927_v6  ;;  %v1971_v37 = vpop.f32.mrb[35].mxu0  ;;  %v2012_v39 = vpop.f32.mrb[35].mxu1  ;;  %v2028_v55 = vadd.f32 %v2020_v51, %v1929_v52  ;;  %v2050_v5 = vrot.slane %v4340_v7, 4  ;;  %v2076_v52 = vld [vmem:[#allocation2 + $0x20] sm:$0xc0] }
 0x775   : > { %v2027_v41 = vadd.f32 %v2019_v13, %v1928_v62  ;;  %v2029_v49 = vadd.f32 %v2021_v50, %v1930_v12  ;;  %v2063_v38 = vpop.permute.xlu0 %2062 }
 0x776   : > { %v3181_v45 = vmul.f32 -1.442695, %v2026_v25  ;;  %vm2064_vm14 = vcmp.eq.s32.totalorder %v2063_v38, 1 }
 0x777   : > { %v3182_v19 = vmul.f32 -1.442695, %v2027_v41  ;;  %v3183_v58 = vmul.f32 -1.442695, %v2029_v49 }
 0x778   : > { %3466 = vpow2.f32 %v3181_v45 }
 0x779   : > { %3468 = vpow2.f32 %v3182_v19 }
 0x77a   : > { %3470 = vpow2.f32 %v3183_v58 }
 0x77b   : > { %3472 = vtanh.f32 %v2028_v55 }
 0x782   : > { %v3467_v8 = vpop.eup %3466 }
 0x783   : > { %v3469_v59 = vpop.eup %3468  ;;  %v2033_v60 = vadd.f32 1.0, %v3467_v8 }
 0x784   : > { %v2039_v61 = vadd.f32 1.0, %v3469_v59  ;;  %v3471_v3 = vpop.eup %3470 }
 0x785   : > { %3474 = vrcp.f32 %v2033_v60  ;;  %v3473_v4 = vpop.eup %3472  ;;  %v2046_v40 = vadd.f32 1.0, %v3471_v3  ;;  %v2077_v60 = vld [vmem:[#allocation2 + $0x28] sm:$0xc0] }
 0x786   : > { %3476 = vrcp.f32 %v2039_v61 }
 0x787   : > { %3478 = vrcp.f32 %v2046_v40 }
 0x78f   : > { %v3475_v16 = vpop.eup %3474 }
 0x790   : > { %v3477_v26 = vpop.eup %3476  ;;  %v2053_v21 = vmul.f32 %v3475_v16, %v3473_v4 }
 0x791   : > { %v2052_v6 = vmul.f32 %v3477_v26, %v2050_v5  ;;  %v3479_v62 = vpop.eup %3478 }
 0x793   : > { %v2054_v13 = vadd.f32 %v2053_v21, %v2052_v6  ;;  %v2079_v21 = vld [vmem:[#allocation2 + $0x38] sm:$0xc0] }
 0x795   : > { %3480 = vtanh.f32 %v2054_v13  ;;  %v2073_v22 = vrot.slane %v2054_v13, 4  ;;  %v2078_v13 = vld [vmem:[#allocation2 + $0x30] sm:$0xc0] }
 0x797   : > { %v4384_v25 = vsel %vm2064_vm14, %v2073_v22, %v4340_v7 }
 0x79f   : > { %v3481_v37 = vpop.eup %3480 }
 0x7a0   : > { %v2056_v39 = vmul.f32 %v3481_v37, %v3479_v62 }
 0x7a2   : > { %v2066_v41 = vrot.slane %v2056_v39, 4 }
 0x7a4   : > { %v2068_v45 = vsel %vm2064_vm14, %v2066_v41, 0.0  ;;  %v4387_v19 = vsel %vm2064_vm14, %v2066_v41, %v4343_v17 }
 0x7a5   : > { %3184 = vst [vmem:[%s4001_s27 + $0xc] sm:$0x3] %v2068_v45  ;;  %v2080_v50 = vpack.c.bf16 %v4387_v19, %v4387_v19 }
 0x7a7   : > { %2114 = vmatmul.mubr.bf16.vlgmr.msra.gmra.mrb[36].mxu0 %v2080_v50  ;;  %2155 = vmatmul.mubr.bf16.vlgmr.msra.gmra.mrb[36].mxu1 %v2080_v50 }
 0x7a8   : > { %2231 = vmatpush1.bf16.msra.mxu0 %v4171_v43  ;;  %2272 = vmatpush1.bf16.msra.mxu1 %v4175_v48 }
 0x7a9   : > { %2232 = vmatprep.subr.bf16.mxu0 %v4179_v63  ;;  %2273 = vmatprep.subr.bf16.mxu1 %v4183_v53 }
 0x7aa   : > { %2262 = vmatprep.mubr.bf16.mxu0 %v3650_v0  ;;  %2303 = vmatprep.mubr.bf16.mxu1 %v3650_v0 }
 0x7ac   : > { %2233 = vmatpush1.bf16.msra.mxu0 %v4189_v54  ;;  %2274 = vmatpush1.bf16.msra.mxu1 %v4193_v1 }
 0x7ad   : > { %2234 = vmatprep.subr.bf16.mxu0 %v4197_v2  ;;  %2275 = vmatprep.subr.bf16.mxu1 %v4201_v56 }
 0x7b0   : > { %2235 = vmatpush1.bf16.msra.mxu0 %v4205_v57  ;;  %2276 = vmatpush1.bf16.msra.mxu1 %v4209_v14 }
 0x7b1   : > { %2236 = vmatprep.subr.bf16.mxu0 %v4213_v15  ;;  %2277 = vmatprep.subr.bf16.mxu1 %v4217_v18 }
 0x7b4   : > { %2237 = vmatpush1.bf16.msra.mxu0 %v4221_v20  ;;  %2278 = vmatpush1.bf16.msra.mxu1 %v4225_v23 }
 0x7b5   : > { %2238 = vmatprep.subr.bf16.mxu0 %v4229_v24  ;;  %2279 = vmatprep.subr.bf16.mxu1 %v4233_v27 }
 0x7b8   : > { %2239 = vmatpush1.bf16.msra.mxu0 %v4237_v28  ;;  %2280 = vmatpush1.bf16.msra.mxu1 %v4241_v29 }
 0x7b9   : > { %2240 = vmatprep.subr.bf16.mxu0 %v4245_v30  ;;  %2281 = vmatprep.subr.bf16.mxu1 %v4249_v31 }
 0x7bc   : > { %2241 = vmatpush1.bf16.msra.mxu0 %v4253_v32  ;;  %2282 = vmatpush1.bf16.msra.mxu1 %v4257_v34 }
 0x7bd   : > { %2242 = vmatprep.subr.bf16.mxu0 %v4261_v35  ;;  %2283 = vmatprep.subr.bf16.mxu1 %v4265_v36 }
 0x7c0   : > { %2243 = vmatpush1.bf16.msra.mxu0 %v4313_v10  ;;  %2284 = vmatpush1.bf16.msra.mxu1 %v4317_v33 }
 0x7c1   : > { %2244 = vmatprep.subr.bf16.mxu0 %v4321_v42  ;;  %2285 = vmatprep.subr.bf16.mxu1 %v4325_v46 }
 0x7c4   : > { %2245 = vmatpush1.bf16.msra.mxu0 %v4329_v44  ;;  %2286 = vmatpush1.bf16.msra.mxu1 %v4333_v47 }
 0x7c5   : > { %2358 = vmatprep.subr.bf16.mxu0 %v4153_v9  ;;  %2399 = vmatprep.subr.bf16.mxu1 %v4157_v11 }
 0x87a   : > { %v2115_v7 = vpop.f32.mrb[36].mxu0  ;;  %v2156_v17 = vpop.f32.mrb[36].mxu1 }
 0x87b   : > { %v2167_v12 = vrot.slane %v2115_v7, 2  ;;  %v2117_v49 = vpop.f32.mrb[37].mxu0  ;;  %v2158_v51 = vpop.f32.mrb[37].mxu1  ;;  %v2169_v6 = vrot.slane %v2156_v17, 2 }
 0x87c   : > { %v2168_v58 = vrot.slane %v2117_v49, 2  ;;  %v2119_v55 = vpop.f32.mrb[38].mxu0  ;;  %v2160_v8 = vpop.f32.mrb[38].mxu1  ;;  %v2170_v26 = vrot.slane %v2158_v51, 2 }
 0x87d   : > { %v2175_v59 = vadd.f32 %v2167_v12, %v2076_v52  ;;  %v2120_v61 = vpop.f32.mrb[39].mxu0  ;;  %v2161_v3 = vpop.f32.mrb[39].mxu1  ;;  %v2177_v22 = vadd.f32 %v2169_v6, %v2078_v13  ;;  %v2199_v12 = vrot.slane %v4384_v25, 2  ;;  %v2226_v6 = vld [vmem:[#allocation2 + $0x48] sm:$0x3] }
 0x87e   : > { %v2176_v4 = vadd.f32 %v2168_v58, %v2077_v60  ;;  %v2178_v40 = vadd.f32 %v2170_v26, %v2079_v21  ;;  %v2212_v55 = vpop.permute.xlu1 %2211 }
 0x87f   : > { %v3185_v16 = vmul.f32 -1.442695, %v2175_v59  ;;  %vm2213_vm15 = vcmp.eq.s32.totalorder %v2212_v55, 1 }
 0x880   : > { %v3186_v5 = vmul.f32 -1.442695, %v2176_v4  ;;  %v3187_v38 = vmul.f32 -1.442695, %v2178_v40 }
 0x881   : > { %3482 = vpow2.f32 %v3185_v16 }
 0x882   : > { %3484 = vpow2.f32 %v3186_v5 }
 0x883   : > { %3486 = vpow2.f32 %v3187_v38 }
 0x884   : > { %3488 = vtanh.f32 %v2177_v22 }
 0x88b   : > { %v3483_v62 = vpop.eup %3482 }
 0x88c   : > { %v3485_v37 = vpop.eup %3484  ;;  %v2182_v39 = vadd.f32 1.0, %v3483_v62 }
 0x88d   : > { %v2188_v41 = vadd.f32 1.0, %v3485_v37  ;;  %v3487_v45 = vpop.eup %3486 }
 0x88e   : > { %3490 = vrcp.f32 %v2182_v39  ;;  %v3489_v50 = vpop.eup %3488  ;;  %v2195_v17 = vadd.f32 1.0, %v3487_v45 }
 0x88f   : > { %3492 = vrcp.f32 %v2188_v41 }
 0x890   : > { %3494 = vrcp.f32 %v2195_v17 }
 0x898   : > { %v3491_v7 = vpop.eup %3490 }
 0x899   : > { %v3493_v49 = vpop.eup %3492  ;;  %v2202_v51 = vmul.f32 %v3491_v7, %v3489_v50  ;;  %v2228_v7 = vld [vmem:[#allocation2 + $0x58] sm:$0x3] }
 0x89a   : > { %v2201_v52 = vmul.f32 %v3493_v49, %v2199_v12  ;;  %v3495_v60 = vpop.eup %3494  ;;  %v2227_v12 = vld [vmem:[#allocation2 + $0x50] sm:$0x3] }
 0x89c   : > { %v2203_v58 = vadd.f32 %v2202_v51, %v2201_v52 }
 0x89e   : > { %3496 = vtanh.f32 %v2203_v58  ;;  %v2222_v8 = vrot.slane %v2203_v58, 6 }
 0x8a0   : > { %v4428_v59 = vsel %vm2213_vm15, %v2222_v8, %v4384_v25  ;;  %v2225_v25 = vld [vmem:[#allocation2 + $0x40] sm:$0x3] }
 0x8a8   : > { %v3497_v61 = vpop.eup %3496 }
 0x8a9   : > { %v2205_v3 = vmul.f32 %v3497_v61, %v3495_v60 }
 0x8ab   : > { %v2215_v4 = vrot.slane %v2205_v3, 6 }
 0x8ad   : > { %v2217_v16 = vsel %vm2213_vm15, %v2215_v4, 0.0  ;;  %v4431_v5 = vsel %vm2213_vm15, %v2215_v4, %v4387_v19 }
 0x8ae   : > { %3188 = vst [vmem:[%s4001_s27 + $0xe] sm:$0x3] %v2217_v16  ;;  %v2229_v26 = vpack.c.bf16 %v4431_v5, %v4431_v5 }
 0x8b0   : > { %2263 = vmatmul.mubr.bf16.vlgmr.msra.gmra.mrb[40].mxu0 %v2229_v26  ;;  %2304 = vmatmul.mubr.bf16.vlgmr.msra.gmra.mrb[40].mxu1 %v2229_v26  ;;  %v2346_v26 = vpop.permute.xlu0 %2345 }
 0x8b1   : > { %2359 = vmatpush1.bf16.msra.mxu0 %v4171_v43  ;;  %2400 = vmatpush1.bf16.msra.mxu1 %v4175_v48  ;;  %vm2347_vm0 = vcmp.eq.s32.totalorder %v2346_v26, 1  ;;  %v4531_v26 = vld [vmem:[%s3764_s10] ss:$16 sps:$4 sm:$0xff]  }
 0x8b2   : > { %2360 = vmatprep.subr.bf16.mxu0 %v4179_v63  ;;  %2401 = vmatprep.subr.bf16.mxu1 %v4183_v53 }
 0x8b3   : > { %2390 = vmatprep.mubr.bf16.mxu0 %v3650_v0  ;;  %2431 = vmatprep.mubr.bf16.mxu1 %v3650_v0 }
 0x8b5   : > { %2361 = vmatpush1.bf16.msra.mxu0 %v4189_v54  ;;  %2402 = vmatpush1.bf16.msra.mxu1 %v4193_v1 }
 0x8b6   : > { %2362 = vmatprep.subr.bf16.mxu0 %v4197_v2  ;;  %2403 = vmatprep.subr.bf16.mxu1 %v4201_v56 }
 0x8b9   : > { %2363 = vmatpush1.bf16.msra.mxu0 %v4205_v57  ;;  %2404 = vmatpush1.bf16.msra.mxu1 %v4209_v14 }
 0x8ba   : > { %2364 = vmatprep.subr.bf16.mxu0 %v4213_v15  ;;  %2405 = vmatprep.subr.bf16.mxu1 %v4217_v18 }
 0x8bd   : > { %2365 = vmatpush1.bf16.msra.mxu0 %v4221_v20  ;;  %2406 = vmatpush1.bf16.msra.mxu1 %v4225_v23 }
 0x8be   : > { %2366 = vmatprep.subr.bf16.mxu0 %v4229_v24  ;;  %2407 = vmatprep.subr.bf16.mxu1 %v4233_v27 }
 0x8c1   : > { %2367 = vmatpush1.bf16.msra.mxu0 %v4237_v28  ;;  %2408 = vmatpush1.bf16.msra.mxu1 %v4241_v29 }
 0x8c2   : > { %2368 = vmatprep.subr.bf16.mxu0 %v4245_v30  ;;  %2409 = vmatprep.subr.bf16.mxu1 %v4249_v31 }
 0x8c5   : > { %2369 = vmatpush1.bf16.msra.mxu0 %v4253_v32  ;;  %2410 = vmatpush1.bf16.msra.mxu1 %v4257_v34 }
 0x8c6   : > { %2370 = vmatprep.subr.bf16.mxu0 %v4261_v35  ;;  %2411 = vmatprep.subr.bf16.mxu1 %v4265_v36 }
 0x8c9   : > { %2371 = vmatpush1.bf16.msra.mxu0 %v4313_v10  ;;  %2412 = vmatpush1.bf16.msra.mxu1 %v4317_v33 }
 0x8ca   : > { %2372 = vmatprep.subr.bf16.mxu0 %v4321_v42  ;;  %2413 = vmatprep.subr.bf16.mxu1 %v4325_v46 }
 0x8cd   : > { %2373 = vmatpush1.bf16.msra.mxu0 %v4329_v44  ;;  %2414 = vmatpush1.bf16.msra.mxu1 %v4333_v47 }
 0x8ce   : > { %2507 = vmatprep.subr.bf16.mxu0 %v4153_v9  ;;  %2548 = vmatprep.subr.bf16.mxu1 %v4157_v11 }
 0x983   : > { %v2264_v19 = vpop.f32.mrb[40].mxu0  ;;  %v2305_v21 = vpop.f32.mrb[40].mxu1 }
 0x984   : > { %v2312_v40 = vadd.f32 %v2264_v19, %v2225_v25  ;;  %v2266_v13 = vpop.f32.mrb[41].mxu0  ;;  %v2307_v38 = vpop.f32.mrb[41].mxu1  ;;  %v2314_v49 = vadd.f32 %v2305_v21, %v2227_v12 }
 0x985   : > { %v2313_v22 = vadd.f32 %v2266_v13, %v2226_v6  ;;  %v2268_v62 = vpop.f32.mrb[42].mxu0  ;;  %v2309_v37 = vpop.f32.mrb[42].mxu1  ;;  %v2315_v9 = vadd.f32 %v2307_v38, %v2228_v7 }
 0x986   : > { %v3189_v39 = vmul.f32 -1.442695, %v2312_v40  ;;  %v2269_v41 = vpop.f32.mrb[43].mxu0  ;;  %v2310_v45 = vpop.f32.mrb[43].mxu1 }
 0x987   : > { %v3190_v50 = vmul.f32 -1.442695, %v2313_v22  ;;  %v3191_v11 = vmul.f32 -1.442695, %v2315_v9 }
 0x988   : > { %3498 = vpow2.f32 %v3189_v39 }
 0x989   : > { %3500 = vpow2.f32 %v3190_v50 }
 0x98a   : > { %3502 = vpow2.f32 %v3191_v11 }
 0x98b   : > { %3504 = vtanh.f32 %v2314_v49 }
 0x992   : > { %v3499_v51 = vpop.eup %3498 }
 0x993   : > { %v3501_v17 = vpop.eup %3500  ;;  %v2319_v52 = vadd.f32 1.0, %v3499_v51 }
 0x994   : > { %v2325_v58 = vadd.f32 1.0, %v3501_v17  ;;  %v3503_v55 = vpop.eup %3502  ;;  %v2489_v17 = vpop.permute.xlu1 %2488 }
 0x995   : > { %3506 = vrcp.f32 %v2319_v52  ;;  %v3505_v8 = vpop.eup %3504  ;;  %v2332_v4 = vadd.f32 1.0, %v3503_v55  ;;  %vm2490_vm1 = vcmp.eq.s32.totalorder %v2489_v17, 1 }
 0x996   : > { %3508 = vrcp.f32 %v2325_v58 }
 0x997   : > { %3510 = vrcp.f32 %v2332_v4 }
 0x99f   : > { %v3507_v60 = vpop.eup %3506 }
 0x9a0   : > { %v3509_v61 = vpop.eup %3508  ;;  %v2336_v3 = vmul.f32 %v3507_v60, %v3505_v8 }
 0x9a1   : > { %v2335_v16 = vmul.f32 %v3509_v61, %v4428_v59  ;;  %v3511_v21 = vpop.eup %3510 }
 0x9a3   : > { %v2337_v25 = vadd.f32 %v2336_v3, %v2335_v16 }
 0x9a5   : > { %3512 = vtanh.f32 %v2337_v25  ;;  %v4472_v19 = vsel %vm2347_vm0, %v2337_v25, %v4428_v59  ;;  %v4535_v25 = vld [vmem:[%s3764_s10 + $0x8] ss:$16 sps:$4 sm:$0xff]  }
 0x9a6   : > { %v2476_v7 = vrot.slane %v4472_v19, 6 }
 0x9af   : > { %v3513_v40 = vpop.eup %3512 }
 0x9b0   : > { %v2339_v6 = vmul.f32 %v3513_v40, %v3511_v21  ;;  %v4543_v21 = vld [vmem:[%s3764_s10 + $0x2c] ss:$16 sps:$4 sm:$0xff]   ;;  %v4549_v40 = vld [vmem:[%s3764_s10 + $0x20] ss:$16 sps:$4 sm:$0xff]  }
 0x9b2   : > { %v2348_v13 = vsel %vm2347_vm0, %v2339_v6, 0.0  ;;  %v4475_v38 = vsel %vm2347_vm0, %v2339_v6, %v4431_v5  ;;  %v4553_v6 = vld [vmem:[%s3764_s10 + $0x28] ss:$16 sps:$4 sm:$0xff]  }
 0x9b3   : > { %3192 = vst [vmem:[%s4001_s27 + $0x10] sm:$0x3] %v2348_v13  ;;  %v2357_v22 = vpack.c.bf16 %v4475_v38, %v4475_v38  ;;  %v4557_v13 = vld [vmem:[%s3764_s10 + $0x44] ss:$16 sps:$4 sm:$0xff]  }
 0x9b5   : > { %2391 = vmatmul.mubr.bf16.vlgmr.msra.gmra.mrb[44].mxu0 %v2357_v22  ;;  %2432 = vmatmul.mubr.bf16.vlgmr.msra.gmra.mrb[44].mxu1 %v2357_v22  ;;  %v4565_v22 = vld [vmem:[%s3764_s10 + $0x40] ss:$16 sps:$4 sm:$0xff]  }
 0x9b6   : > { %2508 = vmatpush1.bf16.msra.mxu0 %v4171_v43  ;;  %2549 = vmatpush1.bf16.msra.mxu1 %v4175_v48  ;;  %v4513_v43 = vld [vmem:[%s3764_s10 + $0x4] ss:$16 sps:$4 sm:$0xff]   ;;  %v4517_v48 = vld [vmem:[%s3764_s10 + $0xc] ss:$16 sps:$4 sm:$0xff]  }
 0x9b7   : > { %2509 = vmatprep.subr.bf16.mxu0 %v4179_v63  ;;  %2550 = vmatprep.subr.bf16.mxu1 %v4183_v53 }
 0x9b8   : > { %2539 = vmatprep.mubr.bf16.mxu0 %v3650_v0  ;;  %2580 = vmatprep.mubr.bf16.mxu1 %v3650_v0 }
 0x9ba   : > { %2510 = vmatpush1.bf16.msra.mxu0 %v4189_v54  ;;  %2551 = vmatpush1.bf16.msra.mxu1 %v4193_v1 }
 0x9bb   : > { %2511 = vmatprep.subr.bf16.mxu0 %v4197_v2  ;;  %2552 = vmatprep.subr.bf16.mxu1 %v4201_v56  ;;  %v2353_v56 = vld [vmem:[#allocation2 + $0x40] sm:$0xc] }
 0x9be   : > { %2512 = vmatpush1.bf16.msra.mxu0 %v4205_v57  ;;  %2553 = vmatpush1.bf16.msra.mxu1 %v4209_v14 }
 0x9bf   : > { %2513 = vmatprep.subr.bf16.mxu0 %v4213_v15  ;;  %2554 = vmatprep.subr.bf16.mxu1 %v4217_v18 }
 0x9c2   : > { %2514 = vmatpush1.bf16.msra.mxu0 %v4221_v20  ;;  %2555 = vmatpush1.bf16.msra.mxu1 %v4225_v23  ;;  %v2354_v20 = vld [vmem:[#allocation2 + $0x48] sm:$0xc] }
 0x9c3   : > { %2515 = vmatprep.subr.bf16.mxu0 %v4229_v24  ;;  %2556 = vmatprep.subr.bf16.mxu1 %v4233_v27 }
 0x9c6   : > { %2516 = vmatpush1.bf16.msra.mxu0 %v4237_v28  ;;  %2557 = vmatpush1.bf16.msra.mxu1 %v4241_v29 }
 0x9c7   : > { %2517 = vmatprep.subr.bf16.mxu0 %v4245_v30  ;;  %2558 = vmatprep.subr.bf16.mxu1 %v4249_v31  ;;  %v2356_v31 = vld [vmem:[#allocation2 + $0x58] sm:$0xc] }
 0x9ca   : > { %2518 = vmatpush1.bf16.msra.mxu0 %v4253_v32  ;;  %2559 = vmatpush1.bf16.msra.mxu1 %v4257_v34 }
 0x9cb   : > { %2519 = vmatprep.subr.bf16.mxu0 %v4261_v35  ;;  %2560 = vmatprep.subr.bf16.mxu1 %v4265_v36  ;;  %v2355_v35 = vld [vmem:[#allocation2 + $0x50] sm:$0xc] }
 0x9ce   : > { %2520 = vmatpush1.bf16.msra.mxu0 %v4313_v10  ;;  %2561 = vmatpush1.bf16.msra.mxu1 %v4317_v33 }
 0x9cf   : > { %2521 = vmatprep.subr.bf16.mxu0 %v4321_v42  ;;  %2562 = vmatprep.subr.bf16.mxu1 %v4325_v46 }
 0x9d2   : > { %2522 = vmatpush1.bf16.msra.mxu0 %v4329_v44  ;;  %2563 = vmatpush1.bf16.msra.mxu1 %v4333_v47 }
 0x9d3   : > { %2656 = vmatprep.subr.bf16.mxu0 %v4513_v43  ;;  %2697 = vmatprep.subr.bf16.mxu1 %v4517_v48 }
 0xa88   : > { %v2392_v63 = vpop.f32.mrb[44].mxu0  ;;  %v2433_v53 = vpop.f32.mrb[44].mxu1 }
 0xa89   : > { %v2444_v54 = vrot.slane %v2392_v63, 6  ;;  %v2394_v1 = vpop.f32.mrb[45].mxu0  ;;  %v2435_v2 = vpop.f32.mrb[45].mxu1  ;;  %v2446_v34 = vrot.slane %v2433_v53, 6  ;;  %v4569_v63 = vld [vmem:[%s3764_s10 + $0x48] ss:$16 sps:$4 sm:$0xff]  }
 0xa8a   : > { %v2445_v57 = vrot.slane %v2394_v1, 6  ;;  %v2396_v14 = vpop.f32.mrb[46].mxu0  ;;  %v2437_v15 = vpop.f32.mrb[46].mxu1  ;;  %v2447_v30 = vrot.slane %v2435_v2, 6  ;;  %v4573_v53 = vld [vmem:[%s3764_s10 + $0x64] ss:$16 sps:$4 sm:$0xff]  }
 0xa8b   : > { %v2452_v18 = vadd.f32 %v2444_v54, %v2353_v56  ;;  %v2397_v23 = vpop.f32.mrb[47].mxu0  ;;  %v2438_v24 = vpop.f32.mrb[47].mxu1  ;;  %v2454_v59 = vadd.f32 %v2446_v34, %v2355_v35  ;;  %v4577_v54 = vld [vmem:[%s3764_s10 + $0x6c] ss:$16 sps:$4 sm:$0xff]   ;;  %v4581_v1 = vld [vmem:[%s3764_s10 + $0x60] ss:$16 sps:$4 sm:$0xff]  }
 0xa8c   : > { %v2453_v27 = vadd.f32 %v2445_v57, %v2354_v20  ;;  %v2455_v32 = vadd.f32 %v2447_v30, %v2356_v31  ;;  %v4585_v2 = vld [vmem:[%s3764_s10 + $0x68] ss:$16 sps:$4 sm:$0xff]   ;;  %v4589_v56 = vld [vmem:[%s3764_s10 + $0x84] ss:$16 sps:$4 sm:$0xff]   ;;  %v4593_v57 = vld [vmem:[%s3764_s10 + $0x8c] ss:$16 sps:$4 sm:$0xff]  }
 0xa8d   : > { %v3193_v28 = vmul.f32 -1.442695, %v2452_v18  ;;  %v4597_v14 = vld [vmem:[%s3764_s10 + $0x80] ss:$16 sps:$4 sm:$0xff]   ;;  %v4601_v15 = vld [vmem:[%s3764_s10 + $0x88] ss:$16 sps:$4 sm:$0xff]  }
 0xa8e   : > { %v3194_v29 = vmul.f32 -1.442695, %v2453_v27  ;;  %v3195_v36 = vmul.f32 -1.442695, %v2455_v32  ;;  %v4605_v18 = vld [vmem:[%s3764_s10 + $0xa4] ss:$16 sps:$4 sm:$0xff]  }
 0xa8f   : > { %3514 = vpow2.f32 %v3193_v28  ;;  %v4609_v20 = vld [vmem:[%s3764_s10 + $0xac] ss:$16 sps:$4 sm:$0xff]   ;;  %v4613_v23 = vld [vmem:[%s3764_s10 + $0xa0] ss:$16 sps:$4 sm:$0xff]   ;;  %v4617_v24 = vld [vmem:[%s3764_s10 + $0xa8] ss:$16 sps:$4 sm:$0xff]  }
 0xa90   : > { %3516 = vpow2.f32 %v3194_v29  ;;  %v4621_v27 = vld [vmem:[%s3764_s10 + $0xc4] ss:$16 sps:$4 sm:$0xff]   ;;  %v4625_v28 = vld [vmem:[%s3764_s10 + $0xcc] ss:$16 sps:$4 sm:$0xff]  }
 0xa91   : > { %3518 = vpow2.f32 %v3195_v36 }
 0xa92   : > { %3520 = vtanh.f32 %v2454_v59  ;;  %v2503_v59 = vld [vmem:[#allocation2 + $0x48] sm:$0x30] }
 0xa99   : > { %v3515_v5 = vpop.eup %3514 }
 0xa9a   : > { %v3517_v62 = vpop.eup %3516  ;;  %v2459_v37 = vadd.f32 1.0, %v3515_v5 }
 0xa9b   : > { %v2465_v39 = vadd.f32 1.0, %v3517_v62  ;;  %v3519_v41 = vpop.eup %3518 }
 0xa9c   : > { %3522 = vrcp.f32 %v2459_v37  ;;  %v3521_v45 = vpop.eup %3520  ;;  %v2472_v11 = vadd.f32 1.0, %v3519_v41  ;;  %v2504_v41 = vld [vmem:[#allocation2 + $0x50] sm:$0x30] }
 0xa9d   : > { %3524 = vrcp.f32 %v2465_v39 }
 0xa9e   : > { %3526 = vrcp.f32 %v2472_v11 }
 0xaa6   : > { %v3523_v50 = vpop.eup %3522 }
 0xaa7   : > { %v3525_v9 = vpop.eup %3524  ;;  %v2479_v12 = vmul.f32 %v3523_v50, %v3521_v45 }
 0xaa8   : > { %v2478_v49 = vmul.f32 %v3525_v9, %v2476_v7  ;;  %v3527_v55 = vpop.eup %3526 }
 0xaaa   : > { %v2480_v51 = vadd.f32 %v2479_v12, %v2478_v49 }
 0xaac   : > { %3528 = vtanh.f32 %v2480_v51  ;;  %v2499_v52 = vrot.slane %v2480_v51, 2 }
 0xaae   : > { %v4522_v58 = vsel %vm2490_vm1, %v2499_v52, %v4472_v19  ;;  %v4539_v19 = vld [vmem:[%s3764_s10 + $0x24] ss:$16 sps:$4 sm:$0xff]  }
 0xaaf   : > { %v2625_v52 = vrot.slane %v4522_v58, 4 }
 0xab6   : > { %v3529_v8 = vpop.eup %3528 }
 0xab7   : > { %v2482_v60 = vmul.f32 %v3529_v8, %v3527_v55 }
 0xab9   : > { %v2492_v61 = vrot.slane %v2482_v60, 2 }
 0xabb   : > { %v2494_v3 = vsel %vm2490_vm1, %v2492_v61, 0.0  ;;  %v4525_v4 = vsel %vm2490_vm1, %v2492_v61, %v4475_v38  ;;  %v4561_v38 = vld [vmem:[%s3764_s10 + $0x4c] ss:$16 sps:$4 sm:$0xff]  }
 0xabc   : > { %3196 = vst [vmem:[%s4001_s27 + $0x12] sm:$0x3] %v2494_v3  ;;  %v2506_v16 = vpack.c.bf16 %v4525_v4, %v4525_v4 }
 0xabe   : > { %2540 = vmatmul.mubr.bf16.vlgmr.msra.gmra.mrb[48].mxu0 %v2506_v16  ;;  %2581 = vmatmul.mubr.bf16.vlgmr.msra.gmra.mrb[48].mxu1 %v2506_v16  ;;  %v2638_v16 = vpop.permute.xlu0 %2637 }
 0xabf   : > { %2657 = vmatpush1.bf16.msra.mxu0 %v4531_v26  ;;  %2698 = vmatpush1.bf16.msra.mxu1 %v4535_v25  ;;  %vm2639_vm2 = vcmp.eq.s32.totalorder %v2638_v16, 1 }
 0xac0   : > { %2658 = vmatprep.subr.bf16.mxu0 %v4539_v19  ;;  %2699 = vmatprep.subr.bf16.mxu1 %v4543_v21 }
 0xac1   : > { %2688 = vmatprep.mubr.bf16.mxu0 %v3650_v0  ;;  %2729 = vmatprep.mubr.bf16.mxu1 %v3650_v0 }
 0xac3   : > { %2659 = vmatpush1.bf16.msra.mxu0 %v4549_v40  ;;  %2700 = vmatpush1.bf16.msra.mxu1 %v4553_v6 }
 0xac4   : > { %2660 = vmatprep.subr.bf16.mxu0 %v4557_v13  ;;  %2701 = vmatprep.subr.bf16.mxu1 %v4561_v38 }
 0xac7   : > { %2661 = vmatpush1.bf16.msra.mxu0 %v4565_v22  ;;  %2702 = vmatpush1.bf16.msra.mxu1 %v4569_v63 }
 0xac8   : > { %2662 = vmatprep.subr.bf16.mxu0 %v4573_v53  ;;  %2703 = vmatprep.subr.bf16.mxu1 %v4577_v54 }
 0xacb   : > { %2663 = vmatpush1.bf16.msra.mxu0 %v4581_v1  ;;  %2704 = vmatpush1.bf16.msra.mxu1 %v4585_v2 }
 0xacc   : > { %2664 = vmatprep.subr.bf16.mxu0 %v4589_v56  ;;  %2705 = vmatprep.subr.bf16.mxu1 %v4593_v57 }
 0xacf   : > { %2665 = vmatpush1.bf16.msra.mxu0 %v4597_v14  ;;  %2706 = vmatpush1.bf16.msra.mxu1 %v4601_v15 }
 0xad0   : > { %2666 = vmatprep.subr.bf16.mxu0 %v4605_v18  ;;  %2707 = vmatprep.subr.bf16.mxu1 %v4609_v20 }
 0xad3   : > { %2667 = vmatpush1.bf16.msra.mxu0 %v4613_v23  ;;  %2708 = vmatpush1.bf16.msra.mxu1 %v4617_v24 }
 0xad4   : > { %2668 = vmatprep.subr.bf16.mxu0 %v4621_v27  ;;  %2709 = vmatprep.subr.bf16.mxu1 %v4625_v28 }
 0xad7   : > { %2669 = vmatpush1.bf16.msra.mxu0 %v4313_v10  ;;  %2710 = vmatpush1.bf16.msra.mxu1 %v4317_v33  ;;  %v2502_v10 = vld [vmem:[#allocation2 + $0x40] sm:$0x30] }
 0xad8   : > { %2670 = vmatprep.subr.bf16.mxu0 %v4321_v42  ;;  %2711 = vmatprep.subr.bf16.mxu1 %v4325_v46 }
 0xadb   : > { %2671 = vmatpush1.bf16.msra.mxu0 %v4329_v44  ;;  %2712 = vmatpush1.bf16.msra.mxu1 %v4333_v47 }
 0xadc   : > { %2805 = vmatprep.subr.bf16.mxu0 %v4513_v43  ;;  %2846 = vmatprep.subr.bf16.mxu1 %v4517_v48  ;;  %v2505_v43 = vld [vmem:[#allocation2 + $0x58] sm:$0x30] }
 0xb91   : > { %v2541_v29 = vpop.f32.mrb[48].mxu0  ;;  %v2582_v30 = vpop.f32.mrb[48].mxu1 }
 0xb92   : > { %v2593_v31 = vrot.slane %v2541_v29, 4  ;;  %v2543_v32 = vpop.f32.mrb[49].mxu0  ;;  %v2584_v34 = vpop.f32.mrb[49].mxu1  ;;  %v2595_v39 = vrot.slane %v2582_v30, 4 }
 0xb93   : > { %v2594_v35 = vrot.slane %v2543_v32, 4  ;;  %v2545_v33 = vpop.f32.mrb[50].mxu0  ;;  %v2586_v36 = vpop.f32.mrb[50].mxu1  ;;  %v2596_v37 = vrot.slane %v2584_v34, 4 }
 0xb94   : > { %v2601_v42 = vadd.f32 %v2593_v31, %v2502_v10  ;;  %v2546_v46 = vpop.f32.mrb[51].mxu0  ;;  %v2587_v5 = vpop.f32.mrb[51].mxu1  ;;  %v2603_v50 = vadd.f32 %v2595_v39, %v2504_v41 }
 0xb95   : > { %v2602_v44 = vadd.f32 %v2594_v35, %v2503_v59  ;;  %v2604_v48 = vadd.f32 %v2596_v37, %v2505_v43 }
 0xb96   : > { %v3197_v62 = vmul.f32 -1.442695, %v2601_v42 }
 0xb97   : > { %v3198_v47 = vmul.f32 -1.442695, %v2602_v44  ;;  %v3199_v45 = vmul.f32 -1.442695, %v2604_v48 }
 0xb98   : > { %3530 = vpow2.f32 %v3197_v62 }
 0xb99   : > { %3532 = vpow2.f32 %v3198_v47 }
 0xb9a   : > { %3534 = vpow2.f32 %v3199_v45 }
 0xb9b   : > { %3536 = vtanh.f32 %v2603_v50 }
 0xba2   : > { %v3531_v7 = vpop.eup %3530 }
 0xba3   : > { %v3533_v9 = vpop.eup %3532  ;;  %v2608_v12 = vadd.f32 1.0, %v3531_v7  ;;  %v2787_v7 = vpop.permute.xlu1 %2786 }
 0xba4   : > { %v2614_v11 = vadd.f32 1.0, %v3533_v9  ;;  %v3535_v49 = vpop.eup %3534  ;;  %vm2788_vm3 = vcmp.eq.s32.totalorder %v2787_v7, 1 }
 0xba5   : > { %3538 = vrcp.f32 %v2608_v12  ;;  %v3537_v51 = vpop.eup %3536  ;;  %v2621_v60 = vadd.f32 1.0, %v3535_v49 }
 0xba6   : > { %3540 = vrcp.f32 %v2614_v11 }
 0xba7   : > { %3542 = vrcp.f32 %v2621_v60 }
 0xbaf   : > { %v3539_v17 = vpop.eup %3538 }
 0xbb0   : > { %v3541_v55 = vpop.eup %3540  ;;  %v2628_v8 = vmul.f32 %v3539_v17, %v3537_v51 }
 0xbb1   : > { %v2627_v61 = vmul.f32 %v3541_v55, %v2625_v52  ;;  %v3543_v31 = vpop.eup %3542 }
 0xbb3   : > { %v2629_v3 = vadd.f32 %v2628_v8, %v2627_v61  ;;  %v2800_v61 = vld [vmem:[#allocation2 + $0x60] sm:$0x3] }
 0xbb5   : > { %3544 = vtanh.f32 %v2629_v3  ;;  %v2648_v29 = vrot.slane %v2629_v3, 4 }
 0xbb7   : > { %v4638_v30 = vsel %vm2639_vm2, %v2648_v29, %v4522_v58  ;;  %v3637_v58 = vld [vmem:[%s3764_s10 + $0xc8] ss:$16 sps:$4 sm:$0xff]  }
 0xbb8   : > { %v2774_v48 = vrot.slane %v4638_v30, 2 }
 0xbbf   : > { %v3545_v32 = vpop.eup %3544 }
 0xbc0   : > { %v2631_v34 = vmul.f32 %v3545_v32, %v3543_v31  ;;  %v2801_v31 = vld [vmem:[#allocation2 + $0x68] sm:$0x3] }
 0xbc2   : > { %v2641_v10 = vrot.slane %v2631_v34, 4 }
 0xbc4   : > { %v2643_v35 = vsel %vm2639_vm2, %v2641_v10, 0.0  ;;  %v4641_v33 = vsel %vm2639_vm2, %v2641_v10, %v4525_v4  ;;  %v3638_v4 = vld [vmem:[%s3764_s10 + $0xe4] ss:$16 sps:$4 sm:$0xff]  }
 0xbc5   : > { %3200 = vst [vmem:[%s4001_s27 + $0x14] sm:$0x3] %v2643_v35  ;;  %v2655_v36 = vpack.c.bf16 %v4641_v33, %v4641_v33 }
 0xbc7   : > { %2689 = vmatmul.mubr.bf16.vlgmr.msra.gmra.mrb[52].mxu0 %v2655_v36  ;;  %2730 = vmatmul.mubr.bf16.vlgmr.msra.gmra.mrb[52].mxu1 %v2655_v36 }
 0xbc8   : > { %2806 = vmatpush1.bf16.msra.mxu0 %v4531_v26  ;;  %2847 = vmatpush1.bf16.msra.mxu1 %v4535_v25  ;;  %v3639_v26 = vld [vmem:[%s3764_s10 + $0xec] ss:$16 sps:$4 sm:$0xff]   ;;  %v3640_v25 = vld [vmem:[%s3764_s10 + $0xe0] ss:$16 sps:$4 sm:$0xff]  }
 0xbc9   : > { %2807 = vmatprep.subr.bf16.mxu0 %v4539_v19  ;;  %2848 = vmatprep.subr.bf16.mxu1 %v4543_v21  ;;  %v3641_v19 = vld [vmem:[%s3764_s10 + $0xe8] ss:$16 sps:$4 sm:$0xff]  }
 0xbca   : > { %2837 = vmatprep.mubr.bf16.mxu0 %v3650_v0  ;;  %2878 = vmatprep.mubr.bf16.mxu1 %v3650_v0  ;;  %v3636_v0 = vld [vmem:[%s3764_s10 + $0xc0] ss:$16 sps:$4 sm:$0xff]  }
 0xbcc   : > { %2808 = vmatpush1.bf16.msra.mxu0 %v4549_v40  ;;  %2849 = vmatpush1.bf16.msra.mxu1 %v4553_v6 }
 0xbcd   : > { %2809 = vmatprep.subr.bf16.mxu0 %v4557_v13  ;;  %2850 = vmatprep.subr.bf16.mxu1 %v4561_v38 }
 0xbd0   : > { %2810 = vmatpush1.bf16.msra.mxu0 %v4565_v22  ;;  %2851 = vmatpush1.bf16.msra.mxu1 %v4569_v63  ;;  %v2651_v22 = vld [vmem:[#allocation2 + $0x40] sm:$0xc0] }
 0xbd1   : > { %2811 = vmatprep.subr.bf16.mxu0 %v4573_v53  ;;  %2852 = vmatprep.subr.bf16.mxu1 %v4577_v54 }
 0xbd4   : > { %2812 = vmatpush1.bf16.msra.mxu0 %v4581_v1  ;;  %2853 = vmatpush1.bf16.msra.mxu1 %v4585_v2  ;;  %v2652_v2 = vld [vmem:[#allocation2 + $0x48] sm:$0xc0] }
 0xbd5   : > { %2813 = vmatprep.subr.bf16.mxu0 %v4589_v56  ;;  %2854 = vmatprep.subr.bf16.mxu1 %v4593_v57 }
 0xbd8   : > { %2814 = vmatpush1.bf16.msra.mxu0 %v4597_v14  ;;  %2855 = vmatpush1.bf16.msra.mxu1 %v4601_v15 }
 0xbd9   : > { %2815 = vmatprep.subr.bf16.mxu0 %v4605_v18  ;;  %2856 = vmatprep.subr.bf16.mxu1 %v4609_v20 }
 0xbdc   : > { %2816 = vmatpush1.bf16.msra.mxu0 %v4613_v23  ;;  %2857 = vmatpush1.bf16.msra.mxu1 %v4617_v24  ;;  %v2654_v23 = vld [vmem:[#allocation2 + $0x58] sm:$0xc0] }
 0xbdd   : > { %2817 = vmatprep.subr.bf16.mxu0 %v4621_v27  ;;  %2858 = vmatprep.subr.bf16.mxu1 %v4625_v28  ;;  %v2653_v28 = vld [vmem:[#allocation2 + $0x50] sm:$0xc0] }
 0xbe0   : > { %2818 = vmatpush1.bf16.msra.mxu0 %v3636_v0  ;;  %2859 = vmatpush1.bf16.msra.mxu1 %v3637_v58 }
 0xbe1   : > { %2819 = vmatprep.subr.bf16.mxu0 %v3638_v4  ;;  %2860 = vmatprep.subr.bf16.mxu1 %v3639_v26 }
 0xbe4   : > { %2820 = vmatpush1.bf16.msra.mxu0 %v3640_v25  ;;  %2861 = vmatpush1.bf16.msra.mxu1 %v3641_v19  ;;  %v2802_v25 = vld [vmem:[#allocation2 + $0x70] sm:$0x3] }
 0xc9a   : > { %v2690_v21 = vpop.f32.mrb[52].mxu0  ;;  %v2731_v40 = vpop.f32.mrb[52].mxu1 }
 0xc9b   : > { %v2742_v6 = vrot.slane %v2690_v21, 2  ;;  %v2692_v13 = vpop.f32.mrb[53].mxu0  ;;  %v2733_v38 = vpop.f32.mrb[53].mxu1  ;;  %v2744_v27 = vrot.slane %v2731_v40, 2 }
 0xc9c   : > { %v2743_v63 = vrot.slane %v2692_v13, 2  ;;  %v2694_v53 = vpop.f32.mrb[54].mxu0  ;;  %v2735_v54 = vpop.f32.mrb[54].mxu1  ;;  %v2745_v20 = vrot.slane %v2733_v38, 2 }
 0xc9d   : > { %v2750_v1 = vadd.f32 %v2742_v6, %v2651_v22  ;;  %v2695_v56 = vpop.f32.mrb[55].mxu0  ;;  %v2736_v57 = vpop.f32.mrb[55].mxu1  ;;  %v2752_v59 = vadd.f32 %v2744_v27, %v2653_v28 }
 0xc9e   : > { %v2751_v14 = vadd.f32 %v2743_v63, %v2652_v2  ;;  %v2753_v24 = vadd.f32 %v2745_v20, %v2654_v23 }
 0xc9f   : > { %v3201_v15 = vmul.f32 -1.442695, %v2750_v1 }
 0xca0   : > { %v3202_v18 = vmul.f32 -1.442695, %v2751_v14  ;;  %v3203_v42 = vmul.f32 -1.442695, %v2753_v24 }
 0xca1   : > { %3546 = vpow2.f32 %v3201_v15  ;;  %v2921_v15 = vpop.permute.xlu0 %2920 }
 0xca2   : > { %3548 = vpow2.f32 %v3202_v18  ;;  %vm2922_vm4 = vcmp.eq.s32.totalorder %v2921_v15, 1 }
 0xca3   : > { %3550 = vpow2.f32 %v3203_v42 }
 0xca4   : > { %3552 = vtanh.f32 %v2752_v59 }
 0xcab   : > { %v3547_v46 = vpop.eup %3546 }
 0xcac   : > { %v3549_v5 = vpop.eup %3548  ;;  %v2757_v44 = vadd.f32 1.0, %v3547_v46 }
 0xcad   : > { %v2763_v62 = vadd.f32 1.0, %v3549_v5  ;;  %v3551_v47 = vpop.eup %3550 }
 0xcae   : > { %3554 = vrcp.f32 %v2757_v44  ;;  %v3553_v37 = vpop.eup %3552  ;;  %v2770_v45 = vadd.f32 1.0, %v3551_v47 }
 0xcaf   : > { %3556 = vrcp.f32 %v2763_v62 }
 0xcb0   : > { %3558 = vrcp.f32 %v2770_v45 }
 0xcb8   : > { %v3555_v43 = vpop.eup %3554 }
 0xcb9   : > { %v3557_v39 = vpop.eup %3556  ;;  %v2777_v41 = vmul.f32 %v3555_v43, %v3553_v37 }
 0xcba   : > { %v2776_v50 = vmul.f32 %v3557_v39, %v2774_v48  ;;  %v3559_v49 = vpop.eup %3558 }
 0xcbc   : > { %v2778_v9 = vadd.f32 %v2777_v41, %v2776_v50 }
 0xcbe   : > { %3560 = vtanh.f32 %v2778_v9  ;;  %v2797_v12 = vrot.slane %v2778_v9, 6 }
 0xcc0   : > { %v2799_v11 = vsel %vm2788_vm3, %v2797_v12, %v4638_v30 }
 0xcc8   : > { %v3561_v51 = vpop.eup %3560 }
 0xcc9   : > { %v2780_v17 = vmul.f32 %v3561_v51, %v3559_v49 }
 0xccb   : > { %v2790_v52 = vrot.slane %v2780_v17, 6 }
 0xccd   : > { %v2792_v55 = vsel %vm2788_vm3, %v2790_v52, 0.0  ;;  %v2795_v8 = vsel %vm2788_vm3, %v2790_v52, %v4641_v33  ;;  %v2803_v33 = vld [vmem:[#allocation2 + $0x78] sm:$0x3] }
 0xcce   : > { %3204 = vst [vmem:[%s4001_s27 + $0x16] sm:$0x3] %v2792_v55  ;;  %v2804_v60 = vpack.c.bf16 %v2795_v8, %v2795_v8 }
 0xcd0   : > { %2838 = vmatmul.mubr.bf16.vlgmr.msra.gmra.mrb[56].mxu0 %v2804_v60  ;;  %2879 = vmatmul.mubr.bf16.vlgmr.msra.gmra.mrb[56].mxu1 %v2804_v60 }
 0xda3   : > { %v2839_v3 = vpop.f32.mrb[56].mxu0  ;;  %v2880_v16 = vpop.f32.mrb[56].mxu1 }
 0xda4   : > { %v2887_v29 = vadd.f32 %v2839_v3, %v2800_v61  ;;  %v2841_v32 = vpop.f32.mrb[57].mxu0  ;;  %v2882_v34 = vpop.f32.mrb[57].mxu1  ;;  %v2889_v21 = vadd.f32 %v2880_v16, %v2802_v25 }
 0xda5   : > { %v2888_v10 = vadd.f32 %v2841_v32, %v2801_v31  ;;  %v2843_v30 = vpop.f32.mrb[58].mxu0  ;;  %v2884_v35 = vpop.f32.mrb[58].mxu1  ;;  %v2890_v26 = vadd.f32 %v2882_v34, %v2803_v33 }
 0xda6   : > { %v3205_v36 = vmul.f32 -1.442695, %v2887_v29  ;;  %v2844_v0 = vpop.f32.mrb[59].mxu0  ;;  %v2885_v58 = vpop.f32.mrb[59].mxu1 }
 0xda7   : > { %v3206_v4 = vmul.f32 -1.442695, %v2888_v10  ;;  %v3207_v19 = vmul.f32 -1.442695, %v2890_v26 }
 0xda8   : > { %3562 = vpow2.f32 %v3205_v36 }
 0xda9   : > { %3564 = vpow2.f32 %v3206_v4 }
 0xdaa   : > { %3566 = vpow2.f32 %v3207_v19 }
 0xdab   : > { %3568 = vtanh.f32 %v2889_v21 }
 0xdb2   : > { %v3563_v40 = vpop.eup %3562 }
 0xdb3   : > { %v3565_v6 = vpop.eup %3564  ;;  %v2894_v13 = vadd.f32 1.0, %v3563_v40 }
 0xdb4   : > { %v2900_v38 = vadd.f32 1.0, %v3565_v6  ;;  %v3567_v22 = vpop.eup %3566 }
 0xdb5   : > { %3570 = vrcp.f32 %v2894_v13  ;;  %v3569_v63 = vpop.eup %3568  ;;  %v2907_v2 = vadd.f32 1.0, %v3567_v22 }
 0xdb6   : > { %3572 = vrcp.f32 %v2900_v38 }
 0xdb7   : > { %3574 = vrcp.f32 %v2907_v2 }
 0xdbf   : > { %v3571_v53 = vpop.eup %3570 }
 0xdc0   : > { %v3573_v54 = vpop.eup %3572  ;;  %v2911_v1 = vmul.f32 %v3571_v53, %v3569_v63 }
 0xdc1   : > { %v2910_v56 = vmul.f32 %v3573_v54, %v2799_v11  ;;  %v3575_v14 = vpop.eup %3574 }
 0xdc3   : > { %v2912_v57 = vadd.f32 %v2911_v1, %v2910_v56 }
 0xdc5   : > { %3576 = vtanh.f32 %v2912_v57 }
 0xdcf   : > { %v3577_v18 = vpop.eup %3576 }
 0xdd0   : > { %v2914_v20 = vmul.f32 %v3577_v18, %v3575_v14 }
 0xdd2   : > { %v2923_v23 = vsel %vm2922_vm4, %v2914_v20, 0.0 }
 0xdd3   : > { %3208 = vst [vmem:[%s4001_s27 + $0x18] sm:$0x3] %v2923_v23 }
 0xdd4 PF: > { %s16_s21 = sadd.s32 1, %s3648_s21  }
 0xdd5   : > { %p13_p4 = scmp.ge.s32.totalorder %s16_s21, 4  }
 0xdd7   :  { %15 = sbr.rel (!%p13_p4) target bundleno = 1 (0x1), region = 101 }

// kernel: a_call__.2
= control target key start
LH: loop header
LB: loop body
LE: loop exit
PB: predicated region body
PF: predicated region fallthrough
CT: control target
= control target key end

     0   :  { %s4100_s21 = smov 0   ;;  %s5122_s0 = inlined_call_operand.vmem [shape: f32[2,26,384], index: 0, kind: input, shape index: {}]   ;;  %s5123_s1 = inlined_call_operand.vmem [shape: s32[2,2,1], index: 1, kind: input, shape index: {}]   ;;  %s5124_s2 = inlined_call_operand.vmem [shape: s32[2,2,1], index: 2, kind: input, shape index: {}]   ;;  %s5125_s3 = inlined_call_operand.vmem [shape: bf16[2,384,512], index: 3, kind: input, shape index: {}]   ;;  %s5126_s4 = inlined_call_operand.vmem [shape: bf16[2,128,512], index: 4, kind: input, shape index: {}]   ;;  %s5127_s5 = inlined_call_operand.vmem [shape: f32[2,1,512], index: 5, kind: input, shape index: {}]   ;;  %s5128_s6 = inlined_call_operand.vmem [shape: f32[2,13,2,128], index: 6, kind: output, shape index: {}]  }
   0x1 LB: > { %s3345_s22 = sadd.s32 4294967295, %s4062_s21   ;;  %p3349_p0 = scmp.ge.s32.totalorder %s4062_s21, 1  ;;  %s4062_s21 = sphi %s4100_s21, %s16_s21  }
   0x2   : > { %p259_p1 = scmp.lt.s32.totalorder %s4062_s21, 3 }
   0x4   : > { %p260_p2 = pnand %p3349_p0, %p259_p1 }
   0x5   : > { %p311_p3 = scmp.lt.s32.totalorder (!%p260_p2), %s3345_s22, 1  ;;  %v4064_v0 = vmov (!%p260_p2), 0  }
   0x6   : > { %263 = sbr.rel (%p260_p2) target bundleno = 3573 (0xdf5), region = 44  ;;  %3590 = vset.pattern.permute.xlu0 (!%p260_p2), %v4064_v0  ;;  %3591 = vset.pattern.permute.xlu1 (!%p260_p2), %v4064_v0 }
   0xd   : > { %s5130_s22 = smov (!%p311_p3, %s3345_s22), 1 }
   0xe   : > { %s3579_s23 = smul.u32 768, %s5130_s22  ;;  %s3545_s24 = sshll.u32 %s5130_s22, 8 }
   0xf   : > { %s4117_s27 = scalar_lea.vmem %s5126_s4, %s3545_s24  ;;  %s3578_s7 = smul.u32 96, %s5130_s22 }
  0x10   : > { %s4122_s30 = scalar_lea.vmem %s5125_s3, %s3579_s23  ;;  %s3351_s11 = sshll.u32 %s5130_s22, 1 }
  0x11   : > { %v3592_v1 = vld [vmem:[%s4122_s30 + $0x4] ss:$16 sps:$4 sm:$0xff]   ;;  %v3594_v2 = vld [vmem:[%s4122_s30 + $0xc] ss:$16 sps:$4 sm:$0xff]   ;;  %v3596_v3 = vld [vmem:[%s4122_s30] ss:$16 sps:$4 sm:$0xff]   ;;  %s4172_s10 = scalar_lea.vmem %s5122_s0, %s3578_s7  ;;  %s319_s14 = scalar_lea.vmem %s5123_s1, %s3351_s11 }
  0x12   : > { %960 = vmatprep.subr.bf16.mxu0 %v3592_v1  ;;  %v3597_v4 = vld [vmem:[%s4122_s30 + $0x8] ss:$16 sps:$4 sm:$0xff]   ;;  %1066 = vmatprep.subr.bf16.mxu1 %v3594_v2  ;;  %v3598_v5 = vld [vmem:[%s4122_s30 + $0x24] ss:$16 sps:$4 sm:$0xff]   ;;  %v3600_v6 = vld [vmem:[%s4122_s30 + $0x2c] ss:$16 sps:$4 sm:$0xff]   ;;  %s323_s17 = scalar_lea.vmem %s5124_s2, %s3351_s11 }
  0x13   : > { %961 = vmatpush1.bf16.msra.mxu0 %v3596_v3  ;;  %1067 = vmatpush1.bf16.msra.mxu1 %v3597_v4  ;;  %v3602_v7 = vld [vmem:[%s4122_s30 + $0x20] ss:$16 sps:$4 sm:$0xff]   ;;  %v3603_v8 = vld [vmem:[%s4122_s30 + $0x28] ss:$16 sps:$4 sm:$0xff]   ;;  %v3604_v9 = vld [vmem:[%s4122_s30 + $0x44] ss:$16 sps:$4 sm:$0xff]  }
  0x14   : > { %962 = vmatprep.subr.bf16.mxu0 %v3598_v5  ;;  %1068 = vmatprep.subr.bf16.mxu1 %v3600_v6  ;;  %v3606_v10 = vld [vmem:[%s4122_s30 + $0x4c] ss:$16 sps:$4 sm:$0xff]   ;;  %v3608_v11 = vld [vmem:[%s4122_s30 + $0x40] ss:$16 sps:$4 sm:$0xff]   ;;  %v3609_v12 = vld [vmem:[%s4122_s30 + $0x48] ss:$16 sps:$4 sm:$0xff]  }
  0x15   : > { %v3610_v13 = vld [vmem:[%s4122_s30 + $0x64] ss:$16 sps:$4 sm:$0xff]   ;;  %v3612_v14 = vld [vmem:[%s4122_s30 + $0x6c] ss:$16 sps:$4 sm:$0xff]   ;;  %v3614_v15 = vld [vmem:[%s4122_s30 + $0x60] ss:$16 sps:$4 sm:$0xff]  }
  0x16   : > { %v3615_v16 = vld [vmem:[%s4122_s30 + $0x68] ss:$16 sps:$4 sm:$0xff]   ;;  %v3616_v17 = vld [vmem:[%s4122_s30 + $0x84] ss:$16 sps:$4 sm:$0xff]   ;;  %v3618_v18 = vld [vmem:[%s4122_s30 + $0x8c] ss:$16 sps:$4 sm:$0xff]  }
  0x17   : > { %963 = vmatpush1.bf16.msra.mxu0 %v3602_v7  ;;  %1069 = vmatpush1.bf16.msra.mxu1 %v3603_v8  ;;  %v3620_v19 = vld [vmem:[%s4122_s30 + $0x80] ss:$16 sps:$4 sm:$0xff]   ;;  %v3621_v20 = vld [vmem:[%s4122_s30 + $0x88] ss:$16 sps:$4 sm:$0xff]   ;;  %v3622_v21 = vld [vmem:[%s4122_s30 + $0xa4] ss:$16 sps:$4 sm:$0xff]  }
  0x18   : > { %964 = vmatprep.subr.bf16.mxu0 %v3604_v9  ;;  %1070 = vmatprep.subr.bf16.mxu1 %v3606_v10  ;;  %v3624_v22 = vld [vmem:[%s4122_s30 + $0xac] ss:$16 sps:$4 sm:$0xff]   ;;  %v3626_v23 = vld [vmem:[%s4122_s30 + $0xa0] ss:$16 sps:$4 sm:$0xff]   ;;  %v3627_v24 = vld [vmem:[%s4122_s30 + $0xa8] ss:$16 sps:$4 sm:$0xff]  }
  0x19   : > { %v3628_v25 = vld [vmem:[%s4122_s30 + $0xc4] ss:$16 sps:$4 sm:$0xff]   ;;  %v3630_v26 = vld [vmem:[%s4122_s30 + $0xcc] ss:$16 sps:$4 sm:$0xff]   ;;  %v3632_v27 = vld [vmem:[%s4122_s30 + $0xc0] ss:$16 sps:$4 sm:$0xff]  }
  0x1a   : > { %v3633_v28 = vld [vmem:[%s4122_s30 + $0xc8] ss:$16 sps:$4 sm:$0xff]   ;;  %v3634_v29 = vld [vmem:[%s4122_s30 + $0xe4] ss:$16 sps:$4 sm:$0xff]   ;;  %v3636_v30 = vld [vmem:[%s4122_s30 + $0xec] ss:$16 sps:$4 sm:$0xff]  }
  0x1b   : > { %965 = vmatpush1.bf16.msra.mxu0 %v3608_v11  ;;  %1071 = vmatpush1.bf16.msra.mxu1 %v3609_v12  ;;  %v3638_v31 = vld [vmem:[%s4122_s30 + $0xe0] ss:$16 sps:$4 sm:$0xff]   ;;  %v3639_v32 = vld [vmem:[%s4122_s30 + $0xe8] ss:$16 sps:$4 sm:$0xff]   ;;  %v3640_v33 = vld [vmem:[%s4122_s30 + $0x104] ss:$16 sps:$4 sm:$0xff]  }
  0x1c   : > { %966 = vmatprep.subr.bf16.mxu0 %v3610_v13  ;;  %1072 = vmatprep.subr.bf16.mxu1 %v3612_v14  ;;  %v3642_v34 = vld [vmem:[%s4122_s30 + $0x10c] ss:$16 sps:$4 sm:$0xff]   ;;  %v3644_v35 = vld [vmem:[%s4122_s30 + $0x100] ss:$16 sps:$4 sm:$0xff]   ;;  %v3645_v36 = vld [vmem:[%s4122_s30 + $0x108] ss:$16 sps:$4 sm:$0xff]  }
  0x1d   : > { %v3646_v37 = vld [vmem:[%s4122_s30 + $0x124] ss:$16 sps:$4 sm:$0xff]   ;;  %v3648_v38 = vld [vmem:[%s4122_s30 + $0x12c] ss:$16 sps:$4 sm:$0xff]   ;;  %v3650_v39 = vld [vmem:[%s4122_s30 + $0x120] ss:$16 sps:$4 sm:$0xff]  }
  0x1e   : > { %v3651_v40 = vld [vmem:[%s4122_s30 + $0x128] ss:$16 sps:$4 sm:$0xff]   ;;  %v3652_v41 = vld [vmem:[%s4122_s30 + $0x144] ss:$16 sps:$4 sm:$0xff]   ;;  %v3654_v42 = vld [vmem:[%s4122_s30 + $0x14c] ss:$16 sps:$4 sm:$0xff]  }
  0x1f   : > { %967 = vmatpush1.bf16.msra.mxu0 %v3614_v15  ;;  %1073 = vmatpush1.bf16.msra.mxu1 %v3615_v16  ;;  %v3656_v43 = vld [vmem:[%s4122_s30 + $0x140] ss:$16 sps:$4 sm:$0xff]   ;;  %v3657_v44 = vld [vmem:[%s4122_s30 + $0x148] ss:$16 sps:$4 sm:$0xff]   ;;  %v3658_v45 = vld [vmem:[%s4122_s30 + $0x164] ss:$16 sps:$4 sm:$0xff]  }
  0x20   : > { %968 = vmatprep.subr.bf16.mxu0 %v3616_v17  ;;  %1074 = vmatprep.subr.bf16.mxu1 %v3618_v18  ;;  %v3660_v46 = vld [vmem:[%s4122_s30 + $0x16c] ss:$16 sps:$4 sm:$0xff]   ;;  %v348_v48 = vld [vmem:[%s4172_s10 + $0x20] sm:$0xff]  ;;  %v3663_v50 = vld [vmem:[%s4122_s30 + $0x168] ss:$16 sps:$4 sm:$0xff]   ;;  %s3356_s18 = sshll.u32 %s5130_s22, 2 }
  0x21   : > { %v345_v47 = vld [vmem:[%s4172_s10 + $0x8] sm:$0xff]  ;;  %v3662_v49 = vld [vmem:[%s4122_s30 + $0x160] ss:$16 sps:$4 sm:$0xff]   ;;  %v3664_v52 = vld [vmem:[%s4122_s30 + $0x184] ss:$16 sps:$4 sm:$0xff]   ;;  %s337_s23 = scalar_lea.vmem %s5127_s5, %s3356_s18  ;;  %s3580_s24 = smul.u32 26, %s5130_s22 }
  0x22   : > { %v357_v51 = vpack.c.bf16 %v348_v48, %v345_v47  ;;  %v3666_v53 = vld [vmem:[%s4122_s30 + $0x18c] ss:$16 sps:$4 sm:$0xff]   ;;  %v3668_v54 = vld [vmem:[%s4122_s30 + $0x180] ss:$16 sps:$4 sm:$0xff]   ;;  %v3669_v55 = vld [vmem:[%s4122_s30 + $0x188] ss:$16 sps:$4 sm:$0xff]  }
  0x23   : > { %969 = vmatpush1.bf16.msra.mxu0 %v3620_v19  ;;  %1075 = vmatpush1.bf16.msra.mxu1 %v3621_v20  ;;  %v3670_v56 = vld [vmem:[%s4122_s30 + $0x1a4] ss:$16 sps:$4 sm:$0xff]   ;;  %v3672_v57 = vld [vmem:[%s4122_s30 + $0x1ac] ss:$16 sps:$4 sm:$0xff]   ;;  %v3674_v58 = vld [vmem:[%s4122_s30 + $0x1a0] ss:$16 sps:$4 sm:$0xff]   ;;  %s4455_s28 = scalar_lea.vmem %s5128_s6, %s3580_s24 }
  0x24   : > { %970 = vmatprep.subr.bf16.mxu0 %v3622_v21  ;;  %1076 = vmatprep.subr.bf16.mxu1 %v3624_v22  ;;  %v3675_v59 = vld [vmem:[%s4122_s30 + $0x1a8] ss:$16 sps:$4 sm:$0xff]   ;;  %v3676_v60 = vld [vmem:[%s4122_s30 + $0x1c4] ss:$16 sps:$4 sm:$0xff]   ;;  %v3678_v61 = vld [vmem:[%s4122_s30 + $0x1cc] ss:$16 sps:$4 sm:$0xff]  }
  0x25   : > { %992 = vmatprep.mubr.bf16.mxu0 %v357_v51  ;;  %1098 = vmatprep.mubr.bf16.mxu1 %v357_v51  ;;  %v3680_v62 = vld [vmem:[%s4122_s30 + $0x1c0] ss:$16 sps:$4 sm:$0xff]   ;;  %v3681_v63 = vld [vmem:[%s4122_s30 + $0x1c8] ss:$16 sps:$4 sm:$0xff]   ;;  %v3682_v1 = vld [vmem:[%s4122_s30 + $0x1e4] ss:$16 sps:$4 sm:$0xff]  }
  0x26   : > { %v3684_v2 = vld [vmem:[%s4122_s30 + $0x1ec] ss:$16 sps:$4 sm:$0xff]   ;;  %v3686_v3 = vld [vmem:[%s4122_s30 + $0x1e0] ss:$16 sps:$4 sm:$0xff]   ;;  %v3687_v4 = vld [vmem:[%s4122_s30 + $0x1e8] ss:$16 sps:$4 sm:$0xff]  }
  0x27   : > { %971 = vmatpush1.bf16.msra.mxu0 %v3626_v23  ;;  %1077 = vmatpush1.bf16.msra.mxu1 %v3627_v24  ;;  %v3690_v5 = vld [vmem:[%s4122_s30 + $0x204] ss:$16 sps:$4 sm:$0xff]   ;;  %v347_v7 = vld [vmem:[%s4172_s10 + $0x18] sm:$0xff]  ;;  %v3688_v9 = vld [vmem:[%s4122_s30 + $0x200] ss:$16 sps:$4 sm:$0xff]  }
  0x28   : > { %972 = vmatprep.subr.bf16.mxu0 %v3628_v25  ;;  %1078 = vmatprep.subr.bf16.mxu1 %v3630_v26  ;;  %v344_v6 = vld [vmem:[%s4172_s10] sm:$0xff]  ;;  %v3693_v8 = vld [vmem:[%s4122_s30 + $0x20c] ss:$16 sps:$4 sm:$0xff]   ;;  %v3691_v10 = vld [vmem:[%s4122_s30 + $0x208] ss:$16 sps:$4 sm:$0xff]  }
  0x29   : > { %v356_v11 = vpack.c.bf16 %v347_v7, %v344_v6  ;;  %v351_v12 = vld [vmem:[%s4172_s10 + $0x38] sm:$0xff]  ;;  %v354_v13 = vld [vmem:[%s4172_s10 + $0x50] sm:$0x3]  ;;  %v3696_v14 = vld [vmem:[%s4122_s30 + $0x224] ss:$16 sps:$4 sm:$0xff]  }
  0x2a   : > { %v3699_v15 = vld [vmem:[%s4122_s30 + $0x22c] ss:$16 sps:$4 sm:$0xff]   ;;  %v3694_v16 = vld [vmem:[%s4122_s30 + $0x220] ss:$16 sps:$4 sm:$0xff]   ;;  %v360_v17 = vpack.c.bf16 %v354_v13, %v351_v12  ;;  %v3697_v18 = vld [vmem:[%s4122_s30 + $0x228] ss:$16 sps:$4 sm:$0xff]  }
  0x2b   : > { %973 = vmatpush1.bf16.msra.mxu0 %v3632_v27  ;;  %1079 = vmatpush1.bf16.msra.mxu1 %v3633_v28  ;;  %v3702_v19 = vld [vmem:[%s4122_s30 + $0x244] ss:$16 sps:$4 sm:$0xff]   ;;  %v353_v21 = vld [vmem:[%s4172_s10 + $0x48] sm:$0x3]  ;;  %v3705_v22 = vld [vmem:[%s4122_s30 + $0x24c] ss:$16 sps:$4 sm:$0xff]  }
  0x2c   : > { %974 = vmatprep.subr.bf16.mxu0 %v3634_v29  ;;  %1080 = vmatprep.subr.bf16.mxu1 %v3636_v30  ;;  %v350_v20 = vld [vmem:[%s4172_s10 + $0x30] sm:$0xff]  ;;  %v3703_v24 = vld [vmem:[%s4122_s30 + $0x248] ss:$16 sps:$4 sm:$0xff]   ;;  %v3711_v27 = vld [vmem:[%s4122_s30 + $0x26c] ss:$16 sps:$4 sm:$0xff]  }
  0x2d   : > { %v3700_v23 = vld [vmem:[%s4122_s30 + $0x240] ss:$16 sps:$4 sm:$0xff]   ;;  %v359_v25 = vpack.c.bf16 %v353_v21, %v350_v20  ;;  %v3708_v26 = vld [vmem:[%s4122_s30 + $0x264] ss:$16 sps:$4 sm:$0xff]   ;;  %v3709_v29 = vld [vmem:[%s4122_s30 + $0x268] ss:$16 sps:$4 sm:$0xff]  }
  0x2e   : > { %v3706_v28 = vld [vmem:[%s4122_s30 + $0x260] ss:$16 sps:$4 sm:$0xff]   ;;  %v3714_v30 = vld [vmem:[%s4122_s30 + $0x284] ss:$16 sps:$4 sm:$0xff]   ;;  %v3733_v47 = vld [vmem:[%s4122_s30 + $0x2e8] ss:$16 sps:$4 sm:$0xff]  }
  0x2f   : > { %975 = vmatpush1.bf16.msra.mxu0 %v3638_v31  ;;  %1081 = vmatpush1.bf16.msra.mxu1 %v3639_v32  ;;  %v3717_v31 = vld [vmem:[%s4122_s30 + $0x28c] ss:$16 sps:$4 sm:$0xff]   ;;  %v3712_v32 = vld [vmem:[%s4122_s30 + $0x280] ss:$16 sps:$4 sm:$0xff]   ;;  %v4255_v51 = vld [vmem:[%s4117_s27 + $0x4] ss:$16 sps:$4 sm:$0xff]  }
  0x30   : > { %976 = vmatprep.subr.bf16.mxu0 %v3640_v33  ;;  %1082 = vmatprep.subr.bf16.mxu1 %v3642_v34  ;;  %v3715_v33 = vld [vmem:[%s4122_s30 + $0x288] ss:$16 sps:$4 sm:$0xff]   ;;  %v3720_v34 = vld [vmem:[%s4122_s30 + $0x2a4] ss:$16 sps:$4 sm:$0xff]   ;;  %v4314_v7 = vld [vmem:[%s4117_s27 + $0x6c] ss:$16 sps:$4 sm:$0xff]  }
  0x31   : > { %v4311_v6 = vld [vmem:[%s4117_s27 + $0x64] ss:$16 sps:$4 sm:$0xff]   ;;  %v4333_v12 = vld [vmem:[%s4117_s27 + $0x8c] ss:$16 sps:$4 sm:$0xff]   ;;  %v4342_v13 = vld [vmem:[%s4117_s27 + $0x80] ss:$16 sps:$4 sm:$0xff]  }
  0x32   : > { %v4370_v21 = vld [vmem:[%s4117_s27 + $0xc4] ss:$16 sps:$4 sm:$0xff]  }
  0x33   : > { %977 = vmatpush1.bf16.msra.mxu0 %v3644_v35  ;;  %1083 = vmatpush1.bf16.msra.mxu1 %v3645_v36  ;;  %v3723_v35 = vld [vmem:[%s4122_s30 + $0x2ac] ss:$16 sps:$4 sm:$0xff]   ;;  %v3718_v36 = vld [vmem:[%s4122_s30 + $0x2a0] ss:$16 sps:$4 sm:$0xff]  }
  0x34   : > { %978 = vmatprep.subr.bf16.mxu0 %v3646_v37  ;;  %1084 = vmatprep.subr.bf16.mxu1 %v3648_v38  ;;  %v3721_v37 = vld [vmem:[%s4122_s30 + $0x2a8] ss:$16 sps:$4 sm:$0xff]   ;;  %v3726_v38 = vld [vmem:[%s4122_s30 + $0x2c4] ss:$16 sps:$4 sm:$0xff]  }
  0x37   : > { %979 = vmatpush1.bf16.msra.mxu0 %v3650_v39  ;;  %1085 = vmatpush1.bf16.msra.mxu1 %v3651_v40  ;;  %v3729_v39 = vld [vmem:[%s4122_s30 + $0x2cc] ss:$16 sps:$4 sm:$0xff]   ;;  %v3724_v40 = vld [vmem:[%s4122_s30 + $0x2c0] ss:$16 sps:$4 sm:$0xff]  }
  0x38   : > { %980 = vmatprep.subr.bf16.mxu0 %v3652_v41  ;;  %1086 = vmatprep.subr.bf16.mxu1 %v3654_v42  ;;  %v3727_v41 = vld [vmem:[%s4122_s30 + $0x2c8] ss:$16 sps:$4 sm:$0xff]   ;;  %v3732_v42 = vld [vmem:[%s4122_s30 + $0x2e4] ss:$16 sps:$4 sm:$0xff]  }
  0x3b   : > { %981 = vmatpush1.bf16.msra.mxu0 %v3656_v43  ;;  %1087 = vmatpush1.bf16.msra.mxu1 %v3657_v44  ;;  %v4240_v43 = vld [vmem:[%s319_s14] sm:$0x3] }
  0x3c   : > { %982 = vmatprep.subr.bf16.mxu0 %v3658_v45  ;;  %1088 = vmatprep.subr.bf16.mxu1 %v3660_v46  ;;  %v4242_v44 = vld [vmem:[%s323_s17] sm:$0x3]  ;;  %v3735_v45 = vld [vmem:[%s4122_s30 + $0x2ec] ss:$16 sps:$4 sm:$0xff]   ;;  %vm1496_vm0 = vcmp.le.s32.totalorder %v4240_v43, 0  ;;  %vm1637_vm2 = vcmp.le.s32.totalorder %v4240_v43, 1 }
  0x3d   : > { %vm1497_vm1 = vcmp.gt.s32.totalorder %v4242_v44, 0  ;;  %vm1638_vm3 = vcmp.gt.s32.totalorder %v4242_v44, 1  ;;  %v3730_v46 = vld [vmem:[%s4122_s30 + $0x2e0] ss:$16 sps:$4 sm:$0xff]   ;;  %vm2069_vm6 = vcmp.le.s32.totalorder %v4240_v43, 4  ;;  %vm2070_vm7 = vcmp.gt.s32.totalorder %v4242_v44, 4 }
  0x3e   : > { %vm1498_vm4 = vmand %vm1496_vm0, %vm1497_vm1  ;;  %vm2361_vm9 = vcmp.le.s32.totalorder %v4240_v43, 6  ;;  %vm2362_vm10 = vcmp.gt.s32.totalorder %v4242_v44, 6  ;;  %vm2644_vm12 = vcmp.le.s32.totalorder %v4240_v43, 8  ;;  %vm2645_vm13 = vcmp.gt.s32.totalorder %v4242_v44, 8 }
  0x3f   : > { %983 = vmatpush1.bf16.msra.mxu0 %v3662_v49  ;;  %1089 = vmatpush1.bf16.msra.mxu1 %v3663_v50  ;;  %v1499_v48 = vsel %vm1498_vm4, 1, %v4064_v0  ;;  %v346_v49 = vld [vmem:[%s4172_s10 + $0x10] sm:$0xff]  ;;  %v349_v50 = vld [vmem:[%s4172_s10 + $0x28] sm:$0xff]  ;;  %vm1639_vm5 = vmand %vm1637_vm2, %vm1638_vm3  ;;  %vm2936_vm15 = vcmp.le.s32.totalorder %v4240_v43, 10  ;;  %vm2937_vm0 = vcmp.gt.s32.totalorder %v4242_v44, 10  ;;  %vm3219_vm2 = vcmp.le.s32.totalorder %v4240_v43, 12 }
  0x40   : > { %984 = vmatprep.subr.bf16.mxu0 %v3664_v52  ;;  %1090 = vmatprep.subr.bf16.mxu1 %v3666_v53  ;;  %v4258_v52 = vld [vmem:[%s4117_s27 + $0xc] ss:$16 sps:$4 sm:$0xff]   ;;  %v358_v53 = vpack.c.bf16 %v349_v50, %v346_v49  ;;  %vm2071_vm8 = vmand %vm2069_vm6, %vm2070_vm7  ;;  %vm3220_vm3 = vcmp.gt.s32.totalorder %v4242_v44, 12  ;;  %vm1786_vm7 = vcmp.le.s32.totalorder %v4240_v43, 2 }
  0x41   : > { %1501 = vperm.xlu0 %3590, %v1499_v48   ;;  %vm2363_vm11 = vmand %vm2361_vm9, %vm2362_vm10  ;;  %vm1935_vm9 = vcmp.le.s32.totalorder %v4240_v43, 3  ;;  %vm1936_vm10 = vcmp.gt.s32.totalorder %v4242_v44, 3 }
  0x42   : > { %vm2646_vm14 = vmand %vm2644_vm12, %vm2645_vm13  ;;  %vm2212_vm13 = vcmp.le.s32.totalorder %v4240_v43, 5 }
  0x43   : > { %985 = vmatpush1.bf16.msra.mxu0 %v3668_v54  ;;  %1091 = vmatpush1.bf16.msra.mxu1 %v3669_v55  ;;  %v1640_v54 = vsel %vm1639_vm5, 1, %v4064_v0  ;;  %v4264_v55 = vld [vmem:[%s4117_s27] ss:$16 sps:$4 sm:$0xff]   ;;  %vm2938_vm1 = vmand %vm2936_vm15, %vm2937_vm0  ;;  %vm2510_vm0 = vcmp.le.s32.totalorder %v4240_v43, 7 }
  0x44   : > { %986 = vmatprep.subr.bf16.mxu0 %v3670_v56  ;;  %1092 = vmatprep.subr.bf16.mxu1 %v3672_v57  ;;  %v4267_v56 = vld [vmem:[%s4117_s27 + $0x8] ss:$16 sps:$4 sm:$0xff]   ;;  %v4272_v57 = vld [vmem:[%s4117_s27 + $0x24] ss:$16 sps:$4 sm:$0xff]   ;;  %v2939_v20 = vsel %vm2938_vm1, 1, %v4064_v0  ;;  %vm3221_vm4 = vmand %vm3219_vm2, %vm3220_vm3  ;;  %vm2511_vm1 = vcmp.gt.s32.totalorder %v4242_v44, 7 }
  0x45   : > { %1642 = vperm.xlu0 %3590, %v1640_v54   ;;  %vm1937_vm12 = vmand %vm1935_vm9, %vm1936_vm10  ;;  %vm2787_vm3 = vcmp.le.s32.totalorder %v4240_v43, 9 }
  0x46   : > { %vm2512_vm2 = vmand %vm2510_vm0, %vm2511_vm1 }
  0x47   : > { %987 = vmatpush1.bf16.msra.mxu0 %v3674_v58  ;;  %1093 = vmatpush1.bf16.msra.mxu1 %v3675_v59  ;;  %v4275_v58 = vld [vmem:[%s4117_s27 + $0x2c] ss:$16 sps:$4 sm:$0xff]   ;;  %v4278_v59 = vld [vmem:[%s4117_s27 + $0x20] ss:$16 sps:$4 sm:$0xff]  }
  0x48   : > { %988 = vmatprep.subr.bf16.mxu0 %v3676_v60  ;;  %1094 = vmatprep.subr.bf16.mxu1 %v3678_v61  ;;  %v4283_v60 = vld [vmem:[%s4117_s27 + $0x28] ss:$16 sps:$4 sm:$0xff]   ;;  %v352_v61 = vld [vmem:[%s4172_s10 + $0x40] sm:$0xff] }
  0x4b   : > { %989 = vmatpush1.bf16.msra.mxu0 %v3680_v62  ;;  %1095 = vmatpush1.bf16.msra.mxu1 %v3681_v63  ;;  %v355_v62 = vld [vmem:[%s4172_s10 + $0x58] sm:$0x3]  ;;  %v2072_v63 = vsel %vm2071_vm8, 1, %v4064_v0  ;;  %vm1787_vm8 = vcmp.gt.s32.totalorder %v4242_v44, 2 }
  0x4c   : > { %990 = vmatprep.subr.bf16.mxu0 %v3682_v1  ;;  %1096 = vmatprep.subr.bf16.mxu1 %v3684_v2  ;;  %v4291_v1 = vld [vmem:[%s4117_s27 + $0x44] ss:$16 sps:$4 sm:$0xff]   ;;  %v4294_v2 = vld [vmem:[%s4117_s27 + $0x4c] ss:$16 sps:$4 sm:$0xff]  }
  0x4d   : > { %2074 = vperm.xlu0 %3590, %v2072_v63  }
  0x4f   : > { %991 = vmatpush1.bf16.msra.mxu0 %v3686_v3  ;;  %1097 = vmatpush1.bf16.msra.mxu1 %v3687_v4  ;;  %v361_v3 = vpack.c.bf16 %v355_v62, %v352_v61  ;;  %v4303_v4 = vld [vmem:[%s4117_s27 + $0x40] ss:$16 sps:$4 sm:$0xff]  }
  0x50   : > { %1013 = vmatprep.subr.bf16.mxu0 %v3690_v5  ;;  %1119 = vmatprep.subr.bf16.mxu1 %v3693_v8  ;;  %v4306_v5 = vld [vmem:[%s4117_s27 + $0x48] ss:$16 sps:$4 sm:$0xff]   ;;  %v4321_v8 = vld [vmem:[%s4117_s27 + $0x60] ss:$16 sps:$4 sm:$0xff]  }
  0x52   : > { %993 = vmatmul.mubr.bf16.vlgmr.msra.gmra.mrb[0].mxu0 %v356_v11  ;;  %1099 = vmatmul.mubr.bf16.vlgmr.msra.gmra.mrb[0].mxu1 %v356_v11  ;;  %v4330_v11 = vld [vmem:[%s4117_s27 + $0x84] ss:$16 sps:$4 sm:$0xff]  }
  0x53   : > { %1014 = vmatpush1.bf16.msra.mxu0 %v3688_v9  ;;  %1120 = vmatpush1.bf16.msra.mxu1 %v3691_v10  ;;  %v4324_v9 = vld [vmem:[%s4117_s27 + $0x68] ss:$16 sps:$4 sm:$0xff]   ;;  %v2364_v10 = vsel %vm2363_vm11, 1, %v4064_v0  ;;  %vm1788_vm11 = vmand %vm1786_vm7, %vm1787_vm8  ;;  %vm3085_vm7 = vcmp.le.s32.totalorder %v4240_v43, 11  ;;  %vm3086_vm8 = vcmp.gt.s32.totalorder %v4242_v44, 11 }
  0x54   : > { %1015 = vmatprep.subr.bf16.mxu0 %v3696_v14  ;;  %1121 = vmatprep.subr.bf16.mxu1 %v3699_v15  ;;  %v4345_v14 = vld [vmem:[%s4117_s27 + $0x88] ss:$16 sps:$4 sm:$0xff]   ;;  %v2647_v15 = vsel %vm2646_vm14, 1, %v4064_v0  ;;  %vm2213_vm14 = vcmp.gt.s32.totalorder %v4242_v44, 5  ;;  %vm3087_vm9 = vmand %vm3085_vm7, %vm3086_vm8 }
  0x55   : > { %1002 = vmatprep.mubr.bf16.mxu0 %v360_v17  ;;  %1108 = vmatprep.mubr.bf16.mxu1 %v360_v17  ;;  %v4354_v17 = vld [vmem:[%s4117_s27 + $0xac] ss:$16 sps:$4 sm:$0xff]   ;;  %vm2214_vm15 = vmand %vm2212_vm13, %vm2213_vm14 }
  0x56   : > { %2366 = vperm.xlu0 %3590, %v2364_v10  }
  0x57   : > { %1016 = vmatpush1.bf16.msra.mxu0 %v3694_v16  ;;  %1122 = vmatpush1.bf16.msra.mxu1 %v3697_v18  ;;  %v4351_v16 = vld [vmem:[%s4117_s27 + $0xa4] ss:$16 sps:$4 sm:$0xff]   ;;  %v4361_v18 = vld [vmem:[%s4117_s27 + $0xa0] ss:$16 sps:$4 sm:$0xff]  }
  0x58   : > { %1017 = vmatprep.subr.bf16.mxu0 %v3702_v19  ;;  %1123 = vmatprep.subr.bf16.mxu1 %v3705_v22  ;;  %v4364_v19 = vld [vmem:[%s4117_s27 + $0xa8] ss:$16 sps:$4 sm:$0xff]   ;;  %v4373_v22 = vld [vmem:[%s4117_s27 + $0xcc] ss:$16 sps:$4 sm:$0xff]  }
  0x5a   : > { %1003 = vmatmul.mubr.bf16.gmra.mrb[4].mxu0 %v359_v25  ;;  %1109 = vmatmul.mubr.bf16.gmra.mrb[4].mxu1 %v359_v25  ;;  %v3222_v25 = vsel %vm3221_vm4, 1, %v4064_v0  ;;  %vm2788_vm4 = vcmp.gt.s32.totalorder %v4242_v44, 9 }
  0x5b   : > { %1018 = vmatpush1.bf16.msra.mxu0 %v3700_v23  ;;  %1124 = vmatpush1.bf16.msra.mxu1 %v3703_v24  ;;  %v4378_v23 = vld [vmem:[%s4117_s27 + $0xc0] ss:$16 sps:$4 sm:$0xff]   ;;  %v4381_v24 = vld [vmem:[%s4117_s27 + $0xc8] ss:$16 sps:$4 sm:$0xff]  }
  0x5c   : > { %1019 = vmatprep.subr.bf16.mxu0 %v3708_v26  ;;  %1125 = vmatprep.subr.bf16.mxu1 %v3711_v27  ;;  %v4387_v26 = vld [vmem:[%s4117_s27 + $0xe4] ss:$16 sps:$4 sm:$0xff]   ;;  %v4390_v27 = vld [vmem:[%s4117_s27 + $0xec] ss:$16 sps:$4 sm:$0xff]  }
  0x5d   : > { %1045 = vmatprep.mubr.bf16.mxu0 %v4064_v0  ;;  %1151 = vmatprep.mubr.bf16.mxu1 %v4064_v0 }
  0x5e   : > { %2649 = vperm.xlu0 %3590, %v2647_v15  }
  0x5f   : > { %1020 = vmatpush1.bf16.msra.mxu0 %v3706_v28  ;;  %1126 = vmatpush1.bf16.msra.mxu1 %v3709_v29  ;;  %v4395_v28 = vld [vmem:[%s4117_s27 + $0xe0] ss:$16 sps:$4 sm:$0xff]   ;;  %v4398_v29 = vld [vmem:[%s4117_s27 + $0xe8] ss:$16 sps:$4 sm:$0xff]  }
  0x60   : > { %1021 = vmatprep.subr.bf16.mxu0 %v3714_v30  ;;  %1127 = vmatprep.subr.bf16.mxu1 %v3717_v31  ;;  %v460_v30 = vlaneseq }
  0x62   : > { %2941 = vperm.xlu0 %3590, %v2939_v20   ;;  %v461_v31 = vshrl.u32 %v460_v30, 7 }
  0x63   : > { %1022 = vmatpush1.bf16.msra.mxu0 %v3712_v32  ;;  %1128 = vmatpush1.bf16.msra.mxu1 %v3715_v33 }
  0x64   : > { %1023 = vmatprep.subr.bf16.mxu0 %v3720_v34  ;;  %1129 = vmatprep.subr.bf16.mxu1 %v3723_v35  ;;  %v462_v32 = vsub.s32 0, %v461_v31  ;;  %v470_v33 = vsub.s32 2, %v461_v31  ;;  %v458_v34 = vld [vmem:[%s337_s23] sm:$0xf]  ;;  %v466_v35 = vsub.s32 1, %v461_v31 }
  0x66   : > { %3224 = vperm.xlu0 %3590, %v3222_v25  }
  0x67   : > { %1024 = vmatpush1.bf16.msra.mxu0 %v3718_v36  ;;  %1130 = vmatpush1.bf16.msra.mxu1 %v3721_v37  ;;  %v474_v36 = vsub.s32 3, %v461_v31  ;;  %v463_v37 = vrot.slane %v458_v34, %v462_v32 }
  0x68   : > { %1025 = vmatprep.subr.bf16.mxu0 %v3726_v38  ;;  %1131 = vmatprep.subr.bf16.mxu1 %v3729_v39  ;;  %v471_v38 = vrot.slane %v458_v34, %v470_v33  ;;  %v467_v39 = vrot.slane %v458_v34, %v466_v35 }
  0x6b   : > { %1026 = vmatpush1.bf16.msra.mxu0 %v3724_v40  ;;  %1132 = vmatpush1.bf16.msra.mxu1 %v3727_v41  ;;  %v475_v40 = vrot.slane %v458_v34, %v474_v36 }
  0x6c   : > { %1027 = vmatprep.subr.bf16.mxu0 %v3732_v42  ;;  %1133 = vmatprep.subr.bf16.mxu1 %v3735_v45 }
  0x6f   : > { %1028 = vmatpush1.bf16.msra.mxu0 %v3730_v46  ;;  %1134 = vmatpush1.bf16.msra.mxu1 %v3733_v47 }
  0x70   : > { %1386 = vmatprep.subr.bf16.mxu0 %v4255_v51  ;;  %1427 = vmatprep.subr.bf16.mxu1 %v4258_v52 }
  0x72   : > { %1046 = vmatmul.mubr.bf16.vlgmr.msra.gmra.mrb[0].mxu0 %v358_v53  ;;  %1152 = vmatmul.mubr.bf16.vlgmr.msra.gmra.mrb[0].mxu1 %v358_v53 }
  0x73   : > { %1387 = vmatpush1.bf16.msra.mxu0 %v4264_v55  ;;  %1428 = vmatpush1.bf16.msra.mxu1 %v4267_v56 }
  0x74   : > { %1388 = vmatprep.subr.bf16.mxu0 %v4272_v57  ;;  %1429 = vmatprep.subr.bf16.mxu1 %v4275_v58 }
  0x75   : > { %1055 = vmatprep.mubr.bf16.mxu0 %v4064_v0  ;;  %1161 = vmatprep.mubr.bf16.mxu1 %v4064_v0 }
  0x77   : > { %1389 = vmatpush1.bf16.msra.mxu0 %v4278_v59  ;;  %1430 = vmatpush1.bf16.msra.mxu1 %v4283_v60 }
  0x78   : > { %1390 = vmatprep.subr.bf16.mxu0 %v4291_v1  ;;  %1431 = vmatprep.subr.bf16.mxu1 %v4294_v2 }
  0x7a   : > { %1056 = vmatmul.mubr.bf16.gmra.mrb[4].mxu0 %v361_v3  ;;  %1162 = vmatmul.mubr.bf16.gmra.mrb[4].mxu1 %v361_v3 }
  0x7b   : > { %1391 = vmatpush1.bf16.msra.mxu0 %v4303_v4  ;;  %1432 = vmatpush1.bf16.msra.mxu1 %v4306_v5 }
  0x7c   : > { %1392 = vmatprep.subr.bf16.mxu0 %v4311_v6  ;;  %1433 = vmatprep.subr.bf16.mxu1 %v4314_v7 }
  0x7d   : > { %1418 = vmatprep.mubr.bf16.mxu0 %v4064_v0  ;;  %1459 = vmatprep.mubr.bf16.mxu1 %v4064_v0 }
  0x7f   : > { %1393 = vmatpush1.bf16.msra.mxu0 %v4321_v8  ;;  %1434 = vmatpush1.bf16.msra.mxu1 %v4324_v9 }
  0x80   : > { %1394 = vmatprep.subr.bf16.mxu0 %v4330_v11  ;;  %1435 = vmatprep.subr.bf16.mxu1 %v4333_v12 }
  0x83   : > { %1395 = vmatpush1.bf16.msra.mxu0 %v4342_v13  ;;  %1436 = vmatpush1.bf16.msra.mxu1 %v4345_v14 }
  0x84   : > { %1396 = vmatprep.subr.bf16.mxu0 %v4351_v16  ;;  %1437 = vmatprep.subr.bf16.mxu1 %v4354_v17 }
  0x87   : > { %1397 = vmatpush1.bf16.msra.mxu0 %v4361_v18  ;;  %1438 = vmatpush1.bf16.msra.mxu1 %v4364_v19 }
  0x88   : > { %1398 = vmatprep.subr.bf16.mxu0 %v4370_v21  ;;  %1439 = vmatprep.subr.bf16.mxu1 %v4373_v22 }
  0x8b   : > { %1399 = vmatpush1.bf16.msra.mxu0 %v4378_v23  ;;  %1440 = vmatpush1.bf16.msra.mxu1 %v4381_v24 }
  0x8c   : > { %1400 = vmatprep.subr.bf16.mxu0 %v4387_v26  ;;  %1441 = vmatprep.subr.bf16.mxu1 %v4390_v27 }
  0x8f   : > { %1401 = vmatpush1.bf16.msra.mxu0 %v4395_v28  ;;  %1442 = vmatpush1.bf16.msra.mxu1 %v4398_v29 }
  0x90   : > { %1512 = vmatprep.subr.bf16.mxu0 %v4255_v51  ;;  %1553 = vmatprep.subr.bf16.mxu1 %v4258_v52 }
  0x92   : > { %1419 = vmatmul.mubr.bf16.vlgmr.msra.gmra.mrb[8].mxu0 %v4064_v0  ;;  %1460 = vmatmul.mubr.bf16.vlgmr.msra.gmra.mrb[8].mxu1 %v4064_v0 }
  0x93   : > { %1513 = vmatpush1.bf16.msra.mxu0 %v4264_v55  ;;  %1554 = vmatpush1.bf16.msra.mxu1 %v4267_v56 }
  0x94   : > { %1514 = vmatprep.subr.bf16.mxu0 %v4272_v57  ;;  %1555 = vmatprep.subr.bf16.mxu1 %v4275_v58 }
  0x95   : > { %1544 = vmatprep.mubr.bf16.mxu0 %v4064_v0  ;;  %1585 = vmatprep.mubr.bf16.mxu1 %v4064_v0 }
  0x97   : > { %1515 = vmatpush1.bf16.msra.mxu0 %v4278_v59  ;;  %1556 = vmatpush1.bf16.msra.mxu1 %v4283_v60 }
  0x98   : > { %1516 = vmatprep.subr.bf16.mxu0 %v4291_v1  ;;  %1557 = vmatprep.subr.bf16.mxu1 %v4294_v2 }
  0x9b   : > { %1517 = vmatpush1.bf16.msra.mxu0 %v4303_v4  ;;  %1558 = vmatpush1.bf16.msra.mxu1 %v4306_v5 }
  0x9c   : > { %1518 = vmatprep.subr.bf16.mxu0 %v4311_v6  ;;  %1559 = vmatprep.subr.bf16.mxu1 %v4314_v7 }
  0x9f   : > { %1519 = vmatpush1.bf16.msra.mxu0 %v4321_v8  ;;  %1560 = vmatpush1.bf16.msra.mxu1 %v4324_v9 }
  0xa0   : > { %1520 = vmatprep.subr.bf16.mxu0 %v4330_v11  ;;  %1561 = vmatprep.subr.bf16.mxu1 %v4333_v12 }
  0xa3   : > { %1521 = vmatpush1.bf16.msra.mxu0 %v4342_v13  ;;  %1562 = vmatpush1.bf16.msra.mxu1 %v4345_v14 }
  0xa4   : > { %1522 = vmatprep.subr.bf16.mxu0 %v4351_v16  ;;  %1563 = vmatprep.subr.bf16.mxu1 %v4354_v17 }
  0xa7   : > { %1523 = vmatpush1.bf16.msra.mxu0 %v4361_v18  ;;  %1564 = vmatpush1.bf16.msra.mxu1 %v4364_v19 }
  0xa8   : > { %1524 = vmatprep.subr.bf16.mxu0 %v4370_v21  ;;  %1565 = vmatprep.subr.bf16.mxu1 %v4373_v22 }
  0xab   : > { %1525 = vmatpush1.bf16.msra.mxu0 %v4378_v23  ;;  %1566 = vmatpush1.bf16.msra.mxu1 %v4381_v24 }
  0xac   : > { %1526 = vmatprep.subr.bf16.mxu0 %v4387_v26  ;;  %1567 = vmatprep.subr.bf16.mxu1 %v4390_v27 }
  0xaf   : > { %1527 = vmatpush1.bf16.msra.mxu0 %v4395_v28  ;;  %1568 = vmatpush1.bf16.msra.mxu1 %v4398_v29 }
  0xb0   : > { %1661 = vmatprep.subr.bf16.mxu0 %v4255_v51  ;;  %1702 = vmatprep.subr.bf16.mxu1 %v4258_v52 }
 0x145   : > { %v1047_v41 = vpop.f32.mrb[0].mxu0  ;;  %v1153_v42 = vpop.f32.mrb[0].mxu1 }
 0x146   : > { %v3546_v45 = vadd.f32 %v1047_v41, %v463_v37  ;;  %v3554_v46 = vadd.f32 %v1153_v42, %v471_v38  ;;  %v1049_v47 = vpop.f32.mrb[1].mxu0  ;;  %v1155_v48 = vpop.f32.mrb[1].mxu1 }
 0x147   : > { %v3547_v49 = vadd.f32 %v1049_v47, %v467_v39  ;;  %v3555_v50 = vadd.f32 %v1155_v48, %v475_v40  ;;  %v1051_v53 = vpop.f32.mrb[2].mxu0  ;;  %v1157_v54 = vpop.f32.mrb[2].mxu1 }
 0x148   : > { %1172 = vst [vmem:[#allocation2] sm:$0xff] %v3546_v45  ;;  %1174 = vst [vmem:[#allocation2 + $0x10] sm:$0xff] %v3554_v46  ;;  %v3548_v61 = vadd.f32 %v1051_v53, %v463_v37  ;;  %v3556_v62 = vadd.f32 %v1157_v54, %v471_v38  ;;  %v1053_v63 = vpop.f32.mrb[3].mxu0  ;;  %v1159_v3 = vpop.f32.mrb[3].mxu1 }
 0x149   : > { %1173 = vst [vmem:[#allocation2 + $0x8] sm:$0xff] %v3547_v49  ;;  %1175 = vst [vmem:[#allocation2 + $0x18] sm:$0xff] %v3555_v50  ;;  %v3549_v10 = vadd.f32 %v1053_v63, %v467_v39  ;;  %v3557_v15 = vadd.f32 %v1159_v3, %v475_v40 }
 0x14a   : > { %1176 = vst [vmem:[#allocation2 + $0x20] sm:$0xff] %v3548_v61  ;;  %1178 = vst [vmem:[#allocation2 + $0x30] sm:$0xff] %v3556_v62 }
 0x14b   : > { %1177 = vst [vmem:[#allocation2 + $0x28] sm:$0xff] %v3549_v10  ;;  %1179 = vst [vmem:[#allocation2 + $0x38] sm:$0xff] %v3557_v15 }
 0x14d   : > { %v1057_v20 = vpop.f32.mrb[4].mxu0  ;;  %v1163_v25 = vpop.f32.mrb[4].mxu1 }
 0x14e   : > { %v3550_v30 = vadd.f32 %v1057_v20, %v463_v37  ;;  %v3558_v31 = vadd.f32 %v1163_v25, %v471_v38  ;;  %v1059_v32 = vpop.f32.mrb[5].mxu0  ;;  %v1165_v33 = vpop.f32.mrb[5].mxu1 }
 0x14f   : > { %v3551_v34 = vadd.f32 %v1059_v32, %v467_v39  ;;  %v3559_v35 = vadd.f32 %v1165_v33, %v475_v40  ;;  %v1061_v36 = vpop.f32.mrb[6].mxu0  ;;  %v1167_v41 = vpop.f32.mrb[6].mxu1  ;;  %v1222_v50 = vld [vmem:[#allocation2] sm:$0x3] }
 0x150   : > { %1180 = vst [vmem:[#allocation2 + $0x40] sm:$0xff] %v3550_v30  ;;  %1182 = vst [vmem:[#allocation2 + $0x50] sm:$0xff] %v3558_v31  ;;  %v3552_v42 = vadd.f32 %v1061_v36, %v463_v37  ;;  %v3560_v45 = vadd.f32 %v1167_v41, %v471_v38  ;;  %v1063_v46 = vpop.f32.mrb[7].mxu0  ;;  %v1169_v47 = vpop.f32.mrb[7].mxu1  ;;  %v1223_v62 = vld [vmem:[#allocation2 + $0x8] sm:$0x3] }
 0x151   : > { %1181 = vst [vmem:[#allocation2 + $0x48] sm:$0xff] %v3551_v34  ;;  %1183 = vst [vmem:[#allocation2 + $0x58] sm:$0xff] %v3559_v35  ;;  %v3553_v48 = vadd.f32 %v1063_v46, %v467_v39  ;;  %v3561_v49 = vadd.f32 %v1169_v47, %v475_v40  ;;  %v1225_v39 = vld [vmem:[#allocation2 + $0x18] sm:$0x3]  ;;  %v1224_v31 = vld [vmem:[#allocation2 + $0x10] sm:$0x3] }
 0x152   : > { %1184 = vst [vmem:[#allocation2 + $0x60] sm:$0x3] %v3552_v42  ;;  %1186 = vst [vmem:[#allocation2 + $0x70] sm:$0x3] %v3560_v45 }
 0x153   : > { %1185 = vst [vmem:[#allocation2 + $0x68] sm:$0x3] %v3553_v48  ;;  %1187 = vst [vmem:[#allocation2 + $0x78] sm:$0x3] %v3561_v49 }
 0x165   : > { %v1420_v53 = vpop.f32.mrb[8].mxu0  ;;  %v1461_v54 = vpop.f32.mrb[8].mxu1 }
 0x166   : > { %v1468_v61 = vadd.f32 %v1420_v53, %v1222_v50  ;;  %v1422_v63 = vpop.f32.mrb[9].mxu0  ;;  %v1463_v3 = vpop.f32.mrb[9].mxu1  ;;  %v1470_v33 = vadd.f32 %v1461_v54, %v1224_v31 }
 0x167   : > { %v1469_v10 = vadd.f32 %v1422_v63, %v1223_v62  ;;  %v1424_v37 = vpop.f32.mrb[10].mxu0  ;;  %v1465_v38 = vpop.f32.mrb[10].mxu1  ;;  %v1471_v40 = vadd.f32 %v1463_v3, %v1225_v39 }
 0x168   : > { %v3486_v15 = vmul.f32 -1.442695, %v1468_v61  ;;  %v1425_v20 = vpop.f32.mrb[11].mxu0  ;;  %v1466_v25 = vpop.f32.mrb[11].mxu1  ;;  %v1789_v37 = vsel %vm1788_vm11, 1, %v4064_v0  ;;  %v1938_v38 = vsel %vm1937_vm12, 1, %v4064_v0 }
 0x169   : > { %v3487_v30 = vmul.f32 -1.442695, %v1469_v10  ;;  %v3488_v32 = vmul.f32 -1.442695, %v1471_v40  ;;  %v4450_v62 = vpop.permute.xlu0 %1501  ;;  %1791 = vperm.xlu1 %3591, %v1789_v37   ;;  %v2513_v20 = vsel %vm2512_vm2, 1, %v4064_v0 }
 0x16a   : > { %3784 = vpow2.f32 %v3486_v15  ;;  %vm1503_vm5 = vcmp.eq.s32.totalorder %v4450_v62, 1  ;;  %v2215_v15 = vsel %vm2214_vm15, 1, %v4064_v0 }
 0x16b   : > { %3786 = vpow2.f32 %v3487_v30  ;;  %vm3489_vm6 = vmpackc.low %vm1503_vm5, %vm1503_vm5  ;;  %v3088_v30 = vsel %vm3087_vm9, 1, %v4064_v0 }
 0x16c   : > { %3788 = vpow2.f32 %v3488_v32 }
 0x16d   : > { %3790 = vtanh.f32 %v1470_v33  ;;  %1940 = vperm.xlu1 %3591, %v1938_v38  }
 0x171   : > { %2217 = vperm.xlu1 %3591, %v2215_v15  }
 0x174   : > { %v3785_v34 = vpop.eup %3784 }
 0x175   : > { %v3787_v35 = vpop.eup %3786  ;;  %v1475_v36 = vadd.f32 1.0, %v3785_v34  ;;  %2515 = vperm.xlu1 %3591, %v2513_v20   ;;  %v1507_v34 = vld [vmem:[#allocation2] sm:$0xc] }
 0x176   : > { %v1481_v41 = vadd.f32 1.0, %v3787_v35  ;;  %v3789_v42 = vpop.eup %3788 }
 0x177   : > { %3792 = vrcp.f32 %v1475_v36  ;;  %v3791_v45 = vpop.eup %3790  ;;  %v1488_v48 = vadd.f32 1.0, %v3789_v42  ;;  %v1508_v42 = vld [vmem:[#allocation2 + $0x8] sm:$0xc] }
 0x178   : > { %3794 = vrcp.f32 %v1481_v41 }
 0x179   : > { %3796 = vrcp.f32 %v1488_v48 }
 0x181   : > { %v3793_v46 = vpop.eup %3792 }
 0x182   : > { %v3795_v47 = vpop.eup %3794  ;;  %v1492_v49 = vmul.f32 %v3793_v46, %v3791_v45 }
 0x183   : > { %v1491_v50 = vmul.f32 0.0, %v3795_v47  ;;  %v3797_v54 = vpop.eup %3796 }
 0x185   : > { %v4446_v53 = vadd.f32 %v1492_v49, %v1491_v50  ;;  %v1510_v50 = vld [vmem:[#allocation2 + $0x18] sm:$0xc] }
 0x187   : > { %3798 = vtanh.f32 %v4446_v53 }
 0x191   : > { %v3799_v61 = vpop.eup %3798 }
 0x192   : > { %v1495_v63 = vmul.f32 %v3799_v61, %v3797_v54 }
 0x194   : > { %v4463_v3 = vsel %vm1503_vm5, %v1495_v63, 0.0  ;;  %v3490_v10 = vpack.c.bf16 %v1495_v63, %v1495_v63  ;;  %v1509_v63 = vld [vmem:[#allocation2 + $0x10] sm:$0xc] }
 0x195   : > { %1505 = vst [vmem:[%s4455_s28] sm:$0x3] %v4463_v3 }
 0x196   : > { %3491 = vmatmul.mubr.msk.bf16.vlgmr.msra.gmra.mrb[12].mxu0 %vm3489_vm6, %v3490_v10  ;;  %3494 = vmatmul.mubr.msk.bf16.vlgmr.msra.gmra.mrb[12].mxu1 %vm3489_vm6, %v3490_v10  ;;  %vm2789_vm6 = vmand %vm2787_vm3, %vm2788_vm4 }
 0x197   : > { %1662 = vmatpush1.bf16.msra.mxu0 %v4264_v55  ;;  %1703 = vmatpush1.bf16.msra.mxu1 %v4267_v56  ;;  %v2790_v25 = vsel %vm2789_vm6, 1, %v4064_v0 }
 0x198   : > { %1663 = vmatprep.subr.bf16.mxu0 %v4272_v57  ;;  %1704 = vmatprep.subr.bf16.mxu1 %v4275_v58 }
 0x199   : > { %1693 = vmatprep.mubr.bf16.mxu0 %v4064_v0  ;;  %1734 = vmatprep.mubr.bf16.mxu1 %v4064_v0 }
 0x19a   : > { %2792 = vperm.xlu1 %3591, %v2790_v25  }
 0x19b   : > { %1664 = vmatpush1.bf16.msra.mxu0 %v4278_v59  ;;  %1705 = vmatpush1.bf16.msra.mxu1 %v4283_v60 }
 0x19c   : > { %1665 = vmatprep.subr.bf16.mxu0 %v4291_v1  ;;  %1706 = vmatprep.subr.bf16.mxu1 %v4294_v2 }
 0x19e   : > { %3090 = vperm.xlu1 %3591, %v3088_v30   ;;  %v1506_v30 = vsel %vm1503_vm5, %v4446_v53, 0.0 }
 0x19f   : > { %1666 = vmatpush1.bf16.msra.mxu0 %v4303_v4  ;;  %1707 = vmatpush1.bf16.msra.mxu1 %v4306_v5 }
 0x1a0   : > { %1667 = vmatprep.subr.bf16.mxu0 %v4311_v6  ;;  %1708 = vmatprep.subr.bf16.mxu1 %v4314_v7 }
 0x1a3   : > { %1668 = vmatpush1.bf16.msra.mxu0 %v4321_v8  ;;  %1709 = vmatpush1.bf16.msra.mxu1 %v4324_v9 }
 0x1a4   : > { %1669 = vmatprep.subr.bf16.mxu0 %v4330_v11  ;;  %1710 = vmatprep.subr.bf16.mxu1 %v4333_v12 }
 0x1a7   : > { %1670 = vmatpush1.bf16.msra.mxu0 %v4342_v13  ;;  %1711 = vmatpush1.bf16.msra.mxu1 %v4345_v14 }
 0x1a8   : > { %1671 = vmatprep.subr.bf16.mxu0 %v4351_v16  ;;  %1712 = vmatprep.subr.bf16.mxu1 %v4354_v17 }
 0x1ab   : > { %1672 = vmatpush1.bf16.msra.mxu0 %v4361_v18  ;;  %1713 = vmatpush1.bf16.msra.mxu1 %v4364_v19 }
 0x1ac   : > { %1673 = vmatprep.subr.bf16.mxu0 %v4370_v21  ;;  %1714 = vmatprep.subr.bf16.mxu1 %v4373_v22 }
 0x1af   : > { %1674 = vmatpush1.bf16.msra.mxu0 %v4378_v23  ;;  %1715 = vmatpush1.bf16.msra.mxu1 %v4381_v24 }
 0x1b0   : > { %1675 = vmatprep.subr.bf16.mxu0 %v4387_v26  ;;  %1716 = vmatprep.subr.bf16.mxu1 %v4390_v27 }
 0x1b3   : > { %1676 = vmatpush1.bf16.msra.mxu0 %v4395_v28  ;;  %1717 = vmatpush1.bf16.msra.mxu1 %v4398_v29 }
 0x1b4   : > { %1810 = vmatprep.subr.bf16.mxu0 %v4255_v51  ;;  %1851 = vmatprep.subr.bf16.mxu1 %v4258_v52 }
 0x269   : > { %v1546_v39 = vpop.f32.mrb[12].mxu0  ;;  %v1587_v40 = vpop.f32.mrb[12].mxu1 }
 0x26a   : > { %v1598_v31 = vrot.slane %v1546_v39, 6  ;;  %v1548_v32 = vpop.f32.mrb[13].mxu0  ;;  %v1589_v33 = vpop.f32.mrb[13].mxu1  ;;  %v1600_v61 = vrot.slane %v1587_v40, 6 }
 0x26b   : > { %v1599_v35 = vrot.slane %v1548_v32, 6  ;;  %v1550_v36 = vpop.f32.mrb[14].mxu0  ;;  %v1591_v41 = vpop.f32.mrb[14].mxu1  ;;  %v1601_v49 = vrot.slane %v1589_v33, 6  ;;  %v1630_v33 = vrot.slane %v1506_v30, 6 }
 0x26c   : > { %v1606_v43 = vadd.f32 %v1598_v31, %v1507_v34  ;;  %v1551_v44 = vpop.f32.mrb[15].mxu0  ;;  %v1592_v45 = vpop.f32.mrb[15].mxu1  ;;  %v1608_v37 = vadd.f32 %v1600_v61, %v1509_v63 }
 0x26d   : > { %v1607_v46 = vadd.f32 %v1599_v35, %v1508_v42  ;;  %v1609_v54 = vadd.f32 %v1601_v49, %v1510_v50 }
 0x26e   : > { %v3495_v47 = vmul.f32 -1.442695, %v1606_v43  ;;  %v1643_v43 = vpop.permute.xlu0 %1642 }
 0x26f   : > { %v3496_v48 = vmul.f32 -1.442695, %v1607_v46  ;;  %v3497_v10 = vmul.f32 -1.442695, %v1609_v54  ;;  %vm1644_vm10 = vcmp.eq.s32.totalorder %v1643_v43, 1 }
 0x270   : > { %3800 = vpow2.f32 %v3495_v47 }
 0x271   : > { %3802 = vpow2.f32 %v3496_v48 }
 0x272   : > { %3804 = vpow2.f32 %v3497_v10  ;;  %v1656_v10 = vld [vmem:[#allocation2] sm:$0x30] }
 0x273   : > { %3806 = vtanh.f32 %v1608_v37 }
 0x27a   : > { %v3801_v38 = vpop.eup %3800 }
 0x27b   : > { %v3803_v15 = vpop.eup %3802  ;;  %v1613_v20 = vadd.f32 1.0, %v3801_v38 }
 0x27c   : > { %v1619_v25 = vadd.f32 1.0, %v3803_v15  ;;  %v3805_v39 = vpop.eup %3804 }
 0x27d   : > { %3808 = vrcp.f32 %v1613_v20  ;;  %v3807_v31 = vpop.eup %3806  ;;  %v1626_v35 = vadd.f32 1.0, %v3805_v39 }
 0x27e   : > { %3810 = vrcp.f32 %v1619_v25  ;;  %v1657_v25 = vld [vmem:[#allocation2 + $0x8] sm:$0x30] }
 0x27f   : > { %3812 = vrcp.f32 %v1626_v35 }
 0x287   : > { %v3809_v32 = vpop.eup %3808 }
 0x288   : > { %v3811_v40 = vpop.eup %3810  ;;  %v1633_v34 = vmul.f32 %v3809_v32, %v3807_v31 }
 0x289   : > { %v1632_v36 = vmul.f32 %v3811_v40, %v1630_v33  ;;  %v3813_v45 = vpop.eup %3812 }
 0x28b   : > { %v1634_v41 = vadd.f32 %v1633_v34, %v1632_v36  ;;  %v1659_v34 = vld [vmem:[#allocation2 + $0x18] sm:$0x30] }
 0x28d   : > { %3814 = vtanh.f32 %v1634_v41  ;;  %v1653_v42 = vrot.slane %v1634_v41, 2  ;;  %v1658_v41 = vld [vmem:[#allocation2 + $0x10] sm:$0x30] }
 0x28f   : > { %v4522_v44 = vsel %vm1644_vm10, %v1653_v42, %v1506_v30 }
 0x297   : > { %v3815_v62 = vpop.eup %3814 }
 0x298   : > { %v1636_v53 = vmul.f32 %v3815_v62, %v3813_v45 }
 0x29a   : > { %v1646_v46 = vrot.slane %v1636_v53, 2 }
 0x29c   : > { %v1648_v47 = vsel %vm1644_vm10, %v1646_v46, 0.0  ;;  %v4525_v48 = vsel %vm1644_vm10, %v1646_v46, %v4463_v3 }
 0x29d   : > { %3498 = vst [vmem:[%s4455_s28 + $0x2] sm:$0x3] %v1648_v47  ;;  %v1660_v49 = vpack.c.bf16 %v4525_v48, %v4525_v48 }
 0x29f   : > { %1694 = vmatmul.mubr.bf16.vlgmr.msra.gmra.mrb[16].mxu0 %v1660_v49  ;;  %1735 = vmatmul.mubr.bf16.vlgmr.msra.gmra.mrb[16].mxu1 %v1660_v49 }
 0x2a0   : > { %1811 = vmatpush1.bf16.msra.mxu0 %v4264_v55  ;;  %1852 = vmatpush1.bf16.msra.mxu1 %v4267_v56 }
 0x2a1   : > { %1812 = vmatprep.subr.bf16.mxu0 %v4272_v57  ;;  %1853 = vmatprep.subr.bf16.mxu1 %v4275_v58 }
 0x2a2   : > { %1842 = vmatprep.mubr.bf16.mxu0 %v4064_v0  ;;  %1883 = vmatprep.mubr.bf16.mxu1 %v4064_v0 }
 0x2a4   : > { %1813 = vmatpush1.bf16.msra.mxu0 %v4278_v59  ;;  %1854 = vmatpush1.bf16.msra.mxu1 %v4283_v60 }
 0x2a5   : > { %1814 = vmatprep.subr.bf16.mxu0 %v4291_v1  ;;  %1855 = vmatprep.subr.bf16.mxu1 %v4294_v2 }
 0x2a8   : > { %1815 = vmatpush1.bf16.msra.mxu0 %v4303_v4  ;;  %1856 = vmatpush1.bf16.msra.mxu1 %v4306_v5 }
 0x2a9   : > { %1816 = vmatprep.subr.bf16.mxu0 %v4311_v6  ;;  %1857 = vmatprep.subr.bf16.mxu1 %v4314_v7 }
 0x2ac   : > { %1817 = vmatpush1.bf16.msra.mxu0 %v4321_v8  ;;  %1858 = vmatpush1.bf16.msra.mxu1 %v4324_v9 }
 0x2ad   : > { %1818 = vmatprep.subr.bf16.mxu0 %v4330_v11  ;;  %1859 = vmatprep.subr.bf16.mxu1 %v4333_v12 }
 0x2b0   : > { %1819 = vmatpush1.bf16.msra.mxu0 %v4342_v13  ;;  %1860 = vmatpush1.bf16.msra.mxu1 %v4345_v14 }
 0x2b1   : > { %1820 = vmatprep.subr.bf16.mxu0 %v4351_v16  ;;  %1861 = vmatprep.subr.bf16.mxu1 %v4354_v17 }
 0x2b4   : > { %1821 = vmatpush1.bf16.msra.mxu0 %v4361_v18  ;;  %1862 = vmatpush1.bf16.msra.mxu1 %v4364_v19 }
 0x2b5   : > { %1822 = vmatprep.subr.bf16.mxu0 %v4370_v21  ;;  %1863 = vmatprep.subr.bf16.mxu1 %v4373_v22 }
 0x2b8   : > { %1823 = vmatpush1.bf16.msra.mxu0 %v4378_v23  ;;  %1864 = vmatpush1.bf16.msra.mxu1 %v4381_v24 }
 0x2b9   : > { %1824 = vmatprep.subr.bf16.mxu0 %v4387_v26  ;;  %1865 = vmatprep.subr.bf16.mxu1 %v4390_v27 }
 0x2bc   : > { %1825 = vmatpush1.bf16.msra.mxu0 %v4395_v28  ;;  %1866 = vmatpush1.bf16.msra.mxu1 %v4398_v29 }
 0x2bd   : > { %1959 = vmatprep.subr.bf16.mxu0 %v4255_v51  ;;  %2000 = vmatprep.subr.bf16.mxu1 %v4258_v52 }
 0x372   : > { %v1695_v3 = vpop.f32.mrb[16].mxu0  ;;  %v1736_v50 = vpop.f32.mrb[16].mxu1 }
 0x373   : > { %v1747_v54 = vrot.slane %v1695_v3, 4  ;;  %v1697_v61 = vpop.f32.mrb[17].mxu0  ;;  %v1738_v63 = vpop.f32.mrb[17].mxu1  ;;  %v1749_v36 = vrot.slane %v1736_v50, 4 }
 0x374   : > { %v1748_v37 = vrot.slane %v1697_v61, 4  ;;  %v1699_v38 = vpop.f32.mrb[18].mxu0  ;;  %v1740_v15 = vpop.f32.mrb[18].mxu1  ;;  %v1750_v40 = vrot.slane %v1738_v63, 4 }
 0x375   : > { %v1755_v20 = vadd.f32 %v1747_v54, %v1656_v10  ;;  %v1700_v30 = vpop.f32.mrb[19].mxu0  ;;  %v1741_v39 = vpop.f32.mrb[19].mxu1  ;;  %v1757_v42 = vadd.f32 %v1749_v36, %v1658_v41  ;;  %v1779_v54 = vrot.slane %v4522_v44, 4 }
 0x376   : > { %v1756_v31 = vadd.f32 %v1748_v37, %v1657_v25  ;;  %v1758_v35 = vadd.f32 %v1750_v40, %v1659_v34  ;;  %v1792_v37 = vpop.permute.xlu1 %1791 }
 0x377   : > { %v3499_v32 = vmul.f32 -1.442695, %v1755_v20  ;;  %vm1793_vm5 = vcmp.eq.s32.totalorder %v1792_v37, 1 }
 0x378   : > { %v3500_v33 = vmul.f32 -1.442695, %v1756_v31  ;;  %v3501_v43 = vmul.f32 -1.442695, %v1758_v35 }
 0x379   : > { %3816 = vpow2.f32 %v3499_v32 }
 0x37a   : > { %3818 = vpow2.f32 %v3500_v33 }
 0x37b   : > { %3820 = vpow2.f32 %v3501_v43 }
 0x37c   : > { %3822 = vtanh.f32 %v1757_v42 }
 0x383   : > { %v3817_v45 = vpop.eup %3816 }
 0x384   : > { %v3819_v62 = vpop.eup %3818  ;;  %v1762_v53 = vadd.f32 1.0, %v3817_v45 }
 0x385   : > { %v1768_v46 = vadd.f32 1.0, %v3819_v62  ;;  %v3821_v47 = vpop.eup %3820 }
 0x386   : > { %3824 = vrcp.f32 %v1762_v53  ;;  %v3823_v49 = vpop.eup %3822  ;;  %v1775_v63 = vadd.f32 1.0, %v3821_v47 }
 0x387   : > { %3826 = vrcp.f32 %v1768_v46 }
 0x388   : > { %3828 = vrcp.f32 %v1775_v63 }
 0x390   : > { %v3825_v3 = vpop.eup %3824 }
 0x391   : > { %v3827_v61 = vpop.eup %3826  ;;  %v1782_v50 = vmul.f32 %v3825_v3, %v3823_v49  ;;  %v1941_v3 = vpop.permute.xlu1 %1940 }
 0x392   : > { %v1781_v10 = vmul.f32 %v3827_v61, %v1779_v54  ;;  %v3829_v25 = vpop.eup %3828  ;;  %vm1942_vm11 = vcmp.eq.s32.totalorder %v1941_v3, 1 }
 0x394   : > { %v1783_v38 = vadd.f32 %v1782_v50, %v1781_v10 }
 0x396   : > { %3830 = vtanh.f32 %v1783_v38  ;;  %v1802_v15 = vrot.slane %v1783_v38, 4 }
 0x398   : > { %v4566_v20 = vsel %vm1793_vm5, %v1802_v15, %v4522_v44 }
 0x399   : > { %v1928_v45 = vrot.slane %v4566_v20, 2 }
 0x3a0   : > { %v3831_v30 = vpop.eup %3830 }
 0x3a1   : > { %v1785_v39 = vmul.f32 %v3831_v30, %v3829_v25  ;;  %v4623_v30 = vld [vmem:[%s4117_s27 + $0x8] ss:$16 sps:$4 sm:$0xff]  }
 0x3a3   : > { %v1795_v31 = vrot.slane %v1785_v39, 4  ;;  %v4627_v39 = vld [vmem:[%s4117_s27 + $0x24] ss:$16 sps:$4 sm:$0xff]  }
 0x3a5   : > { %v1797_v32 = vsel %vm1793_vm5, %v1795_v31, 0.0  ;;  %v4569_v33 = vsel %vm1793_vm5, %v1795_v31, %v4525_v48  ;;  %v4631_v31 = vld [vmem:[%s4117_s27 + $0x2c] ss:$16 sps:$4 sm:$0xff]  }
 0x3a6   : > { %3502 = vst [vmem:[%s4455_s28 + $0x4] sm:$0x3] %v1797_v32  ;;  %v1809_v40 = vpack.c.bf16 %v4569_v33, %v4569_v33  ;;  %v4637_v32 = vld [vmem:[%s4117_s27 + $0x20] ss:$16 sps:$4 sm:$0xff]  }
 0x3a8   : > { %1843 = vmatmul.mubr.bf16.vlgmr.msra.gmra.mrb[20].mxu0 %v1809_v40  ;;  %1884 = vmatmul.mubr.bf16.vlgmr.msra.gmra.mrb[20].mxu1 %v1809_v40  ;;  %v4645_v40 = vld [vmem:[%s4117_s27 + $0x44] ss:$16 sps:$4 sm:$0xff]  }
 0x3a9   : > { %1960 = vmatpush1.bf16.msra.mxu0 %v4264_v55  ;;  %2001 = vmatpush1.bf16.msra.mxu1 %v4267_v56 }
 0x3aa   : > { %1961 = vmatprep.subr.bf16.mxu0 %v4272_v57  ;;  %2002 = vmatprep.subr.bf16.mxu1 %v4275_v58 }
 0x3ab   : > { %1991 = vmatprep.mubr.bf16.mxu0 %v4064_v0  ;;  %2032 = vmatprep.mubr.bf16.mxu1 %v4064_v0 }
 0x3ad   : > { %1962 = vmatpush1.bf16.msra.mxu0 %v4278_v59  ;;  %2003 = vmatpush1.bf16.msra.mxu1 %v4283_v60  ;;  %v1805_v60 = vld [vmem:[#allocation2] sm:$0xc0] }
 0x3ae   : > { %1963 = vmatprep.subr.bf16.mxu0 %v4291_v1  ;;  %2004 = vmatprep.subr.bf16.mxu1 %v4294_v2 }
 0x3b1   : > { %1964 = vmatpush1.bf16.msra.mxu0 %v4303_v4  ;;  %2005 = vmatpush1.bf16.msra.mxu1 %v4306_v5 }
 0x3b2   : > { %1965 = vmatprep.subr.bf16.mxu0 %v4311_v6  ;;  %2006 = vmatprep.subr.bf16.mxu1 %v4314_v7  ;;  %v1806_v6 = vld [vmem:[#allocation2 + $0x8] sm:$0xc0] }
 0x3b5   : > { %1966 = vmatpush1.bf16.msra.mxu0 %v4321_v8  ;;  %2007 = vmatpush1.bf16.msra.mxu1 %v4324_v9 }
 0x3b6   : > { %1967 = vmatprep.subr.bf16.mxu0 %v4330_v11  ;;  %2008 = vmatprep.subr.bf16.mxu1 %v4333_v12 }
 0x3b9   : > { %1968 = vmatpush1.bf16.msra.mxu0 %v4342_v13  ;;  %2009 = vmatpush1.bf16.msra.mxu1 %v4345_v14 }
 0x3ba   : > { %1969 = vmatprep.subr.bf16.mxu0 %v4351_v16  ;;  %2010 = vmatprep.subr.bf16.mxu1 %v4354_v17  ;;  %v1807_v16 = vld [vmem:[#allocation2 + $0x10] sm:$0xc0] }
 0x3bd   : > { %1970 = vmatpush1.bf16.msra.mxu0 %v4361_v18  ;;  %2011 = vmatpush1.bf16.msra.mxu1 %v4364_v19 }
 0x3be   : > { %1971 = vmatprep.subr.bf16.mxu0 %v4370_v21  ;;  %2012 = vmatprep.subr.bf16.mxu1 %v4373_v22 }
 0x3c1   : > { %1972 = vmatpush1.bf16.msra.mxu0 %v4378_v23  ;;  %2013 = vmatpush1.bf16.msra.mxu1 %v4381_v24 }
 0x3c2   : > { %1973 = vmatprep.subr.bf16.mxu0 %v4387_v26  ;;  %2014 = vmatprep.subr.bf16.mxu1 %v4390_v27 }
 0x3c5   : > { %1974 = vmatpush1.bf16.msra.mxu0 %v4395_v28  ;;  %2015 = vmatpush1.bf16.msra.mxu1 %v4398_v29 }
 0x3c6   : > { %2087 = vmatprep.subr.bf16.mxu0 %v4255_v51  ;;  %2128 = vmatprep.subr.bf16.mxu1 %v4258_v52  ;;  %v1808_v51 = vld [vmem:[#allocation2 + $0x18] sm:$0xc0] }
 0x47b   : > { %v1844_v55 = vpop.f32.mrb[20].mxu0  ;;  %v1885_v56 = vpop.f32.mrb[20].mxu1 }
 0x47c   : > { %v1896_v57 = vrot.slane %v1844_v55, 2  ;;  %v1846_v58 = vpop.f32.mrb[21].mxu0  ;;  %v1887_v59 = vpop.f32.mrb[21].mxu1  ;;  %v1898_v14 = vrot.slane %v1885_v56, 2  ;;  %v4649_v55 = vld [vmem:[%s4117_s27 + $0x4c] ss:$16 sps:$4 sm:$0xff]  }
 0x47d   : > { %v1897_v1 = vrot.slane %v1846_v58, 2  ;;  %v1848_v2 = vpop.f32.mrb[22].mxu0  ;;  %v1889_v4 = vpop.f32.mrb[22].mxu1  ;;  %v1899_v13 = vrot.slane %v1887_v59, 2  ;;  %v4653_v56 = vld [vmem:[%s4117_s27 + $0x40] ss:$16 sps:$4 sm:$0xff]  }
 0x47e   : > { %v1904_v5 = vadd.f32 %v1896_v57, %v1805_v60  ;;  %v1849_v7 = vpop.f32.mrb[23].mxu0  ;;  %v1890_v8 = vpop.f32.mrb[23].mxu1  ;;  %v1906_v44 = vadd.f32 %v1898_v14, %v1807_v16  ;;  %v4657_v57 = vld [vmem:[%s4117_s27 + $0x48] ss:$16 sps:$4 sm:$0xff]   ;;  %v4661_v58 = vld [vmem:[%s4117_s27 + $0x64] ss:$16 sps:$4 sm:$0xff]  }
 0x47f   : > { %v1905_v9 = vadd.f32 %v1897_v1, %v1806_v6  ;;  %v1907_v52 = vadd.f32 %v1899_v13, %v1808_v51  ;;  %v4665_v59 = vld [vmem:[%s4117_s27 + $0x6c] ss:$16 sps:$4 sm:$0xff]   ;;  %v4669_v60 = vld [vmem:[%s4117_s27 + $0x60] ss:$16 sps:$4 sm:$0xff]   ;;  %v4673_v1 = vld [vmem:[%s4117_s27 + $0x68] ss:$16 sps:$4 sm:$0xff]  }
 0x480   : > { %v3503_v11 = vmul.f32 -1.442695, %v1904_v5  ;;  %v4677_v2 = vld [vmem:[%s4117_s27 + $0x84] ss:$16 sps:$4 sm:$0xff]   ;;  %v4681_v4 = vld [vmem:[%s4117_s27 + $0x8c] ss:$16 sps:$4 sm:$0xff]  }
 0x481   : > { %v3504_v12 = vmul.f32 -1.442695, %v1905_v9  ;;  %v3505_v17 = vmul.f32 -1.442695, %v1907_v52  ;;  %v4685_v5 = vld [vmem:[%s4117_s27 + $0x80] ss:$16 sps:$4 sm:$0xff]  }
 0x482   : > { %3832 = vpow2.f32 %v3503_v11  ;;  %v4689_v6 = vld [vmem:[%s4117_s27 + $0x88] ss:$16 sps:$4 sm:$0xff]   ;;  %v4693_v7 = vld [vmem:[%s4117_s27 + $0xa4] ss:$16 sps:$4 sm:$0xff]   ;;  %v4697_v8 = vld [vmem:[%s4117_s27 + $0xac] ss:$16 sps:$4 sm:$0xff]  }
 0x483   : > { %3834 = vpow2.f32 %v3504_v12  ;;  %v4711_v9 = vld [vmem:[%s4117_s27 + $0x4] ss:$16 sps:$4 sm:$0xff]   ;;  %v1957_v14 = vld [vmem:[#allocation2 + $0x38] sm:$0x3] }
 0x484   : > { %3836 = vpow2.f32 %v3505_v17  ;;  %v1956_v17 = vld [vmem:[#allocation2 + $0x30] sm:$0x3] }
 0x485   : > { %3838 = vtanh.f32 %v1906_v44 }
 0x48c   : > { %v3833_v48 = vpop.eup %3832 }
 0x48d   : > { %v3835_v34 = vpop.eup %3834  ;;  %v1911_v35 = vadd.f32 1.0, %v3833_v48 }
 0x48e   : > { %v1917_v36 = vadd.f32 1.0, %v3835_v34  ;;  %v3837_v41 = vpop.eup %3836 }
 0x48f   : > { %3840 = vrcp.f32 %v1911_v35  ;;  %v3839_v43 = vpop.eup %3838  ;;  %v1924_v46 = vadd.f32 1.0, %v3837_v41 }
 0x490   : > { %3842 = vrcp.f32 %v1917_v36 }
 0x491   : > { %3844 = vrcp.f32 %v1924_v46 }
 0x499   : > { %v3841_v42 = vpop.eup %3840 }
 0x49a   : > { %v3843_v62 = vpop.eup %3842  ;;  %v1931_v53 = vmul.f32 %v3841_v42, %v3839_v43 }
 0x49b   : > { %v1930_v47 = vmul.f32 %v3843_v62, %v1928_v45  ;;  %v3845_v63 = vpop.eup %3844 }
 0x49d   : > { %v1932_v49 = vadd.f32 %v1931_v53, %v1930_v47 }
 0x49f   : > { %3846 = vtanh.f32 %v1932_v49  ;;  %v1951_v54 = vrot.slane %v1932_v49, 6  ;;  %v2075_v49 = vpop.permute.xlu0 %2074 }
 0x4a0   : > { %vm2076_vm12 = vcmp.eq.s32.totalorder %v2075_v49, 1 }
 0x4a1   : > { %v4610_v61 = vsel %vm1942_vm11, %v1951_v54, %v4566_v20  ;;  %v4619_v20 = vld [vmem:[%s4117_s27] ss:$16 sps:$4 sm:$0xff]  }
 0x4a9   : > { %v3847_v50 = vpop.eup %3846 }
 0x4aa   : > { %v1934_v10 = vmul.f32 %v3847_v50, %v3845_v63 }
 0x4ac   : > { %v1944_v37 = vrot.slane %v1934_v10, 6 }
 0x4ae   : > { %v1946_v38 = vsel %vm1942_vm11, %v1944_v37, 0.0  ;;  %v4613_v15 = vsel %vm1942_vm11, %v1944_v37, %v4569_v33  ;;  %v4641_v33 = vld [vmem:[%s4117_s27 + $0x28] ss:$16 sps:$4 sm:$0xff]  }
 0x4af   : > { %3506 = vst [vmem:[%s4455_s28 + $0x6] sm:$0x3] %v1946_v38  ;;  %v1958_v25 = vpack.c.bf16 %v4613_v15, %v4613_v15 }
 0x4b1   : > { %1992 = vmatmul.mubr.bf16.vlgmr.msra.gmra.mrb[24].mxu0 %v1958_v25  ;;  %2033 = vmatmul.mubr.bf16.vlgmr.msra.gmra.mrb[24].mxu1 %v1958_v25 }
 0x4b2   : > { %2088 = vmatpush1.bf16.msra.mxu0 %v4619_v20  ;;  %2129 = vmatpush1.bf16.msra.mxu1 %v4623_v30 }
 0x4b3   : > { %2089 = vmatprep.subr.bf16.mxu0 %v4627_v39  ;;  %2130 = vmatprep.subr.bf16.mxu1 %v4631_v31 }
 0x4b4   : > { %2119 = vmatprep.mubr.bf16.mxu0 %v4064_v0  ;;  %2160 = vmatprep.mubr.bf16.mxu1 %v4064_v0 }
 0x4b6   : > { %2090 = vmatpush1.bf16.msra.mxu0 %v4637_v32  ;;  %2131 = vmatpush1.bf16.msra.mxu1 %v4641_v33 }
 0x4b7   : > { %2091 = vmatprep.subr.bf16.mxu0 %v4645_v40  ;;  %2132 = vmatprep.subr.bf16.mxu1 %v4649_v55 }
 0x4ba   : > { %2092 = vmatpush1.bf16.msra.mxu0 %v4653_v56  ;;  %2133 = vmatpush1.bf16.msra.mxu1 %v4657_v57 }
 0x4bb   : > { %2093 = vmatprep.subr.bf16.mxu0 %v4661_v58  ;;  %2134 = vmatprep.subr.bf16.mxu1 %v4665_v59 }
 0x4be   : > { %2094 = vmatpush1.bf16.msra.mxu0 %v4669_v60  ;;  %2135 = vmatpush1.bf16.msra.mxu1 %v4673_v1 }
 0x4bf   : > { %2095 = vmatprep.subr.bf16.mxu0 %v4677_v2  ;;  %2136 = vmatprep.subr.bf16.mxu1 %v4681_v4 }
 0x4c2   : > { %2096 = vmatpush1.bf16.msra.mxu0 %v4685_v5  ;;  %2137 = vmatpush1.bf16.msra.mxu1 %v4689_v6 }
 0x4c3   : > { %2097 = vmatprep.subr.bf16.mxu0 %v4693_v7  ;;  %2138 = vmatprep.subr.bf16.mxu1 %v4697_v8 }
 0x4c6   : > { %2098 = vmatpush1.bf16.msra.mxu0 %v4361_v18  ;;  %2139 = vmatpush1.bf16.msra.mxu1 %v4364_v19  ;;  %v4715_v18 = vld [vmem:[%s4117_s27 + $0xc] ss:$16 sps:$4 sm:$0xff]   ;;  %v1954_v19 = vld [vmem:[#allocation2 + $0x20] sm:$0x3] }
 0x4c7   : > { %2099 = vmatprep.subr.bf16.mxu0 %v4370_v21  ;;  %2140 = vmatprep.subr.bf16.mxu1 %v4373_v22 }
 0x4ca   : > { %2100 = vmatpush1.bf16.msra.mxu0 %v4378_v23  ;;  %2141 = vmatpush1.bf16.msra.mxu1 %v4381_v24  ;;  %v1955_v24 = vld [vmem:[#allocation2 + $0x28] sm:$0x3] }
 0x4cb   : > { %2101 = vmatprep.subr.bf16.mxu0 %v4387_v26  ;;  %2142 = vmatprep.subr.bf16.mxu1 %v4390_v27 }
 0x4ce   : > { %2102 = vmatpush1.bf16.msra.mxu0 %v4395_v28  ;;  %2143 = vmatpush1.bf16.msra.mxu1 %v4398_v29 }
 0x4cf   : > { %2236 = vmatprep.subr.bf16.mxu0 %v4711_v9  ;;  %2277 = vmatprep.subr.bf16.mxu1 %v4715_v18 }
 0x584   : > { %v1993_v21 = vpop.f32.mrb[24].mxu0  ;;  %v2034_v22 = vpop.f32.mrb[24].mxu1 }
 0x585   : > { %v2041_v23 = vadd.f32 %v1993_v21, %v1954_v19  ;;  %v1995_v26 = vpop.f32.mrb[25].mxu0  ;;  %v2036_v11 = vpop.f32.mrb[25].mxu1  ;;  %v2043_v48 = vadd.f32 %v2034_v22, %v1956_v17  ;;  %v4759_v19 = vld [vmem:[%s4117_s27 + $0xc4] ss:$16 sps:$4 sm:$0xff]   ;;  %v4763_v21 = vld [vmem:[%s4117_s27 + $0xcc] ss:$16 sps:$4 sm:$0xff]  }
 0x586   : > { %v2042_v27 = vadd.f32 %v1995_v26, %v1955_v24  ;;  %v1997_v12 = vpop.f32.mrb[26].mxu0  ;;  %v2038_v28 = vpop.f32.mrb[26].mxu1  ;;  %v2044_v16 = vadd.f32 %v2036_v11, %v1957_v14  ;;  %v4767_v22 = vld [vmem:[%s4117_s27 + $0xc0] ss:$16 sps:$4 sm:$0xff]   ;;  %v4775_v24 = vld [vmem:[%s4117_s27 + $0xe4] ss:$16 sps:$4 sm:$0xff]  }
 0x587   : > { %v3507_v13 = vmul.f32 -1.442695, %v2041_v23  ;;  %v1998_v29 = vpop.f32.mrb[27].mxu0  ;;  %v2039_v51 = vpop.f32.mrb[27].mxu1  ;;  %v4771_v23 = vld [vmem:[%s4117_s27 + $0xc8] ss:$16 sps:$4 sm:$0xff]  }
 0x588   : > { %v3508_v52 = vmul.f32 -1.442695, %v2042_v27  ;;  %v3509_v44 = vmul.f32 -1.442695, %v2044_v16  ;;  %v4779_v26 = vld [vmem:[%s4117_s27 + $0xec] ss:$16 sps:$4 sm:$0xff]  }
 0x589   : > { %3848 = vpow2.f32 %v3507_v13  ;;  %v4783_v11 = vld [vmem:[%s4117_s27 + $0xe0] ss:$16 sps:$4 sm:$0xff]   ;;  %v4787_v27 = vld [vmem:[%s4117_s27 + $0xe8] ss:$16 sps:$4 sm:$0xff]  }
 0x58a   : > { %3850 = vpow2.f32 %v3508_v52  ;;  %v2082_v52 = vld [vmem:[#allocation2 + $0x20] sm:$0xc] }
 0x58b   : > { %3852 = vpow2.f32 %v3509_v44 }
 0x58c   : > { %3854 = vtanh.f32 %v2043_v48  ;;  %v2083_v48 = vld [vmem:[#allocation2 + $0x28] sm:$0xc] }
 0x593   : > { %v3849_v34 = vpop.eup %3848 }
 0x594   : > { %v3851_v35 = vpop.eup %3850  ;;  %v2048_v36 = vadd.f32 1.0, %v3849_v34 }
 0x595   : > { %v2054_v41 = vadd.f32 1.0, %v3851_v35  ;;  %v3853_v43 = vpop.eup %3852 }
 0x596   : > { %3856 = vrcp.f32 %v2048_v36  ;;  %v3855_v42 = vpop.eup %3854  ;;  %v2061_v46 = vadd.f32 1.0, %v3853_v43 }
 0x597   : > { %3858 = vrcp.f32 %v2054_v41 }
 0x598   : > { %3860 = vrcp.f32 %v2061_v46  ;;  %v2084_v46 = vld [vmem:[#allocation2 + $0x30] sm:$0xc] }
 0x5a0   : > { %v3857_v45 = vpop.eup %3856 }
 0x5a1   : > { %v3859_v62 = vpop.eup %3858  ;;  %v2065_v53 = vmul.f32 %v3857_v45, %v3855_v42  ;;  %v2085_v45 = vld [vmem:[#allocation2 + $0x38] sm:$0xc] }
 0x5a2   : > { %v2064_v47 = vmul.f32 %v3859_v62, %v4610_v61  ;;  %v3861_v63 = vpop.eup %3860 }
 0x5a4   : > { %v2066_v3 = vadd.f32 %v2065_v53, %v2064_v47 }
 0x5a6   : > { %3862 = vtanh.f32 %v2066_v3  ;;  %v4720_v54 = vsel %vm2076_vm12, %v2066_v3, %v4610_v61  ;;  %v4751_v61 = vld [vmem:[%s4117_s27 + $0xa0] ss:$16 sps:$4 sm:$0xff]  }
 0x5b0   : > { %v3863_v50 = vpop.eup %3862 }
 0x5b1   : > { %v2068_v10 = vmul.f32 %v3863_v50, %v3861_v63 }
 0x5b3   : > { %v2077_v37 = vsel %vm2076_vm12, %v2068_v10, 0.0  ;;  %v4723_v38 = vsel %vm2076_vm12, %v2068_v10, %v4613_v15  ;;  %v4755_v15 = vld [vmem:[%s4117_s27 + $0xa8] ss:$16 sps:$4 sm:$0xff]  }
 0x5b4   : > { %3510 = vst [vmem:[%s4455_s28 + $0x8] sm:$0x3] %v2077_v37  ;;  %v2086_v25 = vpack.c.bf16 %v4723_v38, %v4723_v38 }
 0x5b6   : > { %2120 = vmatmul.mubr.bf16.vlgmr.msra.gmra.mrb[28].mxu0 %v2086_v25  ;;  %2161 = vmatmul.mubr.bf16.vlgmr.msra.gmra.mrb[28].mxu1 %v2086_v25 }
 0x5b7   : > { %2237 = vmatpush1.bf16.msra.mxu0 %v4619_v20  ;;  %2278 = vmatpush1.bf16.msra.mxu1 %v4623_v30 }
 0x5b8   : > { %2238 = vmatprep.subr.bf16.mxu0 %v4627_v39  ;;  %2279 = vmatprep.subr.bf16.mxu1 %v4631_v31 }
 0x5b9   : > { %2268 = vmatprep.mubr.bf16.mxu0 %v4064_v0  ;;  %2309 = vmatprep.mubr.bf16.mxu1 %v4064_v0 }
 0x5bb   : > { %2239 = vmatpush1.bf16.msra.mxu0 %v4637_v32  ;;  %2280 = vmatpush1.bf16.msra.mxu1 %v4641_v33 }
 0x5bc   : > { %2240 = vmatprep.subr.bf16.mxu0 %v4645_v40  ;;  %2281 = vmatprep.subr.bf16.mxu1 %v4649_v55 }
 0x5bf   : > { %2241 = vmatpush1.bf16.msra.mxu0 %v4653_v56  ;;  %2282 = vmatpush1.bf16.msra.mxu1 %v4657_v57 }
 0x5c0   : > { %2242 = vmatprep.subr.bf16.mxu0 %v4661_v58  ;;  %2283 = vmatprep.subr.bf16.mxu1 %v4665_v59 }
 0x5c3   : > { %2243 = vmatpush1.bf16.msra.mxu0 %v4669_v60  ;;  %2284 = vmatpush1.bf16.msra.mxu1 %v4673_v1 }
 0x5c4   : > { %2244 = vmatprep.subr.bf16.mxu0 %v4677_v2  ;;  %2285 = vmatprep.subr.bf16.mxu1 %v4681_v4 }
 0x5c7   : > { %2245 = vmatpush1.bf16.msra.mxu0 %v4685_v5  ;;  %2286 = vmatpush1.bf16.msra.mxu1 %v4689_v6 }
 0x5c8   : > { %2246 = vmatprep.subr.bf16.mxu0 %v4693_v7  ;;  %2287 = vmatprep.subr.bf16.mxu1 %v4697_v8 }
 0x5cb   : > { %2247 = vmatpush1.bf16.msra.mxu0 %v4751_v61  ;;  %2288 = vmatpush1.bf16.msra.mxu1 %v4755_v15 }
 0x5cc   : > { %2248 = vmatprep.subr.bf16.mxu0 %v4759_v19  ;;  %2289 = vmatprep.subr.bf16.mxu1 %v4763_v21 }
 0x5cf   : > { %2249 = vmatpush1.bf16.msra.mxu0 %v4767_v22  ;;  %2290 = vmatpush1.bf16.msra.mxu1 %v4771_v23 }
 0x5d0   : > { %2250 = vmatprep.subr.bf16.mxu0 %v4775_v24  ;;  %2291 = vmatprep.subr.bf16.mxu1 %v4779_v26 }
 0x5d3   : > { %2251 = vmatpush1.bf16.msra.mxu0 %v4783_v11  ;;  %2292 = vmatpush1.bf16.msra.mxu1 %v4787_v27 }
 0x5d4   : > { %2385 = vmatprep.subr.bf16.mxu0 %v4711_v9  ;;  %2426 = vmatprep.subr.bf16.mxu1 %v4715_v18 }
 0x689   : > { %v2121_v12 = vpop.f32.mrb[28].mxu0  ;;  %v2162_v28 = vpop.f32.mrb[28].mxu1 }
 0x68a   : > { %v2173_v13 = vrot.slane %v2121_v12, 6  ;;  %v2123_v29 = vpop.f32.mrb[29].mxu0  ;;  %v2164_v51 = vpop.f32.mrb[29].mxu1  ;;  %v2175_v53 = vrot.slane %v2162_v28, 6 }
 0x68b   : > { %v2174_v14 = vrot.slane %v2123_v29, 6  ;;  %v2125_v16 = vpop.f32.mrb[30].mxu0  ;;  %v2166_v17 = vpop.f32.mrb[30].mxu1  ;;  %v2176_v42 = vrot.slane %v2164_v51, 6 }
 0x68c   : > { %v2181_v44 = vadd.f32 %v2173_v13, %v2082_v52  ;;  %v2126_v34 = vpop.f32.mrb[31].mxu0  ;;  %v2167_v35 = vpop.f32.mrb[31].mxu1  ;;  %v2183_v49 = vadd.f32 %v2175_v53, %v2084_v46  ;;  %v2205_v13 = vrot.slane %v4720_v54, 6  ;;  %v2231_v46 = vld [vmem:[#allocation2 + $0x20] sm:$0x30] }
 0x68d   : > { %v2182_v36 = vadd.f32 %v2174_v14, %v2083_v48  ;;  %v2184_v62 = vadd.f32 %v2176_v42, %v2085_v45  ;;  %v2218_v16 = vpop.permute.xlu1 %2217 }
 0x68e   : > { %v3511_v41 = vmul.f32 -1.442695, %v2181_v44  ;;  %vm2219_vm13 = vcmp.eq.s32.totalorder %v2218_v16, 1 }
 0x68f   : > { %v3512_v43 = vmul.f32 -1.442695, %v2182_v36  ;;  %v3513_v47 = vmul.f32 -1.442695, %v2184_v62 }
 0x690   : > { %3864 = vpow2.f32 %v3511_v41 }
 0x691   : > { %3866 = vpow2.f32 %v3512_v43 }
 0x692   : > { %3868 = vpow2.f32 %v3513_v47 }
 0x693   : > { %3870 = vtanh.f32 %v2183_v49 }
 0x69a   : > { %v3865_v3 = vpop.eup %3864 }
 0x69b   : > { %v3867_v63 = vpop.eup %3866  ;;  %v2188_v50 = vadd.f32 1.0, %v3865_v3 }
 0x69c   : > { %v2194_v10 = vadd.f32 1.0, %v3867_v63  ;;  %v3869_v37 = vpop.eup %3868 }
 0x69d   : > { %3872 = vrcp.f32 %v2188_v50  ;;  %v3871_v25 = vpop.eup %3870  ;;  %v2201_v28 = vadd.f32 1.0, %v3869_v37  ;;  %v2232_v50 = vld [vmem:[#allocation2 + $0x28] sm:$0x30] }
 0x69e   : > { %3874 = vrcp.f32 %v2194_v10 }
 0x69f   : > { %3876 = vrcp.f32 %v2201_v28 }
 0x6a7   : > { %v3873_v12 = vpop.eup %3872 }
 0x6a8   : > { %v3875_v29 = vpop.eup %3874  ;;  %v2208_v51 = vmul.f32 %v3873_v12, %v3871_v25 }
 0x6a9   : > { %v2207_v52 = vmul.f32 %v3875_v29, %v2205_v13  ;;  %v3877_v48 = vpop.eup %3876 }
 0x6ab   : > { %v2209_v14 = vadd.f32 %v2208_v51, %v2207_v52  ;;  %v2234_v51 = vld [vmem:[#allocation2 + $0x38] sm:$0x30] }
 0x6ad   : > { %3878 = vtanh.f32 %v2209_v14  ;;  %v2228_v17 = vrot.slane %v2209_v14, 2  ;;  %v2233_v14 = vld [vmem:[#allocation2 + $0x30] sm:$0x30] }
 0x6af   : > { %v4794_v44 = vsel %vm2219_vm13, %v2228_v17, %v4720_v54 }
 0x6b7   : > { %v3879_v34 = vpop.eup %3878 }
 0x6b8   : > { %v2211_v35 = vmul.f32 %v3879_v34, %v3877_v48 }
 0x6ba   : > { %v2221_v36 = vrot.slane %v2211_v35, 2 }
 0x6bc   : > { %v2223_v41 = vsel %vm2219_vm13, %v2221_v36, 0.0  ;;  %v4797_v43 = vsel %vm2219_vm13, %v2221_v36, %v4723_v38 }
 0x6bd   : > { %3514 = vst [vmem:[%s4455_s28 + $0xa] sm:$0x3] %v2223_v41  ;;  %v2235_v42 = vpack.c.bf16 %v4797_v43, %v4797_v43 }
 0x6bf   : > { %2269 = vmatmul.mubr.bf16.vlgmr.msra.gmra.mrb[32].mxu0 %v2235_v42  ;;  %2310 = vmatmul.mubr.bf16.vlgmr.msra.gmra.mrb[32].mxu1 %v2235_v42 }
 0x6c0   : > { %2386 = vmatpush1.bf16.msra.mxu0 %v4619_v20  ;;  %2427 = vmatpush1.bf16.msra.mxu1 %v4623_v30 }
 0x6c1   : > { %2387 = vmatprep.subr.bf16.mxu0 %v4627_v39  ;;  %2428 = vmatprep.subr.bf16.mxu1 %v4631_v31 }
 0x6c2   : > { %2417 = vmatprep.mubr.bf16.mxu0 %v4064_v0  ;;  %2458 = vmatprep.mubr.bf16.mxu1 %v4064_v0 }
 0x6c4   : > { %2388 = vmatpush1.bf16.msra.mxu0 %v4637_v32  ;;  %2429 = vmatpush1.bf16.msra.mxu1 %v4641_v33 }
 0x6c5   : > { %2389 = vmatprep.subr.bf16.mxu0 %v4645_v40  ;;  %2430 = vmatprep.subr.bf16.mxu1 %v4649_v55 }
 0x6c8   : > { %2390 = vmatpush1.bf16.msra.mxu0 %v4653_v56  ;;  %2431 = vmatpush1.bf16.msra.mxu1 %v4657_v57 }
 0x6c9   : > { %2391 = vmatprep.subr.bf16.mxu0 %v4661_v58  ;;  %2432 = vmatprep.subr.bf16.mxu1 %v4665_v59 }
 0x6cc   : > { %2392 = vmatpush1.bf16.msra.mxu0 %v4669_v60  ;;  %2433 = vmatpush1.bf16.msra.mxu1 %v4673_v1 }
 0x6cd   : > { %2393 = vmatprep.subr.bf16.mxu0 %v4677_v2  ;;  %2434 = vmatprep.subr.bf16.mxu1 %v4681_v4 }
 0x6d0   : > { %2394 = vmatpush1.bf16.msra.mxu0 %v4685_v5  ;;  %2435 = vmatpush1.bf16.msra.mxu1 %v4689_v6 }
 0x6d1   : > { %2395 = vmatprep.subr.bf16.mxu0 %v4693_v7  ;;  %2436 = vmatprep.subr.bf16.mxu1 %v4697_v8 }
 0x6d4   : > { %2396 = vmatpush1.bf16.msra.mxu0 %v4751_v61  ;;  %2437 = vmatpush1.bf16.msra.mxu1 %v4755_v15 }
 0x6d5   : > { %2397 = vmatprep.subr.bf16.mxu0 %v4759_v19  ;;  %2438 = vmatprep.subr.bf16.mxu1 %v4763_v21 }
 0x6d8   : > { %2398 = vmatpush1.bf16.msra.mxu0 %v4767_v22  ;;  %2439 = vmatpush1.bf16.msra.mxu1 %v4771_v23 }
 0x6d9   : > { %2399 = vmatprep.subr.bf16.mxu0 %v4775_v24  ;;  %2440 = vmatprep.subr.bf16.mxu1 %v4779_v26 }
 0x6dc   : > { %2400 = vmatpush1.bf16.msra.mxu0 %v4783_v11  ;;  %2441 = vmatpush1.bf16.msra.mxu1 %v4787_v27 }
 0x6dd   : > { %2534 = vmatprep.subr.bf16.mxu0 %v4711_v9  ;;  %2575 = vmatprep.subr.bf16.mxu1 %v4715_v18 }
 0x792   : > { %v2270_v54 = vpop.f32.mrb[32].mxu0  ;;  %v2311_v38 = vpop.f32.mrb[32].mxu1 }
 0x793   : > { %v2322_v45 = vrot.slane %v2270_v54, 4  ;;  %v2272_v62 = vpop.f32.mrb[33].mxu0  ;;  %v2313_v53 = vpop.f32.mrb[33].mxu1  ;;  %v2324_v52 = vrot.slane %v2311_v38, 4 }
 0x794   : > { %v2323_v47 = vrot.slane %v2272_v62, 4  ;;  %v2274_v49 = vpop.f32.mrb[34].mxu0  ;;  %v2315_v3 = vpop.f32.mrb[34].mxu1  ;;  %v2325_v29 = vrot.slane %v2313_v53, 4 }
 0x795   : > { %v2330_v63 = vadd.f32 %v2322_v45, %v2231_v46  ;;  %v2275_v10 = vpop.f32.mrb[35].mxu0  ;;  %v2316_v37 = vpop.f32.mrb[35].mxu1  ;;  %v2332_v17 = vadd.f32 %v2324_v52, %v2233_v14  ;;  %v2354_v45 = vrot.slane %v4794_v44, 4  ;;  %v2380_v14 = vld [vmem:[#allocation2 + $0x20] sm:$0xc0] }
 0x796   : > { %v2331_v25 = vadd.f32 %v2323_v47, %v2232_v50  ;;  %v2333_v28 = vadd.f32 %v2325_v29, %v2234_v51  ;;  %v2367_v49 = vpop.permute.xlu0 %2366 }
 0x797   : > { %v3515_v12 = vmul.f32 -1.442695, %v2330_v63  ;;  %vm2368_vm14 = vcmp.eq.s32.totalorder %v2367_v49, 1 }
 0x798   : > { %v3516_v13 = vmul.f32 -1.442695, %v2331_v25  ;;  %v3517_v16 = vmul.f32 -1.442695, %v2333_v28 }
 0x799   : > { %3880 = vpow2.f32 %v3515_v12 }
 0x79a   : > { %3882 = vpow2.f32 %v3516_v13 }
 0x79b   : > { %3884 = vpow2.f32 %v3517_v16 }
 0x79c   : > { %3886 = vtanh.f32 %v2332_v17 }
 0x7a3   : > { %v3881_v48 = vpop.eup %3880 }
 0x7a4   : > { %v3883_v34 = vpop.eup %3882  ;;  %v2337_v35 = vadd.f32 1.0, %v3881_v48 }
 0x7a5   : > { %v2343_v36 = vadd.f32 1.0, %v3883_v34  ;;  %v3885_v41 = vpop.eup %3884 }
 0x7a6   : > { %3888 = vrcp.f32 %v2337_v35  ;;  %v3887_v42 = vpop.eup %3886  ;;  %v2350_v38 = vadd.f32 1.0, %v3885_v41  ;;  %v2381_v35 = vld [vmem:[#allocation2 + $0x28] sm:$0xc0] }
 0x7a7   : > { %3890 = vrcp.f32 %v2343_v36 }
 0x7a8   : > { %3892 = vrcp.f32 %v2350_v38 }
 0x7b0   : > { %v3889_v54 = vpop.eup %3888 }
 0x7b1   : > { %v3891_v62 = vpop.eup %3890  ;;  %v2357_v53 = vmul.f32 %v3889_v54, %v3887_v42 }
 0x7b2   : > { %v2356_v46 = vmul.f32 %v3891_v62, %v2354_v45  ;;  %v3893_v50 = vpop.eup %3892 }
 0x7b4   : > { %v2358_v47 = vadd.f32 %v2357_v53, %v2356_v46  ;;  %v2383_v53 = vld [vmem:[#allocation2 + $0x38] sm:$0xc0] }
 0x7b6   : > { %3894 = vtanh.f32 %v2358_v47  ;;  %v2377_v3 = vrot.slane %v2358_v47, 4  ;;  %v2382_v47 = vld [vmem:[#allocation2 + $0x30] sm:$0xc0] }
 0x7b8   : > { %v4838_v63 = vsel %vm2368_vm14, %v2377_v3, %v4794_v44 }
 0x7c0   : > { %v3895_v10 = vpop.eup %3894 }
 0x7c1   : > { %v2360_v37 = vmul.f32 %v3895_v10, %v3893_v50 }
 0x7c3   : > { %v2370_v25 = vrot.slane %v2360_v37, 4 }
 0x7c5   : > { %v2372_v12 = vsel %vm2368_vm14, %v2370_v25, 0.0  ;;  %v4841_v13 = vsel %vm2368_vm14, %v2370_v25, %v4797_v43 }
 0x7c6   : > { %3518 = vst [vmem:[%s4455_s28 + $0xc] sm:$0x3] %v2372_v12  ;;  %v2384_v29 = vpack.c.bf16 %v4841_v13, %v4841_v13 }
 0x7c8   : > { %2418 = vmatmul.mubr.bf16.vlgmr.msra.gmra.mrb[36].mxu0 %v2384_v29  ;;  %2459 = vmatmul.mubr.bf16.vlgmr.msra.gmra.mrb[36].mxu1 %v2384_v29 }
 0x7c9   : > { %2535 = vmatpush1.bf16.msra.mxu0 %v4619_v20  ;;  %2576 = vmatpush1.bf16.msra.mxu1 %v4623_v30 }
 0x7ca   : > { %2536 = vmatprep.subr.bf16.mxu0 %v4627_v39  ;;  %2577 = vmatprep.subr.bf16.mxu1 %v4631_v31 }
 0x7cb   : > { %2566 = vmatprep.mubr.bf16.mxu0 %v4064_v0  ;;  %2607 = vmatprep.mubr.bf16.mxu1 %v4064_v0 }
 0x7cd   : > { %2537 = vmatpush1.bf16.msra.mxu0 %v4637_v32  ;;  %2578 = vmatpush1.bf16.msra.mxu1 %v4641_v33 }
 0x7ce   : > { %2538 = vmatprep.subr.bf16.mxu0 %v4645_v40  ;;  %2579 = vmatprep.subr.bf16.mxu1 %v4649_v55 }
 0x7d1   : > { %2539 = vmatpush1.bf16.msra.mxu0 %v4653_v56  ;;  %2580 = vmatpush1.bf16.msra.mxu1 %v4657_v57 }
 0x7d2   : > { %2540 = vmatprep.subr.bf16.mxu0 %v4661_v58  ;;  %2581 = vmatprep.subr.bf16.mxu1 %v4665_v59 }
 0x7d5   : > { %2541 = vmatpush1.bf16.msra.mxu0 %v4669_v60  ;;  %2582 = vmatpush1.bf16.msra.mxu1 %v4673_v1 }
 0x7d6   : > { %2542 = vmatprep.subr.bf16.mxu0 %v4677_v2  ;;  %2583 = vmatprep.subr.bf16.mxu1 %v4681_v4 }
 0x7d9   : > { %2543 = vmatpush1.bf16.msra.mxu0 %v4685_v5  ;;  %2584 = vmatpush1.bf16.msra.mxu1 %v4689_v6 }
 0x7da   : > { %2544 = vmatprep.subr.bf16.mxu0 %v4693_v7  ;;  %2585 = vmatprep.subr.bf16.mxu1 %v4697_v8 }
 0x7dd   : > { %2545 = vmatpush1.bf16.msra.mxu0 %v4751_v61  ;;  %2586 = vmatpush1.bf16.msra.mxu1 %v4755_v15 }
 0x7de   : > { %2546 = vmatprep.subr.bf16.mxu0 %v4759_v19  ;;  %2587 = vmatprep.subr.bf16.mxu1 %v4763_v21 }
 0x7e1   : > { %2547 = vmatpush1.bf16.msra.mxu0 %v4767_v22  ;;  %2588 = vmatpush1.bf16.msra.mxu1 %v4771_v23 }
 0x7e2   : > { %2548 = vmatprep.subr.bf16.mxu0 %v4775_v24  ;;  %2589 = vmatprep.subr.bf16.mxu1 %v4779_v26 }
 0x7e5   : > { %2549 = vmatpush1.bf16.msra.mxu0 %v4783_v11  ;;  %2590 = vmatpush1.bf16.msra.mxu1 %v4787_v27 }
 0x7e6   : > { %2662 = vmatprep.subr.bf16.mxu0 %v4711_v9  ;;  %2703 = vmatprep.subr.bf16.mxu1 %v4715_v18 }
 0x89b   : > { %v2419_v44 = vpop.f32.mrb[36].mxu0  ;;  %v2460_v43 = vpop.f32.mrb[36].mxu1 }
 0x89c   : > { %v2471_v51 = vrot.slane %v2419_v44, 2  ;;  %v2421_v28 = vpop.f32.mrb[37].mxu0  ;;  %v2462_v52 = vpop.f32.mrb[37].mxu1  ;;  %v2473_v46 = vrot.slane %v2460_v43, 2 }
 0x89d   : > { %v2472_v16 = vrot.slane %v2421_v28, 2  ;;  %v2423_v17 = vpop.f32.mrb[38].mxu0  ;;  %v2464_v48 = vpop.f32.mrb[38].mxu1  ;;  %v2474_v62 = vrot.slane %v2462_v52, 2 }
 0x89e   : > { %v2479_v34 = vadd.f32 %v2471_v51, %v2380_v14  ;;  %v2424_v36 = vpop.f32.mrb[39].mxu0  ;;  %v2465_v41 = vpop.f32.mrb[39].mxu1  ;;  %v2481_v3 = vadd.f32 %v2473_v46, %v2382_v47  ;;  %v2503_v51 = vrot.slane %v4838_v63, 2  ;;  %v2530_v46 = vld [vmem:[#allocation2 + $0x48] sm:$0x3] }
 0x89f   : > { %v2480_v42 = vadd.f32 %v2472_v16, %v2381_v35  ;;  %v2482_v38 = vadd.f32 %v2474_v62, %v2383_v53  ;;  %v2516_v17 = vpop.permute.xlu1 %2515 }
 0x8a0   : > { %v3519_v54 = vmul.f32 -1.442695, %v2479_v34  ;;  %vm2517_vm15 = vcmp.eq.s32.totalorder %v2516_v17, 1 }
 0x8a1   : > { %v3520_v45 = vmul.f32 -1.442695, %v2480_v42  ;;  %v3521_v49 = vmul.f32 -1.442695, %v2482_v38 }
 0x8a2   : > { %3896 = vpow2.f32 %v3519_v54 }
 0x8a3   : > { %3898 = vpow2.f32 %v3520_v45 }
 0x8a4   : > { %3900 = vpow2.f32 %v3521_v49 }
 0x8a5   : > { %3902 = vtanh.f32 %v2481_v3 }
 0x8ac   : > { %v3897_v50 = vpop.eup %3896 }
 0x8ad   : > { %v3899_v10 = vpop.eup %3898  ;;  %v2486_v37 = vadd.f32 1.0, %v3897_v50 }
 0x8ae   : > { %v2492_v25 = vadd.f32 1.0, %v3899_v10  ;;  %v3901_v12 = vpop.eup %3900 }
 0x8af   : > { %3904 = vrcp.f32 %v2486_v37  ;;  %v3903_v29 = vpop.eup %3902  ;;  %v2499_v43 = vadd.f32 1.0, %v3901_v12 }
 0x8b0   : > { %3906 = vrcp.f32 %v2492_v25 }
 0x8b1   : > { %3908 = vrcp.f32 %v2499_v43 }
 0x8b9   : > { %v3905_v44 = vpop.eup %3904 }
 0x8ba   : > { %v3907_v28 = vpop.eup %3906  ;;  %v2506_v52 = vmul.f32 %v3905_v44, %v3903_v29  ;;  %v2532_v44 = vld [vmem:[#allocation2 + $0x58] sm:$0x3] }
 0x8bb   : > { %v2505_v14 = vmul.f32 %v3907_v28, %v2503_v51  ;;  %v3909_v35 = vpop.eup %3908  ;;  %v2531_v28 = vld [vmem:[#allocation2 + $0x50] sm:$0x3] }
 0x8bd   : > { %v2507_v16 = vadd.f32 %v2506_v52, %v2505_v14 }
 0x8bf   : > { %3910 = vtanh.f32 %v2507_v16  ;;  %v2526_v48 = vrot.slane %v2507_v16, 6 }
 0x8c1   : > { %v4882_v34 = vsel %vm2517_vm15, %v2526_v48, %v4838_v63  ;;  %v2529_v63 = vld [vmem:[#allocation2 + $0x40] sm:$0x3] }
 0x8c9   : > { %v3911_v36 = vpop.eup %3910 }
 0x8ca   : > { %v2509_v41 = vmul.f32 %v3911_v36, %v3909_v35 }
 0x8cc   : > { %v2519_v42 = vrot.slane %v2509_v41, 6 }
 0x8ce   : > { %v2521_v54 = vsel %vm2517_vm15, %v2519_v42, 0.0  ;;  %v4885_v45 = vsel %vm2517_vm15, %v2519_v42, %v4841_v13 }
 0x8cf   : > { %3522 = vst [vmem:[%s4455_s28 + $0xe] sm:$0x3] %v2521_v54  ;;  %v2533_v62 = vpack.c.bf16 %v4885_v45, %v4885_v45 }
 0x8d1   : > { %2567 = vmatmul.mubr.bf16.vlgmr.msra.gmra.mrb[40].mxu0 %v2533_v62  ;;  %2608 = vmatmul.mubr.bf16.vlgmr.msra.gmra.mrb[40].mxu1 %v2533_v62 }
 0x8d2   : > { %2663 = vmatpush1.bf16.msra.mxu0 %v4619_v20  ;;  %2704 = vmatpush1.bf16.msra.mxu1 %v4623_v30 }
 0x8d3   : > { %2664 = vmatprep.subr.bf16.mxu0 %v4627_v39  ;;  %2705 = vmatprep.subr.bf16.mxu1 %v4631_v31 }
 0x8d4   : > { %2694 = vmatprep.mubr.bf16.mxu0 %v4064_v0  ;;  %2735 = vmatprep.mubr.bf16.mxu1 %v4064_v0 }
 0x8d6   : > { %2665 = vmatpush1.bf16.msra.mxu0 %v4637_v32  ;;  %2706 = vmatpush1.bf16.msra.mxu1 %v4641_v33 }
 0x8d7   : > { %2666 = vmatprep.subr.bf16.mxu0 %v4645_v40  ;;  %2707 = vmatprep.subr.bf16.mxu1 %v4649_v55 }
 0x8da   : > { %2667 = vmatpush1.bf16.msra.mxu0 %v4653_v56  ;;  %2708 = vmatpush1.bf16.msra.mxu1 %v4657_v57 }
 0x8db   : > { %2668 = vmatprep.subr.bf16.mxu0 %v4661_v58  ;;  %2709 = vmatprep.subr.bf16.mxu1 %v4665_v59 }
 0x8de   : > { %2669 = vmatpush1.bf16.msra.mxu0 %v4669_v60  ;;  %2710 = vmatpush1.bf16.msra.mxu1 %v4673_v1 }
 0x8df   : > { %2670 = vmatprep.subr.bf16.mxu0 %v4677_v2  ;;  %2711 = vmatprep.subr.bf16.mxu1 %v4681_v4 }
 0x8e2   : > { %2671 = vmatpush1.bf16.msra.mxu0 %v4685_v5  ;;  %2712 = vmatpush1.bf16.msra.mxu1 %v4689_v6 }
 0x8e3   : > { %2672 = vmatprep.subr.bf16.mxu0 %v4693_v7  ;;  %2713 = vmatprep.subr.bf16.mxu1 %v4697_v8 }
 0x8e6   : > { %2673 = vmatpush1.bf16.msra.mxu0 %v4751_v61  ;;  %2714 = vmatpush1.bf16.msra.mxu1 %v4755_v15 }
 0x8e7   : > { %2674 = vmatprep.subr.bf16.mxu0 %v4759_v19  ;;  %2715 = vmatprep.subr.bf16.mxu1 %v4763_v21 }
 0x8ea   : > { %2675 = vmatpush1.bf16.msra.mxu0 %v4767_v22  ;;  %2716 = vmatpush1.bf16.msra.mxu1 %v4771_v23 }
 0x8eb   : > { %2676 = vmatprep.subr.bf16.mxu0 %v4775_v24  ;;  %2717 = vmatprep.subr.bf16.mxu1 %v4779_v26 }
 0x8ee   : > { %2677 = vmatpush1.bf16.msra.mxu0 %v4783_v11  ;;  %2718 = vmatpush1.bf16.msra.mxu1 %v4787_v27 }
 0x8ef   : > { %2811 = vmatprep.subr.bf16.mxu0 %v4711_v9  ;;  %2852 = vmatprep.subr.bf16.mxu1 %v4715_v18 }
 0x9a4   : > { %v2568_v13 = vpop.f32.mrb[40].mxu0  ;;  %v2609_v53 = vpop.f32.mrb[40].mxu1 }
 0x9a5   : > { %v2616_v38 = vadd.f32 %v2568_v13, %v2529_v63  ;;  %v2570_v47 = vpop.f32.mrb[41].mxu0  ;;  %v2611_v49 = vpop.f32.mrb[41].mxu1  ;;  %v2618_v43 = vadd.f32 %v2609_v53, %v2531_v28 }
 0x9a6   : > { %v2617_v3 = vadd.f32 %v2570_v47, %v2530_v46  ;;  %v2572_v50 = vpop.f32.mrb[42].mxu0  ;;  %v2613_v10 = vpop.f32.mrb[42].mxu1  ;;  %v2619_v51 = vadd.f32 %v2611_v49, %v2532_v44 }
 0x9a7   : > { %v3523_v37 = vmul.f32 -1.442695, %v2616_v38  ;;  %v2573_v25 = vpop.f32.mrb[43].mxu0  ;;  %v2614_v12 = vpop.f32.mrb[43].mxu1 }
 0x9a8   : > { %v3524_v29 = vmul.f32 -1.442695, %v2617_v3  ;;  %v3525_v52 = vmul.f32 -1.442695, %v2619_v51  ;;  %v2650_v13 = vpop.permute.xlu0 %2649 }
 0x9a9   : > { %3912 = vpow2.f32 %v3523_v37  ;;  %vm2651_vm0 = vcmp.eq.s32.totalorder %v2650_v13, 1 }
 0x9aa   : > { %3914 = vpow2.f32 %v3524_v29 }
 0x9ab   : > { %3916 = vpow2.f32 %v3525_v52 }
 0x9ac   : > { %3918 = vtanh.f32 %v2618_v43 }
 0x9b3   : > { %v3913_v14 = vpop.eup %3912 }
 0x9b4   : > { %v3915_v16 = vpop.eup %3914  ;;  %v2623_v17 = vadd.f32 1.0, %v3913_v14 }
 0x9b5   : > { %v2629_v48 = vadd.f32 1.0, %v3915_v16  ;;  %v3917_v35 = vpop.eup %3916 }
 0x9b6   : > { %3920 = vrcp.f32 %v2623_v17  ;;  %v3919_v36 = vpop.eup %3918  ;;  %v2636_v62 = vadd.f32 1.0, %v3917_v35 }
 0x9b7   : > { %3922 = vrcp.f32 %v2629_v48  ;;  %v2793_v48 = vpop.permute.xlu1 %2792 }
 0x9b8   : > { %3924 = vrcp.f32 %v2636_v62  ;;  %vm2794_vm1 = vcmp.eq.s32.totalorder %v2793_v48, 1 }
 0x9c0   : > { %v3921_v41 = vpop.eup %3920 }
 0x9c1   : > { %v3923_v42 = vpop.eup %3922  ;;  %v2640_v54 = vmul.f32 %v3921_v41, %v3919_v36 }
 0x9c2   : > { %v2639_v63 = vmul.f32 %v3923_v42, %v4882_v34  ;;  %v3925_v46 = vpop.eup %3924 }
 0x9c4   : > { %v2641_v38 = vadd.f32 %v2640_v54, %v2639_v63 }
 0x9c6   : > { %3926 = vtanh.f32 %v2641_v38  ;;  %v4926_v53 = vsel %vm2651_vm0, %v2641_v38, %v4882_v34 }
 0x9c7   : > { %v2780_v28 = vrot.slane %v4926_v53, 6 }
 0x9d0   : > { %v3927_v47 = vpop.eup %3926 }
 0x9d1   : > { %v2643_v49 = vmul.f32 %v3927_v47, %v3925_v46  ;;  %v4983_v46 = vld [vmem:[%s4117_s27 + $0x8] ss:$16 sps:$4 sm:$0xff]   ;;  %v4987_v47 = vld [vmem:[%s4117_s27 + $0x24] ss:$16 sps:$4 sm:$0xff]  }
 0x9d3   : > { %v2652_v3 = vsel %vm2651_vm0, %v2643_v49, 0.0  ;;  %v4929_v50 = vsel %vm2651_vm0, %v2643_v49, %v4885_v45  ;;  %v4991_v49 = vld [vmem:[%s4117_s27 + $0x2c] ss:$16 sps:$4 sm:$0xff]  }
 0x9d4   : > { %3526 = vst [vmem:[%s4455_s28 + $0x10] sm:$0x3] %v2652_v3  ;;  %v2661_v10 = vpack.c.bf16 %v4929_v50, %v4929_v50  ;;  %v4997_v3 = vld [vmem:[%s4117_s27 + $0x20] ss:$16 sps:$4 sm:$0xff]  }
 0x9d6   : > { %2695 = vmatmul.mubr.bf16.vlgmr.msra.gmra.mrb[44].mxu0 %v2661_v10  ;;  %2736 = vmatmul.mubr.bf16.vlgmr.msra.gmra.mrb[44].mxu1 %v2661_v10  ;;  %v5005_v10 = vld [vmem:[%s4117_s27 + $0x44] ss:$16 sps:$4 sm:$0xff]  }
 0x9d7   : > { %2812 = vmatpush1.bf16.msra.mxu0 %v4619_v20  ;;  %2853 = vmatpush1.bf16.msra.mxu1 %v4623_v30 }
 0x9d8   : > { %2813 = vmatprep.subr.bf16.mxu0 %v4627_v39  ;;  %2854 = vmatprep.subr.bf16.mxu1 %v4631_v31 }
 0x9d9   : > { %2843 = vmatprep.mubr.bf16.mxu0 %v4064_v0  ;;  %2884 = vmatprep.mubr.bf16.mxu1 %v4064_v0 }
 0x9db   : > { %2814 = vmatpush1.bf16.msra.mxu0 %v4637_v32  ;;  %2855 = vmatpush1.bf16.msra.mxu1 %v4641_v33  ;;  %v2657_v33 = vld [vmem:[#allocation2 + $0x40] sm:$0xc] }
 0x9dc   : > { %2815 = vmatprep.subr.bf16.mxu0 %v4645_v40  ;;  %2856 = vmatprep.subr.bf16.mxu1 %v4649_v55 }
 0x9df   : > { %2816 = vmatpush1.bf16.msra.mxu0 %v4653_v56  ;;  %2857 = vmatpush1.bf16.msra.mxu1 %v4657_v57 }
 0x9e0   : > { %2817 = vmatprep.subr.bf16.mxu0 %v4661_v58  ;;  %2858 = vmatprep.subr.bf16.mxu1 %v4665_v59  ;;  %v2658_v58 = vld [vmem:[#allocation2 + $0x48] sm:$0xc] }
 0x9e3   : > { %2818 = vmatpush1.bf16.msra.mxu0 %v4669_v60  ;;  %2859 = vmatpush1.bf16.msra.mxu1 %v4673_v1 }
 0x9e4   : > { %2819 = vmatprep.subr.bf16.mxu0 %v4677_v2  ;;  %2860 = vmatprep.subr.bf16.mxu1 %v4681_v4 }
 0x9e7   : > { %2820 = vmatpush1.bf16.msra.mxu0 %v4685_v5  ;;  %2861 = vmatpush1.bf16.msra.mxu1 %v4689_v6  ;;  %v2660_v6 = vld [vmem:[#allocation2 + $0x58] sm:$0xc] }
 0x9e8   : > { %2821 = vmatprep.subr.bf16.mxu0 %v4693_v7  ;;  %2862 = vmatprep.subr.bf16.mxu1 %v4697_v8 }
 0x9eb   : > { %2822 = vmatpush1.bf16.msra.mxu0 %v4751_v61  ;;  %2863 = vmatpush1.bf16.msra.mxu1 %v4755_v15 }
 0x9ec   : > { %2823 = vmatprep.subr.bf16.mxu0 %v4759_v19  ;;  %2864 = vmatprep.subr.bf16.mxu1 %v4763_v21 }
 0x9ef   : > { %2824 = vmatpush1.bf16.msra.mxu0 %v4767_v22  ;;  %2865 = vmatpush1.bf16.msra.mxu1 %v4771_v23 }
 0x9f0   : > { %2825 = vmatprep.subr.bf16.mxu0 %v4775_v24  ;;  %2866 = vmatprep.subr.bf16.mxu1 %v4779_v26 }
 0x9f3   : > { %2826 = vmatpush1.bf16.msra.mxu0 %v4783_v11  ;;  %2867 = vmatpush1.bf16.msra.mxu1 %v4787_v27 }
 0x9f4   : > { %2960 = vmatprep.subr.bf16.mxu0 %v4711_v9  ;;  %3001 = vmatprep.subr.bf16.mxu1 %v4715_v18  ;;  %v2659_v9 = vld [vmem:[#allocation2 + $0x50] sm:$0xc] }
 0xaa9   : > { %v2696_v20 = vpop.f32.mrb[44].mxu0  ;;  %v2737_v30 = vpop.f32.mrb[44].mxu1 }
 0xaaa   : > { %v2748_v39 = vrot.slane %v2696_v20, 6  ;;  %v2698_v31 = vpop.f32.mrb[45].mxu0  ;;  %v2739_v32 = vpop.f32.mrb[45].mxu1  ;;  %v2750_v8 = vrot.slane %v2737_v30, 6  ;;  %v5009_v20 = vld [vmem:[%s4117_s27 + $0x4c] ss:$16 sps:$4 sm:$0xff]  }
 0xaab   : > { %v2749_v40 = vrot.slane %v2698_v31, 6  ;;  %v2700_v55 = vpop.f32.mrb[46].mxu0  ;;  %v2741_v56 = vpop.f32.mrb[46].mxu1  ;;  %v2751_v5 = vrot.slane %v2739_v32, 6  ;;  %v5013_v30 = vld [vmem:[%s4117_s27 + $0x40] ss:$16 sps:$4 sm:$0xff]  }
 0xaac   : > { %v2756_v57 = vadd.f32 %v2748_v39, %v2657_v33  ;;  %v2701_v59 = vpop.f32.mrb[47].mxu0  ;;  %v2742_v60 = vpop.f32.mrb[47].mxu1  ;;  %v2758_v34 = vadd.f32 %v2750_v8, %v2659_v9  ;;  %v5017_v39 = vld [vmem:[%s4117_s27 + $0x48] ss:$16 sps:$4 sm:$0xff]   ;;  %v5021_v31 = vld [vmem:[%s4117_s27 + $0x64] ss:$16 sps:$4 sm:$0xff]  }
 0xaad   : > { %v2757_v1 = vadd.f32 %v2749_v40, %v2658_v58  ;;  %v2759_v7 = vadd.f32 %v2751_v5, %v2660_v6  ;;  %v5025_v32 = vld [vmem:[%s4117_s27 + $0x6c] ss:$16 sps:$4 sm:$0xff]   ;;  %v5029_v33 = vld [vmem:[%s4117_s27 + $0x60] ss:$16 sps:$4 sm:$0xff]   ;;  %v5033_v40 = vld [vmem:[%s4117_s27 + $0x68] ss:$16 sps:$4 sm:$0xff]  }
 0xaae   : > { %v3527_v2 = vmul.f32 -1.442695, %v2756_v57  ;;  %v5037_v55 = vld [vmem:[%s4117_s27 + $0x84] ss:$16 sps:$4 sm:$0xff]   ;;  %v5041_v56 = vld [vmem:[%s4117_s27 + $0x8c] ss:$16 sps:$4 sm:$0xff]  }
 0xaaf   : > { %v3528_v4 = vmul.f32 -1.442695, %v2757_v1  ;;  %v3529_v18 = vmul.f32 -1.442695, %v2759_v7  ;;  %v5045_v57 = vld [vmem:[%s4117_s27 + $0x80] ss:$16 sps:$4 sm:$0xff]  }
 0xab0   : > { %3928 = vpow2.f32 %v3527_v2  ;;  %v5049_v58 = vld [vmem:[%s4117_s27 + $0x88] ss:$16 sps:$4 sm:$0xff]   ;;  %v5053_v59 = vld [vmem:[%s4117_s27 + $0xa4] ss:$16 sps:$4 sm:$0xff]   ;;  %v5057_v60 = vld [vmem:[%s4117_s27 + $0xac] ss:$16 sps:$4 sm:$0xff]  }
 0xab1   : > { %3930 = vpow2.f32 %v3528_v4  ;;  %v4044_v1 = vld [vmem:[%s4117_s27 + $0x4] ss:$16 sps:$4 sm:$0xff]   ;;  %v2807_v7 = vld [vmem:[#allocation2 + $0x48] sm:$0x30] }
 0xab2   : > { %3932 = vpow2.f32 %v3529_v18 }
 0xab3   : > { %3934 = vtanh.f32 %v2758_v34  ;;  %v2809_v34 = vld [vmem:[#allocation2 + $0x58] sm:$0x30] }
 0xaba   : > { %v3929_v45 = vpop.eup %3928 }
 0xabb   : > { %v3931_v37 = vpop.eup %3930  ;;  %v2763_v25 = vadd.f32 1.0, %v3929_v45 }
 0xabc   : > { %v2769_v12 = vadd.f32 1.0, %v3931_v37  ;;  %v3933_v29 = vpop.eup %3932 }
 0xabd   : > { %3936 = vrcp.f32 %v2763_v25  ;;  %v3935_v44 = vpop.eup %3934  ;;  %v2776_v14 = vadd.f32 1.0, %v3933_v29  ;;  %v2808_v25 = vld [vmem:[#allocation2 + $0x50] sm:$0x30] }
 0xabe   : > { %3938 = vrcp.f32 %v2769_v12 }
 0xabf   : > { %3940 = vrcp.f32 %v2776_v14 }
 0xac7   : > { %v3937_v51 = vpop.eup %3936 }
 0xac8   : > { %v3939_v52 = vpop.eup %3938  ;;  %v2783_v43 = vmul.f32 %v3937_v51, %v3935_v44 }
 0xac9   : > { %v2782_v16 = vmul.f32 %v3939_v52, %v2780_v28  ;;  %v3941_v41 = vpop.eup %3940 }
 0xacb   : > { %v2784_v17 = vadd.f32 %v2783_v43, %v2782_v16 }
 0xacd   : > { %3942 = vtanh.f32 %v2784_v17  ;;  %v2803_v35 = vrot.slane %v2784_v17, 2 }
 0xacf   : > { %v4970_v36 = vsel %vm2794_vm1, %v2803_v35, %v4926_v53  ;;  %v4979_v53 = vld [vmem:[%s4117_s27] ss:$16 sps:$4 sm:$0xff]  }
 0xad0   : > { %v2929_v17 = vrot.slane %v4970_v36, 4 }
 0xad7   : > { %v3943_v42 = vpop.eup %3942 }
 0xad8   : > { %v2786_v54 = vmul.f32 %v3943_v42, %v3941_v41 }
 0xada   : > { %v2796_v62 = vrot.slane %v2786_v54, 2 }
 0xadc   : > { %v2798_v63 = vsel %vm2794_vm1, %v2796_v62, 0.0  ;;  %v4973_v13 = vsel %vm2794_vm1, %v2796_v62, %v4929_v50  ;;  %v5001_v50 = vld [vmem:[%s4117_s27 + $0x28] ss:$16 sps:$4 sm:$0xff]   ;;  %v2942_v62 = vpop.permute.xlu0 %2941 }
 0xadd   : > { %3530 = vst [vmem:[%s4455_s28 + $0x12] sm:$0x3] %v2798_v63  ;;  %v2810_v38 = vpack.c.bf16 %v4973_v13, %v4973_v13  ;;  %vm2943_vm2 = vcmp.eq.s32.totalorder %v2942_v62, 1 }
 0xadf   : > { %2844 = vmatmul.mubr.bf16.vlgmr.msra.gmra.mrb[48].mxu0 %v2810_v38  ;;  %2885 = vmatmul.mubr.bf16.vlgmr.msra.gmra.mrb[48].mxu1 %v2810_v38 }
 0xae0   : > { %2961 = vmatpush1.bf16.msra.mxu0 %v4979_v53  ;;  %3002 = vmatpush1.bf16.msra.mxu1 %v4983_v46 }
 0xae1   : > { %2962 = vmatprep.subr.bf16.mxu0 %v4987_v47  ;;  %3003 = vmatprep.subr.bf16.mxu1 %v4991_v49 }
 0xae2   : > { %2992 = vmatprep.mubr.bf16.mxu0 %v4064_v0  ;;  %3033 = vmatprep.mubr.bf16.mxu1 %v4064_v0 }
 0xae4   : > { %2963 = vmatpush1.bf16.msra.mxu0 %v4997_v3  ;;  %3004 = vmatpush1.bf16.msra.mxu1 %v5001_v50 }
 0xae5   : > { %2964 = vmatprep.subr.bf16.mxu0 %v5005_v10  ;;  %3005 = vmatprep.subr.bf16.mxu1 %v5009_v20 }
 0xae8   : > { %2965 = vmatpush1.bf16.msra.mxu0 %v5013_v30  ;;  %3006 = vmatpush1.bf16.msra.mxu1 %v5017_v39 }
 0xae9   : > { %2966 = vmatprep.subr.bf16.mxu0 %v5021_v31  ;;  %3007 = vmatprep.subr.bf16.mxu1 %v5025_v32 }
 0xaec   : > { %2967 = vmatpush1.bf16.msra.mxu0 %v5029_v33  ;;  %3008 = vmatpush1.bf16.msra.mxu1 %v5033_v40 }
 0xaed   : > { %2968 = vmatprep.subr.bf16.mxu0 %v5037_v55  ;;  %3009 = vmatprep.subr.bf16.mxu1 %v5041_v56 }
 0xaf0   : > { %2969 = vmatpush1.bf16.msra.mxu0 %v5045_v57  ;;  %3010 = vmatpush1.bf16.msra.mxu1 %v5049_v58 }
 0xaf1   : > { %2970 = vmatprep.subr.bf16.mxu0 %v5053_v59  ;;  %3011 = vmatprep.subr.bf16.mxu1 %v5057_v60 }
 0xaf4   : > { %2971 = vmatpush1.bf16.msra.mxu0 %v4751_v61  ;;  %3012 = vmatpush1.bf16.msra.mxu1 %v4755_v15  ;;  %v4045_v61 = vld [vmem:[%s4117_s27 + $0xc] ss:$16 sps:$4 sm:$0xff]  }
 0xaf5   : > { %2972 = vmatprep.subr.bf16.mxu0 %v4759_v19  ;;  %3013 = vmatprep.subr.bf16.mxu1 %v4763_v21 }
 0xaf8   : > { %2973 = vmatpush1.bf16.msra.mxu0 %v4767_v22  ;;  %3014 = vmatpush1.bf16.msra.mxu1 %v4771_v23  ;;  %v2806_v22 = vld [vmem:[#allocation2 + $0x40] sm:$0x30] }
 0xaf9   : > { %2974 = vmatprep.subr.bf16.mxu0 %v4775_v24  ;;  %3015 = vmatprep.subr.bf16.mxu1 %v4779_v26 }
 0xafc   : > { %2975 = vmatpush1.bf16.msra.mxu0 %v4783_v11  ;;  %3016 = vmatpush1.bf16.msra.mxu1 %v4787_v27 }
 0xafd   : > { %3109 = vmatprep.subr.bf16.mxu0 %v4044_v1  ;;  %3150 = vmatprep.subr.bf16.mxu1 %v4045_v61 }
 0xbb2   : > { %v2845_v15 = vpop.f32.mrb[48].mxu0  ;;  %v2886_v19 = vpop.f32.mrb[48].mxu1 }
 0xbb3   : > { %v2897_v2 = vrot.slane %v2845_v15, 4  ;;  %v2847_v21 = vpop.f32.mrb[49].mxu0  ;;  %v2888_v4 = vpop.f32.mrb[49].mxu1  ;;  %v2899_v37 = vrot.slane %v2886_v19, 4 }
 0xbb4   : > { %v2898_v5 = vrot.slane %v2847_v21, 4  ;;  %v2849_v23 = vpop.f32.mrb[50].mxu0  ;;  %v2890_v6 = vpop.f32.mrb[50].mxu1  ;;  %v2900_v18 = vrot.slane %v2888_v4, 4 }
 0xbb5   : > { %v2905_v24 = vadd.f32 %v2897_v2, %v2806_v22  ;;  %v2850_v26 = vpop.f32.mrb[51].mxu0  ;;  %v2891_v8 = vpop.f32.mrb[51].mxu1  ;;  %v2907_v29 = vadd.f32 %v2899_v37, %v2808_v25 }
 0xbb6   : > { %v2906_v11 = vadd.f32 %v2898_v5, %v2807_v7  ;;  %v2908_v45 = vadd.f32 %v2900_v18, %v2809_v34  ;;  %v2957_v8 = vld [vmem:[#allocation2 + $0x50] sm:$0xc0] }
 0xbb7   : > { %v3531_v9 = vmul.f32 -1.442695, %v2905_v24  ;;  %v2958_v24 = vld [vmem:[#allocation2 + $0x58] sm:$0xc0] }
 0xbb8   : > { %v3532_v27 = vmul.f32 -1.442695, %v2906_v11  ;;  %v3533_v12 = vmul.f32 -1.442695, %v2908_v45 }
 0xbb9   : > { %3944 = vpow2.f32 %v3531_v9 }
 0xbba   : > { %3946 = vpow2.f32 %v3532_v27 }
 0xbbb   : > { %3948 = vpow2.f32 %v3533_v12 }
 0xbbc   : > { %3950 = vtanh.f32 %v2907_v29 }
 0xbc3   : > { %v3945_v44 = vpop.eup %3944 }
 0xbc4   : > { %v3947_v51 = vpop.eup %3946  ;;  %v2912_v28 = vadd.f32 1.0, %v3945_v44 }
 0xbc5   : > { %v2918_v52 = vadd.f32 1.0, %v3947_v51  ;;  %v3949_v43 = vpop.eup %3948 }
 0xbc6   : > { %3952 = vrcp.f32 %v2912_v28  ;;  %v3951_v14 = vpop.eup %3950  ;;  %v2925_v41 = vadd.f32 1.0, %v3949_v43  ;;  %v3091_v43 = vpop.permute.xlu1 %3090 }
 0xbc7   : > { %3954 = vrcp.f32 %v2918_v52  ;;  %vm3092_vm3 = vcmp.eq.s32.totalorder %v3091_v43, 1 }
 0xbc8   : > { %3956 = vrcp.f32 %v2925_v41 }
 0xbd0   : > { %v3953_v16 = vpop.eup %3952 }
 0xbd1   : > { %v3955_v48 = vpop.eup %3954  ;;  %v2932_v35 = vmul.f32 %v3953_v16, %v3951_v14 }
 0xbd2   : > { %v2931_v42 = vmul.f32 %v3955_v48, %v2929_v17  ;;  %v3957_v1 = vpop.eup %3956 }
 0xbd4   : > { %v2933_v54 = vadd.f32 %v2932_v35, %v2931_v42 }
 0xbd6   : > { %3958 = vtanh.f32 %v2933_v54  ;;  %v2952_v63 = vrot.slane %v2933_v54, 4 }
 0xbd8   : > { %v5074_v38 = vsel %vm2943_vm2, %v2952_v63, %v4970_v36  ;;  %v4047_v36 = vld [vmem:[%s4117_s27 + $0xa8] ss:$16 sps:$4 sm:$0xff]  }
 0xbd9   : > { %v3078_v29 = vrot.slane %v5074_v38, 2 }
 0xbe0   : > { %v3959_v61 = vpop.eup %3958 }
 0xbe1   : > { %v2935_v15 = vmul.f32 %v3959_v61, %v3957_v1  ;;  %v3104_v1 = vld [vmem:[#allocation2 + $0x60] sm:$0x3] }
 0xbe3   : > { %v2945_v19 = vrot.slane %v2935_v15, 4 }
 0xbe5   : > { %v2947_v2 = vsel %vm2943_vm2, %v2945_v19, 0.0  ;;  %v5077_v21 = vsel %vm2943_vm2, %v2945_v19, %v4973_v13  ;;  %v4048_v13 = vld [vmem:[%s4117_s27 + $0xc4] ss:$16 sps:$4 sm:$0xff]  }
 0xbe6   : > { %3534 = vst [vmem:[%s4455_s28 + $0x14] sm:$0x3] %v2947_v2  ;;  %v2959_v4 = vpack.c.bf16 %v5077_v21, %v5077_v21  ;;  %v3105_v2 = vld [vmem:[#allocation2 + $0x68] sm:$0x3] }
 0xbe8   : > { %2993 = vmatmul.mubr.bf16.vlgmr.msra.gmra.mrb[52].mxu0 %v2959_v4  ;;  %3034 = vmatmul.mubr.bf16.vlgmr.msra.gmra.mrb[52].mxu1 %v2959_v4 }
 0xbe9   : > { %3110 = vmatpush1.bf16.msra.mxu0 %v4979_v53  ;;  %3151 = vmatpush1.bf16.msra.mxu1 %v4983_v46  ;;  %v4049_v53 = vld [vmem:[%s4117_s27 + $0xcc] ss:$16 sps:$4 sm:$0xff]   ;;  %v4050_v46 = vld [vmem:[%s4117_s27 + $0xc0] ss:$16 sps:$4 sm:$0xff]  }
 0xbea   : > { %3111 = vmatprep.subr.bf16.mxu0 %v4987_v47  ;;  %3152 = vmatprep.subr.bf16.mxu1 %v4991_v49  ;;  %v4051_v47 = vld [vmem:[%s4117_s27 + $0xc8] ss:$16 sps:$4 sm:$0xff]   ;;  %v4052_v49 = vld [vmem:[%s4117_s27 + $0xe4] ss:$16 sps:$4 sm:$0xff]  }
 0xbeb   : > { %3141 = vmatprep.mubr.bf16.mxu0 %v4064_v0  ;;  %3182 = vmatprep.mubr.bf16.mxu1 %v4064_v0  ;;  %v4046_v0 = vld [vmem:[%s4117_s27 + $0xa0] ss:$16 sps:$4 sm:$0xff]  }
 0xbed   : > { %3112 = vmatpush1.bf16.msra.mxu0 %v4997_v3  ;;  %3153 = vmatpush1.bf16.msra.mxu1 %v5001_v50  ;;  %v4053_v3 = vld [vmem:[%s4117_s27 + $0xec] ss:$16 sps:$4 sm:$0xff]   ;;  %v4054_v50 = vld [vmem:[%s4117_s27 + $0xe0] ss:$16 sps:$4 sm:$0xff]  }
 0xbee   : > { %3113 = vmatprep.subr.bf16.mxu0 %v5005_v10  ;;  %3154 = vmatprep.subr.bf16.mxu1 %v5009_v20  ;;  %v4055_v10 = vld [vmem:[%s4117_s27 + $0xe8] ss:$16 sps:$4 sm:$0xff]  }
 0xbf1   : > { %3114 = vmatpush1.bf16.msra.mxu0 %v5013_v30  ;;  %3155 = vmatpush1.bf16.msra.mxu1 %v5017_v39 }
 0xbf2   : > { %3115 = vmatprep.subr.bf16.mxu0 %v5021_v31  ;;  %3156 = vmatprep.subr.bf16.mxu1 %v5025_v32 }
 0xbf5   : > { %3116 = vmatpush1.bf16.msra.mxu0 %v5029_v33  ;;  %3157 = vmatpush1.bf16.msra.mxu1 %v5033_v40  ;;  %v2955_v33 = vld [vmem:[#allocation2 + $0x40] sm:$0xc0] }
 0xbf6   : > { %3117 = vmatprep.subr.bf16.mxu0 %v5037_v55  ;;  %3158 = vmatprep.subr.bf16.mxu1 %v5041_v56 }
 0xbf9   : > { %3118 = vmatpush1.bf16.msra.mxu0 %v5045_v57  ;;  %3159 = vmatpush1.bf16.msra.mxu1 %v5049_v58  ;;  %v2956_v58 = vld [vmem:[#allocation2 + $0x48] sm:$0xc0] }
 0xbfa   : > { %3119 = vmatprep.subr.bf16.mxu0 %v5053_v59  ;;  %3160 = vmatprep.subr.bf16.mxu1 %v5057_v60 }
 0xbfd   : > { %3120 = vmatpush1.bf16.msra.mxu0 %v4046_v0  ;;  %3161 = vmatpush1.bf16.msra.mxu1 %v4047_v36 }
 0xbfe   : > { %3121 = vmatprep.subr.bf16.mxu0 %v4048_v13  ;;  %3162 = vmatprep.subr.bf16.mxu1 %v4049_v53 }
 0xc01   : > { %3122 = vmatpush1.bf16.msra.mxu0 %v4050_v46  ;;  %3163 = vmatpush1.bf16.msra.mxu1 %v4051_v47 }
 0xc02   : > { %3123 = vmatprep.subr.bf16.mxu0 %v4052_v49  ;;  %3164 = vmatprep.subr.bf16.mxu1 %v4053_v3 }
 0xc05   : > { %3124 = vmatpush1.bf16.msra.mxu0 %v4054_v50  ;;  %3165 = vmatpush1.bf16.msra.mxu1 %v4055_v10  ;;  %v3106_v50 = vld [vmem:[#allocation2 + $0x70] sm:$0x3] }
 0xcbb   : > { %v2994_v20 = vpop.f32.mrb[52].mxu0  ;;  %v3035_v30 = vpop.f32.mrb[52].mxu1 }
 0xcbc   : > { %v3046_v39 = vrot.slane %v2994_v20, 2  ;;  %v2996_v31 = vpop.f32.mrb[53].mxu0  ;;  %v3037_v32 = vpop.f32.mrb[53].mxu1  ;;  %v3048_v26 = vrot.slane %v3035_v30, 2 }
 0xcbd   : > { %v3047_v40 = vrot.slane %v2996_v31, 2  ;;  %v2998_v55 = vpop.f32.mrb[54].mxu0  ;;  %v3039_v56 = vpop.f32.mrb[54].mxu1  ;;  %v3049_v6 = vrot.slane %v3037_v32, 2 }
 0xcbe   : > { %v3054_v57 = vadd.f32 %v3046_v39, %v2955_v33  ;;  %v2999_v59 = vpop.f32.mrb[55].mxu0  ;;  %v3040_v60 = vpop.f32.mrb[55].mxu1  ;;  %v3056_v9 = vadd.f32 %v3048_v26, %v2957_v8 }
 0xcbf   : > { %v3055_v22 = vadd.f32 %v3047_v40, %v2956_v58  ;;  %v3057_v7 = vadd.f32 %v3049_v6, %v2958_v24 }
 0xcc0   : > { %v3535_v5 = vmul.f32 -1.442695, %v3054_v57 }
 0xcc1   : > { %v3536_v23 = vmul.f32 -1.442695, %v3055_v22  ;;  %v3537_v11 = vmul.f32 -1.442695, %v3057_v7 }
 0xcc2   : > { %3960 = vpow2.f32 %v3535_v5  ;;  %v3225_v5 = vpop.permute.xlu0 %3224 }
 0xcc3   : > { %3962 = vpow2.f32 %v3536_v23  ;;  %vm3226_vm4 = vcmp.eq.s32.totalorder %v3225_v5, 1 }
 0xcc4   : > { %3964 = vpow2.f32 %v3537_v11 }
 0xcc5   : > { %3966 = vtanh.f32 %v3056_v9 }
 0xccc   : > { %v3961_v27 = vpop.eup %3960 }
 0xccd   : > { %v3963_v18 = vpop.eup %3962  ;;  %v3061_v34 = vadd.f32 1.0, %v3961_v27 }
 0xcce   : > { %v3067_v45 = vadd.f32 1.0, %v3963_v18  ;;  %v3965_v37 = vpop.eup %3964 }
 0xccf   : > { %3968 = vrcp.f32 %v3061_v34  ;;  %v3967_v25 = vpop.eup %3966  ;;  %v3074_v28 = vadd.f32 1.0, %v3965_v37 }
 0xcd0   : > { %3970 = vrcp.f32 %v3067_v45 }
 0xcd1   : > { %3972 = vrcp.f32 %v3074_v28 }
 0xcd9   : > { %v3969_v12 = vpop.eup %3968 }
 0xcda   : > { %v3971_v44 = vpop.eup %3970  ;;  %v3081_v51 = vmul.f32 %v3969_v12, %v3967_v25 }
 0xcdb   : > { %v3080_v52 = vmul.f32 %v3971_v44, %v3078_v29  ;;  %v3973_v48 = vpop.eup %3972 }
 0xcdd   : > { %v3082_v14 = vadd.f32 %v3081_v51, %v3080_v52 }
 0xcdf   : > { %3974 = vtanh.f32 %v3082_v14  ;;  %v3101_v16 = vrot.slane %v3082_v14, 6 }
 0xce1   : > { %v3103_v17 = vsel %vm3092_vm3, %v3101_v16, %v5074_v38 }
 0xce9   : > { %v3975_v35 = vpop.eup %3974 }
 0xcea   : > { %v3084_v41 = vmul.f32 %v3975_v35, %v3973_v48 }
 0xcec   : > { %v3094_v42 = vrot.slane %v3084_v41, 6 }
 0xcee   : > { %v3096_v54 = vsel %vm3092_vm3, %v3094_v42, 0.0  ;;  %v3099_v62 = vsel %vm3092_vm3, %v3094_v42, %v5077_v21  ;;  %v3107_v21 = vld [vmem:[#allocation2 + $0x78] sm:$0x3] }
 0xcef   : > { %3538 = vst [vmem:[%s4455_s28 + $0x16] sm:$0x3] %v3096_v54  ;;  %v3108_v63 = vpack.c.bf16 %v3099_v62, %v3099_v62 }
 0xcf1   : > { %3142 = vmatmul.mubr.bf16.vlgmr.msra.gmra.mrb[56].mxu0 %v3108_v63  ;;  %3183 = vmatmul.mubr.bf16.vlgmr.msra.gmra.mrb[56].mxu1 %v3108_v63 }
 0xdc4   : > { %v3143_v61 = vpop.f32.mrb[56].mxu0  ;;  %v3184_v15 = vpop.f32.mrb[56].mxu1 }
 0xdc5   : > { %v3191_v19 = vadd.f32 %v3143_v61, %v3104_v1  ;;  %v3145_v4 = vpop.f32.mrb[57].mxu0  ;;  %v3186_v0 = vpop.f32.mrb[57].mxu1  ;;  %v3193_v20 = vadd.f32 %v3184_v15, %v3106_v50 }
 0xdc6   : > { %v3192_v36 = vadd.f32 %v3145_v4, %v3105_v2  ;;  %v3147_v38 = vpop.f32.mrb[58].mxu0  ;;  %v3188_v13 = vpop.f32.mrb[58].mxu1  ;;  %v3194_v3 = vadd.f32 %v3186_v0, %v3107_v21 }
 0xdc7   : > { %v3539_v53 = vmul.f32 -1.442695, %v3191_v19  ;;  %v3148_v46 = vpop.f32.mrb[59].mxu0  ;;  %v3189_v47 = vpop.f32.mrb[59].mxu1 }
 0xdc8   : > { %v3540_v49 = vmul.f32 -1.442695, %v3192_v36  ;;  %v3541_v10 = vmul.f32 -1.442695, %v3194_v3 }
 0xdc9   : > { %3976 = vpow2.f32 %v3539_v53 }
 0xdca   : > { %3978 = vpow2.f32 %v3540_v49 }
 0xdcb   : > { %3980 = vpow2.f32 %v3541_v10 }
 0xdcc   : > { %3982 = vtanh.f32 %v3193_v20 }
 0xdd3   : > { %v3977_v30 = vpop.eup %3976 }
 0xdd4   : > { %v3979_v39 = vpop.eup %3978  ;;  %v3198_v31 = vadd.f32 1.0, %v3977_v30 }
 0xdd5   : > { %v3204_v32 = vadd.f32 1.0, %v3979_v39  ;;  %v3981_v33 = vpop.eup %3980 }
 0xdd6   : > { %3984 = vrcp.f32 %v3198_v31  ;;  %v3983_v40 = vpop.eup %3982  ;;  %v3211_v58 = vadd.f32 1.0, %v3981_v33 }
 0xdd7   : > { %3986 = vrcp.f32 %v3204_v32 }
 0xdd8   : > { %3988 = vrcp.f32 %v3211_v58 }
 0xde0   : > { %v3985_v55 = vpop.eup %3984 }
 0xde1   : > { %v3987_v56 = vpop.eup %3986  ;;  %v3215_v57 = vmul.f32 %v3985_v55, %v3983_v40 }
 0xde2   : > { %v3214_v59 = vmul.f32 %v3987_v56, %v3103_v17  ;;  %v3989_v22 = vpop.eup %3988 }
 0xde4   : > { %v3216_v60 = vadd.f32 %v3215_v57, %v3214_v59 }
 0xde6   : > { %3990 = vtanh.f32 %v3216_v60 }
 0xdf0   : > { %v3991_v23 = vpop.eup %3990 }
 0xdf1   : > { %v3218_v6 = vmul.f32 %v3991_v23, %v3989_v22 }
 0xdf3   : > { %v3227_v24 = vsel %vm3226_vm4, %v3218_v6, 0.0 }
 0xdf4   : > { %3542 = vst [vmem:[%s4455_s28 + $0x18] sm:$0x3] %v3227_v24 }
 0xdf5 PF: > { %s16_s21 = sadd.s32 1, %s4062_s21  }
 0xdf6   : > { %p13_p4 = scmp.ge.s32.totalorder %s16_s21, 4  }
 0xdf8   :  { %15 = sbr.rel (!%p13_p4) target bundleno = 1 (0x1), region = 101 }

</bundles_post_ra>
